<compile_context>
chip_gen: v6e
topology: v6e:2x2x1
jax: 0.10.0
libtpu: 0.0.40
codegen_flags: <defaults>
</compile_context>

<pallas_src>
import jax
import jax.numpy as jnp
import numpy as np
from jax.experimental import pallas as pl
from jax.experimental.pallas import tpu as pltpu

B = 16  # images per grid step (batch tile); multiple of 8 keeps slices aligned


# ----------------------------- fused kernel --------------------------------

def _fused_forward_kernel(x_ref, w1t_ref, b1_ref, sc1_ref,
                          w2s_ref, b2_ref, wfc_ref, bfc_ref, o_ref):
    f32 = jnp.float32
    bf16 = jnp.bfloat16

    # Padded input tile, rows h-major: row = hp*B + b, hp in [0,28), col p.
    xp = x_ref[0]                                            # (28B, 28) bf16

    # ---- conv1 (k=5, pad=1): one block-Toeplitz matmul, M = 24*B rows ----
    l1 = jnp.concatenate([xp[i * B:(i + 24) * B, :] for i in range(5)],
                         axis=1)                             # (24B, 140) bf16
    c1 = jnp.dot(l1, w1t_ref[...],
                 preferred_element_type=f32) + b1_ref[...]   # (24B, 384) f32

    # ---- 2x2 maxpool + relu. Rows: aligned B-row block maxes (h-major);
    #      width: lane-shift max + 0/1 column-select matmul. ----
    mr = jnp.concatenate(
        [jnp.maximum(c1[(2 * m) * B:(2 * m + 1) * B, :],
                     c1[(2 * m + 1) * B:(2 * m + 2) * B, :])
         for m in range(12)], axis=0)                        # (12B, 384)
    mc = jnp.maximum(mr[:, 0:368], mr[:, 16:384])            # (12B, 368)
    p1 = jnp.dot(mc.astype(bf16), sc1_ref[...],
                 preferred_element_type=f32)                 # (12B, 192)
    p1 = jnp.maximum(p1, 0.0).astype(bf16)                   # rows m*B + b

    # ---- conv2 (k=5, pad=1): zero-pad, then 5 accumulated row-shift matmuls
    #      (K = 5*224 splits exactly, so no 1120-lane im2col concat needed) ----
    zr = jnp.zeros((B, 192), bf16)
    q = jnp.concatenate([zr, p1, zr], axis=0)                # (14B, 192)
    zl = jnp.zeros((14 * B, 16), bf16)
    q = jnp.concatenate([zl, q, zl], axis=1)                 # (14B, 224)
    acc = jnp.zeros((10 * B, 320), f32)
    for i in range(5):
        acc = acc + jnp.dot(q[i * B:(i + 10) * B, :], w2s_ref[i],
                            preferred_element_type=f32)
    c2 = acc + b2_ref[...]                                   # (10B, 320) f32

    # ---- 2x2 maxpool + relu + fused (pool2-select . flatten . fc1 . fc2) ----
    blocks = []
    for h in range(5):
        r = jnp.maximum(c2[(2 * h) * B:(2 * h + 1) * B, :],
                        c2[(2 * h + 1) * B:(2 * h + 2) * B, :])   # (B, 320)
        r = jnp.maximum(r[:, 0:288], r[:, 32:320])                # (B, 288)
        blocks.append(jnp.maximum(r, 0.0).astype(bf16))
    flat = jnp.concatenate(blocks, axis=1)                   # (B, 1440) bf16
    # TODO(synk): Dropout2d(p=0.5) is identity at inference; no mask applied.
    z = jnp.dot(flat, wfc_ref[...],
                preferred_element_type=f32) + bfc_ref[...]   # (B, 128) f32

    # ---- log_softmax over the 10 real classes (pad columns biased to -1e9) ----
    m = jnp.max(z, axis=-1, keepdims=True)
    lse = jnp.log(jnp.sum(jnp.exp(z - m), axis=-1, keepdims=True)) + m
    o_ref[...] = z - lse


_WEIGHT_KEYS = ("w1t", "b1", "sc1", "w2s", "b2", "wfc", "bfc")


def _replicated_spec(arr):
    zeros = (0,) * arr.ndim
    return pl.BlockSpec(arr.shape, lambda n: zeros)


@jax.jit
def model_forward(prep, x):
    """x: (N, 1, 26, 26) float32 NCHW -> (N, 10) log-probabilities."""
    N = x.shape[0]
    n_pad = (-N) % B
    Np = N + n_pad
    x3 = x.reshape(N, 26, 26)
    if n_pad:
        x3 = jnp.concatenate([x3, jnp.zeros((n_pad, 26, 26), x3.dtype)], axis=0)
    # Spatial zero-pad to 28x28, cast to bf16, and repack each batch tile so
    # block g has rows h-major:  row hp*B + b, col p  ==  image g*B+b, (hp, p).
    xp = jnp.pad(x3, ((0, 0), (1, 1), (1, 1))).astype(jnp.bfloat16)
    xp = xp.reshape(Np // B, B, 28, 28).transpose(0, 2, 1, 3)
    xp = xp.reshape(Np // B, 28 * B, 28)

    weights = [prep[k] for k in _WEIGHT_KEYS]
    in_specs = [pl.BlockSpec((1, 28 * B, 28), lambda n: (n, 0, 0))]
    in_specs += [_replicated_spec(w) for w in weights]
    out = pl.pallas_call(
        _fused_forward_kernel,
        out_shape=jax.ShapeDtypeStruct((Np, 128), jnp.float32),
        grid=(Np // B,),
        in_specs=in_specs,
        out_specs=pl.BlockSpec((B, 128), lambda n: (n, 0)),
        compiler_params=pltpu.CompilerParams(
            dimension_semantics=("parallel",)),
    )(xp, *weights)
    return out[:N, :10]


# -------------------- one-time parameter preparation ------------------------

def prepare_params(params):
    """Host-side, one-time repack of PyTorch-layout params into the fused
    kernel's operands: block-Toeplitz conv matrices (conv2 split by row shift),
    the pool1 0/1 column-select matrix, and a single fused
    pool2-select/flatten/fc1/fc2 weight, all bf16 (biases f32)."""
    w1 = np.asarray(params["conv1_w"], np.float32)    # (16, 1, 5, 5)
    b1 = np.asarray(params["conv1_b"], np.float32)
    w2 = np.asarray(params["conv2_w"], np.float32)    # (32, 16, 5, 5)
    b2 = np.asarray(params["conv2_b"], np.float32)
    f1w = np.asarray(params["fc1_w"], np.float32)     # (200, 800)
    f1b = np.asarray(params["fc1_b"], np.float32)
    f2w = np.asarray(params["fc2_w"], np.float32)     # (10, 200)
    f2b = np.asarray(params["fc2_b"], np.float32)

    K, C1, C2 = 5, 16, 32

    # conv1 Toeplitz: l1[:, i*28 + p] = xpad[ho+i, p]; output lanes wo*16 + co.
    w1t = np.zeros((K * 28, 24 * C1), np.float32)
    for i in range(K):
        for j in range(K):
            for wo in range(24):
                w1t[i * 28 + wo + j, wo * C1:(wo + 1) * C1] = w1[:, 0, i, j]
    b1e = np.tile(b1, 24).reshape(1, 24 * C1)

    # pool1 width select: mc lanes = wq*16 + c (wq in [0,23)); keep even wq.
    sc1 = np.zeros((23 * C1, 12 * C1), np.float32)
    for w in range(12):
        for c in range(C1):
            sc1[(2 * w) * C1 + c, w * C1 + c] = 1.0

    # conv2, split by row shift i: lhs lanes = wp*16 + ci (padded col wp in
    # [0,14)); w2s[i][(wo+j)*16 + ci, wo*32 + co] = w2[co, ci, i, j].
    w2s = np.zeros((K, 14 * C1, 10 * C2), np.float32)
    for i in range(K):
        for j in range(K):
            for ci in range(C1):
                for wo in range(10):
                    w2s[i, (wo + j) * C1 + ci,
                        wo * C2:(wo + 1) * C2] = w2[:, ci, i, j]
    b2e = np.tile(b2, 10).reshape(1, 10 * C2)

    # Fused pool2-select + flatten + fc1 + fc2 (no nonlinearity between fc1 and
    # fc2; dropout is identity at inference).  flat index = h*288 + wq*32 + c
    # with valid pooled values at even wq=2w; torch flat index = c*25 + h*5 + w.
    wcomb = f1w.T @ f2w.T                             # (800, 10)
    bcomb = f1b @ f2w.T + f2b                         # (10,)
    wfc = np.zeros((5 * 288, 128), np.float32)
    for h in range(5):
        for w in range(5):
            for c in range(C2):
                wfc[h * 288 + (2 * w) * C2 + c, :10] = wcomb[c * 25 + h * 5 + w]
    bfc = np.full((1, 128), -1e9, np.float32)         # pad classes -> exp()==0
    bfc[0, :10] = bcomb

    bf = lambda a: jnp.asarray(a, jnp.bfloat16)
    f32 = lambda a: jnp.asarray(a, jnp.float32)
    return {"w1t": bf(w1t), "b1": f32(b1e), "sc1": bf(sc1),
            "w2s": bf(w2s), "b2": f32(b2e), "wfc": bf(wfc), "bfc": f32(bfc)}


# -------------------------- init & reference --------------------------------

def init_params(key):
    def uniform(k, shape, fan_in):
        bound = 1.0 / float(fan_in) ** 0.5
        return jax.random.uniform(k, shape, jnp.float32, -bound, bound)

    ks = jax.random.split(key, 8)
    return {
        "conv1_w": uniform(ks[0], (16, 1, 5, 5), 1 * 5 * 5),
        "conv1_b": uniform(ks[1], (16,), 1 * 5 * 5),
        "conv2_w": uniform(ks[2], (32, 16, 5, 5), 16 * 5 * 5),
        "conv2_b": uniform(ks[3], (32,), 16 * 5 * 5),
        "fc1_w": uniform(ks[4], (200, 800), 800),
        "fc1_b": uniform(ks[5], (200,), 800),
        "fc2_w": uniform(ks[6], (10, 200), 200),
        "fc2_b": uniform(ks[7], (10,), 200),
    }


@jax.jit
def reference_forward(params, x):
    def conv(y, w, b):
        y = jax.lax.conv_general_dilated(
            y, w, window_strides=(1, 1), padding=((1, 1), (1, 1)),
            dimension_numbers=("NCHW", "OIHW", "NCHW"))
        return y + b[None, :, None, None]

    def pool_relu(y):
        n, c, h, w = y.shape
        y = y.reshape(n, c, h // 2, 2, w // 2, 2).max(axis=(3, 5))
        return jnp.maximum(y, 0.0)

    y = pool_relu(conv(x, params["conv1_w"], params["conv1_b"]))
    y = pool_relu(conv(y, params["conv2_w"], params["conv2_b"]))
    y = y.reshape(y.shape[0], -1)
    y = y @ params["fc1_w"].T + params["fc1_b"]
    y = y @ params["fc2_w"].T + params["fc2_b"]
    return jax.nn.log_softmax(y, axis=-1)


# --------------------------------- main --------------------------------------

if __name__ == "__main__":
    key = jax.random.PRNGKey(0)
    pkey, xkey = jax.random.split(key)
    params = init_params(pkey)
    prep = prepare_params(params)

    # 26x26 input so that flatten size is 800 = 32*5*5, as the fc1 layer implies.
    # N=24 exercises both the batch-tile padding path and a 2-step grid.
    x = jax.random.normal(xkey, (24, 1, 26, 26), jnp.float32)

    out = model_forward(prep, x)
    jax.block_until_ready(out)
    assert out.shape == (24, 10)

    # log_softmax rows exponentiate-sum to 1.
    assert bool(jnp.all(jnp.abs(jnp.sum(jnp.exp(out), axis=1) - 1.0) < 1e-3))

    # Match the plain-XLA f32 reference (kernel uses bf16 matmul operands).
    ref = reference_forward(params, x)
    max_err = float(jnp.max(jnp.abs(out - ref)))
    assert max_err < 5e-2, f"mismatch vs reference: {max_err}"

    print("KERNEL_OK")
</pallas_src>

<mosaic_0001>
module attributes {stable_mosaic.version = 11 : i64} {
  func.func @_fused_forward_kernel(%arg0: i32, %arg1: memref<1x448x28xbf16, #tpu.memory_space<vmem>>, %arg2: memref<140x384xbf16, #tpu.memory_space<vmem>>, %arg3: memref<1x384xf32, #tpu.memory_space<vmem>>, %arg4: memref<368x192xbf16, #tpu.memory_space<vmem>>, %arg5: memref<5x224x320xbf16, #tpu.memory_space<vmem>>, %arg6: memref<1x320xf32, #tpu.memory_space<vmem>>, %arg7: memref<1440x128xbf16, #tpu.memory_space<vmem>>, %arg8: memref<1x128xf32, #tpu.memory_space<vmem>>, %arg9: memref<16x128xf32, #tpu.memory_space<vmem>>) attributes {dimension_semantics = [#tpu.dimension_semantics<parallel>], iteration_bounds = array<i64: 2>, scalar_prefetch = 0 : i64, scratch_operands = 0 : i64, tpu.core_type = #tpu.core_type<tc>, window_params = [{transform_indices = @transform_0, window_bounds = array<i64: 1, 448, 28>}, {pipeline_mode = #tpu.pipeline_mode<synchronous>, transform_indices = @transform_1, window_bounds = array<i64: 140, 384>}, {pipeline_mode = #tpu.pipeline_mode<synchronous>, transform_indices = @transform_2, window_bounds = array<i64: 1, 384>}, {pipeline_mode = #tpu.pipeline_mode<synchronous>, transform_indices = @transform_3, window_bounds = array<i64: 368, 192>}, {pipeline_mode = #tpu.pipeline_mode<synchronous>, transform_indices = @transform_4, window_bounds = array<i64: 5, 224, 320>}, {pipeline_mode = #tpu.pipeline_mode<synchronous>, transform_indices = @transform_5, window_bounds = array<i64: 1, 320>}, {pipeline_mode = #tpu.pipeline_mode<synchronous>, transform_indices = @transform_6, window_bounds = array<i64: 1440, 128>}, {pipeline_mode = #tpu.pipeline_mode<synchronous>, transform_indices = @transform_7, window_bounds = array<i64: 1, 128>}, {transform_indices = @transform_8, window_bounds = array<i64: 16, 128>}]} {
    %c0 = arith.constant 0 : index
    %c0_0 = arith.constant 0 : index
    %c0_1 = arith.constant 0 : index
    %0 = vector.load %arg1[%c0, %c0_0, %c0_1] : memref<1x448x28xbf16, #tpu.memory_space<vmem>>, vector<1x448x28xbf16>
    %1 = vector.shape_cast %0 : vector<1x448x28xbf16> to vector<448x28xbf16>
    %2 = vector.extract_strided_slice %1 {offsets = [0, 0], sizes = [384, 28], strides = [1, 1]} : vector<448x28xbf16> to vector<384x28xbf16>
    %3 = vector.extract_strided_slice %1 {offsets = [16, 0], sizes = [384, 28], strides = [1, 1]} : vector<448x28xbf16> to vector<384x28xbf16>
    %4 = vector.extract_strided_slice %1 {offsets = [32, 0], sizes = [384, 28], strides = [1, 1]} : vector<448x28xbf16> to vector<384x28xbf16>
    %5 = vector.extract_strided_slice %1 {offsets = [48, 0], sizes = [384, 28], strides = [1, 1]} : vector<448x28xbf16> to vector<384x28xbf16>
    %6 = vector.extract_strided_slice %1 {offsets = [64, 0], sizes = [384, 28], strides = [1, 1]} : vector<448x28xbf16> to vector<384x28xbf16>
    %7 = tpu.concatenate %2, %3, %4, %5, %6 in 1 : vector<384x28xbf16>, vector<384x28xbf16>, vector<384x28xbf16>, vector<384x28xbf16>, vector<384x28xbf16> -> vector<384x140xbf16>
    %c0_2 = arith.constant 0 : index
    %c0_3 = arith.constant 0 : index
    %8 = vector.load %arg2[%c0_2, %c0_3] : memref<140x384xbf16, #tpu.memory_space<vmem>>, vector<140x384xbf16>
    %cst = arith.constant dense<0.000000e+00> : vector<384x384xf32>
    %9 = tpu.matmul %7, %8, %cst {dimension_numbers = #tpu.dot_dimension_numbers<[1], [0], [0], [1], [0, 0, 1, 1], [], []>} : vector<384x140xbf16>, vector<140x384xbf16>, vector<384x384xf32> -> vector<384x384xf32>
    %c0_4 = arith.constant 0 : index
    %c0_5 = arith.constant 0 : index
    %10 = vector.load %arg3[%c0_4, %c0_5] : memref<1x384xf32, #tpu.memory_space<vmem>>, vector<1x384xf32>
    %11 = vector.broadcast %10 : vector<1x384xf32> to vector<384x384xf32>
    %12 = arith.addf %9, %11 : vector<384x384xf32>
    %13 = vector.extract_strided_slice %12 {offsets = [0, 0], sizes = [16, 384], strides = [1, 1]} : vector<384x384xf32> to vector<16x384xf32>
    %14 = vector.extract_strided_slice %12 {offsets = [16, 0], sizes = [16, 384], strides = [1, 1]} : vector<384x384xf32> to vector<16x384xf32>
    %15 = arith.maximumf %13, %14 : vector<16x384xf32>
    %16 = vector.extract_strided_slice %12 {offsets = [32, 0], sizes = [16, 384], strides = [1, 1]} : vector<384x384xf32> to vector<16x384xf32>
    %17 = vector.extract_strided_slice %12 {offsets = [48, 0], sizes = [16, 384], strides = [1, 1]} : vector<384x384xf32> to vector<16x384xf32>
    %18 = arith.maximumf %16, %17 : vector<16x384xf32>
    %19 = vector.extract_strided_slice %12 {offsets = [64, 0], sizes = [16, 384], strides = [1, 1]} : vector<384x384xf32> to vector<16x384xf32>
    %20 = vector.extract_strided_slice %12 {offsets = [80, 0], sizes = [16, 384], strides = [1, 1]} : vector<384x384xf32> to vector<16x384xf32>
    %21 = arith.maximumf %19, %20 : vector<16x384xf32>
    %22 = vector.extract_strided_slice %12 {offsets = [96, 0], sizes = [16, 384], strides = [1, 1]} : vector<384x384xf32> to vector<16x384xf32>
    %23 = vector.extract_strided_slice %12 {offsets = [112, 0], sizes = [16, 384], strides = [1, 1]} : vector<384x384xf32> to vector<16x384xf32>
    %24 = arith.maximumf %22, %23 : vector<16x384xf32>
    %25 = vector.extract_strided_slice %12 {offsets = [128, 0], sizes = [16, 384], strides = [1, 1]} : vector<384x384xf32> to vector<16x384xf32>
    %26 = vector.extract_strided_slice %12 {offsets = [144, 0], sizes = [16, 384], strides = [1, 1]} : vector<384x384xf32> to vector<16x384xf32>
    %27 = arith.maximumf %25, %26 : vector<16x384xf32>
    %28 = vector.extract_strided_slice %12 {offsets = [160, 0], sizes = [16, 384], strides = [1, 1]} : vector<384x384xf32> to vector<16x384xf32>
    %29 = vector.extract_strided_slice %12 {offsets = [176, 0], sizes = [16, 384], strides = [1, 1]} : vector<384x384xf32> to vector<16x384xf32>
    %30 = arith.maximumf %28, %29 : vector<16x384xf32>
    %31 = vector.extract_strided_slice %12 {offsets = [192, 0], sizes = [16, 384], strides = [1, 1]} : vector<384x384xf32> to vector<16x384xf32>
    %32 = vector.extract_strided_slice %12 {offsets = [208, 0], sizes = [16, 384], strides = [1, 1]} : vector<384x384xf32> to vector<16x384xf32>
    %33 = arith.maximumf %31, %32 : vector<16x384xf32>
    %34 = vector.extract_strided_slice %12 {offsets = [224, 0], sizes = [16, 384], strides = [1, 1]} : vector<384x384xf32> to vector<16x384xf32>
    %35 = vector.extract_strided_slice %12 {offsets = [240, 0], sizes = [16, 384], strides = [1, 1]} : vector<384x384xf32> to vector<16x384xf32>
    %36 = arith.maximumf %34, %35 : vector<16x384xf32>
    %37 = vector.extract_strided_slice %12 {offsets = [256, 0], sizes = [16, 384], strides = [1, 1]} : vector<384x384xf32> to vector<16x384xf32>
    %38 = vector.extract_strided_slice %12 {offsets = [272, 0], sizes = [16, 384], strides = [1, 1]} : vector<384x384xf32> to vector<16x384xf32>
    %39 = arith.maximumf %37, %38 : vector<16x384xf32>
    %40 = vector.extract_strided_slice %12 {offsets = [288, 0], sizes = [16, 384], strides = [1, 1]} : vector<384x384xf32> to vector<16x384xf32>
    %41 = vector.extract_strided_slice %12 {offsets = [304, 0], sizes = [16, 384], strides = [1, 1]} : vector<384x384xf32> to vector<16x384xf32>
    %42 = arith.maximumf %40, %41 : vector<16x384xf32>
    %43 = vector.extract_strided_slice %12 {offsets = [320, 0], sizes = [16, 384], strides = [1, 1]} : vector<384x384xf32> to vector<16x384xf32>
    %44 = vector.extract_strided_slice %12 {offsets = [336, 0], sizes = [16, 384], strides = [1, 1]} : vector<384x384xf32> to vector<16x384xf32>
    %45 = arith.maximumf %43, %44 : vector<16x384xf32>
    %46 = vector.extract_strided_slice %12 {offsets = [352, 0], sizes = [16, 384], strides = [1, 1]} : vector<384x384xf32> to vector<16x384xf32>
    %47 = vector.extract_strided_slice %12 {offsets = [368, 0], sizes = [16, 384], strides = [1, 1]} : vector<384x384xf32> to vector<16x384xf32>
    %48 = arith.maximumf %46, %47 : vector<16x384xf32>
    %49 = tpu.concatenate %15, %18, %21, %24, %27, %30, %33, %36, %39, %42, %45, %48 in 0 : vector<16x384xf32>, vector<16x384xf32>, vector<16x384xf32>, vector<16x384xf32>, vector<16x384xf32>, vector<16x384xf32>, vector<16x384xf32>, vector<16x384xf32>, vector<16x384xf32>, vector<16x384xf32>, vector<16x384xf32>, vector<16x384xf32> -> vector<192x384xf32>
    %50 = vector.extract_strided_slice %49 {offsets = [0, 0], sizes = [192, 368], strides = [1, 1]} : vector<192x384xf32> to vector<192x368xf32>
    %51 = vector.extract_strided_slice %49 {offsets = [0, 16], sizes = [192, 368], strides = [1, 1]} : vector<192x384xf32> to vector<192x368xf32>
    %52 = arith.maximumf %50, %51 : vector<192x368xf32>
    %53 = arith.truncf %52 : vector<192x368xf32> to vector<192x368xbf16>
    %c0_6 = arith.constant 0 : index
    %c0_7 = arith.constant 0 : index
    %54 = vector.load %arg4[%c0_6, %c0_7] : memref<368x192xbf16, #tpu.memory_space<vmem>>, vector<368x192xbf16>
    %cst_8 = arith.constant dense<0.000000e+00> : vector<192x192xf32>
    %55 = tpu.matmul %53, %54, %cst_8 {dimension_numbers = #tpu.dot_dimension_numbers<[1], [0], [0], [1], [0, 0, 1, 1], [], []>} : vector<192x368xbf16>, vector<368x192xbf16>, vector<192x192xf32> -> vector<192x192xf32>
    %cst_9 = arith.constant 0.000000e+00 : f32
    %56 = vector.broadcast %cst_9 : f32 to vector<192x192xf32>
    %57 = arith.maximumf %55, %56 : vector<192x192xf32>
    %58 = arith.truncf %57 : vector<192x192xf32> to vector<192x192xbf16>
    %cst_10 = arith.constant 0.000000e+00 : bf16
    %59 = vector.broadcast %cst_10 : bf16 to vector<16x192xbf16>
    %60 = tpu.concatenate %59, %58, %59 in 0 : vector<16x192xbf16>, vector<192x192xbf16>, vector<16x192xbf16> -> vector<224x192xbf16>
    %cst_11 = arith.constant 0.000000e+00 : bf16
    %61 = vector.broadcast %cst_11 : bf16 to vector<224x16xbf16>
    %62 = tpu.concatenate %61, %60, %61 in 1 : vector<224x16xbf16>, vector<224x192xbf16>, vector<224x16xbf16> -> vector<224x224xbf16>
    %cst_12 = arith.constant 0.000000e+00 : f32
    %63 = vector.broadcast %cst_12 : f32 to vector<160x320xf32>
    %64 = vector.extract_strided_slice %62 {offsets = [0, 0], sizes = [160, 224], strides = [1, 1]} : vector<224x224xbf16> to vector<160x224xbf16>
    %c0_13 = arith.constant 0 : index
    %c0_14 = arith.constant 0 : index
    %c0_15 = arith.constant 0 : index
    %65 = vector.load %arg5[%c0_13, %c0_14, %c0_15] : memref<5x224x320xbf16, #tpu.memory_space<vmem>>, vector<1x224x320xbf16>
    %66 = vector.shape_cast %65 : vector<1x224x320xbf16> to vector<224x320xbf16>
    %cst_16 = arith.constant dense<0.000000e+00> : vector<160x320xf32>
    %67 = tpu.matmul %64, %66, %cst_16 {dimension_numbers = #tpu.dot_dimension_numbers<[1], [0], [0], [1], [0, 0, 1, 1], [], []>} : vector<160x224xbf16>, vector<224x320xbf16>, vector<160x320xf32> -> vector<160x320xf32>
    %68 = arith.addf %63, %67 : vector<160x320xf32>
    %69 = vector.extract_strided_slice %62 {offsets = [16, 0], sizes = [160, 224], strides = [1, 1]} : vector<224x224xbf16> to vector<160x224xbf16>
    %c1 = arith.constant 1 : index
    %c0_17 = arith.constant 0 : index
    %c0_18 = arith.constant 0 : index
    %70 = vector.load %arg5[%c1, %c0_17, %c0_18] : memref<5x224x320xbf16, #tpu.memory_space<vmem>>, vector<1x224x320xbf16>
    %71 = vector.shape_cast %70 : vector<1x224x320xbf16> to vector<224x320xbf16>
    %cst_19 = arith.constant dense<0.000000e+00> : vector<160x320xf32>
    %72 = tpu.matmul %69, %71, %cst_19 {dimension_numbers = #tpu.dot_dimension_numbers<[1], [0], [0], [1], [0, 0, 1, 1], [], []>} : vector<160x224xbf16>, vector<224x320xbf16>, vector<160x320xf32> -> vector<160x320xf32>
    %73 = arith.addf %68, %72 : vector<160x320xf32>
    %74 = vector.extract_strided_slice %62 {offsets = [32, 0], sizes = [160, 224], strides = [1, 1]} : vector<224x224xbf16> to vector<160x224xbf16>
    %c2 = arith.constant 2 : index
    %c0_20 = arith.constant 0 : index
    %c0_21 = arith.constant 0 : index
    %75 = vector.load %arg5[%c2, %c0_20, %c0_21] : memref<5x224x320xbf16, #tpu.memory_space<vmem>>, vector<1x224x320xbf16>
    %76 = vector.shape_cast %75 : vector<1x224x320xbf16> to vector<224x320xbf16>
    %cst_22 = arith.constant dense<0.000000e+00> : vector<160x320xf32>
    %77 = tpu.matmul %74, %76, %cst_22 {dimension_numbers = #tpu.dot_dimension_numbers<[1], [0], [0], [1], [0, 0, 1, 1], [], []>} : vector<160x224xbf16>, vector<224x320xbf16>, vector<160x320xf32> -> vector<160x320xf32>
    %78 = arith.addf %73, %77 : vector<160x320xf32>
    %79 = vector.extract_strided_slice %62 {offsets = [48, 0], sizes = [160, 224], strides = [1, 1]} : vector<224x224xbf16> to vector<160x224xbf16>
    %c3 = arith.constant 3 : index
    %c0_23 = arith.constant 0 : index
    %c0_24 = arith.constant 0 : index
    %80 = vector.load %arg5[%c3, %c0_23, %c0_24] : memref<5x224x320xbf16, #tpu.memory_space<vmem>>, vector<1x224x320xbf16>
    %81 = vector.shape_cast %80 : vector<1x224x320xbf16> to vector<224x320xbf16>
    %cst_25 = arith.constant dense<0.000000e+00> : vector<160x320xf32>
    %82 = tpu.matmul %79, %81, %cst_25 {dimension_numbers = #tpu.dot_dimension_numbers<[1], [0], [0], [1], [0, 0, 1, 1], [], []>} : vector<160x224xbf16>, vector<224x320xbf16>, vector<160x320xf32> -> vector<160x320xf32>
    %83 = arith.addf %78, %82 : vector<160x320xf32>
    %84 = vector.extract_strided_slice %62 {offsets = [64, 0], sizes = [160, 224], strides = [1, 1]} : vector<224x224xbf16> to vector<160x224xbf16>
    %c4 = arith.constant 4 : index
    %c0_26 = arith.constant 0 : index
    %c0_27 = arith.constant 0 : index
    %85 = vector.load %arg5[%c4, %c0_26, %c0_27] : memref<5x224x320xbf16, #tpu.memory_space<vmem>>, vector<1x224x320xbf16>
    %86 = vector.shape_cast %85 : vector<1x224x320xbf16> to vector<224x320xbf16>
    %cst_28 = arith.constant dense<0.000000e+00> : vector<160x320xf32>
    %87 = tpu.matmul %84, %86, %cst_28 {dimension_numbers = #tpu.dot_dimension_numbers<[1], [0], [0], [1], [0, 0, 1, 1], [], []>} : vector<160x224xbf16>, vector<224x320xbf16>, vector<160x320xf32> -> vector<160x320xf32>
    %88 = arith.addf %83, %87 : vector<160x320xf32>
    %c0_29 = arith.constant 0 : index
    %c0_30 = arith.constant 0 : index
    %89 = vector.load %arg6[%c0_29, %c0_30] : memref<1x320xf32, #tpu.memory_space<vmem>>, vector<1x320xf32>
    %90 = vector.broadcast %89 : vector<1x320xf32> to vector<160x320xf32>
    %91 = arith.addf %88, %90 : vector<160x320xf32>
    %92 = vector.extract_strided_slice %91 {offsets = [0, 0], sizes = [16, 320], strides = [1, 1]} : vector<160x320xf32> to vector<16x320xf32>
    %93 = vector.extract_strided_slice %91 {offsets = [16, 0], sizes = [16, 320], strides = [1, 1]} : vector<160x320xf32> to vector<16x320xf32>
    %94 = arith.maximumf %92, %93 : vector<16x320xf32>
    %95 = vector.extract_strided_slice %94 {offsets = [0, 0], sizes = [16, 288], strides = [1, 1]} : vector<16x320xf32> to vector<16x288xf32>
    %96 = vector.extract_strided_slice %94 {offsets = [0, 32], sizes = [16, 288], strides = [1, 1]} : vector<16x320xf32> to vector<16x288xf32>
    %97 = arith.maximumf %95, %96 : vector<16x288xf32>
    %cst_31 = arith.constant 0.000000e+00 : f32
    %98 = vector.broadcast %cst_31 : f32 to vector<16x288xf32>
    %99 = arith.maximumf %97, %98 : vector<16x288xf32>
    %100 = arith.truncf %99 : vector<16x288xf32> to vector<16x288xbf16>
    %101 = vector.extract_strided_slice %91 {offsets = [32, 0], sizes = [16, 320], strides = [1, 1]} : vector<160x320xf32> to vector<16x320xf32>
    %102 = vector.extract_strided_slice %91 {offsets = [48, 0], sizes = [16, 320], strides = [1, 1]} : vector<160x320xf32> to vector<16x320xf32>
    %103 = arith.maximumf %101, %102 : vector<16x320xf32>
    %104 = vector.extract_strided_slice %103 {offsets = [0, 0], sizes = [16, 288], strides = [1, 1]} : vector<16x320xf32> to vector<16x288xf32>
    %105 = vector.extract_strided_slice %103 {offsets = [0, 32], sizes = [16, 288], strides = [1, 1]} : vector<16x320xf32> to vector<16x288xf32>
    %106 = arith.maximumf %104, %105 : vector<16x288xf32>
    %cst_32 = arith.constant 0.000000e+00 : f32
    %107 = vector.broadcast %cst_32 : f32 to vector<16x288xf32>
    %108 = arith.maximumf %106, %107 : vector<16x288xf32>
    %109 = arith.truncf %108 : vector<16x288xf32> to vector<16x288xbf16>
    %110 = vector.extract_strided_slice %91 {offsets = [64, 0], sizes = [16, 320], strides = [1, 1]} : vector<160x320xf32> to vector<16x320xf32>
    %111 = vector.extract_strided_slice %91 {offsets = [80, 0], sizes = [16, 320], strides = [1, 1]} : vector<160x320xf32> to vector<16x320xf32>
    %112 = arith.maximumf %110, %111 : vector<16x320xf32>
    %113 = vector.extract_strided_slice %112 {offsets = [0, 0], sizes = [16, 288], strides = [1, 1]} : vector<16x320xf32> to vector<16x288xf32>
    %114 = vector.extract_strided_slice %112 {offsets = [0, 32], sizes = [16, 288], strides = [1, 1]} : vector<16x320xf32> to vector<16x288xf32>
    %115 = arith.maximumf %113, %114 : vector<16x288xf32>
    %cst_33 = arith.constant 0.000000e+00 : f32
    %116 = vector.broadcast %cst_33 : f32 to vector<16x288xf32>
    %117 = arith.maximumf %115, %116 : vector<16x288xf32>
    %118 = arith.truncf %117 : vector<16x288xf32> to vector<16x288xbf16>
    %119 = vector.extract_strided_slice %91 {offsets = [96, 0], sizes = [16, 320], strides = [1, 1]} : vector<160x320xf32> to vector<16x320xf32>
    %120 = vector.extract_strided_slice %91 {offsets = [112, 0], sizes = [16, 320], strides = [1, 1]} : vector<160x320xf32> to vector<16x320xf32>
    %121 = arith.maximumf %119, %120 : vector<16x320xf32>
    %122 = vector.extract_strided_slice %121 {offsets = [0, 0], sizes = [16, 288], strides = [1, 1]} : vector<16x320xf32> to vector<16x288xf32>
    %123 = vector.extract_strided_slice %121 {offsets = [0, 32], sizes = [16, 288], strides = [1, 1]} : vector<16x320xf32> to vector<16x288xf32>
    %124 = arith.maximumf %122, %123 : vector<16x288xf32>
    %cst_34 = arith.constant 0.000000e+00 : f32
    %125 = vector.broadcast %cst_34 : f32 to vector<16x288xf32>
    %126 = arith.maximumf %124, %125 : vector<16x288xf32>
    %127 = arith.truncf %126 : vector<16x288xf32> to vector<16x288xbf16>
    %128 = vector.extract_strided_slice %91 {offsets = [128, 0], sizes = [16, 320], strides = [1, 1]} : vector<160x320xf32> to vector<16x320xf32>
    %129 = vector.extract_strided_slice %91 {offsets = [144, 0], sizes = [16, 320], strides = [1, 1]} : vector<160x320xf32> to vector<16x320xf32>
    %130 = arith.maximumf %128, %129 : vector<16x320xf32>
    %131 = vector.extract_strided_slice %130 {offsets = [0, 0], sizes = [16, 288], strides = [1, 1]} : vector<16x320xf32> to vector<16x288xf32>
    %132 = vector.extract_strided_slice %130 {offsets = [0, 32], sizes = [16, 288], strides = [1, 1]} : vector<16x320xf32> to vector<16x288xf32>
    %133 = arith.maximumf %131, %132 : vector<16x288xf32>
    %cst_35 = arith.constant 0.000000e+00 : f32
    %134 = vector.broadcast %cst_35 : f32 to vector<16x288xf32>
    %135 = arith.maximumf %133, %134 : vector<16x288xf32>
    %136 = arith.truncf %135 : vector<16x288xf32> to vector<16x288xbf16>
    %137 = tpu.concatenate %100, %109, %118, %127, %136 in 1 : vector<16x288xbf16>, vector<16x288xbf16>, vector<16x288xbf16>, vector<16x288xbf16>, vector<16x288xbf16> -> vector<16x1440xbf16>
    %c0_36 = arith.constant 0 : index
    %c0_37 = arith.constant 0 : index
    %138 = vector.load %arg7[%c0_36, %c0_37] : memref<1440x128xbf16, #tpu.memory_space<vmem>>, vector<1440x128xbf16>
    %cst_38 = arith.constant dense<0.000000e+00> : vector<16x128xf32>
    %139 = tpu.matmul %137, %138, %cst_38 {dimension_numbers = #tpu.dot_dimension_numbers<[1], [0], [0], [1], [0, 0, 1, 1], [], []>} : vector<16x1440xbf16>, vector<1440x128xbf16>, vector<16x128xf32> -> vector<16x128xf32>
    %c0_39 = arith.constant 0 : index
    %c0_40 = arith.constant 0 : index
    %140 = vector.load %arg8[%c0_39, %c0_40] : memref<1x128xf32, #tpu.memory_space<vmem>>, vector<1x128xf32>
    %141 = vector.broadcast %140 : vector<1x128xf32> to vector<16x128xf32>
    %142 = arith.addf %139, %141 : vector<16x128xf32>
    %cst_41 = arith.constant dense<0xFF800000> : vector<16xf32>
    %143 = vector.multi_reduction <maximumf>, %142, %cst_41 [1] : vector<16x128xf32> to vector<16xf32>
    %144 = vector.shape_cast %143 : vector<16xf32> to vector<16x1xf32>
    %145 = vector.broadcast %144 : vector<16x1xf32> to vector<16x128xf32>
    %146 = arith.subf %142, %145 : vector<16x128xf32>
    %147 = math.exp %146 : vector<16x128xf32>
    %cst_42 = arith.constant dense<0.000000e+00> : vector<16xf32>
    %148 = vector.multi_reduction <add>, %147, %cst_42 [1] : vector<16x128xf32> to vector<16xf32>
    %149 = vector.shape_cast %148 : vector<16xf32> to vector<16x1xf32>
    %150 = math.log %149 : vector<16x1xf32>
    %151 = arith.addf %150, %144 : vector<16x1xf32>
    %152 = vector.broadcast %151 : vector<16x1xf32> to vector<16x128xf32>
    %153 = arith.subf %142, %152 : vector<16x128xf32>
    %c0_43 = arith.constant 0 : index
    %c0_44 = arith.constant 0 : index
    %154 = vector.load %arg9[%c0_43, %c0_44] : memref<16x128xf32, #tpu.memory_space<vmem>>, vector<16x128xf32>
    tpu.vector_store %arg9[%c0_43, %c0_44], %153 {strides = array<i32>} : memref<16x128xf32, #tpu.memory_space<vmem>>, vector<16x128xf32>,
    return
  }
  func.func @transform_0(%arg0: i32) -> (i32, i32, i32) {
    %c0_i32 = arith.constant 0 : i32
    %c0_i32_0 = arith.constant 0 : i32
    %c0_i32_1 = arith.constant 0 : i32
    return %arg0, %c0_i32, %c0_i32_0 : i32, i32, i32
  }
  func.func @transform_1(%arg0: i32) -> (i32, i32) {
    %c0_i32 = arith.constant 0 : i32
    %c0_i32_0 = arith.constant 0 : i32
    %c0_i32_1 = arith.constant 0 : i32
    return %c0_i32, %c0_i32_0 : i32, i32
  }
  func.func @transform_2(%arg0: i32) -> (i32, i32) {
    %c0_i32 = arith.constant 0 : i32
    %c0_i32_0 = arith.constant 0 : i32
    %c0_i32_1 = arith.constant 0 : i32
    return %c0_i32, %c0_i32_0 : i32, i32
  }
  func.func @transform_3(%arg0: i32) -> (i32, i32) {
    %c0_i32 = arith.constant 0 : i32
    %c0_i32_0 = arith.constant 0 : i32
    %c0_i32_1 = arith.constant 0 : i32
    return %c0_i32, %c0_i32_0 : i32, i32
  }
  func.func @transform_4(%arg0: i32) -> (i32, i32, i32) {
    %c0_i32 = arith.constant 0 : i32
    %c0_i32_0 = arith.constant 0 : i32
    %c0_i32_1 = arith.constant 0 : i32
    %c0_i32_2 = arith.constant 0 : i32
    return %c0_i32, %c0_i32_0, %c0_i32_1 : i32, i32, i32
  }
  func.func @transform_5(%arg0: i32) -> (i32, i32) {
    %c0_i32 = arith.constant 0 : i32
    %c0_i32_0 = arith.constant 0 : i32
    %c0_i32_1 = arith.constant 0 : i32
    return %c0_i32, %c0_i32_0 : i32, i32
  }
  func.func @transform_6(%arg0: i32) -> (i32, i32) {
    %c0_i32 = arith.constant 0 : i32
    %c0_i32_0 = arith.constant 0 : i32
    %c0_i32_1 = arith.constant 0 : i32
    return %c0_i32, %c0_i32_0 : i32, i32
  }
  func.func @transform_7(%arg0: i32) -> (i32, i32) {
    %c0_i32 = arith.constant 0 : i32
    %c0_i32_0 = arith.constant 0 : i32
    %c0_i32_1 = arith.constant 0 : i32
    return %c0_i32, %c0_i32_0 : i32, i32
  }
  func.func @transform_8(%arg0: i32) -> (i32, i32) {
    %c0_i32 = arith.constant 0 : i32
    %c0_i32_0 = arith.constant 0 : i32
    return %arg0, %c0_i32 : i32, i32
  }
}

</mosaic_0001>

<bundles_post_ra>
// kernel: model_forward.1
= control target key start
LH: loop header
LB: loop body
LE: loop exit
PB: predicated region body
PF: predicated region fallthrough
CT: control target
= control target key end

     0   :  { %s9299_s27 = smov 0   ;;  %s13018_s0 = inlined_call_operand.vmem [shape: bf16[2,448,28], index: 0, kind: input, shape index: {}]   ;;  %s13019_s1 = inlined_call_operand.vmem [shape: bf16[140,384], index: 1, kind: input, shape index: {}]   ;;  %s13020_s2 = inlined_call_operand.vmem [shape: f32[1,384], index: 2, kind: input, shape index: {}]   ;;  %s13021_s3 = inlined_call_operand.vmem [shape: bf16[368,192], index: 3, kind: input, shape index: {}]   ;;  %s13022_s4 = inlined_call_operand.vmem [shape: bf16[5,224,320], index: 4, kind: input, shape index: {}]   ;;  %s13023_s5 = inlined_call_operand.vmem [shape: f32[1,320], index: 5, kind: input, shape index: {}]   ;;  %s13024_s6 = inlined_call_operand.vmem [shape: bf16[1440,128], index: 6, kind: input, shape index: {}]   ;;  %s13025_s7 = inlined_call_operand.vmem [shape: f32[1,128], index: 7, kind: input, shape index: {}]   ;;  %s13026_s8 = inlined_call_operand.vmem [shape: f32[32,128], index: 8, kind: output, shape index: {}]  }
   0x1 LB: > { %s9305_s28 = sadd.s32 4294967295, %s9243_s27   ;;  %p7329_p0 = scmp.ge.s32.totalorder %s9243_s27, 1  ;;  %s9243_s27 = sphi %s9299_s27, %s18_s27  }
   0x2   : > { %p262_p1 = scmp.lt.s32.totalorder %s9243_s27, 3 }
   0x4   : > { %p263_p2 = pnand %p7329_p0, %p262_p1 }
   0x6   : > { %266 = sbr.rel (%p263_p2) target bundleno = 2252 (0x8cc), region = 52 }
   0xb   : > { %p296_p3 = scmp.lt.s32.totalorder %s9305_s28, 1  ;;  %v8720_v0 = vld [vmem:[%s13019_s1 + $0xac] ss:$12 sps:$4 sm:$0xff]   ;;  %v8722_v1 = vld [vmem:[%s13019_s1 + $0xa8] ss:$12 sps:$4 sm:$0xff]   ;;  %v13030_v2 = vmov 0  }
   0xc   : > { %1193 = vmatprep.subr.bf16.mxu0 %v8720_v0  ;;  %1466 = vmatprep.subr.bf16.mxu1 %v13030_v2  ;;  %v8723_v3 = vld [vmem:[%s13019_s1 + $0xb0] ss:$12 sps:$4 sm:$0xff]   ;;  %v8724_v4 = vld [vmem:[%s13019_s1 + $0x94] ss:$12 sps:$4 sm:$0xff]   ;;  %v8727_v6 = vld [vmem:[%s13019_s1 + $0x98] ss:$12 sps:$4 sm:$0xff]  }
   0xd   : > { %s297_s11 = scalar_select %p296_p3, %s9305_s28, 1  ;;  %1194 = vmatpush1.bf16.msra.mxu0 %v8722_v1  ;;  %v8726_v5 = vld [vmem:[%s13019_s1 + $0x90] ss:$12 sps:$4 sm:$0xff]   ;;  %1467 = vmatpush1.bf16.msra.mxu1 %v8723_v3  ;;  %v8731_v8 = vld [vmem:[%s13019_s1 + $0x78] ss:$12 sps:$4 sm:$0xff]   ;;  %vm1183_vm0 = vcmask 1045504  }
   0xe   : > { %1195 = vmatprep.subr.bf16.mxu0 %v8724_v4  ;;  %v8729_v7 = vld [vmem:[%s13019_s1 + $0x7c] ss:$12 sps:$4 sm:$0xff]   ;;  %1468 = vmatprep.subr.bf16.mxu1 %v13030_v2  ;;  %s9246_s30 = smov 28   ;;  %s9247_s9 = smov 84   ;;  %v8732_v14 = vld [vmem:[%s13019_s1 + $0x80] ss:$12 sps:$4 sm:$0xff]  }
   0xf   : > { %s8433_s16 = smul.u32 224, %s297_s11  ;;  %s9248_s10 = smov 56   ;;  %v8733_v15 = vld [vmem:[%s13019_s1 + $0x64] ss:$12 sps:$4 sm:$0xff]   ;;  %v8735_v16 = vld [vmem:[%s13019_s1 + $0x60] ss:$12 sps:$4 sm:$0xff]  }
  0x10   : > { %s9249_s11 = smov 112   ;;  %v8736_v17 = vld [vmem:[%s13019_s1 + $0x68] ss:$12 sps:$4 sm:$0xff]   ;;  %v8738_v19 = vld [vmem:[%s13019_s1 + $0x4c] ss:$12 sps:$4 sm:$0xff]   ;;  %vm696_vm1 = vcmask 228352  }
  0x11   : > { %s9336_s25 = scalar_lea.vmem %s13018_s0, %s8433_s16  ;;  %1196 = vmatpush1.bf16.msra.mxu0 %v8726_v5  ;;  %1469 = vmatpush1.bf16.msra.mxu1 %v8727_v6  ;;  %v8740_v20 = vld [vmem:[%s13019_s1 + $0x48] ss:$12 sps:$4 sm:$0xff]   ;;  %v8741_v21 = vld [vmem:[%s13019_s1 + $0x50] ss:$12 sps:$4 sm:$0xff]   ;;  %v8745_v24 = vld [vmem:[%s13019_s1 + $0x38] ss:$12 sps:$4 sm:$0xff]  }
  0x12   : > { %v9343_v9 = vld [vmem:[%s9336_s25 + $0x8] sm:$0xff]   ;;  %v8707_v10 = vld [vmem:[%s9336_s25 + $0x18] sm:$0xff]   ;;  %1197 = vmatprep.subr.bf16.mxu0 %v8729_v7  ;;  %v8708_v11 = vld [vmem:[%s9336_s25 + $0x10] sm:$0xff]   ;;  %1470 = vmatprep.subr.bf16.mxu1 %v13030_v2  ;;  %vm769_vm2 = vcmask 457728   ;;  %vm1134_vm3 = vcmask 97280   ;;  %vm818_vm4 = vcmask 687104  }
  0x13   : > { %489 = vrot.lane.b32.xlu0 %v9343_v9, %s9246_s30  ;;  %595 = vrot.lane.b32.xlu1 %v8707_v10, %s9247_s9  ;;  %v8709_v12 = vld [vmem:[%s9336_s25 + $0x20] sm:$0xff]   ;;  %v8710_v13 = vld [vmem:[%s9336_s25 + $0x28] sm:$0xff]   ;;  %vm867_vm5 = vcmask 916480   ;;  %vm2972_vm6 = vcmask 130048   ;;  %vm3026_vm7 = vcmask 654336   ;;  %vm3389_vm8 = vcmask 785408  }
  0x14   : > { %v8711_v18 = vld [vmem:[%s9336_s25 + $0x30] sm:$0xff]   ;;  %v8747_v25 = vld [vmem:[%s13019_s1 + $0x1c] ss:$12 sps:$4 sm:$0xff]   ;;  %v8749_v27 = vld [vmem:[%s13019_s1 + $0x18] ss:$12 sps:$4 sm:$0xff]   ;;  %s9251_s23 = smov 96  }
  0x15   : > { %1198 = vmatpush1.bf16.msra.mxu0 %v8731_v8  ;;  %1471 = vmatpush1.bf16.msra.mxu1 %v8732_v14  ;;  %v8742_v22 = vld [vmem:[%s13019_s1 + $0x34] ss:$12 sps:$4 sm:$0xff]   ;;  %v8744_v23 = vld [vmem:[%s13019_s1 + $0x30] ss:$12 sps:$4 sm:$0xff]   ;;  %v8714_v38 = vld [vmem:[%s9336_s25 + $0x48] sm:$0xff]   ;;  %s9252_s19 = smov 32  }
  0x16   : > { %1199 = vmatprep.subr.bf16.mxu0 %v8733_v15  ;;  %1472 = vmatprep.subr.bf16.mxu1 %v13030_v2  ;;  %v8712_v26 = vld [vmem:[%s9336_s25 + $0x38] sm:$0xff]   ;;  %v8750_v28 = vld [vmem:[%s13019_s1 + $0x20] ss:$12 sps:$4 sm:$0xff]   ;;  %v8751_v29 = vld [vmem:[%s13019_s1 + $0x4] ss:$12 sps:$4 sm:$0xff]   ;;  %vm6224_vm10 = vcmask 261120  }
  0x17   : > { %542 = vrot.lane.b32.xlu0 %v8708_v11, %s9248_s10  ;;  %648 = vrot.lane.b32.xlu1 %v8709_v12, %s9249_s11  ;;  %v8754_v30 = vld [vmem:[%s13019_s1] ss:$12 sps:$4 sm:$0xff]   ;;  %v8755_v31 = vld [vmem:[%s13019_s1 + $0x8] ss:$12 sps:$4 sm:$0xff]   ;;  %vm10573_vm9 = vmneg %vm2972_vm6  ;;  %vm6237_vm11 = vcmask 523264   ;;  %s7331_s16 = sshll.u32 %s9305_s28, 1 }
  0x18   : > { %v8757_v32 = vld [vmem:[%s13019_s1 + $0xc4] ss:$12 sps:$4 sm:$0x3f]   ;;  %v8759_v33 = vld [vmem:[%s13019_s1 + $0xc0] ss:$12 sps:$4 sm:$0x3f]  }
  0x19   : > { %1200 = vmatpush1.bf16.msra.mxu0 %v8735_v16  ;;  %1473 = vmatpush1.bf16.msra.mxu1 %v8736_v17  ;;  %v8760_v34 = vld [vmem:[%s13019_s1 + $0xc8] ss:$12 sps:$4 sm:$0x3f]   ;;  %v8713_v35 = vld [vmem:[%s9336_s25 + $0x40] sm:$0xff]   ;;  %v1185_v36 = vsel %vm1183_vm0, %v8759_v33, 0  ;;  %v8716_v40 = vld [vmem:[%s9336_s25 + $0x58] sm:$0xff]  }
  0x1a   : > { %1201 = vmatprep.subr.bf16.mxu0 %v8738_v19  ;;  %1474 = vmatprep.subr.bf16.mxu1 %v13030_v2  ;;  %v1191_v37 = vsel %vm1183_vm0, %v8760_v34, 0  ;;  %v8715_v39 = vld [vmem:[%s9336_s25 + $0x50] sm:$0xff]   ;;  %v8717_v41 = vld [vmem:[%s9336_s25 + $0x60] sm:$0xff]   ;;  %v8718_v42 = vld [vmem:[%s9336_s25 + $0x68] sm:$0xff]   ;;  %p302_p4 = scmp.lt.s32.totalorder %s7331_s16, 3 }
  0x1b   : > { %491 = vrot.lane.b32.xlu0 %v8708_v11, %s9246_s30  ;;  %544 = vrot.lane.b32.xlu1 %v8707_v10, %s9248_s10  ;;  %v8719_v43 = vld [vmem:[%s9336_s25 + $0x70] sm:$0xff]   ;;  %v8728_v44 = vld [vmem:[%s9336_s25 + $0x78] sm:$0xff]  }
  0x1c   : > { %v8737_v45 = vld [vmem:[%s9336_s25 + $0x80] sm:$0xff]   ;;  %v8746_v46 = vld [vmem:[%s9336_s25 + $0x88] sm:$0xff]   ;;  %v8756_v47 = vld [vmem:[%s9336_s25 + $0x90] sm:$0xff]   ;;  %s13298_s16 = smov (!%p302_p4, %s7331_s16), 3 }
  0x1d   : > { %1202 = vmatpush1.bf16.msra.mxu0 %v8740_v20  ;;  %1475 = vmatpush1.bf16.msra.mxu1 %v8741_v21  ;;  %v8753_v48 = vld [vmem:[%s9336_s25] sm:$0xff]   ;;  %v8761_v55 = vld [vmem:[%s9336_s25 + $0x98] sm:$0xff]   ;;  %v9217_v5 = vld [vmem:[%s9336_s25 + $0x10] sm:$0xff]   ;;  %s7332_s17 = sshll.u32 %s13298_s16, 3 }
  0x1e   : > { %1203 = vmatprep.subr.bf16.mxu0 %v8742_v22  ;;  %1476 = vmatprep.subr.bf16.mxu1 %v13030_v2  ;;  %v8762_v1 = vld [vmem:[%s9336_s25 + $0xa0] sm:$0xff]   ;;  %v9218_v15 = vld [vmem:[%s9336_s25 + $0x18] sm:$0xff]   ;;  %v9528_v22 = vld [vmem:[%s9336_s25 + $0xb0] sm:$0xff]  }
  0x1f   : > { %597 = vrot.lane.b32.xlu0 %v8709_v12, %s9247_s9  ;;  %650 = vrot.lane.b32.xlu1 %v8710_v13, %s9249_s11 }
  0x21   : > { %1204 = vmatpush1.bf16.msra.mxu0 %v8744_v23  ;;  %1477 = vmatpush1.bf16.msra.mxu1 %v8745_v24 }
  0x22   : > { %1205 = vmatprep.subr.bf16.mxu0 %v8747_v25  ;;  %1478 = vmatprep.subr.bf16.mxu1 %v13030_v2  ;;  %v9219_v25 = vld [vmem:[%s9336_s25 + $0x20] sm:$0xff]  }
  0x23   : > { %493 = vrot.lane.b32.xlu0 %v8707_v10, %s9246_s30  ;;  %546 = vrot.lane.b32.xlu1 %v8709_v12, %s9248_s10 }
  0x25   : > { %1206 = vmatpush1.bf16.msra.mxu0 %v8749_v27  ;;  %1479 = vmatpush1.bf16.msra.mxu1 %v8750_v28 }
  0x26   : > { %1207 = vmatprep.subr.bf16.mxu0 %v8751_v29  ;;  %1480 = vmatprep.subr.bf16.mxu1 %v13030_v2 }
  0x27   : > { %599 = vrot.lane.b32.xlu0 %v8710_v13, %s9247_s9  ;;  %652 = vrot.lane.b32.xlu1 %v8711_v18, %s9249_s11 }
  0x29   : > { %1208 = vmatpush1.bf16.msra.mxu0 %v8754_v30  ;;  %1481 = vmatpush1.bf16.msra.mxu1 %v8755_v31 }
  0x2a   : > { %7388 = vmatprep.subr.msk.bf16.mxu0 %vm1183_vm0, %v8757_v32  ;;  %1496 = vmatprep.subr.bf16.mxu1 %v13030_v2  ;;  %v9543_v32 = vld [vmem:[%s9336_s25 + $0xb8] sm:$0xff]  }
  0x2b   : > { %495 = vrot.lane.b32.xlu0 %v8709_v12, %s9246_s30  ;;  %548 = vrot.lane.b32.xlu1 %v8710_v13, %s9248_s10  ;;  %v8763_v12 = vld [vmem:[%s9336_s25 + $0xa8] sm:$0xff]  }
  0x2d   : > { %1224 = vmatpush2.bf16.msra.mxu0 %v1185_v36  ;;  %1497 = vmatpush2.bf16.msra.mxu1 %v1191_v37 }
  0x2f   : > { %601 = vrot.lane.b32.xlu0 %v8711_v18, %s9247_s9  ;;  %654 = vrot.lane.b32.xlu1 %v8712_v26, %s9249_s11 }
  0x33   : > { %497 = vrot.lane.b32.xlu0 %v8710_v13, %s9246_s30  ;;  %550 = vrot.lane.b32.xlu1 %v8711_v18, %s9248_s10 }
  0x37   : > { %603 = vrot.lane.b32.xlu0 %v8712_v26, %s9247_s9  ;;  %656 = vrot.lane.b32.xlu1 %v8713_v35, %s9249_s11 }
  0x3b   : > { %499 = vrot.lane.b32.xlu0 %v8711_v18, %s9246_s30  ;;  %552 = vrot.lane.b32.xlu1 %v8712_v26, %s9248_s10 }
  0x3f   : > { %605 = vrot.lane.b32.xlu0 %v8713_v35, %s9247_s9  ;;  %658 = vrot.lane.b32.xlu1 %v8714_v38, %s9249_s11 }
  0x43   : > { %501 = vrot.lane.b32.xlu0 %v8712_v26, %s9246_s30  ;;  %554 = vrot.lane.b32.xlu1 %v8713_v35, %s9248_s10 }
  0x47   : > { %607 = vrot.lane.b32.xlu0 %v8714_v38, %s9247_s9  ;;  %660 = vrot.lane.b32.xlu1 %v8715_v39, %s9249_s11 }
  0x4b   : > { %503 = vrot.lane.b32.xlu0 %v8713_v35, %s9246_s30  ;;  %556 = vrot.lane.b32.xlu1 %v8714_v38, %s9248_s10  ;;  %v9220_v35 = vld [vmem:[%s9336_s25 + $0x28] sm:$0xff]  }
  0x4f   : > { %609 = vrot.lane.b32.xlu0 %v8715_v39, %s9247_s9  ;;  %662 = vrot.lane.b32.xlu1 %v8716_v40, %s9249_s11 }
  0x53   : > { %505 = vrot.lane.b32.xlu0 %v8714_v38, %s9246_s30  ;;  %558 = vrot.lane.b32.xlu1 %v8715_v39, %s9248_s10 }
  0x57   : > { %611 = vrot.lane.b32.xlu0 %v8716_v40, %s9247_s9  ;;  %664 = vrot.lane.b32.xlu1 %v8717_v41, %s9249_s11 }
  0x5b   : > { %507 = vrot.lane.b32.xlu0 %v8715_v39, %s9246_s30  ;;  %560 = vrot.lane.b32.xlu1 %v8716_v40, %s9248_s10 }
  0x5f   : > { %613 = vrot.lane.b32.xlu0 %v8717_v41, %s9247_s9  ;;  %666 = vrot.lane.b32.xlu1 %v8718_v42, %s9249_s11 }
  0x63   : > { %509 = vrot.lane.b32.xlu0 %v8716_v40, %s9246_s30  ;;  %562 = vrot.lane.b32.xlu1 %v8717_v41, %s9248_s10 }
  0x67   : > { %615 = vrot.lane.b32.xlu0 %v8718_v42, %s9247_s9  ;;  %668 = vrot.lane.b32.xlu1 %v8719_v43, %s9249_s11 }
  0x6b   : > { %511 = vrot.lane.b32.xlu0 %v8717_v41, %s9246_s30  ;;  %564 = vrot.lane.b32.xlu1 %v8718_v42, %s9248_s10 }
  0x6f   : > { %617 = vrot.lane.b32.xlu0 %v8719_v43, %s9247_s9  ;;  %670 = vrot.lane.b32.xlu1 %v8728_v44, %s9249_s11 }
  0x73   : > { %513 = vrot.lane.b32.xlu0 %v8718_v42, %s9246_s30  ;;  %566 = vrot.lane.b32.xlu1 %v8719_v43, %s9248_s10  ;;  %v8766_v42 = vld [vmem:[%s9336_s25 + $0xc0] sm:$0xff]  }
  0x77   : > { %619 = vrot.lane.b32.xlu0 %v8728_v44, %s9247_s9  ;;  %672 = vrot.lane.b32.xlu1 %v8737_v45, %s9249_s11 }
  0x7b   : > { %515 = vrot.lane.b32.xlu0 %v8719_v43, %s9246_s30  ;;  %568 = vrot.lane.b32.xlu1 %v8728_v44, %s9248_s10 }
  0x7f   : > { %621 = vrot.lane.b32.xlu0 %v8737_v45, %s9247_s9  ;;  %674 = vrot.lane.b32.xlu1 %v8746_v46, %s9249_s11 }
  0x83   : > { %517 = vrot.lane.b32.xlu0 %v8728_v44, %s9246_s30  ;;  %570 = vrot.lane.b32.xlu1 %v8737_v45, %s9248_s10 }
  0x85   : > { %v490_v49 = vpop.permute.xlu0 %489  ;;  %v596_v50 = vpop.permute.xlu1 %595 }
  0x86   : > { %v699_v51 = vsel %vm696_vm1, %v8753_v48, %v490_v49 }
  0x87   : > { %623 = vrot.lane.b32.xlu0 %v8746_v46, %s9247_s9  ;;  %676 = vrot.lane.b32.xlu1 %v8756_v47, %s9249_s11 }
  0x89   : > { %v543_v52 = vpop.permute.xlu0 %542  ;;  %v649_v54 = vpop.permute.xlu1 %648 }
  0x8a   : > { %v771_v53 = vsel %vm769_vm2, %v699_v51, %v543_v52  ;;  %7389 = vmatprep.mubr.msk.bf16.mxu0 %vm1134_vm3, %v649_v54  ;;  %7413 = vmatprep.mubr.msk.bf16.mxu1 %vm1134_vm3, %v649_v54  ;;  %v8767_v52 = vld [vmem:[%s9336_s25 + $0xc8] sm:$0xff]  }
  0x8b   : > { %519 = vrot.lane.b32.xlu0 %v8737_v45, %s9246_s30  ;;  %v820_v56 = vsel %vm818_vm4, %v771_v53, %v596_v50  ;;  %572 = vrot.lane.b32.xlu1 %v8746_v46, %s9248_s10  ;;  %v9221_v45 = vld [vmem:[%s9336_s25 + $0x30] sm:$0xff]  }
  0x8c   : > { %v869_v57 = vsel %vm867_vm5, %v820_v56, %v649_v54 }
  0x8d   : > { %v492_v58 = vpop.permute.xlu0 %491  ;;  %1226 = vmatmul.mubr.bf16.vlgmr.msra.gmra.mxu0 %v869_v57  ;;  %1499 = vmatmul.mubr.bf16.vlgmr.msra.gmra.mxu1 %v869_v57  ;;  %v545_v60 = vpop.permute.xlu1 %544 }
  0x8e   : > { %v702_v59 = vsel %vm696_vm1, %v9343_v9, %v492_v58 }
  0x8f   : > { %v773_v61 = vsel %vm769_vm2, %v702_v59, %v545_v60  ;;  %625 = vrot.lane.b32.xlu0 %v8756_v47, %s9247_s9  ;;  %678 = vrot.lane.b32.xlu1 %v8761_v55, %s9249_s11 }
  0x91   : > { %v598_v62 = vpop.permute.xlu0 %597  ;;  %v651_v0 = vpop.permute.xlu1 %650 }
  0x92   : > { %v822_v63 = vsel %vm818_vm4, %v773_v61, %v598_v62  ;;  %7390 = vmatprep.mubr.msk.bf16.mxu0 %vm1134_vm3, %v651_v0  ;;  %7414 = vmatprep.mubr.msk.bf16.mxu1 %vm1134_vm3, %v651_v0  ;;  %v8768_v62 = vld [vmem:[%s9336_s25 + $0xd0] sm:$0xff]  }
  0x93   : > { %521 = vrot.lane.b32.xlu0 %v8746_v46, %s9246_s30  ;;  %v872_v3 = vsel %vm867_vm5, %v822_v63, %v651_v0  ;;  %574 = vrot.lane.b32.xlu1 %v8756_v47, %s9248_s10 }
  0x95   : > { %v494_v4 = vpop.permute.xlu0 %493  ;;  %1236 = vmatmul.mubr.bf16.gmra.mxu0 %v872_v3  ;;  %1507 = vmatmul.mubr.bf16.gmra.mxu1 %v872_v3  ;;  %v547_v7 = vpop.permute.xlu1 %546 }
  0x96   : > { %v705_v6 = vsel %vm696_vm1, %v9217_v5, %v494_v4 }
  0x97   : > { %v775_v8 = vsel %vm769_vm2, %v705_v6, %v547_v7  ;;  %627 = vrot.lane.b32.xlu0 %v8761_v55, %s9247_s9  ;;  %680 = vrot.lane.b32.xlu1 %v8762_v1, %s9249_s11 }
  0x99   : > { %v600_v9 = vpop.permute.xlu0 %599  ;;  %v653_v11 = vpop.permute.xlu1 %652 }
  0x9a   : > { %v824_v10 = vsel %vm818_vm4, %v775_v8, %v600_v9  ;;  %7391 = vmatprep.mubr.msk.bf16.mxu0 %vm1134_vm3, %v653_v11  ;;  %7415 = vmatprep.mubr.msk.bf16.mxu1 %vm1134_vm3, %v653_v11  ;;  %v8769_v9 = vld [vmem:[%s9336_s25 + $0xd8] sm:$0xff]  }
  0x9b   : > { %523 = vrot.lane.b32.xlu0 %v8756_v47, %s9246_s30  ;;  %v875_v13 = vsel %vm867_vm5, %v824_v10, %v653_v11  ;;  %576 = vrot.lane.b32.xlu1 %v8761_v55, %s9248_s10 }
  0x9d   : > { %v496_v14 = vpop.permute.xlu0 %495  ;;  %1246 = vmatmul.mubr.bf16.gmra.mxu0 %v875_v13  ;;  %1515 = vmatmul.mubr.bf16.gmra.mxu1 %v875_v13  ;;  %v549_v17 = vpop.permute.xlu1 %548 }
  0x9e   : > { %v708_v16 = vsel %vm696_vm1, %v9218_v15, %v496_v14 }
  0x9f   : > { %v777_v18 = vsel %vm769_vm2, %v708_v16, %v549_v17  ;;  %629 = vrot.lane.b32.xlu0 %v8762_v1, %s9247_s9  ;;  %682 = vrot.lane.b32.xlu1 %v8763_v12, %s9249_s11 }
  0xa1   : > { %v602_v19 = vpop.permute.xlu0 %601  ;;  %v655_v21 = vpop.permute.xlu1 %654 }
  0xa2   : > { %v826_v20 = vsel %vm818_vm4, %v777_v18, %v602_v19  ;;  %7392 = vmatprep.mubr.msk.bf16.mxu0 %vm1134_vm3, %v655_v21  ;;  %7416 = vmatprep.mubr.msk.bf16.mxu1 %vm1134_vm3, %v655_v21 }
  0xa3   : > { %525 = vrot.lane.b32.xlu0 %v8761_v55, %s9246_s30  ;;  %v878_v23 = vsel %vm867_vm5, %v826_v20, %v655_v21  ;;  %578 = vrot.lane.b32.xlu1 %v8762_v1, %s9248_s10  ;;  %v9222_v55 = vld [vmem:[%s9336_s25 + $0x38] sm:$0xff]   ;;  %v9225_v21 = vld [vmem:[%s9336_s25 + $0x50] sm:$0xff]  }
  0xa5   : > { %v498_v24 = vpop.permute.xlu0 %497  ;;  %1256 = vmatmul.mubr.bf16.gmra.mxu0 %v878_v23  ;;  %1523 = vmatmul.mubr.bf16.gmra.mxu1 %v878_v23  ;;  %v551_v27 = vpop.permute.xlu1 %550 }
  0xa6   : > { %v711_v26 = vsel %vm696_vm1, %v9219_v25, %v498_v24 }
  0xa7   : > { %v779_v28 = vsel %vm769_vm2, %v711_v26, %v551_v27  ;;  %631 = vrot.lane.b32.xlu0 %v8763_v12, %s9247_s9  ;;  %684 = vrot.lane.b32.xlu1 %v9528_v22, %s9249_s11 }
  0xa9   : > { %v604_v29 = vpop.permute.xlu0 %603  ;;  %v657_v31 = vpop.permute.xlu1 %656 }
  0xaa   : > { %v828_v30 = vsel %vm818_vm4, %v779_v28, %v604_v29  ;;  %7393 = vmatprep.mubr.msk.bf16.mxu0 %vm1134_vm3, %v657_v31  ;;  %7417 = vmatprep.mubr.msk.bf16.mxu1 %vm1134_vm3, %v657_v31 }
  0xab   : > { %527 = vrot.lane.b32.xlu0 %v8762_v1, %s9246_s30  ;;  %v881_v33 = vsel %vm867_vm5, %v828_v30, %v657_v31  ;;  %580 = vrot.lane.b32.xlu1 %v8763_v12, %s9248_s10  ;;  %v9223_v1 = vld [vmem:[%s9336_s25 + $0x40] sm:$0xff]   ;;  %v9226_v31 = vld [vmem:[%s9336_s25 + $0x58] sm:$0xff]  }
  0xad   : > { %v500_v34 = vpop.permute.xlu0 %499  ;;  %1266 = vmatmul.mubr.bf16.gmra.mxu0 %v881_v33  ;;  %1531 = vmatmul.mubr.bf16.gmra.mxu1 %v881_v33  ;;  %v553_v37 = vpop.permute.xlu1 %552 }
  0xae   : > { %v714_v36 = vsel %vm696_vm1, %v9220_v35, %v500_v34 }
  0xaf   : > { %v781_v38 = vsel %vm769_vm2, %v714_v36, %v553_v37  ;;  %633 = vrot.lane.b32.xlu0 %v9528_v22, %s9247_s9  ;;  %686 = vrot.lane.b32.xlu1 %v9543_v32, %s9249_s11 }
  0xb1   : > { %v606_v39 = vpop.permute.xlu0 %605  ;;  %v659_v41 = vpop.permute.xlu1 %658 }
  0xb2   : > { %v830_v40 = vsel %vm818_vm4, %v781_v38, %v606_v39  ;;  %7394 = vmatprep.mubr.msk.bf16.mxu0 %vm1134_vm3, %v659_v41  ;;  %7418 = vmatprep.mubr.msk.bf16.mxu1 %vm1134_vm3, %v659_v41 }
  0xb3   : > { %v884_v43 = vsel %vm867_vm5, %v830_v40, %v659_v41  ;;  %529 = vrot.lane.b32.xlu0 %v8763_v12, %s9246_s30  ;;  %582 = vrot.lane.b32.xlu1 %v9528_v22, %s9248_s10  ;;  %v9224_v12 = vld [vmem:[%s9336_s25 + $0x48] sm:$0xff]   ;;  %v8770_v40 = vld [vmem:[%s13021_s3 + $0x70] ss:$8 sps:$4 sm:$0xff]  }
  0xb4   : > { %v8772_v41 = vld [vmem:[%s13021_s3 + $0x74] ss:$8 sps:$4 sm:$0xff]  }
  0xb5   : > { %v502_v44 = vpop.permute.xlu0 %501  ;;  %1276 = vmatmul.mubr.bf16.gmra.mxu0 %v884_v43  ;;  %1539 = vmatmul.mubr.bf16.gmra.mxu1 %v884_v43  ;;  %v555_v47 = vpop.permute.xlu1 %554 }
  0xb6   : > { %v717_v46 = vsel %vm696_vm1, %v9221_v45, %v502_v44  ;;  %v8775_v44 = vld [vmem:[%s13021_s3 + $0x164] ss:$8 sps:$4 sm:$0xff]   ;;  %2519 = vmatprep.subr.bf16.mxu0 %v8772_v41 }
  0xb7   : > { %v783_v48 = vsel %vm769_vm2, %v717_v46, %v555_v47  ;;  %635 = vrot.lane.b32.xlu0 %v9543_v32, %s9247_s9  ;;  %688 = vrot.lane.b32.xlu1 %v8766_v42, %s9249_s11  ;;  %v9227_v45 = vld [vmem:[%s9336_s25 + $0x60] sm:$0xff]  }
  0xb8   : > { %2674 = vmatprep.subr.bf16.mxu1 %v8775_v44  ;;  %2520 = vmatpush1.bf16.msra.mxu0 %v8770_v40 }
  0xb9   : > { %v608_v49 = vpop.permute.xlu0 %607  ;;  %v661_v51 = vpop.permute.xlu1 %660 }
  0xba   : > { %v832_v50 = vsel %vm818_vm4, %v783_v48, %v608_v49  ;;  %7395 = vmatprep.mubr.msk.bf16.mxu0 %vm1134_vm3, %v661_v51  ;;  %7419 = vmatprep.mubr.msk.bf16.mxu1 %vm1134_vm3, %v661_v51 }
  0xbb   : > { %v887_v53 = vsel %vm867_vm5, %v832_v50, %v661_v51  ;;  %531 = vrot.lane.b32.xlu0 %v9528_v22, %s9246_s30  ;;  %584 = vrot.lane.b32.xlu1 %v9543_v32, %s9248_s10 }
  0xbd   : > { %v504_v54 = vpop.permute.xlu0 %503  ;;  %1286 = vmatmul.mubr.bf16.gmra.mxu0 %v887_v53  ;;  %1547 = vmatmul.mubr.bf16.gmra.mxu1 %v887_v53  ;;  %v557_v57 = vpop.permute.xlu1 %556 }
  0xbe   : > { %v720_v56 = vsel %vm696_vm1, %v9222_v55, %v504_v54  ;;  %v9228_v54 = vld [vmem:[%s9336_s25 + $0x68] sm:$0xff]  }
  0xbf   : > { %v785_v58 = vsel %vm769_vm2, %v720_v56, %v557_v57  ;;  %637 = vrot.lane.b32.xlu0 %v8766_v42, %s9247_s9  ;;  %690 = vrot.lane.b32.xlu1 %v8767_v52, %s9249_s11 }
  0xc1   : > { %v610_v59 = vpop.permute.xlu0 %609  ;;  %v663_v61 = vpop.permute.xlu1 %662 }
  0xc2   : > { %v834_v60 = vsel %vm818_vm4, %v785_v58, %v610_v59  ;;  %7396 = vmatprep.mubr.msk.bf16.mxu0 %vm1134_vm3, %v663_v61  ;;  %7420 = vmatprep.mubr.msk.bf16.mxu1 %vm1134_vm3, %v663_v61  ;;  %v8776_v58 = vld [vmem:[%s13021_s3 + $0x60] ss:$8 sps:$4 sm:$0xff]   ;;  %v8778_v59 = vld [vmem:[%s13021_s3 + $0x64] ss:$8 sps:$4 sm:$0xff]  }
  0xc3   : > { %v890_v63 = vsel %vm867_vm5, %v834_v60, %v663_v61  ;;  %533 = vrot.lane.b32.xlu0 %v9543_v32, %s9246_s30  ;;  %586 = vrot.lane.b32.xlu1 %v8766_v42, %s9248_s10 }
  0xc4   : > { %2521 = vmatprep.subr.bf16.mxu0 %v8778_v59 }
  0xc5   : > { %v506_v0 = vpop.permute.xlu0 %505  ;;  %1296 = vmatmul.mubr.bf16.gmra.mxu0 %v890_v63  ;;  %1555 = vmatmul.mubr.bf16.gmra.mxu1 %v890_v63  ;;  %v559_v4 = vpop.permute.xlu1 %558 }
  0xc6   : > { %v723_v3 = vsel %vm696_vm1, %v9223_v1, %v506_v0  ;;  %2522 = vmatpush1.bf16.msra.mxu0 %v8776_v58  ;;  %v9229_v1 = vld [vmem:[%s9336_s25 + $0x70] sm:$0xff]  }
  0xc7   : > { %v787_v5 = vsel %vm769_vm2, %v723_v3, %v559_v4  ;;  %639 = vrot.lane.b32.xlu0 %v8767_v52, %s9247_s9  ;;  %692 = vrot.lane.b32.xlu1 %v8768_v62, %s9249_s11 }
  0xc9   : > { %v612_v6 = vpop.permute.xlu0 %611  ;;  %v665_v8 = vpop.permute.xlu1 %664 }
  0xca   : > { %v836_v7 = vsel %vm818_vm4, %v787_v5, %v612_v6  ;;  %7397 = vmatprep.mubr.msk.bf16.mxu0 %vm1134_vm3, %v665_v8  ;;  %7421 = vmatprep.mubr.msk.bf16.mxu1 %vm1134_vm3, %v665_v8 }
  0xcb   : > { %v893_v10 = vsel %vm867_vm5, %v836_v7, %v665_v8  ;;  %535 = vrot.lane.b32.xlu0 %v8766_v42, %s9246_s30  ;;  %588 = vrot.lane.b32.xlu1 %v8767_v52, %s9248_s10  ;;  %v8773_v42 = vld [vmem:[%s13021_s3 + $0x160] ss:$8 sps:$4 sm:$0xff]   ;;  %s9253_s30 = smov 64  }
  0xcc   : > { %2675 = vmatpush1.bf16.msra.mxu1 %v8773_v42 }
  0xcd   : > { %v508_v11 = vpop.permute.xlu0 %507  ;;  %1306 = vmatmul.mubr.bf16.gmra.mxu0 %v893_v10  ;;  %1563 = vmatmul.mubr.bf16.gmra.mxu1 %v893_v10  ;;  %v561_v14 = vpop.permute.xlu1 %560 }
  0xce   : > { %v726_v13 = vsel %vm696_vm1, %v9224_v12, %v508_v11  ;;  %v9230_v11 = vld [vmem:[%s9336_s25 + $0x78] sm:$0xff]  }
  0xcf   : > { %v789_v15 = vsel %vm769_vm2, %v726_v13, %v561_v14  ;;  %641 = vrot.lane.b32.xlu0 %v8768_v62, %s9247_s9  ;;  %694 = vrot.lane.b32.xlu1 %v8769_v9, %s9249_s11 }
  0xd1   : > { %v614_v16 = vpop.permute.xlu0 %613  ;;  %v667_v18 = vpop.permute.xlu1 %666 }
  0xd2   : > { %v838_v17 = vsel %vm818_vm4, %v789_v15, %v614_v16  ;;  %7398 = vmatprep.mubr.msk.bf16.mxu0 %vm1134_vm3, %v667_v18  ;;  %7422 = vmatprep.mubr.msk.bf16.mxu1 %vm1134_vm3, %v667_v18  ;;  %v8779_v15 = vld [vmem:[%s13021_s3 + $0x50] ss:$8 sps:$4 sm:$0xff]   ;;  %v8781_v16 = vld [vmem:[%s13021_s3 + $0x54] ss:$8 sps:$4 sm:$0xff]  }
  0xd3   : > { %v896_v19 = vsel %vm867_vm5, %v838_v17, %v667_v18  ;;  %v8784_v18 = vld [vmem:[%s13021_s3 + $0x154] ss:$8 sps:$4 sm:$0xff]   ;;  %2523 = vmatprep.subr.bf16.mxu0 %v8781_v16 }
  0xd4   : > { %2524 = vmatpush1.bf16.msra.mxu0 %v8779_v15  ;;  %2676 = vmatprep.subr.bf16.mxu1 %v8784_v18 }
  0xd5   : > { %v510_v20 = vpop.permute.xlu0 %509  ;;  %1316 = vmatmul.mubr.bf16.gmra.mxu0 %v896_v19  ;;  %1571 = vmatmul.mubr.bf16.gmra.mxu1 %v896_v19  ;;  %v563_v24 = vpop.permute.xlu1 %562 }
  0xd6   : > { %v729_v23 = vsel %vm696_vm1, %v9225_v21, %v510_v20  ;;  %v8782_v21 = vld [vmem:[%s13021_s3 + $0x150] ss:$8 sps:$4 sm:$0xff]  }
  0xd7   : > { %v791_v25 = vsel %vm769_vm2, %v729_v23, %v563_v24  ;;  %2677 = vmatpush1.bf16.msra.mxu1 %v8782_v21  ;;  %v8799_v21 = vld [vmem:[%s13021_s3 + $0x14] ss:$8 sps:$4 sm:$0xff]  }
  0xd9   : > { %v616_v26 = vpop.permute.xlu0 %615  ;;  %v669_v28 = vpop.permute.xlu1 %668 }
  0xda   : > { %v840_v27 = vsel %vm818_vm4, %v791_v25, %v616_v26  ;;  %7399 = vmatprep.mubr.msk.bf16.mxu0 %vm1134_vm3, %v669_v28  ;;  %7423 = vmatprep.mubr.msk.bf16.mxu1 %vm1134_vm3, %v669_v28  ;;  %v9231_v25 = vld [vmem:[%s9336_s25 + $0x80] sm:$0xff]  }
  0xdb   : > { %v899_v29 = vsel %vm867_vm5, %v840_v27, %v669_v28 }
  0xdd   : > { %v512_v30 = vpop.permute.xlu0 %511  ;;  %1326 = vmatmul.mubr.bf16.gmra.mxu0 %v899_v29  ;;  %1579 = vmatmul.mubr.bf16.gmra.mxu1 %v899_v29  ;;  %v565_v34 = vpop.permute.xlu1 %564 }
  0xde   : > { %v732_v33 = vsel %vm696_vm1, %v9226_v31, %v512_v30 }
  0xdf   : > { %v793_v35 = vsel %vm769_vm2, %v732_v33, %v565_v34  ;;  %v8785_v34 = vld [vmem:[%s13021_s3 + $0x40] ss:$8 sps:$4 sm:$0xff]  }
  0xe1   : > { %v618_v36 = vpop.permute.xlu0 %617  ;;  %v671_v38 = vpop.permute.xlu1 %670 }
  0xe2   : > { %v842_v37 = vsel %vm818_vm4, %v793_v35, %v618_v36  ;;  %7400 = vmatprep.mubr.msk.bf16.mxu0 %vm1134_vm3, %v671_v38  ;;  %7424 = vmatprep.mubr.msk.bf16.mxu1 %vm1134_vm3, %v671_v38  ;;  %v8787_v35 = vld [vmem:[%s13021_s3 + $0x44] ss:$8 sps:$4 sm:$0xff]  }
  0xe3   : > { %v902_v39 = vsel %vm867_vm5, %v842_v37, %v671_v38  ;;  %v9232_v37 = vld [vmem:[%s9336_s25 + $0x88] sm:$0xff]   ;;  %2525 = vmatprep.subr.bf16.mxu0 %v8787_v35 }
  0xe4   : > { %2526 = vmatpush1.bf16.msra.mxu0 %v8785_v34 }
  0xe5   : > { %v514_v43 = vpop.permute.xlu0 %513  ;;  %1336 = vmatmul.mubr.bf16.gmra.mxu0 %v902_v39  ;;  %1587 = vmatmul.mubr.bf16.gmra.mxu1 %v902_v39  ;;  %v567_v47 = vpop.permute.xlu1 %566 }
  0xe6   : > { %v735_v46 = vsel %vm696_vm1, %v9227_v45, %v514_v43  ;;  %v8788_v45 = vld [vmem:[%s13021_s3 + $0x30] ss:$8 sps:$4 sm:$0xff]  }
  0xe7   : > { %v795_v48 = vsel %vm769_vm2, %v735_v46, %v567_v47  ;;  %v8790_v46 = vld [vmem:[%s13021_s3 + $0x34] ss:$8 sps:$4 sm:$0xff]  }
  0xe8   : > { %2527 = vmatprep.subr.bf16.mxu0 %v8790_v46  ;;  %v8809_v46 = vld [vmem:[%s13021_s3 + $0xe0] ss:$8 sps:$4 sm:$0xff]  }
  0xe9   : > { %v620_v49 = vpop.permute.xlu0 %619  ;;  %v673_v51 = vpop.permute.xlu1 %672  ;;  %2528 = vmatpush1.bf16.msra.mxu0 %v8788_v45 }
  0xea   : > { %v844_v50 = vsel %vm818_vm4, %v795_v48, %v620_v49  ;;  %7401 = vmatprep.mubr.msk.bf16.mxu0 %vm1134_vm3, %v673_v51  ;;  %7425 = vmatprep.mubr.msk.bf16.mxu1 %vm1134_vm3, %v673_v51  ;;  %v9233_v48 = vld [vmem:[%s9336_s25 + $0x90] sm:$0xff]  }
  0xeb   : > { %v905_v52 = vsel %vm867_vm5, %v844_v50, %v673_v51 }
  0xed   : > { %v516_v53 = vpop.permute.xlu0 %515  ;;  %1346 = vmatmul.mubr.bf16.gmra.mxu0 %v905_v52  ;;  %1595 = vmatmul.mubr.bf16.gmra.mxu1 %v905_v52  ;;  %v569_v56 = vpop.permute.xlu1 %568 }
  0xee   : > { %v738_v55 = vsel %vm696_vm1, %v9228_v54, %v516_v53 }
  0xef   : > { %v797_v57 = vsel %vm769_vm2, %v738_v55, %v569_v56 }
  0xf1   : > { %v622_v60 = vpop.permute.xlu0 %621  ;;  %v675_v62 = vpop.permute.xlu1 %674 }
  0xf2   : > { %v846_v61 = vsel %vm818_vm4, %v797_v57, %v622_v60  ;;  %7402 = vmatprep.mubr.msk.bf16.mxu0 %vm1134_vm3, %v675_v62  ;;  %7426 = vmatprep.mubr.msk.bf16.mxu1 %vm1134_vm3, %v675_v62  ;;  %v9234_v57 = vld [vmem:[%s9336_s25 + $0x98] sm:$0xff]  }
  0xf3   : > { %v908_v63 = vsel %vm867_vm5, %v846_v61, %v675_v62  ;;  %v8791_v61 = vld [vmem:[%s13021_s3 + $0x140] ss:$8 sps:$4 sm:$0xff]   ;;  %v8793_v62 = vld [vmem:[%s13021_s3 + $0x144] ss:$8 sps:$4 sm:$0xff]  }
  0xf4   : > { %2678 = vmatprep.subr.bf16.mxu1 %v8793_v62 }
  0xf5   : > { %v518_v0 = vpop.permute.xlu0 %517  ;;  %1356 = vmatmul.mubr.bf16.gmra.mxu0 %v908_v63  ;;  %1603 = vmatmul.mubr.bf16.gmra.mxu1 %v908_v63  ;;  %v571_v4 = vpop.permute.xlu1 %570 }
  0xf6   : > { %v741_v3 = vsel %vm696_vm1, %v9229_v1, %v518_v0  ;;  %v8796_v0 = vld [vmem:[%s13021_s3 + $0x24] ss:$8 sps:$4 sm:$0xff]   ;;  %2679 = vmatpush1.bf16.msra.mxu1 %v8791_v61  ;;  %v8821_v61 = vld [vmem:[%s13021_s3 + $0x120] ss:$8 sps:$4 sm:$0xff]  }
  0xf7   : > { %v799_v5 = vsel %vm769_vm2, %v741_v3, %v571_v4  ;;  %v8794_v4 = vld [vmem:[%s13021_s3 + $0x20] ss:$8 sps:$4 sm:$0xff]   ;;  %2529 = vmatprep.subr.bf16.mxu0 %v8796_v0 }
  0xf8   : > { %2530 = vmatpush1.bf16.msra.mxu0 %v8794_v4 }
  0xf9   : > { %v624_v6 = vpop.permute.xlu0 %623  ;;  %v677_v8 = vpop.permute.xlu1 %676  ;;  %2531 = vmatprep.subr.bf16.mxu0 %v8799_v21 }
  0xfa   : > { %v848_v7 = vsel %vm818_vm4, %v799_v5, %v624_v6  ;;  %7403 = vmatprep.mubr.msk.bf16.mxu0 %vm1134_vm3, %v677_v8  ;;  %7427 = vmatprep.mubr.msk.bf16.mxu1 %vm1134_vm3, %v677_v8 }
  0xfb   : > { %v911_v9 = vsel %vm867_vm5, %v848_v7, %v677_v8  ;;  %v9235_v8 = vld [vmem:[%s9336_s25 + $0xa0] sm:$0xff]  }
  0xfd   : > { %v520_v10 = vpop.permute.xlu0 %519  ;;  %1366 = vmatmul.mubr.bf16.gmra.mxu0 %v911_v9  ;;  %1611 = vmatmul.mubr.bf16.gmra.mxu1 %v911_v9  ;;  %v573_v13 = vpop.permute.xlu1 %572 }
  0xfe   : > { %v744_v12 = vsel %vm696_vm1, %v9230_v11, %v520_v10 }
  0xff   : > { %v801_v14 = vsel %vm769_vm2, %v744_v12, %v573_v13 }
 0x101   : > { %v626_v17 = vpop.permute.xlu0 %625  ;;  %v679_v20 = vpop.permute.xlu1 %678 }
 0x102   : > { %v850_v19 = vsel %vm818_vm4, %v801_v14, %v626_v17  ;;  %7404 = vmatprep.mubr.msk.bf16.mxu0 %vm1134_vm3, %v679_v20  ;;  %7428 = vmatprep.mubr.msk.bf16.mxu1 %vm1134_vm3, %v679_v20  ;;  %v9236_v17 = vld [vmem:[%s9336_s25 + $0xa8] sm:$0xff]   ;;  %s9250_s25 = smov 16  }
 0x103   : > { %v914_v23 = vsel %vm867_vm5, %v850_v19, %v679_v20  ;;  %v8797_v20 = vld [vmem:[%s13021_s3 + $0x10] ss:$8 sps:$4 sm:$0xff]  }
 0x104   : > { %2532 = vmatpush1.bf16.msra.mxu0 %v8797_v20  ;;  %v8835_v20 = vld [vmem:[%s13021_s3 + $0x104] ss:$8 sps:$4 sm:$0xff]  }
 0x105   : > { %v522_v24 = vpop.permute.xlu0 %521  ;;  %1376 = vmatmul.mubr.bf16.gmra.mxu0 %v914_v23  ;;  %1619 = vmatmul.mubr.bf16.gmra.mxu1 %v914_v23  ;;  %v575_v27 = vpop.permute.xlu1 %574 }
 0x106   : > { %v747_v26 = vsel %vm696_vm1, %v9231_v25, %v522_v24 }
 0x107   : > { %v803_v28 = vsel %vm769_vm2, %v747_v26, %v575_v27 }
 0x109   : > { %v628_v29 = vpop.permute.xlu0 %627  ;;  %v681_v31 = vpop.permute.xlu1 %680 }
 0x10a   : > { %v852_v30 = vsel %vm818_vm4, %v803_v28, %v628_v29  ;;  %7405 = vmatprep.mubr.msk.bf16.mxu0 %vm1134_vm3, %v681_v31  ;;  %7429 = vmatprep.mubr.msk.bf16.mxu1 %vm1134_vm3, %v681_v31 }
 0x10b   : > { %v917_v33 = vsel %vm867_vm5, %v852_v30, %v681_v31  ;;  %v8805_v30 = vld [vmem:[%s13021_s3 + $0x4] ss:$8 sps:$4 sm:$0xff]  }
 0x10c   : > { %2533 = vmatprep.subr.bf16.mxu0 %v8805_v30 }
 0x10d   : > { %v524_v36 = vpop.permute.xlu0 %523  ;;  %1386 = vmatmul.mubr.bf16.gmra.mxu0 %v917_v33  ;;  %1627 = vmatmul.mubr.bf16.gmra.mxu1 %v917_v33  ;;  %v577_v39 = vpop.permute.xlu1 %576  ;;  %v8803_v33 = vld [vmem:[%s13021_s3] ss:$8 sps:$4 sm:$0xff]  }
 0x10e   : > { %v750_v38 = vsel %vm696_vm1, %v9232_v37, %v524_v36  ;;  %2534 = vmatpush1.bf16.msra.mxu0 %v8803_v33 }
 0x10f   : > { %v805_v40 = vsel %vm769_vm2, %v750_v38, %v577_v39  ;;  %v8800_v38 = vld [vmem:[%s13021_s3 + $0x130] ss:$8 sps:$4 sm:$0xff]   ;;  %v8802_v39 = vld [vmem:[%s13021_s3 + $0x134] ss:$8 sps:$4 sm:$0xff]  }
 0x110   : > { %2680 = vmatprep.subr.bf16.mxu1 %v8802_v39 }
 0x111   : > { %v630_v41 = vpop.permute.xlu0 %629  ;;  %v683_v43 = vpop.permute.xlu1 %682  ;;  %2681 = vmatpush1.bf16.msra.mxu1 %v8800_v38 }
 0x112   : > { %v854_v42 = vsel %vm818_vm4, %v805_v40, %v630_v41  ;;  %7406 = vmatprep.mubr.msk.bf16.mxu0 %vm1134_vm3, %v683_v43  ;;  %7430 = vmatprep.mubr.msk.bf16.mxu1 %vm1134_vm3, %v683_v43  ;;  %v8806_v40 = vld [vmem:[%s13021_s3 + $0xf0] ss:$8 sps:$4 sm:$0xff]  }
 0x113   : > { %v920_v44 = vsel %vm867_vm5, %v854_v42, %v683_v43 }
 0x115   : > { %v526_v47 = vpop.permute.xlu0 %525  ;;  %1396 = vmatmul.mubr.bf16.gmra.mxu0 %v920_v44  ;;  %1635 = vmatmul.mubr.bf16.gmra.mxu1 %v920_v44  ;;  %v579_v50 = vpop.permute.xlu1 %578  ;;  %v8811_v44 = vld [vmem:[%s13021_s3 + $0xe4] ss:$8 sps:$4 sm:$0xff]  }
 0x116   : > { %v753_v49 = vsel %vm696_vm1, %v9233_v48, %v526_v47 }
 0x117   : > { %v807_v51 = vsel %vm769_vm2, %v753_v49, %v579_v50 }
 0x119   : > { %v632_v52 = vpop.permute.xlu0 %631  ;;  %v685_v54 = vpop.permute.xlu1 %684 }
 0x11a   : > { %v856_v53 = vsel %vm818_vm4, %v807_v51, %v632_v52  ;;  %7407 = vmatprep.mubr.msk.bf16.mxu0 %vm1134_vm3, %v685_v54  ;;  %7431 = vmatprep.mubr.msk.bf16.mxu1 %vm1134_vm3, %v685_v54  ;;  %v8812_v51 = vld [vmem:[%s13021_s3 + $0xd0] ss:$8 sps:$4 sm:$0xff]   ;;  %v978_v52 = vlaneseq }
 0x11b   : > { %v923_v55 = vsel %vm867_vm5, %v856_v53, %v685_v54  ;;  %v8817_v53 = vld [vmem:[%s13021_s3 + $0xc4] ss:$8 sps:$4 sm:$0xff]   ;;  %v8815_v54 = vld [vmem:[%s13021_s3 + $0xc0] ss:$8 sps:$4 sm:$0xff]  }
 0x11d   : > { %v528_v56 = vpop.permute.xlu0 %527  ;;  %1406 = vmatmul.mubr.bf16.gmra.mxu0 %v923_v55  ;;  %1643 = vmatmul.mubr.bf16.gmra.mxu1 %v923_v55  ;;  %v581_v59 = vpop.permute.xlu1 %580  ;;  %v9809_v55 = vshrl.u32 %v978_v52, 7 }
 0x11e   : > { %v756_v58 = vsel %vm696_vm1, %v9234_v57, %v528_v56  ;;  %v8820_v56 = vld [vmem:[%s13021_s3 + $0xb4] ss:$8 sps:$4 sm:$0xff]   ;;  %v8818_v57 = vld [vmem:[%s13021_s3 + $0xb0] ss:$8 sps:$4 sm:$0xff]  }
 0x11f   : > { %v809_v60 = vsel %vm769_vm2, %v756_v58, %v581_v59  ;;  %13054 = vst [vmem:[#allocation2_spill] sm:$0xff] %v9809_v55  ;;  %v13028_v62 = vsub.s32 2, %v9809_v55  ;;  %v13027_v4 = vsub.s32 1, %v9809_v55 }
 0x121   : > { %v634_v63 = vpop.permute.xlu0 %633  ;;  %v687_v3 = vpop.permute.xlu1 %686 }
 0x122   : > { %v858_v1 = vsel %vm818_vm4, %v809_v60, %v634_v63  ;;  %7408 = vmatprep.mubr.msk.bf16.mxu0 %vm1134_vm3, %v687_v3  ;;  %7432 = vmatprep.mubr.msk.bf16.mxu1 %vm1134_vm3, %v687_v3  ;;  %v8823_v60 = vld [vmem:[%s13021_s3 + $0x124] ss:$8 sps:$4 sm:$0xff]  }
 0x123   : > { %v926_v5 = vsel %vm867_vm5, %v858_v1, %v687_v3  ;;  %2682 = vmatprep.subr.bf16.mxu1 %v8823_v60  ;;  %v8826_v1 = vld [vmem:[%s13021_s3 + $0xa4] ss:$8 sps:$4 sm:$0xff]   ;;  %v976_v3 = vld [vmem:[%s13020_s2] sm:$0x7] }
 0x124   : > { %2683 = vmatpush1.bf16.msra.mxu1 %v8821_v61 }
 0x125   : > { %1416 = vmatmul.mubr.bf16.gmra.mxu0 %v926_v5  ;;  %1651 = vmatmul.mubr.bf16.gmra.mxu1 %v926_v5  ;;  %v530_v6 = vpop.permute.xlu0 %529  ;;  %v583_v7 = vpop.permute.xlu1 %582  ;;  %v8824_v5 = vld [vmem:[%s13021_s3 + $0xa0] ss:$8 sps:$4 sm:$0xff]  }
 0x126   : > { %v759_v9 = vsel %vm696_vm1, %v9235_v8, %v530_v6  ;;  %v8829_v8 = vld [vmem:[%s13021_s3 + $0x114] ss:$8 sps:$4 sm:$0xff]  }
 0x127   : > { %v811_v10 = vsel %vm769_vm2, %v759_v9, %v583_v7  ;;  %v8827_v9 = vld [vmem:[%s13021_s3 + $0x110] ss:$8 sps:$4 sm:$0xff]   ;;  %2684 = vmatprep.subr.bf16.mxu1 %v8829_v8 }
 0x128   : > { %2685 = vmatpush1.bf16.msra.mxu1 %v8827_v9 }
 0x129   : > { %v636_v11 = vpop.permute.xlu0 %635  ;;  %v689_v12 = vpop.permute.xlu1 %688  ;;  %2686 = vmatprep.subr.bf16.mxu1 %v8835_v20 }
 0x12a   : > { %v860_v13 = vsel %vm818_vm4, %v811_v10, %v636_v11  ;;  %7409 = vmatprep.mubr.msk.bf16.mxu0 %vm1134_vm3, %v689_v12  ;;  %7433 = vmatprep.mubr.msk.bf16.mxu1 %vm1134_vm3, %v689_v12  ;;  %v13029_v10 = vsub.s32 0, %v9809_v55  ;;  %v9843_v11 = vrot.slane %v976_v3, %v13028_v62 }
 0x12b   : > { %v929_v14 = vsel %vm867_vm5, %v860_v13, %v689_v12 }
 0x12c   : > { %v9861_v21 = vrot.slane %v976_v3, %v13029_v10 }
 0x12d   : > { %1426 = vmatmul.mubr.bf16.gmra.mxu0 %v929_v14  ;;  %1659 = vmatmul.mubr.bf16.gmra.mxu1 %v929_v14  ;;  %v532_v15 = vpop.permute.xlu0 %531  ;;  %v585_v16 = vpop.permute.xlu1 %584  ;;  %v8832_v14 = vld [vmem:[%s13021_s3 + $0x94] ss:$8 sps:$4 sm:$0xff]  }
 0x12e   : > { %v762_v18 = vsel %vm696_vm1, %v9236_v17, %v532_v15  ;;  %v9850_v15 = vrot.slane %v976_v3, %v13027_v4 }
 0x12f   : > { %v813_v19 = vsel %vm769_vm2, %v762_v18, %v585_v16  ;;  %v8830_v16 = vld [vmem:[%s13021_s3 + $0x90] ss:$8 sps:$4 sm:$0xff]  }
 0x131   : > { %v638_v23 = vpop.permute.xlu0 %637  ;;  %v691_v24 = vpop.permute.xlu1 %690 }
 0x132   : > { %v862_v25 = vsel %vm818_vm4, %v813_v19, %v638_v23  ;;  %7410 = vmatprep.mubr.msk.bf16.mxu0 %vm1134_vm3, %v691_v24  ;;  %7434 = vmatprep.mubr.msk.bf16.mxu1 %vm1134_vm3, %v691_v24 }
 0x133   : > { %v932_v26 = vsel %vm867_vm5, %v862_v25, %v691_v24 }
 0x135   : > { %1436 = vmatmul.mubr.bf16.gmra.mxu0 %v932_v26  ;;  %1667 = vmatmul.mubr.bf16.gmra.mxu1 %v932_v26  ;;  %v534_v27 = vpop.permute.xlu0 %533  ;;  %v587_v28 = vpop.permute.xlu1 %586  ;;  %v8833_v26 = vld [vmem:[%s13021_s3 + $0x100] ss:$8 sps:$4 sm:$0xff]  }
 0x136   : > { %v765_v29 = vsel %vm696_vm1, %v9528_v22, %v534_v27  ;;  %v8808_v22 = vld [vmem:[%s13021_s3 + $0xf4] ss:$8 sps:$4 sm:$0xff]   ;;  %2687 = vmatpush1.bf16.msra.mxu1 %v8833_v26 }
 0x137   : > { %v815_v31 = vsel %vm769_vm2, %v765_v29, %v587_v28  ;;  %2535 = vmatprep.subr.bf16.mxu0 %v8808_v22  ;;  %v8838_v29 = vld [vmem:[%s13021_s3 + $0x84] ss:$8 sps:$4 sm:$0xff]   ;;  %3543 = vmatprep.subr.bf16.mxu1 %v13030_v2 }
 0x138   : > { %2536 = vmatpush2.bf16.msra.mxu0 %v8806_v40 }
 0x139   : > { %v640_v34 = vpop.permute.xlu0 %639  ;;  %v693_v35 = vpop.permute.xlu1 %692  ;;  %2537 = vmatprep.subr.bf16.mxu0 %v8811_v44 }
 0x13a   : > { %v864_v36 = vsel %vm818_vm4, %v815_v31, %v640_v34  ;;  %7411 = vmatprep.mubr.msk.bf16.mxu0 %vm1134_vm3, %v693_v35  ;;  %7435 = vmatprep.mubr.msk.bf16.mxu1 %vm1134_vm3, %v693_v35 }
 0x13b   : > { %v935_v37 = vsel %vm867_vm5, %v864_v36, %v693_v35  ;;  %v8836_v36 = vld [vmem:[%s13021_s3 + $0x80] ss:$8 sps:$4 sm:$0xff]  }
 0x13c   : > { %2538 = vmatpush2.bf16.msra.mxu0 %v8809_v46 }
 0x13d   : > { %1446 = vmatmul.mubr.bf16.gmra.mxu0 %v935_v37  ;;  %1675 = vmatmul.mubr.bf16.gmra.mxu1 %v935_v37  ;;  %v536_v41 = vpop.permute.xlu0 %535  ;;  %v589_v42 = vpop.permute.xlu1 %588 }
 0x13e   : > { %v768_v43 = vsel %vm696_vm1, %v9543_v32, %v536_v41  ;;  %v8814_v32 = vld [vmem:[%s13021_s3 + $0xd4] ss:$8 sps:$4 sm:$0xff]  }
 0x13f   : > { %v817_v45 = vsel %vm769_vm2, %v768_v43, %v589_v42  ;;  %2539 = vmatprep.subr.bf16.mxu0 %v8814_v32 }
 0x140   : > { %2540 = vmatpush2.bf16.msra.mxu0 %v8812_v51 }
 0x141   : > { %v642_v47 = vpop.permute.xlu0 %641  ;;  %v695_v48 = vpop.permute.xlu1 %694  ;;  %2541 = vmatprep.subr.bf16.mxu0 %v8817_v53 }
 0x142   : > { %v866_v49 = vsel %vm818_vm4, %v817_v45, %v642_v47  ;;  %7412 = vmatprep.mubr.msk.bf16.mxu0 %vm1134_vm3, %v695_v48  ;;  %7436 = vmatprep.mubr.msk.bf16.mxu1 %vm1134_vm3, %v695_v48 }
 0x143   : > { %v938_v50 = vsel %vm867_vm5, %v866_v49, %v695_v48 }
 0x144   : > { %2542 = vmatpush2.bf16.msra.mxu0 %v8815_v54 }
 0x145   : > { %1456 = vmatmul.mubr.bf16.gmra.mxu0 %v938_v50  ;;  %1683 = vmatmul.mubr.bf16.gmra.mxu1 %v938_v50 }
 0x146   : > { %2704 = vmatprep.mubr.bf16.mxu1 %v13030_v2  ;;  %2543 = vmatprep.subr.bf16.mxu0 %v8820_v56 }
 0x148   : > { %2544 = vmatpush2.bf16.msra.mxu0 %v8818_v57 }
 0x149   : > { %2545 = vmatprep.subr.bf16.mxu0 %v8826_v1 }
 0x14c   : > { %2546 = vmatpush2.bf16.msra.mxu0 %v8824_v5 }
 0x14d   : > { %v1227_v58 = vpop.f32.mrf.mxu0  ;;  %v1500_v59 = vpop.f32.mrf.mxu1  ;;  %2547 = vmatprep.subr.bf16.mxu0 %v8832_v14 }
 0x14e   : > { %v1501_v23 = vadd.f32 %v1500_v59, %v9843_v11  ;;  %v1228_v39 = vadd.f32 %v1227_v58, %v9861_v21 }
 0x14f   : > { %v1229_v63 = vpop.f32.mrf.mxu0  ;;  %v1502_v0 = vpop.f32.mrf.mxu1 }
 0x150   : > { %v1230_v27 = vadd.f32 %v1229_v63, %v9850_v15  ;;  %2548 = vmatpush2.bf16.msra.mxu0 %v8830_v16 }
 0x151   : > { %v1231_v6 = vpop.f32.mrf.mxu0  ;;  %v1503_v7 = vpop.f32.mrf.mxu1  ;;  %2549 = vmatprep.subr.bf16.mxu0 %v8838_v29 }
 0x152   : > { %v1232_v30 = vadd.f32 %v1231_v6, %v9861_v21  ;;  %v1504_v40 = vadd.f32 %v1503_v7, %v9843_v11 }
 0x153   : > { %v1233_v12 = vpop.f32.mrf.mxu0  ;;  %v1505_v13 = vpop.f32.mrf.mxu1 }
 0x154   : > { %v1234_v43 = vadd.f32 %v1233_v12, %v9850_v15  ;;  %2550 = vmatpush2.bf16.msra.mxu0 %v8836_v36 }
 0x155   : > { %v1237_v17 = vpop.f32.mrf.mxu0  ;;  %v1508_v18 = vpop.f32.mrf.mxu1 }
 0x156   : > { %v1509_v19 = vadd.f32 %v1508_v18, %v9843_v11  ;;  %v1238_v31 = vadd.f32 %v1237_v17, %v9861_v21 }
 0x157   : > { %v1239_v24 = vpop.f32.mrf.mxu0  ;;  %v1510_v25 = vpop.f32.mrf.mxu1 }
 0x158   : > { %v1240_v28 = vadd.f32 %v1239_v24, %v9850_v15  ;;  %v9874_v33 = vmax.f32 %v1501_v23, %v1509_v19  ;;  %v9892_v49 = vmax.f32 %v1228_v39, %v1238_v31 }
 0x159   : > { %v1241_v34 = vpop.f32.mrf.mxu0  ;;  %v1511_v35 = vpop.f32.mrf.mxu1 }
 0x15a   : > { %v9879_v22 = vmax.f32 %v1230_v27, %v1240_v28  ;;  %v1242_v37 = vadd.f32 %v1241_v34, %v9861_v21  ;;  %v1512_v38 = vadd.f32 %v1511_v35, %v9843_v11 }
 0x15b   : > { %v1243_v41 = vpop.f32.mrf.mxu0  ;;  %v1513_v42 = vpop.f32.mrf.mxu1 }
 0x15c   : > { %v9887_v44 = vmax.f32 %v1232_v30, %v1242_v37  ;;  %v1244_v45 = vadd.f32 %v1243_v41, %v9850_v15  ;;  %v8451_v46 = vpack.i.bf16 %v9874_v33, %v9879_v22  ;;  %v9894_v32 = vmax.f32 %v1504_v40, %v1512_v38 }
 0x15d   : > { %v1247_v47 = vpop.f32.mrf.mxu0  ;;  %v1516_v48 = vpop.f32.mrf.mxu1 }
 0x15e   : > { %v9896_v50 = vmax.f32 %v1234_v43, %v1244_v45  ;;  %8452 = vrot.lane.b32.xlu0 %v8451_v46, %s9249_s11  ;;  %v8461_v53 = vpack.i.bf16 %v9887_v44, %v9892_v49  ;;  %v1517_v3 = vadd.f32 %v1516_v48, %v9843_v11  ;;  %v1248_v18 = vadd.f32 %v1247_v47, %v9861_v21 }
 0x15f   : > { %v1249_v51 = vpop.f32.mrf.mxu0  ;;  %v1518_v52 = vpop.f32.mrf.mxu1 }
 0x160   : > { %v8456_v54 = vpack.i.bf16 %v9894_v32, %v9896_v50  ;;  %v1250_v5 = vadd.f32 %v1249_v51, %v9850_v15 }
 0x161   : > { %v1251_v56 = vpop.f32.mrf.mxu0  ;;  %v1519_v57 = vpop.f32.mrf.mxu1 }
 0x162   : > { %8457 = vrot.lane.b32.xlu1 %v8456_v54, %s9249_s11  ;;  %8462 = vrot.lane.b32.xlu0 %v8461_v53, %s9249_s11  ;;  %v1252_v7 = vadd.f32 %v1251_v56, %v9861_v21  ;;  %v1520_v19 = vadd.f32 %v1519_v57, %v9843_v11 }
 0x163   : > { %v1253_v58 = vpop.f32.mrf.mxu0  ;;  %v1521_v59 = vpop.f32.mrf.mxu1 }
 0x164   : > { %v1254_v24 = vadd.f32 %v1253_v58, %v9850_v15 }
 0x165   : > { %v1257_v60 = vpop.f32.mrf.mxu0  ;;  %v1524_v61 = vpop.f32.mrf.mxu1 }
 0x166   : > { %v1525_v63 = vadd.f32 %v1524_v61, %v9843_v11  ;;  %v1258_v8 = vadd.f32 %v1257_v60, %v9861_v21 }
 0x167   : > { %v1259_v0 = vpop.f32.mrf.mxu0  ;;  %v1526_v1 = vpop.f32.mrf.mxu1 }
 0x168   : > { %v1260_v6 = vadd.f32 %v1259_v0, %v9850_v15  ;;  %v9911_v13 = vmax.f32 %v1517_v3, %v1525_v63  ;;  %v9925_v30 = vmax.f32 %v1248_v18, %v1258_v8 }
 0x169   : > { %v1261_v9 = vpop.f32.mrf.mxu0  ;;  %v1527_v12 = vpop.f32.mrf.mxu1 }
 0x16a   : > { %v9913_v14 = vmax.f32 %v1250_v5, %v1260_v6  ;;  %v1262_v16 = vadd.f32 %v1261_v9, %v9861_v21  ;;  %v1528_v17 = vadd.f32 %v1527_v12, %v9843_v11 }
 0x16b   : > { %v1263_v20 = vpop.f32.mrf.mxu0  ;;  %v1529_v23 = vpop.f32.mrf.mxu1 }
 0x16c   : > { %v8466_v25 = vpack.i.bf16 %v9911_v13, %v9913_v14  ;;  %v9922_v26 = vmax.f32 %v1252_v7, %v1262_v16  ;;  %v1264_v27 = vadd.f32 %v1263_v20, %v9850_v15  ;;  %v9927_v31 = vmax.f32 %v1520_v19, %v1528_v17 }
 0x16d   : > { %v1267_v28 = vpop.f32.mrf.mxu0  ;;  %v1532_v29 = vpop.f32.mrf.mxu1 }
 0x16e   : > { %v9929_v34 = vmax.f32 %v1254_v24, %v1264_v27  ;;  %8467 = vrot.lane.b32.xlu1 %v8466_v25, %s9249_s11  ;;  %v8476_v37 = vpack.i.bf16 %v9922_v26, %v9925_v30  ;;  %v1533_v51 = vadd.f32 %v1532_v29, %v9843_v11  ;;  %v1268_v0 = vadd.f32 %v1267_v28, %v9861_v21 }
 0x16f   : > { %v1269_v35 = vpop.f32.mrf.mxu0  ;;  %v1534_v36 = vpop.f32.mrf.mxu1 }
 0x170   : > { %v8471_v38 = vpack.i.bf16 %v9927_v31, %v9929_v34  ;;  %v1270_v52 = vadd.f32 %v1269_v35, %v9850_v15 }
 0x171   : > { %v1271_v39 = vpop.f32.mrf.mxu0  ;;  %v1535_v40 = vpop.f32.mrf.mxu1 }
 0x172   : > { %8477 = vrot.lane.b32.xlu1 %v8476_v37, %s9249_s11  ;;  %8472 = vrot.lane.b32.xlu0 %v8471_v38, %s9249_s11  ;;  %v1272_v54 = vadd.f32 %v1271_v39, %v9861_v21  ;;  %v1536_v1 = vadd.f32 %v1535_v40, %v9843_v11 }
 0x173   : > { %v1273_v41 = vpop.f32.mrf.mxu0  ;;  %v1537_v42 = vpop.f32.mrf.mxu1 }
 0x174   : > { %v1274_v6 = vadd.f32 %v1273_v41, %v9850_v15 }
 0x175   : > { %v1277_v43 = vpop.f32.mrf.mxu0  ;;  %v1540_v45 = vpop.f32.mrf.mxu1 }
 0x176   : > { %v1541_v46 = vadd.f32 %v1540_v45, %v9843_v11  ;;  %v1278_v56 = vadd.f32 %v1277_v43, %v9861_v21 }
 0x177   : > { %v1279_v47 = vpop.f32.mrf.mxu0  ;;  %v1542_v48 = vpop.f32.mrf.mxu1 }
 0x178   : > { %v1280_v53 = vadd.f32 %v1279_v47, %v9850_v15  ;;  %v9944_v59 = vmax.f32 %v1533_v51, %v1541_v46  ;;  %v9958_v17 = vmax.f32 %v1268_v0, %v1278_v56 }
 0x179   : > { %v1281_v57 = vpop.f32.mrf.mxu0  ;;  %v1543_v58 = vpop.f32.mrf.mxu1 }
 0x17a   : > { %v9946_v60 = vmax.f32 %v1270_v52, %v1280_v53  ;;  %v1282_v61 = vadd.f32 %v1281_v57, %v9861_v21  ;;  %v1544_v63 = vadd.f32 %v1543_v58, %v9843_v11 }
 0x17b   : > { %v1283_v3 = vpop.f32.mrf.mxu0  ;;  %v1545_v5 = vpop.f32.mrf.mxu1 }
 0x17c   : > { %v8481_v7 = vpack.i.bf16 %v9944_v59, %v9946_v60  ;;  %v9955_v8 = vmax.f32 %v1272_v54, %v1282_v61  ;;  %v1284_v9 = vadd.f32 %v1283_v3, %v9850_v15  ;;  %v9960_v18 = vmax.f32 %v1536_v1, %v1544_v63 }
 0x17d   : > { %v1287_v12 = vpop.f32.mrf.mxu0  ;;  %v1548_v16 = vpop.f32.mrf.mxu1 }
 0x17e   : > { %v9962_v19 = vmax.f32 %v1274_v6, %v1284_v9  ;;  %8482 = vrot.lane.b32.xlu0 %v8481_v7, %s9249_s11  ;;  %v8491_v24 = vpack.i.bf16 %v9955_v8, %v9958_v17  ;;  %v1549_v41 = vadd.f32 %v1548_v16, %v9843_v11  ;;  %v1288_v56 = vadd.f32 %v1287_v12, %v9861_v21 }
 0x17f   : > { %v1289_v20 = vpop.f32.mrf.mxu0  ;;  %v1550_v23 = vpop.f32.mrf.mxu1 }
 0x180   : > { %v8486_v25 = vpack.i.bf16 %v9960_v18, %v9962_v19  ;;  %v1290_v42 = vadd.f32 %v1289_v20, %v9850_v15 }
 0x181   : > { %v1291_v27 = vpop.f32.mrf.mxu0  ;;  %v1551_v28 = vpop.f32.mrf.mxu1 }
 0x182   : > { %8487 = vrot.lane.b32.xlu1 %v8486_v25, %s9249_s11  ;;  %8492 = vrot.lane.b32.xlu0 %v8491_v24, %s9249_s11  ;;  %v1292_v45 = vadd.f32 %v1291_v27, %v9861_v21  ;;  %v1552_v57 = vadd.f32 %v1551_v28, %v9843_v11 }
 0x183   : > { %v1293_v29 = vpop.f32.mrf.mxu0  ;;  %v1553_v35 = vpop.f32.mrf.mxu1 }
 0x184   : > { %v1294_v63 = vadd.f32 %v1293_v29, %v9850_v15 }
 0x185   : > { %v1297_v36 = vpop.f32.mrf.mxu0  ;;  %v1556_v37 = vpop.f32.mrf.mxu1 }
 0x186   : > { %v1557_v38 = vadd.f32 %v1556_v37, %v9843_v11  ;;  %v1298_v46 = vadd.f32 %v1297_v36, %v9861_v21 }
 0x187   : > { %v1299_v39 = vpop.f32.mrf.mxu0  ;;  %v1558_v40 = vpop.f32.mrf.mxu1 }
 0x188   : > { %v1300_v43 = vadd.f32 %v1299_v39, %v9850_v15  ;;  %v9977_v51 = vmax.f32 %v1549_v41, %v1557_v38  ;;  %v9991_v7 = vmax.f32 %v1288_v56, %v1298_v46 }
 0x189   : > { %v1301_v47 = vpop.f32.mrf.mxu0  ;;  %v1559_v48 = vpop.f32.mrf.mxu1 }
 0x18a   : > { %v9979_v52 = vmax.f32 %v1290_v42, %v1300_v43  ;;  %v1302_v53 = vadd.f32 %v1301_v47, %v9861_v21  ;;  %v1560_v54 = vadd.f32 %v1559_v48, %v9843_v11 }
 0x18b   : > { %v1303_v58 = vpop.f32.mrf.mxu0  ;;  %v1561_v61 = vpop.f32.mrf.mxu1 }
 0x18c   : > { %v8496_v0 = vpack.i.bf16 %v9977_v51, %v9979_v52  ;;  %v9988_v1 = vmax.f32 %v1292_v45, %v1302_v53  ;;  %v1304_v3 = vadd.f32 %v1303_v58, %v9850_v15  ;;  %v9993_v9 = vmax.f32 %v1552_v57, %v1560_v54 }
 0x18d   : > { %v1307_v5 = vpop.f32.mrf.mxu0  ;;  %v1564_v6 = vpop.f32.mrf.mxu1 }
 0x18e   : > { %v9995_v12 = vmax.f32 %v1294_v63, %v1304_v3  ;;  %8497 = vrot.lane.b32.xlu1 %v8496_v0, %s9249_s11  ;;  %v8506_v23 = vpack.i.bf16 %v9988_v1, %v9991_v7  ;;  %v1565_v40 = vadd.f32 %v1564_v6, %v9843_v11  ;;  %v1308_v57 = vadd.f32 %v1307_v5, %v9861_v21 }
 0x18f   : > { %v1309_v16 = vpop.f32.mrf.mxu0  ;;  %v1566_v20 = vpop.f32.mrf.mxu1 }
 0x190   : > { %v8501_v24 = vpack.i.bf16 %v9993_v9, %v9995_v12  ;;  %v1310_v41 = vadd.f32 %v1309_v16, %v9850_v15 }
 0x191   : > { %v1311_v25 = vpop.f32.mrf.mxu0  ;;  %v1567_v27 = vpop.f32.mrf.mxu1 }
 0x192   : > { %8507 = vrot.lane.b32.xlu1 %v8506_v23, %s9249_s11  ;;  %8502 = vrot.lane.b32.xlu0 %v8501_v24, %s9249_s11  ;;  %v1312_v43 = vadd.f32 %v1311_v25, %v9861_v21  ;;  %v1568_v58 = vadd.f32 %v1567_v27, %v9843_v11 }
 0x193   : > { %v1313_v28 = vpop.f32.mrf.mxu0  ;;  %v1569_v29 = vpop.f32.mrf.mxu1 }
 0x194   : > { %v1314_v0 = vadd.f32 %v1313_v28, %v9850_v15 }
 0x195   : > { %v1317_v35 = vpop.f32.mrf.mxu0  ;;  %v1572_v36 = vpop.f32.mrf.mxu1 }
 0x196   : > { %v1573_v37 = vadd.f32 %v1572_v36, %v9843_v11  ;;  %v1318_v45 = vadd.f32 %v1317_v35, %v9861_v21 }
 0x197   : > { %v1319_v38 = vpop.f32.mrf.mxu0  ;;  %v1574_v39 = vpop.f32.mrf.mxu1 }
 0x198   : > { %v1320_v42 = vadd.f32 %v1319_v38, %v9850_v15  ;;  %v10010_v48 = vmax.f32 %v1565_v40, %v1573_v37  ;;  %v10024_v24 = vmax.f32 %v1308_v57, %v1318_v45 }
 0x199   : > { %v1321_v46 = vpop.f32.mrf.mxu0  ;;  %v1575_v47 = vpop.f32.mrf.mxu1 }
 0x19a   : > { %v10012_v53 = vmax.f32 %v1310_v41, %v1320_v42  ;;  %v1322_v54 = vadd.f32 %v1321_v46, %v9861_v21  ;;  %v1576_v56 = vadd.f32 %v1575_v47, %v9843_v11 }
 0x19b   : > { %v1323_v61 = vpop.f32.mrf.mxu0  ;;  %v1577_v63 = vpop.f32.mrf.mxu1 }
 0x19c   : > { %v8511_v3 = vpack.i.bf16 %v10010_v48, %v10012_v53  ;;  %v10021_v6 = vmax.f32 %v1312_v43, %v1322_v54  ;;  %v1324_v16 = vadd.f32 %v1323_v61, %v9850_v15  ;;  %v10026_v25 = vmax.f32 %v1568_v58, %v1576_v56 }
 0x19d   : > { %v1327_v20 = vpop.f32.mrf.mxu0  ;;  %v1580_v23 = vpop.f32.mrf.mxu1 }
 0x19e   : > { %v10028_v5 = vmax.f32 %v1314_v0, %v1324_v16  ;;  %8512 = vrot.lane.b32.xlu0 %v8511_v3, %s9249_s11  ;;  %v8521_v28 = vpack.i.bf16 %v10021_v6, %v10024_v24  ;;  %v1581_v46 = vadd.f32 %v1580_v23, %v9843_v11  ;;  %v1328_v23 = vadd.f32 %v1327_v20, %v9861_v21 }
 0x19f   : > { %v1329_v27 = vpop.f32.mrf.mxu0  ;;  %v1582_v29 = vpop.f32.mrf.mxu1 }
 0x1a0   : > { %v8516_v35 = vpack.i.bf16 %v10026_v25, %v10028_v5  ;;  %v1330_v47 = vadd.f32 %v1329_v27, %v9850_v15 }
 0x1a1   : > { %v1331_v36 = vpop.f32.mrf.mxu0  ;;  %v1583_v37 = vpop.f32.mrf.mxu1 }
 0x1a2   : > { %8517 = vrot.lane.b32.xlu1 %v8516_v35, %s9249_s11  ;;  %8522 = vrot.lane.b32.xlu0 %v8521_v28, %s9249_s11  ;;  %v1332_v56 = vadd.f32 %v1331_v36, %v9861_v21  ;;  %v1584_v27 = vadd.f32 %v1583_v37, %v9843_v11 }
 0x1a3   : > { %v1333_v38 = vpop.f32.mrf.mxu0  ;;  %v1585_v39 = vpop.f32.mrf.mxu1 }
 0x1a4   : > { %v1334_v35 = vadd.f32 %v1333_v38, %v9850_v15 }
 0x1a5   : > { %v1337_v40 = vpop.f32.mrf.mxu0  ;;  %v1588_v41 = vpop.f32.mrf.mxu1 }
 0x1a6   : > { %v1589_v42 = vadd.f32 %v1588_v41, %v9843_v11  ;;  %v1338_v57 = vadd.f32 %v1337_v40, %v9861_v21 }
 0x1a7   : > { %v1339_v43 = vpop.f32.mrf.mxu0  ;;  %v1590_v45 = vpop.f32.mrf.mxu1 }
 0x1a8   : > { %v1340_v54 = vadd.f32 %v1339_v43, %v9850_v15  ;;  %v10043_v63 = vmax.f32 %v1581_v46, %v1589_v42  ;;  %v10057_v43 = vmax.f32 %v1328_v23, %v1338_v57 }
 0x1a9   : > { %v1341_v58 = vpop.f32.mrf.mxu0  ;;  %v1591_v61 = vpop.f32.mrf.mxu1 }
 0x1aa   : > { %v10045_v0 = vmax.f32 %v1330_v47, %v1340_v54  ;;  %v1342_v3 = vadd.f32 %v1341_v58, %v9861_v21  ;;  %v1592_v16 = vadd.f32 %v1591_v61, %v9843_v11 }
 0x1ab   : > { %v1343_v29 = vpop.f32.mrf.mxu0  ;;  %v1593_v28 = vpop.f32.mrf.mxu1 }
 0x1ac   : > { %13055 = vst [vmem:[#allocation3_spill] sm:$0xff] %v10045_v0  ;;  %v8526_v36 = vpack.i.bf16 %v10043_v63, %v10045_v0  ;;  %v10054_v39 = vmax.f32 %v1332_v56, %v1342_v3  ;;  %v1344_v40 = vadd.f32 %v1343_v29, %v9850_v15  ;;  %v10059_v45 = vmax.f32 %v1584_v27, %v1592_v16 }
 0x1ad   : > { %v1347_v41 = vpop.f32.mrf.mxu0  ;;  %v1596_v42 = vpop.f32.mrf.mxu1 }
 0x1ae   : > { %v10061_v20 = vmax.f32 %v1334_v35, %v1344_v40  ;;  %8527 = vrot.lane.b32.xlu1 %v8526_v36, %s9249_s11  ;;  %v8536_v38 = vpack.i.bf16 %v10054_v39, %v10057_v43  ;;  %v1597_v29 = vadd.f32 %v1596_v42, %v9843_v11  ;;  %v1348_v42 = vadd.f32 %v1347_v41, %v9861_v21 }
 0x1af   : > { %v1349_v37 = vpop.f32.mrf.mxu0  ;;  %v1598_v46 = vpop.f32.mrf.mxu1 }
 0x1b0   : > { %13056 = vst [vmem:[#allocation4_spill] sm:$0xff] %v10061_v20  ;;  %v8531_v47 = vpack.i.bf16 %v10059_v45, %v10061_v20  ;;  %v1350_v28 = vadd.f32 %v1349_v37, %v9850_v15 }
 0x1b1   : > { %v1351_v54 = vpop.f32.mrf.mxu0  ;;  %v1599_v56 = vpop.f32.mrf.mxu1 }
 0x1b2   : > { %8537 = vrot.lane.b32.xlu1 %v8536_v38, %s9249_s11  ;;  %8532 = vrot.lane.b32.xlu0 %v8531_v47, %s9249_s11  ;;  %v1352_v36 = vadd.f32 %v1351_v54, %v9861_v21  ;;  %v1600_v37 = vadd.f32 %v1599_v56, %v9843_v11 }
 0x1b3   : > { %v1353_v57 = vpop.f32.mrf.mxu0  ;;  %v1601_v58 = vpop.f32.mrf.mxu1 }
 0x1b4   : > { %v1354_v54 = vadd.f32 %v1353_v57, %v9850_v15 }
 0x1b5   : > { %v1357_v61 = vpop.f32.mrf.mxu0  ;;  %v1604_v3 = vpop.f32.mrf.mxu1 }
 0x1b6   : > { %v1605_v16 = vadd.f32 %v1604_v3, %v9843_v11  ;;  %v1358_v40 = vadd.f32 %v1357_v61, %v9861_v21 }
 0x1b7   : > { %v1359_v23 = vpop.f32.mrf.mxu0  ;;  %v1606_v27 = vpop.f32.mrf.mxu1 }
 0x1b8   : > { %v1360_v35 = vadd.f32 %v1359_v23, %v9850_v15  ;;  %v10076_v47 = vmax.f32 %v1597_v29, %v1605_v16 }
 0x1b9   : > { %v1361_v46 = vpop.f32.mrf.mxu0  ;;  %v1607_v38 = vpop.f32.mrf.mxu1 }
 0x1ba   : > { %13057 = vst [vmem:[#allocation5_spill] sm:$0xff] %v10076_v47  ;;  %v10078_v58 = vmax.f32 %v1350_v28, %v1360_v35  ;;  %v1362_v3 = vadd.f32 %v1361_v46, %v9861_v21  ;;  %v1608_v27 = vadd.f32 %v1607_v38, %v9843_v11  ;;  %v10090_v35 = vmax.f32 %v1348_v42, %v1358_v40 }
 0x1bb   : > { %v1363_v4 = vpop.f32.mrf.mxu0  ;;  %v1609_v23 = vpop.f32.mrf.mxu1 }
 0x1bc   : > { %13058 = vst [vmem:[#allocation6_spill] sm:$0xff] %v10078_v58  ;;  %v8541_v61 = vpack.i.bf16 %v10076_v47, %v10078_v58  ;;  %v10087_v62 = vmax.f32 %v1352_v36, %v1362_v3  ;;  %v1364_v16 = vadd.f32 %v1363_v4, %v9850_v15  ;;  %13060 = vst [vmem:[#allocation8_spill] sm:$0xff] %v10090_v35 }
 0x1bd   : > { %v1367_v29 = vpop.f32.mrf.mxu0  ;;  %v1612_v28 = vpop.f32.mrf.mxu1  ;;  %v10092_v46 = vmax.f32 %v1600_v37, %v1608_v27 }
 0x1be   : > { %13059 = vst [vmem:[#allocation7_spill] sm:$0xff] %v10087_v62  ;;  %v10094_v41 = vmax.f32 %v1354_v54, %v1364_v16  ;;  %8542 = vrot.lane.b32.xlu0 %v8541_v61, %s9249_s11  ;;  %v8551_v57 = vpack.i.bf16 %v10087_v62, %v10090_v35  ;;  %v1613_v16 = vadd.f32 %v1612_v28, %v9843_v11 }
 0x1bf   : > { %13061 = vst [vmem:[#allocation9_spill] sm:$0xff] %v10092_v46  ;;  %v1369_v56 = vpop.f32.mrf.mxu0  ;;  %v1614_v38 = vpop.f32.mrf.mxu1  ;;  %v1368_v28 = vadd.f32 %v1367_v29, %v9861_v21 }
 0x1c0   : > { %13062 = vst [vmem:[#allocation10_spill] sm:$0xff] %v10094_v41  ;;  %v8546_v36 = vpack.i.bf16 %v10092_v46, %v10094_v41  ;;  %v1370_v38 = vadd.f32 %v1369_v56, %v9850_v15 }
 0x1c1   : > { %v1371_v3 = vpop.f32.mrf.mxu0  ;;  %v1615_v4 = vpop.f32.mrf.mxu1 }
 0x1c2   : > { %8547 = vrot.lane.b32.xlu1 %v8546_v36, %s9249_s11  ;;  %8552 = vrot.lane.b32.xlu0 %v8551_v57, %s9249_s11  ;;  %v1372_v2 = vadd.f32 %v1371_v3, %v9861_v21  ;;  %v1616_v56 = vadd.f32 %v1615_v4, %v9843_v11 }
 0x1c3   : > { %v1373_v40 = vpop.f32.mrf.mxu0  ;;  %v1617_v27 = vpop.f32.mrf.mxu1 }
 0x1c4   : > { %v1374_v3 = vadd.f32 %v1373_v40, %v9850_v15 }
 0x1c5   : > { %v1377_v42 = vpop.f32.mrf.mxu0  ;;  %v1620_v37 = vpop.f32.mrf.mxu1 }
 0x1c6   : > { %v1621_v23 = vadd.f32 %v1620_v37, %v9843_v11  ;;  %v1378_v36 = vadd.f32 %v1377_v42, %v9861_v21 }
 0x1c7   : > { %v1379_v54 = vpop.f32.mrf.mxu0  ;;  %v1622_v61 = vpop.f32.mrf.mxu1 }
 0x1c8   : > { %v1380_v10 = vadd.f32 %v1379_v54, %v9850_v15  ;;  %v10109_v41 = vmax.f32 %v1613_v16, %v1621_v23 }
 0x1c9   : > { %v1381_v55 = vpop.f32.mrf.mxu0  ;;  %v1623_v57 = vpop.f32.mrf.mxu1 }
 0x1ca   : > { %13063 = vst [vmem:[#allocation11_spill] sm:$0xff] %v10109_v41  ;;  %v10111_v27 = vmax.f32 %v1370_v38, %v1380_v10  ;;  %v1382_v37 = vadd.f32 %v1381_v55, %v9861_v21  ;;  %v1624_v61 = vadd.f32 %v1623_v57, %v9843_v11  ;;  %v10123_v55 = vmax.f32 %v1368_v28, %v1378_v36 }
 0x1cb   : > { %v1383_v58 = vpop.f32.mrf.mxu0  ;;  %v1625_v54 = vpop.f32.mrf.mxu1 }
 0x1cc   : > { %13064 = vst [vmem:[#allocation12_spill] sm:$0xff] %v10111_v27  ;;  %v8556_v42 = vpack.i.bf16 %v10109_v41, %v10111_v27  ;;  %v10120_v35 = vmax.f32 %v1372_v2, %v1382_v37  ;;  %v1384_v10 = vadd.f32 %v1383_v58, %v9850_v15  ;;  %13066 = vst [vmem:[#allocation14_spill] sm:$0xff] %v10123_v55 }
 0x1cd   : > { %v1387_v23 = vpop.f32.mrf.mxu0  ;;  %v1628_v16 = vpop.f32.mrf.mxu1  ;;  %v10125_v38 = vmax.f32 %v1616_v56, %v1624_v61 }
 0x1ce   : > { %13065 = vst [vmem:[#allocation13_spill] sm:$0xff] %v10120_v35  ;;  %v10127_v29 = vmax.f32 %v1374_v3, %v1384_v10  ;;  %8557 = vrot.lane.b32.xlu1 %v8556_v42, %s9249_s11  ;;  %v8566_v40 = vpack.i.bf16 %v10120_v35, %v10123_v55 }
 0x1cf   : > { %13067 = vst [vmem:[#allocation15_spill] sm:$0xff] %v10125_v38  ;;  %v1389_v4 = vpop.f32.mrf.mxu0  ;;  %v1630_v57 = vpop.f32.mrf.mxu1 }
 0x1d0   : > { %13068 = vst [vmem:[#allocation16_spill] sm:$0xff] %v10127_v29  ;;  %v8561_v2 = vpack.i.bf16 %v10125_v38, %v10127_v29  ;;  %v8453_v37 = vpop.permute.xlu0 %8452  ;;  %v1390_v47 = vadd.f32 %v1389_v4, %v9850_v15 }
 0x1d1   : > { %v1391_v58 = vpop.f32.mrf.mxu0  ;;  %v1631_v54 = vpop.f32.mrf.mxu1  ;;  %v8455_v27 = vunpack.i.h.bf16 %v8453_v37  ;;  %v8454_v36 = vunpack.i.l.bf16 %v8453_v37 }
 0x1d2   : > { %8567 = vrot.lane.b32.xlu1 %v8566_v40, %s9249_s11  ;;  %8562 = vrot.lane.b32.xlu0 %v8561_v2, %s9249_s11 }
 0x1d3   : > { %v1393_v61 = vpop.f32.mrf.mxu0  ;;  %v1633_v28 = vpop.f32.mrf.mxu1  ;;  %v2101_v29 = vmax.f32 %v9874_v33, %v8455_v27  ;;  %v1980_v38 = vsel %vm867_vm5, %v8454_v36, %v8455_v27 }
 0x1d4   : > { %v8458_v56 = vpop.permute.xlu1 %8457  ;;  %v8463_v3 = vpop.permute.xlu0 %8462 }
 0x1d5   : > { %v8460_v42 = vunpack.i.h.bf16 %v8458_v56  ;;  %v8459_v10 = vunpack.i.l.bf16 %v8458_v56  ;;  %v8465_v57 = vunpack.i.h.bf16 %v8463_v3  ;;  %v8464_v35 = vunpack.i.l.bf16 %v8463_v3  ;;  %v1397_v55 = vpop.f32.mrf.mxu0  ;;  %v1636_v41 = vpop.f32.mrf.mxu1 }
 0x1d6   : > { %v1637_v37 = vadd.f32 %v1636_v41, %v9843_v11  ;;  %v1629_v3 = vadd.f32 %v1628_v16, %v9843_v11 }
 0x1d7   : > { %v2104_v40 = vmax.f32 %v9894_v32, %v8460_v42  ;;  %v1982_v2 = vsel %vm867_vm5, %v8459_v10, %v8460_v42  ;;  %v1981_v28 = vsel %vm867_vm5, %v8465_v57, %v8459_v10  ;;  %v1979_v62 = vsel %vm867_vm5, %v8464_v35, %v8454_v36  ;;  %v1399_v46 = vpop.f32.mrf.mxu0  ;;  %v1638_v56 = vpop.f32.mrf.mxu1 }
 0x1d8   : > { %v2102_v33 = vmax.f32 %v9887_v44, %v1981_v28  ;;  %v2099_v27 = vmax.f32 %v9892_v49, %v1979_v62  ;;  %v1400_v41 = vadd.f32 %v1399_v46, %v9850_v15  ;;  %v2100_v42 = vmax.f32 %v9879_v22, %v1980_v38 }
 0x1d9   : > { %v2173_v20 = vpack.c.bf16 %v2104_v40, %v2101_v29  ;;  %v1401_v32 = vpop.f32.mrf.mxu0  ;;  %v1639_v0 = vpop.f32.mrf.mxu1  ;;  %v2103_v10 = vmax.f32 %v9896_v50, %v1982_v2  ;;  %v1392_v35 = vadd.f32 %v1391_v58, %v9861_v21  ;;  %v1398_v44 = vadd.f32 %v1397_v55, %v9861_v21 }
 0x1da   : > { %v2171_v36 = vpack.c.bf16 %v2102_v33, %v2099_v27  ;;  %v1402_v16 = vadd.f32 %v1401_v32, %v9861_v21  ;;  %v1640_v4 = vadd.f32 %v1639_v0, %v9843_v11  ;;  %v10154_v57 = vmax.f32 %v1629_v3, %v1637_v37 }
 0x1db   : > { %v10156_v62 = vmax.f32 %v1390_v47, %v1400_v41  ;;  %v1403_v49 = vpop.f32.mrf.mxu0  ;;  %v1641_v46 = vpop.f32.mrf.mxu1  ;;  %7483 = vmatmul.mubr.msk.bf16.vlgmr.msra.gmra.mxu1 %vm867_vm5, %v2173_v20  ;;  %v2172_v22 = vpack.c.bf16 %v2103_v10, %v2100_v42  ;;  %v1632_v50 = vadd.f32 %v1631_v54, %v9843_v11  ;;  %v1394_v38 = vadd.f32 %v1393_v61, %v9850_v15 }
 0x1dc   : > { %v1404_v29 = vadd.f32 %v1403_v49, %v9850_v15  ;;  %v13069_v58 = vmov 0   ;;  %v1388_v0 = vadd.f32 %v1387_v23, %v9861_v21  ;;  %v10166_v47 = vmax.f32 %v1392_v35, %v1402_v16 }
 0x1dd   : > { %2714 = vmatprep.mubr.bf16.mxu1 %v13069_v58  ;;  %v8571_v55 = vpack.i.bf16 %v10154_v57, %v10156_v62  ;;  %2551 = vmatprep.mubr.bf16.mxu0 %v2172_v22  ;;  %v1407_v37 = vpop.f32.mrf.mxu0  ;;  %v1644_v40 = vpop.f32.mrf.mxu1  ;;  %v10168_v20 = vmax.f32 %v1632_v50, %v1640_v4 }
 0x1de   : > { %v10170_v2 = vmax.f32 %v1394_v38, %v1404_v29  ;;  %2552 = vmatmul.mubr.bf16.vlgmr.msra.gmra.mxu0 %v2171_v36  ;;  %v10172_v54 = vmax.f32 %v1388_v0, %v1398_v44  ;;  %v1645_v35 = vadd.f32 %v1644_v40, %v9843_v11 }
 0x1df   : > { %8572 = vrot.lane.b32.xlu0 %v8571_v55, %s9249_s11  ;;  %v1409_v61 = vpop.f32.mrf.mxu0  ;;  %v1646_v28 = vpop.f32.mrf.mxu1 }
 0x1e0   : > { %v8576_v23 = vpack.i.bf16 %v10168_v20, %v10170_v2  ;;  %v8468_v56 = vpop.permute.xlu1 %8467  ;;  %v8581_v3 = vpack.i.bf16 %v10166_v47, %v10172_v54  ;;  %v1410_v29 = vadd.f32 %v1409_v61, %v9850_v15 }
 0x1e1   : > { %v8470_v33 = vunpack.i.h.bf16 %v8468_v56  ;;  %v8469_v27 = vunpack.i.l.bf16 %v8468_v56  ;;  %v1411_v41 = vpop.f32.mrf.mxu0  ;;  %v1647_v32 = vpop.f32.mrf.mxu1 }
 0x1e2   : > { %8577 = vrot.lane.b32.xlu1 %v8576_v23, %s9249_s11  ;;  %v1412_v55 = vadd.f32 %v1411_v41, %v9861_v21 }
 0x1e3   : > { %8582 = vrot.lane.b32.xlu0 %v8581_v3, %s9249_s11  ;;  %v1413_v42 = vpop.f32.mrf.mxu0  ;;  %v1649_v10 = vpop.f32.mrf.mxu1  ;;  %v1984_v36 = vsel %vm867_vm5, %v8469_v27, %v8470_v33  ;;  %v2107_v0 = vmax.f32 %v9911_v13, %v8470_v33 }
 0x1e4   : > { %v8478_v16 = vpop.permute.xlu1 %8477  ;;  %v8473_v4 = vpop.permute.xlu0 %8472  ;;  %v2106_v13 = vmax.f32 %v9913_v14, %v1984_v36  ;;  %v1408_v14 = vadd.f32 %v1407_v37, %v9861_v21 }
 0x1e5   : > { %v8480_v44 = vunpack.i.h.bf16 %v8478_v16  ;;  %v8479_v49 = vunpack.i.l.bf16 %v8478_v16  ;;  %v8475_v46 = vunpack.i.h.bf16 %v8473_v4  ;;  %v8474_v22 = vunpack.i.l.bf16 %v8473_v4  ;;  %v1417_v50 = vpop.f32.mrf.mxu0  ;;  %v1652_v38 = vpop.f32.mrf.mxu1 }
 0x1e6   : > { %v1653_v28 = vadd.f32 %v1652_v38, %v9843_v11  ;;  %v1418_v4 = vadd.f32 %v1417_v50, %v9861_v21 }
 0x1e7   : > { %v1983_v40 = vsel %vm867_vm5, %v8479_v49, %v8469_v27  ;;  %v2110_v23 = vmax.f32 %v9927_v31, %v8475_v46  ;;  %v1985_v56 = vsel %vm867_vm5, %v8480_v44, %v8474_v22  ;;  %v1986_v3 = vsel %vm867_vm5, %v8474_v22, %v8475_v46  ;;  %v1419_v10 = vpop.f32.mrf.mxu0  ;;  %v1654_v16 = vpop.f32.mrf.mxu1 }
 0x1e8   : > { %v1420_v61 = vadd.f32 %v1419_v10, %v9850_v15  ;;  %v2109_v33 = vmax.f32 %v9929_v34, %v1986_v3  ;;  %v10195_v38 = vmax.f32 %v1645_v35, %v1653_v28  ;;  %v2105_v31 = vmax.f32 %v9925_v30, %v1983_v40 }
 0x1e9   : > { %v2176_v41 = vpack.c.bf16 %v2110_v23, %v2107_v0  ;;  %v1421_v27 = vpop.f32.mrf.mxu0  ;;  %v1655_v49 = vpop.f32.mrf.mxu1  ;;  %v2108_v44 = vmax.f32 %v9922_v26, %v1985_v56  ;;  %v1648_v34 = vadd.f32 %v1647_v32, %v9843_v11  ;;  %v1414_v30 = vadd.f32 %v1413_v42, %v9850_v15 }
 0x1ea   : > { %v10199_v46 = vmax.f32 %v1410_v29, %v1420_v61  ;;  %v1422_v22 = vadd.f32 %v1421_v27, %v9861_v21  ;;  %v1656_v50 = vadd.f32 %v1655_v49, %v9843_v11  ;;  %v2175_v10 = vpack.c.bf16 %v2109_v33, %v2106_v13 }
 0x1eb   : > { %v1423_v36 = vpop.f32.mrf.mxu0  ;;  %v1657_v35 = vpop.f32.mrf.mxu1  ;;  %7484 = vmatmul.mubr.msk.bf16.gmra.mxu1 %vm867_vm5, %v2176_v41  ;;  %v2174_v0 = vpack.c.bf16 %v2108_v44, %v2105_v31  ;;  %v10213_v32 = vmax.f32 %v1408_v14, %v1418_v4 }
 0x1ec   : > { %v8586_v26 = vpack.i.bf16 %v10195_v38, %v10199_v46  ;;  %v10209_v29 = vmax.f32 %v1412_v55, %v1422_v22  ;;  %v1424_v28 = vadd.f32 %v1423_v36, %v9850_v15  ;;  %2561 = vmatprep.mubr.bf16.mxu0 %v2175_v10  ;;  %2724 = vmatprep.mubr.bf16.mxu1 %v13069_v58 }
 0x1ed   : > { %2562 = vmatmul.mubr.bf16.gmra.mxu0 %v2174_v0  ;;  %v1427_v40 = vpop.f32.mrf.mxu0  ;;  %v1660_v37 = vpop.f32.mrf.mxu1  ;;  %v10215_v23 = vmax.f32 %v1648_v34, %v1656_v50 }
 0x1ee   : > { %v10217_v56 = vmax.f32 %v1414_v30, %v1424_v28  ;;  %8587 = vrot.lane.b32.xlu1 %v8586_v26, %s9249_s11  ;;  %v8596_v55 = vpack.i.bf16 %v10209_v29, %v10213_v32  ;;  %v1428_v27 = vadd.f32 %v1427_v40, %v9861_v21  ;;  %v1661_v49 = vadd.f32 %v1660_v37, %v9843_v11 }
 0x1ef   : > { %v1429_v42 = vpop.f32.mrf.mxu0  ;;  %v1662_v3 = vpop.f32.mrf.mxu1 }
 0x1f0   : > { %13070 = vst [vmem:[#allocation17_spill] sm:$0xff] %v10217_v56  ;;  %v8591_v16 = vpack.i.bf16 %v10215_v23, %v10217_v56  ;;  %v8483_v61 = vpop.permute.xlu0 %8482  ;;  %v1430_v22 = vadd.f32 %v1429_v42, %v9850_v15 }
 0x1f1   : > { %v8485_v13 = vunpack.i.h.bf16 %v8483_v61  ;;  %v8484_v33 = vunpack.i.l.bf16 %v8483_v61  ;;  %v1431_v41 = vpop.f32.mrf.mxu0  ;;  %v1663_v4 = vpop.f32.mrf.mxu1 }
 0x1f2   : > { %8597 = vrot.lane.b32.xlu1 %v8596_v55, %s9249_s11  ;;  %8592 = vrot.lane.b32.xlu0 %v8591_v16, %s9249_s11  ;;  %v1432_v10 = vadd.f32 %v1431_v41, %v9861_v21  ;;  %v1664_v14 = vadd.f32 %v1663_v4, %v9843_v11 }
 0x1f3   : > { %v1433_v31 = vpop.f32.mrf.mxu0  ;;  %v1665_v44 = vpop.f32.mrf.mxu1  ;;  %v1988_v50 = vsel %vm867_vm5, %v8484_v33, %v8485_v13  ;;  %v2113_v37 = vmax.f32 %v9944_v59, %v8485_v13 }
 0x1f4   : > { %v8488_v34 = vpop.permute.xlu1 %8487  ;;  %v8493_v36 = vpop.permute.xlu0 %8492  ;;  %v1434_v3 = vadd.f32 %v1433_v31, %v9850_v15  ;;  %v2112_v59 = vmax.f32 %v9946_v60, %v1988_v50 }
 0x1f5   : > { %v8490_v35 = vunpack.i.h.bf16 %v8488_v34  ;;  %v8489_v0 = vunpack.i.l.bf16 %v8488_v34  ;;  %v8495_v30 = vunpack.i.h.bf16 %v8493_v36  ;;  %v8494_v26 = vunpack.i.l.bf16 %v8493_v36  ;;  %v1437_v28 = vpop.f32.mrf.mxu0  ;;  %v1668_v40 = vpop.f32.mrf.mxu1 }
 0x1f6   : > { %v1438_v42 = vadd.f32 %v1437_v28, %v9861_v21  ;;  %v1669_v55 = vadd.f32 %v1668_v40, %v9843_v11 }
 0x1f7   : > { %v2116_v16 = vmax.f32 %v9960_v18, %v8490_v35  ;;  %v1990_v61 = vsel %vm867_vm5, %v8489_v0, %v8490_v35  ;;  %v1989_v41 = vsel %vm867_vm5, %v8495_v30, %v8489_v0  ;;  %v1987_v4 = vsel %vm867_vm5, %v8494_v26, %v8484_v33  ;;  %v1439_v44 = vpop.f32.mrf.mxu0  ;;  %v1670_v34 = vpop.f32.mrf.mxu1 }
 0x1f8   : > { %v1440_v36 = vadd.f32 %v1439_v44, %v9850_v15  ;;  %v10241_v56 = vmax.f32 %v1661_v49, %v1669_v55  ;;  %v2115_v13 = vmax.f32 %v9962_v19, %v1990_v61  ;;  %v10245_v28 = vmax.f32 %v1428_v27, %v1438_v42 }
 0x1f9   : > { %v2179_v31 = vpack.c.bf16 %v2116_v16, %v2113_v37  ;;  %v1441_v18 = vpop.f32.mrf.mxu0  ;;  %v1671_v40 = vpop.f32.mrf.mxu1  ;;  %v2111_v35 = vmax.f32 %v9958_v17, %v1987_v4  ;;  %v2114_v0 = vmax.f32 %v9955_v8, %v1989_v41 }
 0x1fa   : > { %v10249_v33 = vmax.f32 %v1430_v22, %v1440_v36  ;;  %v1442_v30 = vadd.f32 %v1441_v18, %v9861_v21  ;;  %v1672_v49 = vadd.f32 %v1671_v40, %v9843_v11  ;;  %v2178_v26 = vpack.c.bf16 %v2115_v13, %v2112_v59 }
 0x1fb   : > { %7485 = vmatmul.mubr.msk.bf16.gmra.mxu1 %vm867_vm5, %v2179_v31  ;;  %v1443_v60 = vpop.f32.mrf.mxu0  ;;  %v2177_v19 = vpack.c.bf16 %v2114_v0, %v2111_v35  ;;  %v1673_v50 = vpop.f32.mrf.mxu1 }
 0x1fc   : > { %v8601_v27 = vpack.i.bf16 %v10241_v56, %v10249_v33  ;;  %v10256_v37 = vmax.f32 %v1432_v10, %v1442_v30  ;;  %v1444_v17 = vadd.f32 %v1443_v60, %v9850_v15  ;;  %v10259_v8 = vmax.f32 %v1664_v14, %v1672_v49  ;;  %2571 = vmatprep.mubr.bf16.mxu0 %v2178_v26 }
 0x1fd   : > { %2572 = vmatmul.mubr.bf16.gmra.mxu0 %v2177_v19  ;;  %2734 = vmatprep.mubr.bf16.mxu1 %v13069_v58  ;;  %v1447_v22 = vpop.f32.mrf.mxu0  ;;  %v1676_v42 = vpop.f32.mrf.mxu1 }
 0x1fe   : > { %v8611_v55 = vpack.i.bf16 %v10256_v37, %v10245_v28  ;;  %v10264_v16 = vmax.f32 %v1434_v3, %v1444_v17  ;;  %8602 = vrot.lane.b32.xlu0 %v8601_v27, %s9249_s11  ;;  %v1448_v59 = vadd.f32 %v1447_v22, %v9861_v21  ;;  %v1677_v0 = vadd.f32 %v1676_v42, %v9843_v11 }
 0x1ff   : > { %v1449_v61 = vpop.f32.mrf.mxu0  ;;  %v1678_v10 = vpop.f32.mrf.mxu1 }
 0x200   : > { %v8606_v41 = vpack.i.bf16 %v10259_v8, %v10264_v16  ;;  %v8498_v14 = vpop.permute.xlu1 %8497  ;;  %v1450_v35 = vadd.f32 %v1449_v61, %v9850_v15 }
 0x201   : > { %v8500_v4 = vunpack.i.h.bf16 %v8498_v14  ;;  %v8499_v44 = vunpack.i.l.bf16 %v8498_v14  ;;  %v1451_v34 = vpop.f32.mrf.mxu0  ;;  %v1679_v36 = vpop.f32.mrf.mxu1 }
 0x202   : > { %8607 = vrot.lane.b32.xlu1 %v8606_v41, %s9249_s11  ;;  %8612 = vrot.lane.b32.xlu0 %v8611_v55, %s9249_s11  ;;  %v1452_v30 = vadd.f32 %v1451_v34, %v9861_v21  ;;  %v1680_v22 = vadd.f32 %v1679_v36, %v9843_v11 }
 0x203   : > { %v1453_v3 = vpop.f32.mrf.mxu0  ;;  %v1681_v13 = vpop.f32.mrf.mxu1  ;;  %v1992_v31 = vsel %vm867_vm5, %v8499_v44, %v8500_v4  ;;  %v2119_v17 = vmax.f32 %v9977_v51, %v8500_v4 }
 0x204   : > { %v8508_v18 = vpop.permute.xlu1 %8507  ;;  %v8503_v40 = vpop.permute.xlu0 %8502 }
 0x205   : > { %v8510_v49 = vunpack.i.h.bf16 %v8508_v18  ;;  %v8509_v26 = vunpack.i.l.bf16 %v8508_v18  ;;  %v8505_v60 = vunpack.i.h.bf16 %v8503_v40  ;;  %v8504_v19 = vunpack.i.l.bf16 %v8503_v40  ;;  %v1457_v50 = vpop.f32.mrf.mxu0  ;;  %v1684_v27 = vpop.f32.mrf.mxu1 }
 0x206   : > { %v1458_v55 = vadd.f32 %v1457_v50, %v9861_v21  ;;  %v1685_v10 = vadd.f32 %v1684_v27, %v9843_v11  ;;  %v2118_v18 = vmax.f32 %v9979_v52, %v1992_v31  ;;  %v1454_v50 = vadd.f32 %v1453_v3, %v9850_v15 }
 0x207   : > { %v1991_v61 = vsel %vm867_vm5, %v8509_v26, %v8499_v44  ;;  %v2122_v42 = vmax.f32 %v9993_v9, %v8505_v60  ;;  %v1993_v41 = vsel %vm867_vm5, %v8510_v49, %v8504_v19  ;;  %v1994_v14 = vsel %vm867_vm5, %v8504_v19, %v8505_v60  ;;  %v1459_v34 = vpop.f32.mrf.mxu0  ;;  %v1686_v13 = vpop.f32.mrf.mxu1 }
 0x208   : > { %v2121_v51 = vmax.f32 %v9995_v12, %v1994_v14  ;;  %v2117_v4 = vmax.f32 %v9991_v7, %v1991_v61  ;;  %v2120_v36 = vmax.f32 %v9988_v1, %v1993_v41  ;;  %v1460_v44 = vadd.f32 %v1459_v34, %v9850_v15 }
 0x209   : > { %v2182_v40 = vpack.c.bf16 %v2122_v42, %v2119_v17  ;;  %v10290_v9 = vmax.f32 %v1677_v0, %v1685_v10  ;;  %v1461_v49 = vpop.f32.mrf.mxu0  ;;  %v1687_v26 = vpop.f32.mrf.mxu1  ;;  %v10295_v7 = vmax.f32 %v1448_v59, %v1458_v55 }
 0x20a   : > { %v2181_v60 = vpack.c.bf16 %v2121_v51, %v2118_v18  ;;  %v2180_v19 = vpack.c.bf16 %v2120_v36, %v2117_v4  ;;  %v1462_v27 = vadd.f32 %v1461_v49, %v9861_v21  ;;  %v1688_v52 = vadd.f32 %v1687_v26, %v9843_v11 }
 0x20b   : > { %7486 = vmatmul.mubr.msk.bf16.gmra.mxu1 %vm867_vm5, %v2182_v40  ;;  %v10297_v1 = vmax.f32 %v1450_v35, %v1460_v44  ;;  %v1463_v12 = vpop.f32.mrf.mxu0  ;;  %v1689_v3 = vpop.f32.mrf.mxu1 }
 0x20c   : > { %2581 = vmatprep.mubr.bf16.mxu0 %v2181_v60  ;;  %2744 = vmatprep.mubr.bf16.mxu1 %v13069_v58  ;;  %v10300_v31 = vmax.f32 %v1452_v30, %v1462_v27  ;;  %v1464_v0 = vadd.f32 %v1463_v12, %v9850_v15  ;;  %v10303_v17 = vmax.f32 %v1680_v22, %v1688_v52 }
 0x20d   : > { %2582 = vmatmul.mubr.bf16.gmra.mxu0 %v2180_v19  ;;  %v8616_v11 = vpack.i.bf16 %v10290_v9, %v10297_v1 }
 0x20e   : > { %v10307_v21 = vmax.f32 %v1454_v50, %v1464_v0  ;;  %v8626_v59 = vpack.i.bf16 %v10300_v31, %v10295_v7 }
 0x20f   : > { %8617 = vrot.lane.b32.xlu1 %v8616_v11, %s9249_s11 }
 0x210   : > { %v8513_v35 = vpop.permute.xlu0 %8512  ;;  %v8621_v30 = vpack.i.bf16 %v10303_v17, %v10307_v21 }
 0x211   : > { %v8515_v55 = vunpack.i.h.bf16 %v8513_v35  ;;  %v8514_v10 = vunpack.i.l.bf16 %v8513_v35 }
 0x212   : > { %8622 = vrot.lane.b32.xlu0 %v8621_v30, %s9249_s11 }
 0x213   : > { %8627 = vrot.lane.b32.xlu1 %v8626_v59, %s9249_s11  ;;  %v1996_v15 = vsel %vm867_vm5, %v8514_v10, %v8515_v55  ;;  %v2125_v13 = vmax.f32 %v10010_v48, %v8515_v55 }
 0x214   : > { %v8518_v22 = vpop.permute.xlu1 %8517  ;;  %v8523_v61 = vpop.permute.xlu0 %8522  ;;  %v2124_v44 = vmax.f32 %v10012_v53, %v1996_v15  ;;  %v13071_v15 = vld [vmem:[#allocation3_spill] sm:$0xff] }
 0x215   : > { %v8520_v42 = vunpack.i.h.bf16 %v8518_v22  ;;  %v8519_v41 = vunpack.i.l.bf16 %v8518_v22  ;;  %v8525_v14 = vunpack.i.h.bf16 %v8523_v61  ;;  %v8524_v34 = vunpack.i.l.bf16 %v8523_v61  ;;  %v13072_v61 = vld [vmem:[#allocation4_spill] sm:$0xff] }
 0x217   : > { %v2128_v18 = vmax.f32 %v10026_v25, %v8520_v42  ;;  %v1998_v51 = vsel %vm867_vm5, %v8519_v41, %v8520_v42  ;;  %v1997_v4 = vsel %vm867_vm5, %v8525_v14, %v8519_v41  ;;  %v1995_v36 = vsel %vm867_vm5, %v8524_v34, %v8514_v10 }
 0x218   : > { %v2126_v40 = vmax.f32 %v10021_v6, %v1997_v4  ;;  %v2123_v50 = vmax.f32 %v10024_v24, %v1995_v36  ;;  %v2127_v49 = vmax.f32 %v10028_v5, %v1998_v51 }
 0x219   : > { %v2185_v26 = vpack.c.bf16 %v2128_v18, %v2125_v13 }
 0x21a   : > { %v2184_v60 = vpack.c.bf16 %v2127_v49, %v2124_v44  ;;  %v2183_v19 = vpack.c.bf16 %v2126_v40, %v2123_v50  ;;  %v13073_v50 = vld [vmem:[#allocation5_spill] sm:$0xff] }
 0x21b   : > { %7487 = vmatmul.mubr.msk.bf16.gmra.mxu1 %vm867_vm5, %v2185_v26  ;;  %v13074_v49 = vld [vmem:[#allocation9_spill] sm:$0xff] }
 0x21c   : > { %2591 = vmatprep.mubr.bf16.mxu0 %v2184_v60  ;;  %2754 = vmatprep.mubr.bf16.mxu1 %v13069_v58 }
 0x21d   : > { %2592 = vmatmul.mubr.bf16.gmra.mxu0 %v2183_v19 }
 0x220   : > { %v8528_v48 = vpop.permute.xlu1 %8527 }
 0x221   : > { %v8530_v25 = vunpack.i.h.bf16 %v8528_v48  ;;  %v8529_v27 = vunpack.i.l.bf16 %v8528_v48 }
 0x223   : > { %v2000_v6 = vsel %vm867_vm5, %v8529_v27, %v8530_v25  ;;  %v2131_v0 = vmax.f32 %v10043_v63, %v8530_v25  ;;  %v13075_v25 = vld [vmem:[#allocation7_spill] sm:$0xff] }
 0x224   : > { %v8538_v52 = vpop.permute.xlu1 %8537  ;;  %v8533_v24 = vpop.permute.xlu0 %8532  ;;  %v2130_v22 = vmax.f32 %v13071_v15, %v2000_v6  ;;  %v13076_v6 = vld [vmem:[#allocation8_spill] sm:$0xff] }
 0x225   : > { %v8540_v12 = vunpack.i.h.bf16 %v8538_v52  ;;  %v8539_v53 = vunpack.i.l.bf16 %v8538_v52  ;;  %v8535_v3 = vunpack.i.h.bf16 %v8533_v24  ;;  %v8534_v5 = vunpack.i.l.bf16 %v8533_v24  ;;  %v13077_v24 = vld [vmem:[#allocation6_spill] sm:$0xff] }
 0x227   : > { %v1999_v11 = vsel %vm867_vm5, %v8539_v53, %v8529_v27  ;;  %v2134_v59 = vmax.f32 %v10059_v45, %v8535_v3  ;;  %v2001_v35 = vsel %vm867_vm5, %v8540_v12, %v8534_v5  ;;  %v2002_v30 = vsel %vm867_vm5, %v8534_v5, %v8535_v3  ;;  %v13078_v53 = vld [vmem:[#allocation10_spill] sm:$0xff] }
 0x228   : > { %v2129_v55 = vmax.f32 %v10057_v43, %v1999_v11  ;;  %v2132_v10 = vmax.f32 %v10054_v39, %v2001_v35  ;;  %v2133_v42 = vmax.f32 %v13072_v61, %v2002_v30 }
 0x229   : > { %v2188_v41 = vpack.c.bf16 %v2134_v59, %v2131_v0 }
 0x22a   : > { %v2187_v14 = vpack.c.bf16 %v2133_v42, %v2130_v22  ;;  %v2186_v34 = vpack.c.bf16 %v2132_v10, %v2129_v55 }
 0x22b   : > { %7488 = vmatmul.mubr.msk.bf16.gmra.mxu1 %vm867_vm5, %v2188_v41 }
 0x22c   : > { %2601 = vmatprep.mubr.bf16.mxu0 %v2187_v14  ;;  %2764 = vmatprep.mubr.bf16.mxu1 %v13069_v58  ;;  %v13079_v14 = vld [vmem:[#allocation11_spill] sm:$0xff] }
 0x22d   : > { %2602 = vmatmul.mubr.bf16.gmra.mxu0 %v2186_v34 }
 0x230   : > { %v8543_v63 = vpop.permute.xlu0 %8542 }
 0x231   : > { %v8545_v45 = vunpack.i.h.bf16 %v8543_v63  ;;  %v8544_v13 = vunpack.i.l.bf16 %v8543_v63 }
 0x233   : > { %v2004_v43 = vsel %vm867_vm5, %v8544_v13, %v8545_v45  ;;  %v2137_v44 = vmax.f32 %v13073_v50, %v8545_v45  ;;  %v13080_v45 = vld [vmem:[#allocation15_spill] sm:$0xff] }
 0x234   : > { %v8548_v18 = vpop.permute.xlu1 %8547  ;;  %v8553_v39 = vpop.permute.xlu0 %8552  ;;  %v2136_v12 = vmax.f32 %v13077_v24, %v2004_v43 }
 0x235   : > { %v8550_v51 = vunpack.i.h.bf16 %v8548_v18  ;;  %v8549_v4 = vunpack.i.l.bf16 %v8548_v18  ;;  %v8555_v36 = vunpack.i.h.bf16 %v8553_v39  ;;  %v8554_v40 = vunpack.i.l.bf16 %v8553_v39  ;;  %v13081_v39 = vld [vmem:[#allocation14_spill] sm:$0xff] }
 0x237   : > { %v2140_v26 = vmax.f32 %v13074_v49, %v8550_v51  ;;  %v2006_v60 = vsel %vm867_vm5, %v8549_v4, %v8550_v51  ;;  %v2005_v19 = vsel %vm867_vm5, %v8555_v36, %v8549_v4  ;;  %v2003_v48 = vsel %vm867_vm5, %v8554_v40, %v8544_v13  ;;  %v13082_v4 = vld [vmem:[#allocation13_spill] sm:$0xff]  ;;  %v13083_v40 = vld [vmem:[#allocation12_spill] sm:$0xff] }
 0x238   : > { %v2138_v27 = vmax.f32 %v13075_v25, %v2005_v19  ;;  %v2135_v52 = vmax.f32 %v13076_v6, %v2003_v48  ;;  %v2139_v3 = vmax.f32 %v13078_v53, %v2006_v60 }
 0x239   : > { %v2191_v5 = vpack.c.bf16 %v2140_v26, %v2137_v44  ;;  %v13084_v44 = vld [vmem:[#allocation16_spill] sm:$0xff] }
 0x23a   : > { %v2190_v0 = vpack.c.bf16 %v2139_v3, %v2136_v12  ;;  %v2189_v11 = vpack.c.bf16 %v2138_v27, %v2135_v52 }
 0x23b   : > { %7489 = vmatmul.mubr.msk.bf16.gmra.mxu1 %vm867_vm5, %v2191_v5 }
 0x23c   : > { %2611 = vmatprep.mubr.bf16.mxu0 %v2190_v0  ;;  %2774 = vmatprep.mubr.bf16.mxu1 %v13069_v58 }
 0x23d   : > { %2612 = vmatmul.mubr.bf16.gmra.mxu0 %v2189_v11 }
 0x240   : > { %v8558_v59 = vpop.permute.xlu1 %8557 }
 0x241   : > { %v8560_v35 = vunpack.i.h.bf16 %v8558_v59  ;;  %v8559_v30 = vunpack.i.l.bf16 %v8558_v59 }
 0x243   : > { %v2008_v55 = vsel %vm867_vm5, %v8559_v30, %v8560_v35  ;;  %v2143_v34 = vmax.f32 %v13079_v14, %v8560_v35 }
 0x244   : > { %v8568_v10 = vpop.permute.xlu1 %8567  ;;  %v8563_v15 = vpop.permute.xlu0 %8562  ;;  %v2142_v50 = vmax.f32 %v13083_v40, %v2008_v55 }
 0x245   : > { %v8570_v22 = vunpack.i.h.bf16 %v8568_v10  ;;  %v8569_v61 = vunpack.i.l.bf16 %v8568_v10  ;;  %v8565_v42 = vunpack.i.h.bf16 %v8563_v15  ;;  %v8564_v41 = vunpack.i.l.bf16 %v8563_v15 }
 0x247   : > { %v2007_v63 = vsel %vm867_vm5, %v8569_v61, %v8559_v30  ;;  %v2146_v13 = vmax.f32 %v13080_v45, %v8565_v42  ;;  %v2009_v43 = vsel %vm867_vm5, %v8570_v22, %v8564_v41  ;;  %v2010_v18 = vsel %vm867_vm5, %v8564_v41, %v8565_v42 }
 0x248   : > { %v2141_v51 = vmax.f32 %v13081_v39, %v2007_v63  ;;  %v2144_v36 = vmax.f32 %v13082_v4, %v2009_v43  ;;  %v2145_v49 = vmax.f32 %v13084_v44, %v2010_v18  ;;  %v8841_v4 = vld [vmem:[%s13022_s4 + $0x1fc] ss:$12 sps:$4 sm:$0xff]  }
 0x249   : > { %v2194_v26 = vpack.c.bf16 %v2146_v13, %v2143_v34  ;;  %v13085_v44 = vld [vmem:[#allocation17_spill] sm:$0xff]  ;;  %3410 = vmatprep.subr.bf16.mxu0 %v8841_v4 }
 0x24a   : > { %v2193_v60 = vpack.c.bf16 %v2145_v49, %v2142_v50  ;;  %v2192_v19 = vpack.c.bf16 %v2144_v36, %v2141_v51  ;;  %v8842_v49 = vld [vmem:[%s13022_s4 + $0x200] ss:$12 sps:$4 sm:$0xff]   ;;  %v8867_v4 = vld [vmem:[%s13022_s4 + $0x150] ss:$12 sps:$4 sm:$0xff]  }
 0x24b   : > { %7490 = vmatmul.mubr.msk.bf16.gmra.mxu1 %vm867_vm5, %v2194_v26 }
 0x24c   : > { %2621 = vmatprep.mubr.bf16.mxu0 %v2193_v60  ;;  %2784 = vmatprep.mubr.bf16.mxu1 %v13069_v58 }
 0x24d   : > { %2622 = vmatmul.mubr.bf16.gmra.mxu0 %v2192_v19  ;;  %3544 = vmatpush1.bf16.msra.mxu1 %v8842_v49 }
 0x24e   : > { %3545 = vmatprep.subr.bf16.mxu1 %v13069_v58 }
 0x251   : > { %v8573_v48 = vpop.permute.xlu0 %8572 }
 0x252   : > { %v8575_v25 = vunpack.i.h.bf16 %v8573_v48  ;;  %v8574_v27 = vunpack.i.l.bf16 %v8573_v48  ;;  %v8849_v48 = vld [vmem:[%s13022_s4 + $0x1cc] ss:$12 sps:$4 sm:$0xff]  }
 0x254   : > { %v8578_v6 = vpop.permute.xlu1 %8577  ;;  %v2012_v52 = vsel %vm867_vm5, %v8574_v27, %v8575_v25  ;;  %v2149_v0 = vmax.f32 %v10154_v57, %v8575_v25 }
 0x255   : > { %v8580_v24 = vunpack.i.h.bf16 %v8578_v6  ;;  %v8579_v12 = vunpack.i.l.bf16 %v8578_v6  ;;  %v8583_v53 = vpop.permute.xlu0 %8582  ;;  %v2148_v55 = vmax.f32 %v10156_v62, %v2012_v52  ;;  %v8850_v6 = vld [vmem:[%s13022_s4 + $0x1d0] ss:$12 sps:$4 sm:$0xff]  }
 0x256   : > { %v8585_v3 = vunpack.i.h.bf16 %v8583_v53  ;;  %v8584_v5 = vunpack.i.l.bf16 %v8583_v53  ;;  %v8853_v53 = vld [vmem:[%s13022_s4 + $0x1b4] ss:$12 sps:$4 sm:$0xff]  }
 0x257   : > { %v2152_v11 = vmax.f32 %v10168_v20, %v8580_v24  ;;  %v2014_v59 = vsel %vm867_vm5, %v8579_v12, %v8580_v24 }
 0x258   : > { %v2013_v35 = vsel %vm867_vm5, %v8585_v3, %v8579_v12  ;;  %v2011_v30 = vsel %vm867_vm5, %v8584_v5, %v8574_v27  ;;  %v2151_v10 = vmax.f32 %v10170_v2, %v2014_v59  ;;  %v8847_v27 = vld [vmem:[%s13022_s4 + $0x1c8] ss:$12 sps:$4 sm:$0xff]   ;;  %v8854_v59 = vld [vmem:[%s13022_s4 + $0x1b8] ss:$12 sps:$4 sm:$0xff]  }
 0x259   : > { %v2197_v15 = vpack.c.bf16 %v2152_v11, %v2149_v0  ;;  %v2150_v22 = vmax.f32 %v10166_v47, %v2013_v35  ;;  %v2147_v61 = vmax.f32 %v10172_v54, %v2011_v30  ;;  %v8851_v11 = vld [vmem:[%s13022_s4 + $0x1b0] ss:$12 sps:$4 sm:$0xff]  }
 0x25a   : > { %v2196_v42 = vpack.c.bf16 %v2151_v10, %v2148_v55 }
 0x25b   : > { %7491 = vmatmul.mubr.msk.bf16.gmra.mxu1 %vm867_vm5, %v2197_v15  ;;  %v2195_v57 = vpack.c.bf16 %v2150_v22, %v2147_v61 }
 0x25c   : > { %2631 = vmatprep.mubr.bf16.mxu0 %v2196_v42  ;;  %2794 = vmatprep.mubr.bf16.mxu1 %v13069_v58 }
 0x25d   : > { %2632 = vmatmul.mubr.bf16.gmra.mxu0 %v2195_v57  ;;  %v8857_v57 = vld [vmem:[%s13022_s4 + $0x19c] ss:$12 sps:$4 sm:$0xff]  }
 0x260   : > { %v8588_v20 = vpop.permute.xlu1 %8587 }
 0x261   : > { %v8590_v41 = vunpack.i.h.bf16 %v8588_v20  ;;  %v8589_v14 = vunpack.i.l.bf16 %v8588_v20 }
 0x263   : > { %v2016_v62 = vsel %vm867_vm5, %v8589_v14, %v8590_v41  ;;  %v2155_v54 = vmax.f32 %v10195_v38, %v8590_v41 }
 0x264   : > { %v8598_v34 = vpop.permute.xlu1 %8597  ;;  %v8593_v2 = vpop.permute.xlu0 %8592  ;;  %v2154_v50 = vmax.f32 %v10199_v46, %v2016_v62  ;;  %v8843_v46 = vld [vmem:[%s13022_s4 + $0x1e0] ss:$12 sps:$4 sm:$0xff]  }
 0x265   : > { %v8600_v63 = vunpack.i.h.bf16 %v8598_v34  ;;  %v8599_v45 = vunpack.i.l.bf16 %v8598_v34  ;;  %v8595_v47 = vunpack.i.h.bf16 %v8593_v2  ;;  %v8594_v13 = vunpack.i.l.bf16 %v8593_v2 }
 0x267   : > { %v2015_v43 = vsel %vm867_vm5, %v8599_v45, %v8589_v14  ;;  %v2158_v18 = vmax.f32 %v10215_v23, %v8595_v47  ;;  %v2017_v39 = vsel %vm867_vm5, %v8600_v63, %v8594_v13  ;;  %v2018_v51 = vsel %vm867_vm5, %v8594_v13, %v8595_v47  ;;  %v8839_v23 = vld [vmem:[%s13022_s4 + $0x1f8] ss:$12 sps:$4 sm:$0xff]   ;;  %v8858_v14 = vld [vmem:[%s13022_s4 + $0x1a0] ss:$12 sps:$4 sm:$0xff]   ;;  %v8863_v45 = vld [vmem:[%s13022_s4 + $0x168] ss:$12 sps:$4 sm:$0xff]  }
 0x268   : > { %v2153_v36 = vmax.f32 %v10213_v32, %v2015_v43  ;;  %v2156_v40 = vmax.f32 %v10209_v29, %v2017_v39  ;;  %v2157_v38 = vmax.f32 %v13085_v44, %v2018_v51  ;;  %3411 = vmatpush1.bf16.msra.mxu0 %v8839_v23  ;;  %v8845_v29 = vld [vmem:[%s13022_s4 + $0x1e4] ss:$12 sps:$4 sm:$0xff]   ;;  %v8846_v32 = vld [vmem:[%s13022_s4 + $0x1e8] ss:$12 sps:$4 sm:$0xff]   ;;  %v8865_v63 = vld [vmem:[%s13022_s4 + $0x16c] ss:$12 sps:$4 sm:$0xff]  }
 0x269   : > { %v2200_v26 = vpack.c.bf16 %v2158_v18, %v2155_v54  ;;  %3412 = vmatprep.subr.bf16.mxu0 %v8845_v29  ;;  %3546 = vmatpush1.bf16.msra.mxu1 %v8846_v32  ;;  %v8866_v47 = vld [vmem:[%s13022_s4 + $0x170] ss:$12 sps:$4 sm:$0xff]   ;;  %v8869_v18 = vld [vmem:[%s13022_s4 + $0x154] ss:$12 sps:$4 sm:$0xff]  }
 0x26a   : > { %v2199_v60 = vpack.c.bf16 %v2157_v38, %v2154_v50  ;;  %v2198_v19 = vpack.c.bf16 %v2156_v40, %v2153_v36  ;;  %3547 = vmatprep.subr.bf16.mxu1 %v13069_v58  ;;  %v8870_v36 = vld [vmem:[%s13022_s4 + $0x158] ss:$12 sps:$4 sm:$0xff]  }
 0x26b   : > { %7492 = vmatmul.mubr.msk.bf16.gmra.mxu1 %vm867_vm5, %v2200_v26 }
 0x26c   : > { %2641 = vmatprep.mubr.bf16.mxu0 %v2199_v60  ;;  %2804 = vmatprep.mubr.bf16.mxu1 %v13069_v58 }
 0x26d   : > { %2642 = vmatmul.mubr.bf16.gmra.mxu0 %v2198_v19  ;;  %3548 = vmatpush1.bf16.msra.mxu1 %v8850_v6 }
 0x26e   : > { %3413 = vmatpush1.bf16.msra.mxu0 %v8843_v46  ;;  %3549 = vmatprep.subr.bf16.mxu1 %v13069_v58  ;;  %v8873_v46 = vld [vmem:[%s13022_s4 + $0x28c] ss:$12 sps:$4 sm:$0xff]  }
 0x26f   : > { %3414 = vmatprep.subr.bf16.mxu0 %v8849_v48 }
 0x270   : > { %v8603_v25 = vpop.permute.xlu0 %8602 }
 0x271   : > { %v8605_v52 = vunpack.i.h.bf16 %v8603_v25  ;;  %v8604_v24 = vunpack.i.l.bf16 %v8603_v25  ;;  %3550 = vmatpush1.bf16.msra.mxu1 %v8854_v59  ;;  %v8887_v59 = vld [vmem:[%s13022_s4 + $0x228] ss:$12 sps:$4 sm:$0xff]  }
 0x272   : > { %3415 = vmatpush1.bf16.msra.mxu0 %v8847_v27  ;;  %3551 = vmatprep.subr.bf16.mxu1 %v13069_v58 }
 0x273   : > { %v2020_v12 = vsel %vm867_vm5, %v8604_v24, %v8605_v52  ;;  %v2161_v3 = vmax.f32 %v10241_v56, %v8605_v52  ;;  %3416 = vmatprep.subr.bf16.mxu0 %v8853_v53  ;;  %v8882_v53 = vld [vmem:[%s13022_s4 + $0x260] ss:$12 sps:$4 sm:$0xff]  }
 0x274   : > { %v8608_v5 = vpop.permute.xlu1 %8607  ;;  %v8613_v0 = vpop.permute.xlu0 %8612  ;;  %v2160_v15 = vmax.f32 %v10249_v33, %v2020_v12  ;;  %v8879_v12 = vld [vmem:[%s13022_s4 + $0x258] ss:$12 sps:$4 sm:$0xff]  }
 0x275   : > { %v8610_v35 = vunpack.i.h.bf16 %v8608_v5  ;;  %v8609_v30 = vunpack.i.l.bf16 %v8608_v5  ;;  %v8615_v55 = vunpack.i.h.bf16 %v8613_v0  ;;  %v8614_v10 = vunpack.i.l.bf16 %v8613_v0  ;;  %3552 = vmatpush1.bf16.msra.mxu1 %v8858_v14  ;;  %v8883_v5 = vld [vmem:[%s13022_s4 + $0x240] ss:$12 sps:$4 sm:$0xff]   ;;  %v8886_v0 = vld [vmem:[%s13022_s4 + $0x248] ss:$12 sps:$4 sm:$0xff]  }
 0x276   : > { %3417 = vmatpush1.bf16.msra.mxu0 %v8851_v11  ;;  %3553 = vmatprep.subr.bf16.mxu1 %v13069_v58  ;;  %v8889_v11 = vld [vmem:[%s13022_s4 + $0x22c] ss:$12 sps:$4 sm:$0xff]  }
 0x277   : > { %v2164_v56 = vmax.f32 %v10259_v8, %v8610_v35  ;;  %v2022_v22 = vsel %vm867_vm5, %v8609_v30, %v8610_v35  ;;  %v2021_v61 = vsel %vm867_vm5, %v8615_v55, %v8609_v30  ;;  %v2019_v42 = vsel %vm867_vm5, %v8614_v10, %v8604_v24  ;;  %v8855_v8 = vld [vmem:[%s13022_s4 + $0x198] ss:$12 sps:$4 sm:$0xff]   ;;  %3418 = vmatprep.subr.bf16.mxu0 %v8857_v57  ;;  %v8877_v24 = vld [vmem:[%s13022_s4 + $0x274] ss:$12 sps:$4 sm:$0xff]   ;;  %v8890_v35 = vld [vmem:[%s13022_s4 + $0x230] ss:$12 sps:$4 sm:$0xff]  }
 0x278   : > { %v2162_v20 = vmax.f32 %v10256_v37, %v2021_v61  ;;  %v2159_v33 = vmax.f32 %v10245_v28, %v2019_v42  ;;  %v2163_v41 = vmax.f32 %v10264_v16, %v2022_v22  ;;  %v8859_v28 = vld [vmem:[%s13022_s4 + $0x180] ss:$12 sps:$4 sm:$0xff]   ;;  %v8861_v37 = vld [vmem:[%s13022_s4 + $0x184] ss:$12 sps:$4 sm:$0xff]   ;;  %v8862_v16 = vld [vmem:[%s13022_s4 + $0x188] ss:$12 sps:$4 sm:$0xff]  }
 0x279   : > { %v2203_v62 = vpack.c.bf16 %v2164_v56, %v2161_v3  ;;  %3554 = vmatpush1.bf16.msra.mxu1 %v8862_v16  ;;  %v8885_v3 = vld [vmem:[%s13022_s4 + $0x244] ss:$12 sps:$4 sm:$0xff]   ;;  %v8893_v10 = vld [vmem:[%s13022_s4 + $0x214] ss:$12 sps:$4 sm:$0xff]  }
 0x27a   : > { %v2202_v34 = vpack.c.bf16 %v2163_v41, %v2160_v15  ;;  %v2201_v2 = vpack.c.bf16 %v2162_v20, %v2159_v33  ;;  %3419 = vmatpush1.bf16.msra.mxu0 %v8855_v8  ;;  %3555 = vmatprep.subr.bf16.mxu1 %v13069_v58  ;;  %v8891_v55 = vld [vmem:[%s13022_s4 + $0x210] ss:$12 sps:$4 sm:$0xff]   ;;  %v8894_v15 = vld [vmem:[%s13022_s4 + $0x218] ss:$12 sps:$4 sm:$0xff]  }
 0x27b   : > { %7493 = vmatmul.mubr.msk.bf16.gmra.mxu1 %vm867_vm5, %v2203_v62  ;;  %3420 = vmatprep.subr.bf16.mxu0 %v8861_v37 }
 0x27c   : > { %2651 = vmatprep.mubr.bf16.mxu0 %v2202_v34  ;;  %2814 = vmatprep.mubr.bf16.mxu1 %v13069_v58 }
 0x27d   : > { %2652 = vmatmul.mubr.bf16.gmra.mxu0 %v2201_v2  ;;  %3556 = vmatpush1.bf16.msra.mxu1 %v8866_v47 }
 0x27e   : > { %3421 = vmatpush1.bf16.msra.mxu0 %v8859_v28  ;;  %3557 = vmatprep.subr.bf16.mxu1 %v13069_v58 }
 0x27f   : > { %3422 = vmatprep.subr.bf16.mxu0 %v8865_v63 }
 0x281   : > { %v8618_v13 = vpop.permute.xlu1 %8617  ;;  %3558 = vmatpush1.bf16.msra.mxu1 %v8870_v36 }
 0x282   : > { %v8620_v54 = vunpack.i.h.bf16 %v8618_v13  ;;  %v8619_v43 = vunpack.i.l.bf16 %v8618_v13  ;;  %3423 = vmatpush1.bf16.msra.mxu0 %v8863_v45  ;;  %3563 = vmatprep.subr.bf16.mxu1 %v13069_v58 }
 0x283   : > { %3424 = vmatprep.subr.bf16.mxu0 %v8869_v18 }
 0x284   : > { %v2024_v39 = vsel %vm867_vm5, %v8619_v43, %v8620_v54  ;;  %v8623_v51 = vpop.permute.xlu0 %8622  ;;  %v2167_v40 = vmax.f32 %v10290_v9, %v8620_v54 }
 0x285   : > { %v8625_v50 = vunpack.i.h.bf16 %v8623_v51  ;;  %v8624_v44 = vunpack.i.l.bf16 %v8623_v51  ;;  %v8628_v38 = vpop.permute.xlu1 %8627  ;;  %v2166_v26 = vmax.f32 %v10297_v1, %v2024_v39  ;;  %v8871_v1 = vld [vmem:[%s13022_s4 + $0x288] ss:$12 sps:$4 sm:$0xff]  }
 0x286   : > { %v8630_v23 = vunpack.i.h.bf16 %v8628_v38  ;;  %v8629_v49 = vunpack.i.l.bf16 %v8628_v38  ;;  %3425 = vmatpush1.bf16.msra.mxu0 %v8867_v4 }
 0x287   : > { %v2170_v60 = vmax.f32 %v10303_v17, %v8625_v50  ;;  %v2026_v19 = vsel %vm867_vm5, %v8624_v44, %v8625_v50  ;;  %v8874_v17 = vld [vmem:[%s13022_s4 + $0x290] ss:$12 sps:$4 sm:$0xff]   ;;  %3430 = vmatprep.subr.bf16.mxu0 %v8873_v46 }
 0x288   : > { %v2023_v9 = vsel %vm867_vm5, %v8629_v49, %v8619_v43  ;;  %v2025_v29 = vsel %vm867_vm5, %v8630_v23, %v8624_v44  ;;  %v2169_v32 = vmax.f32 %v10307_v21, %v2026_v19  ;;  %3564 = vmatpush2.bf16.msra.mxu1 %v8874_v17  ;;  %v8875_v21 = vld [vmem:[%s13022_s4 + $0x270] ss:$12 sps:$4 sm:$0xff]  }
 0x289   : > { %v2206_v48 = vpack.c.bf16 %v2170_v60, %v2167_v40  ;;  %v2165_v25 = vmax.f32 %v10295_v7, %v2023_v9  ;;  %v2168_v27 = vmax.f32 %v10300_v31, %v2025_v29  ;;  %3565 = vmatprep.subr.bf16.mxu1 %v13069_v58  ;;  %v8878_v7 = vld [vmem:[%s13022_s4 + $0x278] ss:$12 sps:$4 sm:$0xff]   ;;  %v8881_v31 = vld [vmem:[%s13022_s4 + $0x25c] ss:$12 sps:$4 sm:$0xff]  }
 0x28a   : > { %v2205_v6 = vpack.c.bf16 %v2169_v32, %v2166_v26  ;;  %3431 = vmatpush2.bf16.msra.mxu0 %v8871_v1 }
 0x28b   : > { %v2204_v52 = vpack.c.bf16 %v2168_v27, %v2165_v25  ;;  %7494 = vmatmul.mubr.msk.bf16.gmra.mxu1 %vm867_vm5, %v2206_v48  ;;  %3432 = vmatprep.subr.bf16.mxu0 %v8877_v24 }
 0x28c   : > { %2661 = vmatprep.mubr.bf16.mxu0 %v2205_v6  ;;  %3566 = vmatpush2.bf16.msra.mxu1 %v8878_v7 }
 0x28d   : > { %2662 = vmatmul.mubr.bf16.gmra.mxu0 %v2204_v52  ;;  %3567 = vmatprep.subr.bf16.mxu1 %v13069_v58 }
 0x28e   : > { %3433 = vmatpush2.bf16.msra.mxu0 %v8875_v21 }
 0x28f   : > { %3434 = vmatprep.subr.bf16.mxu0 %v8881_v31 }
 0x290   : > { %3568 = vmatpush2.bf16.msra.mxu1 %v8882_v53 }
 0x291   : > { %3569 = vmatprep.subr.bf16.mxu1 %v13069_v58 }
 0x292   : > { %3435 = vmatpush2.bf16.msra.mxu0 %v8879_v12 }
 0x293   : > { %3436 = vmatprep.subr.bf16.mxu0 %v8885_v3 }
 0x294   : > { %3570 = vmatpush2.bf16.msra.mxu1 %v8886_v0 }
 0x295   : > { %3571 = vmatprep.subr.bf16.mxu1 %v13069_v58 }
 0x296   : > { %3437 = vmatpush2.bf16.msra.mxu0 %v8883_v5 }
 0x297   : > { %3438 = vmatprep.subr.bf16.mxu0 %v8889_v11 }
 0x298   : > { %3572 = vmatpush2.bf16.msra.mxu1 %v8890_v35 }
 0x299   : > { %3573 = vmatprep.subr.bf16.mxu1 %v13069_v58 }
 0x29a   : > { %3439 = vmatpush2.bf16.msra.mxu0 %v8887_v59 }
 0x29b   : > { %v2706_v30 = vpop.f32.mrf.mxu1  ;;  %3440 = vmatprep.subr.bf16.mxu0 %v8893_v10 }
 0x29c   : > { %3574 = vmatpush2.bf16.msra.mxu1 %v8894_v15 }
 0x29d   : > { %v2708_v56 = vpop.f32.mrf.mxu1  ;;  %4015 = vmatprep.subr.bf16.mxu1 %v13069_v58 }
 0x29e   : > { %v2553_v22 = vpop.f32.mrf.mxu0  ;;  %3441 = vmatpush2.bf16.msra.mxu0 %v8891_v55 }
 0x29f   : > { %v2710_v42 = vpop.f32.mrf.mxu1  ;;  %v2707_v57 = vadd.f32 %v2706_v30, %v2553_v22 }
 0x2a0   : > { %v2555_v61 = vpop.f32.mrf.mxu0 }
 0x2a1   : > { %v2709_v33 = vadd.f32 %v2708_v56, %v2555_v61  ;;  %v2712_v8 = vpop.f32.mrf.mxu1  ;;  %v2825_v62 = vmax.f32 %v2707_v57, 0.0 }
 0x2a2   : > { %v2557_v20 = vpop.f32.mrf.mxu0 }
 0x2a3   : > { %v2711_v41 = vadd.f32 %v2710_v42, %v2557_v20  ;;  %v2826_v28 = vmax.f32 %v2709_v33, 0.0 }
 0x2a4   : > { %v2559_v14 = vpop.f32.mrf.mxu0 }
 0x2a5   : > { %v2827_v34 = vmax.f32 %v2711_v41, 0.0  ;;  %v2713_v2 = vadd.f32 %v2712_v8, %v2559_v14 }
 0x2a7   : > { %v2873_v37 = vpack.c.bf16 %v2827_v34, %v2825_v62  ;;  %v2828_v16 = vmax.f32 %v2713_v2, 0.0 }
 0x2a9   : > { %v2874_v63 = vpack.c.bf16 %v2828_v16, %v2826_v28  ;;  %2924 = vrot.lane.b32.xlu0 %v2873_v37, %s9250_s25  ;;  %v8897_v37 = vld [vmem:[%s13022_s4 + $0xac] ss:$12 sps:$4 sm:$0xff]  }
 0x2aa   : > { %3882 = vmatprep.subr.bf16.mxu0 %v8897_v37 }
 0x2ab   : > { %2926 = vrot.lane.b32.xlu1 %v2874_v63, %s9250_s25  ;;  %v2716_v45 = vpop.f32.mrf.mxu1 }
 0x2ad   : > { %v2563_v47 = vpop.f32.mrf.mxu0  ;;  %v2718_v13 = vpop.f32.mrf.mxu1 }
 0x2ae   : > { %v2717_v18 = vadd.f32 %v2716_v45, %v2563_v47 }
 0x2af   : > { %v2565_v54 = vpop.f32.mrf.mxu0  ;;  %v2720_v43 = vpop.f32.mrf.mxu1 }
 0x2b0   : > { %v2719_v51 = vadd.f32 %v2718_v13, %v2565_v54  ;;  %v2829_v50 = vmax.f32 %v2717_v18, 0.0 }
 0x2b1   : > { %v2567_v39 = vpop.f32.mrf.mxu0  ;;  %v2722_v36 = vpop.f32.mrf.mxu1 }
 0x2b2   : > { %v2721_v4 = vadd.f32 %v2720_v43, %v2567_v39  ;;  %v2830_v23 = vmax.f32 %v2719_v51, 0.0 }
 0x2b3   : > { %v2569_v40 = vpop.f32.mrf.mxu0 }
 0x2b4   : > { %v2831_v44 = vmax.f32 %v2721_v4, 0.0  ;;  %v2723_v38 = vadd.f32 %v2722_v36, %v2569_v40 }
 0x2b6   : > { %v2875_v49 = vpack.c.bf16 %v2831_v44, %v2829_v50  ;;  %v2832_v26 = vmax.f32 %v2723_v38, 0.0 }
 0x2b8   : > { %v2876_v60 = vpack.c.bf16 %v2832_v26, %v2830_v23  ;;  %2928 = vrot.lane.b32.xlu0 %v2875_v49, %s9250_s25 }
 0x2ba   : > { %2930 = vrot.lane.b32.xlu1 %v2876_v60, %s9250_s25 }
 0x2bb   : > { %v2726_v19 = vpop.f32.mrf.mxu1 }
 0x2bd   : > { %v2573_v46 = vpop.f32.mrf.mxu0  ;;  %v2728_v9 = vpop.f32.mrf.mxu1 }
 0x2be   : > { %v2727_v1 = vadd.f32 %v2726_v19, %v2573_v46 }
 0x2bf   : > { %v2575_v29 = vpop.f32.mrf.mxu0  ;;  %v2730_v32 = vpop.f32.mrf.mxu1 }
 0x2c0   : > { %v2729_v48 = vadd.f32 %v2728_v9, %v2575_v29  ;;  %v2833_v52 = vmax.f32 %v2727_v1, 0.0 }
 0x2c1   : > { %v2577_v17 = vpop.f32.mrf.mxu0  ;;  %v2732_v27 = vpop.f32.mrf.mxu1 }
 0x2c2   : > { %v2731_v25 = vadd.f32 %v2730_v32, %v2577_v17  ;;  %v2834_v7 = vmax.f32 %v2729_v48, 0.0 }
 0x2c3   : > { %v2579_v6 = vpop.f32.mrf.mxu0 }
 0x2c4   : > { %v2835_v21 = vmax.f32 %v2731_v25, 0.0  ;;  %v2733_v24 = vadd.f32 %v2732_v27, %v2579_v6 }
 0x2c6   : > { %v2877_v31 = vpack.c.bf16 %v2835_v21, %v2833_v52  ;;  %v2836_v12 = vmax.f32 %v2733_v24, 0.0 }
 0x2c8   : > { %v2878_v53 = vpack.c.bf16 %v2836_v12, %v2834_v7  ;;  %2932 = vrot.lane.b32.xlu0 %v2877_v31, %s9250_s25 }
 0x2ca   : > { %2934 = vrot.lane.b32.xlu1 %v2878_v53, %s9250_s25 }
 0x2cb   : > { %v2736_v3 = vpop.f32.mrf.mxu1 }
 0x2cd   : > { %v2583_v5 = vpop.f32.mrf.mxu0  ;;  %v2738_v0 = vpop.f32.mrf.mxu1 }
 0x2ce   : > { %v2737_v35 = vadd.f32 %v2736_v3, %v2583_v5 }
 0x2cf   : > { %v2585_v11 = vpop.f32.mrf.mxu0  ;;  %v2740_v59 = vpop.f32.mrf.mxu1 }
 0x2d0   : > { %v2739_v55 = vadd.f32 %v2738_v0, %v2585_v11  ;;  %v2837_v22 = vmax.f32 %v2737_v35, 0.0 }
 0x2d1   : > { %v2587_v30 = vpop.f32.mrf.mxu0  ;;  %v2742_v15 = vpop.f32.mrf.mxu1 }
 0x2d2   : > { %v2741_v10 = vadd.f32 %v2740_v59, %v2587_v30  ;;  %v2838_v57 = vmax.f32 %v2739_v55, 0.0 }
 0x2d3   : > { %v2589_v56 = vpop.f32.mrf.mxu0 }
 0x2d4   : > { %v2839_v61 = vmax.f32 %v2741_v10, 0.0  ;;  %v2743_v42 = vadd.f32 %v2742_v15, %v2589_v56 }
 0x2d6   : > { %v2879_v20 = vpack.c.bf16 %v2839_v61, %v2837_v22  ;;  %v2840_v33 = vmax.f32 %v2743_v42, 0.0 }
 0x2d8   : > { %v2880_v41 = vpack.c.bf16 %v2840_v33, %v2838_v57  ;;  %2936 = vrot.lane.b32.xlu0 %v2879_v20, %s9250_s25 }
 0x2da   : > { %2938 = vrot.lane.b32.xlu1 %v2880_v41, %s9250_s25 }
 0x2db   : > { %v2746_v8 = vpop.f32.mrf.mxu1 }
 0x2dd   : > { %v2593_v14 = vpop.f32.mrf.mxu0  ;;  %v2748_v62 = vpop.f32.mrf.mxu1 }
 0x2de   : > { %v2747_v28 = vadd.f32 %v2746_v8, %v2593_v14 }
 0x2df   : > { %v2595_v34 = vpop.f32.mrf.mxu0  ;;  %v2750_v2 = vpop.f32.mrf.mxu1 }
 0x2e0   : > { %v2749_v63 = vadd.f32 %v2748_v62, %v2595_v34  ;;  %v2841_v54 = vmax.f32 %v2747_v28, 0.0 }
 0x2e1   : > { %v2597_v16 = vpop.f32.mrf.mxu0  ;;  %v2752_v47 = vpop.f32.mrf.mxu1 }
 0x2e2   : > { %v2751_v45 = vadd.f32 %v2750_v2, %v2597_v16  ;;  %v2842_v39 = vmax.f32 %v2749_v63, 0.0 }
 0x2e3   : > { %v2599_v13 = vpop.f32.mrf.mxu0 }
 0x2e4   : > { %v2843_v43 = vmax.f32 %v2751_v45, 0.0  ;;  %v2753_v18 = vadd.f32 %v2752_v47, %v2599_v13 }
 0x2e6   : > { %v2881_v51 = vpack.c.bf16 %v2843_v43, %v2841_v54  ;;  %v2844_v4 = vmax.f32 %v2753_v18, 0.0 }
 0x2e8   : > { %v2882_v36 = vpack.c.bf16 %v2844_v4, %v2842_v39  ;;  %2940 = vrot.lane.b32.xlu0 %v2881_v51, %s9250_s25  ;;  %v8895_v4 = vld [vmem:[%s13022_s4 + $0xa8] ss:$12 sps:$4 sm:$0xff]  }
 0x2ea   : > { %2942 = vrot.lane.b32.xlu1 %v2882_v36, %s9250_s25  ;;  %v8898_v36 = vld [vmem:[%s13022_s4 + $0xb0] ss:$12 sps:$4 sm:$0xff]  }
 0x2eb   : > { %v2756_v40 = vpop.f32.mrf.mxu1 }
 0x2ed   : > { %v2603_v50 = vpop.f32.mrf.mxu0  ;;  %v2758_v44 = vpop.f32.mrf.mxu1 }
 0x2ee   : > { %v2757_v49 = vadd.f32 %v2756_v40, %v2603_v50 }
 0x2ef   : > { %v2605_v38 = vpop.f32.mrf.mxu0  ;;  %v2760_v23 = vpop.f32.mrf.mxu1 }
 0x2f0   : > { %v2759_v60 = vadd.f32 %v2758_v44, %v2605_v38  ;;  %v2845_v29 = vmax.f32 %v2757_v49, 0.0  ;;  %v8901_v44 = vld [vmem:[%s13022_s4 + $0x94] ss:$12 sps:$4 sm:$0xff]  }
 0x2f1   : > { %v2607_v26 = vpop.f32.mrf.mxu0  ;;  %v2762_v46 = vpop.f32.mrf.mxu1 }
 0x2f2   : > { %v2761_v19 = vadd.f32 %v2760_v23, %v2607_v26  ;;  %v2846_v17 = vmax.f32 %v2759_v60, 0.0 }
 0x2f3   : > { %v2609_v9 = vpop.f32.mrf.mxu0 }
 0x2f4   : > { %v2847_v32 = vmax.f32 %v2761_v19, 0.0  ;;  %v2763_v1 = vadd.f32 %v2762_v46, %v2609_v9  ;;  %v8899_v19 = vld [vmem:[%s13022_s4 + $0x90] ss:$12 sps:$4 sm:$0xff]   ;;  %v8902_v46 = vld [vmem:[%s13022_s4 + $0x98] ss:$12 sps:$4 sm:$0xff]  }
 0x2f6   : > { %v2883_v48 = vpack.c.bf16 %v2847_v32, %v2845_v29  ;;  %v2848_v25 = vmax.f32 %v2763_v1, 0.0  ;;  %v8905_v32 = vld [vmem:[%s13022_s4 + $0x7c] ss:$12 sps:$4 sm:$0xff]  }
 0x2f8   : > { %v2884_v27 = vpack.c.bf16 %v2848_v25, %v2846_v17  ;;  %2944 = vrot.lane.b32.xlu0 %v2883_v48, %s9250_s25 }
 0x2fa   : > { %2946 = vrot.lane.b32.xlu1 %v2884_v27, %s9250_s25 }
 0x2fb   : > { %v2766_v6 = vpop.f32.mrf.mxu1 }
 0x2fd   : > { %v2613_v52 = vpop.f32.mrf.mxu0  ;;  %v2768_v21 = vpop.f32.mrf.mxu1 }
 0x2fe   : > { %v2767_v31 = vadd.f32 %v2766_v6, %v2613_v52  ;;  %v8903_v52 = vld [vmem:[%s13022_s4 + $0x78] ss:$12 sps:$4 sm:$0xff]  }
 0x2ff   : > { %v2615_v24 = vpop.f32.mrf.mxu0  ;;  %v2770_v7 = vpop.f32.mrf.mxu1 }
 0x300   : > { %v2769_v53 = vadd.f32 %v2768_v21, %v2615_v24  ;;  %v2849_v11 = vmax.f32 %v2767_v31, 0.0  ;;  %v8906_v21 = vld [vmem:[%s13022_s4 + $0x80] ss:$12 sps:$4 sm:$0xff]   ;;  %v8909_v24 = vld [vmem:[%s13022_s4 + $0x64] ss:$12 sps:$4 sm:$0xff]  }
 0x301   : > { %v2617_v12 = vpop.f32.mrf.mxu0  ;;  %v2772_v5 = vpop.f32.mrf.mxu1  ;;  %v8907_v31 = vld [vmem:[%s13022_s4 + $0x60] ss:$12 sps:$4 sm:$0xff]  }
 0x302   : > { %v2771_v3 = vadd.f32 %v2770_v7, %v2617_v12  ;;  %v2850_v30 = vmax.f32 %v2769_v53, 0.0 }
 0x303   : > { %v2619_v0 = vpop.f32.mrf.mxu0 }
 0x304   : > { %v2851_v59 = vmax.f32 %v2771_v3, 0.0  ;;  %v2773_v35 = vadd.f32 %v2772_v5, %v2619_v0 }
 0x306   : > { %v2885_v55 = vpack.c.bf16 %v2851_v59, %v2849_v11  ;;  %v2852_v10 = vmax.f32 %v2773_v35, 0.0  ;;  %v8910_v59 = vld [vmem:[%s13022_s4 + $0x68] ss:$12 sps:$4 sm:$0xff]   ;;  %v8913_v35 = vld [vmem:[%s13022_s4 + $0x4c] ss:$12 sps:$4 sm:$0xff]  }
 0x308   : > { %v2886_v15 = vpack.c.bf16 %v2852_v10, %v2850_v30  ;;  %2948 = vrot.lane.b32.xlu0 %v2885_v55, %s9250_s25  ;;  %v8911_v55 = vld [vmem:[%s13022_s4 + $0x48] ss:$12 sps:$4 sm:$0xff]  }
 0x30a   : > { %2950 = vrot.lane.b32.xlu1 %v2886_v15, %s9250_s25 }
 0x30b   : > { %v2776_v56 = vpop.f32.mrf.mxu1 }
 0x30d   : > { %v2623_v22 = vpop.f32.mrf.mxu0  ;;  %v2778_v61 = vpop.f32.mrf.mxu1 }
 0x30e   : > { %v2777_v20 = vadd.f32 %v2776_v56, %v2623_v22  ;;  %v8917_v56 = vld [vmem:[%s13022_s4 + $0x34] ss:$12 sps:$4 sm:$0xff]  }
 0x30f   : > { %v2625_v42 = vpop.f32.mrf.mxu0  ;;  %v2780_v57 = vpop.f32.mrf.mxu1 }
 0x310   : > { %v2779_v41 = vadd.f32 %v2778_v61, %v2625_v42  ;;  %v2853_v34 = vmax.f32 %v2777_v20, 0.0  ;;  %v8914_v42 = vld [vmem:[%s13022_s4 + $0x50] ss:$12 sps:$4 sm:$0xff]  }
 0x311   : > { %v2627_v33 = vpop.f32.mrf.mxu0  ;;  %v2782_v14 = vpop.f32.mrf.mxu1 }
 0x312   : > { %v2781_v8 = vadd.f32 %v2780_v57, %v2627_v33  ;;  %v2854_v37 = vmax.f32 %v2779_v41, 0.0  ;;  %v8915_v33 = vld [vmem:[%s13022_s4 + $0x30] ss:$12 sps:$4 sm:$0xff]  }
 0x313   : > { %v2629_v62 = vpop.f32.mrf.mxu0 }
 0x314   : > { %v2855_v2 = vmax.f32 %v2781_v8, 0.0  ;;  %v2783_v28 = vadd.f32 %v2782_v14, %v2629_v62  ;;  %v8921_v14 = vld [vmem:[%s13022_s4 + $0x1c] ss:$12 sps:$4 sm:$0xff]  }
 0x316   : > { %v2887_v16 = vpack.c.bf16 %v2855_v2, %v2853_v34  ;;  %v2856_v63 = vmax.f32 %v2783_v28, 0.0  ;;  %v8918_v28 = vld [vmem:[%s13022_s4 + $0x38] ss:$12 sps:$4 sm:$0xff]  }
 0x318   : > { %v2888_v45 = vpack.c.bf16 %v2856_v63, %v2854_v37  ;;  %2952 = vrot.lane.b32.xlu0 %v2887_v16, %s9250_s25 }
 0x31a   : > { %2954 = vrot.lane.b32.xlu1 %v2888_v45, %s9250_s25  ;;  %v8919_v45 = vld [vmem:[%s13022_s4 + $0x18] ss:$12 sps:$4 sm:$0xff]  }
 0x31b   : > { %v2786_v47 = vpop.f32.mrf.mxu1  ;;  %v10570_v13 = vpop.permute.xlu0 %2924 }
 0x31d   : > { %v2927_v54 = vpop.permute.xlu1 %2926  ;;  %v2633_v43 = vpop.f32.mrf.mxu0 }
 0x31e   : > { %v2973_v39 = vsel %vm2972_vm6, %v10570_v13, %v2927_v54  ;;  %v2788_v51 = vpop.f32.mrf.mxu1  ;;  %v2787_v38 = vadd.f32 %v2786_v47, %v2633_v43  ;;  %v8925_v47 = vld [vmem:[%s13022_s4 + $0x4] ss:$12 sps:$4 sm:$0xff]   ;;  %v8922_v43 = vld [vmem:[%s13022_s4 + $0x20] ss:$12 sps:$4 sm:$0xff]  }
 0x31f   : > { %v10586_v40 = vsel %vm3026_vm7, %v2973_v39, 0  ;;  %v2635_v50 = vpop.f32.mrf.mxu0  ;;  %v8923_v39 = vld [vmem:[%s13022_s4] ss:$12 sps:$4 sm:$0xff]  }
 0x320   : > { %v2790_v23 = vpop.f32.mrf.mxu1  ;;  %7593 = vmatprep.mubr.msk.bf16.mxu0 %vm3389_vm8, %v10586_v40  ;;  %7623 = vmatprep.mubr.msk.bf16.mxu1 %vm3389_vm8, %v10586_v40  ;;  %v2789_v26 = vadd.f32 %v2788_v51, %v2635_v50  ;;  %v2857_v1 = vmax.f32 %v2787_v38, 0.0 }
 0x321   : > { %7595 = vmatmul.mubr.msk.bf16.vlgmr.msra.gmra.mxu0 %vm10573_vm9, %v10570_v13  ;;  %7625 = vmatmul.mubr.msk.bf16.vlgmr.msra.gmra.mxu1 %vm10573_vm9, %v10570_v13  ;;  %v2637_v49 = vpop.f32.mrf.mxu0 }
 0x322   : > { %v2791_v60 = vadd.f32 %v2790_v23, %v2637_v49  ;;  %3883 = vmatpush1.bf16.msra.mxu0 %v8895_v4  ;;  %4016 = vmatpush1.bf16.msra.mxu1 %v8898_v36  ;;  %v2792_v9 = vpop.f32.mrf.mxu1  ;;  %v2858_v25 = vmax.f32 %v2789_v26, 0.0  ;;  %v8926_v23 = vld [vmem:[%s13022_s4 + $0x8] ss:$12 sps:$4 sm:$0xff]  }
 0x323   : > { %v2639_v29 = vpop.f32.mrf.mxu0  ;;  %3884 = vmatprep.subr.bf16.mxu0 %v8901_v44  ;;  %4017 = vmatprep.subr.bf16.mxu1 %v13069_v58  ;;  %v8929_v49 = vld [vmem:[%s13022_s4 + $0x13c] ss:$12 sps:$4 sm:$0xff]  }
 0x324   : > { %v2859_v17 = vmax.f32 %v2791_v60, 0.0  ;;  %v2793_v48 = vadd.f32 %v2792_v9, %v2639_v29  ;;  %v8933_v29 = vld [vmem:[%s13022_s4 + $0x124] ss:$12 sps:$4 sm:$0xff]  }
 0x326   : > { %v2889_v27 = vpack.c.bf16 %v2859_v17, %v2857_v1  ;;  %v2860_v6 = vmax.f32 %v2793_v48, 0.0  ;;  %3885 = vmatpush1.bf16.msra.mxu0 %v8899_v19  ;;  %4018 = vmatpush1.bf16.msra.mxu1 %v8902_v46  ;;  %v8927_v19 = vld [vmem:[%s13022_s4 + $0x138] ss:$12 sps:$4 sm:$0xff]   ;;  %v8930_v48 = vld [vmem:[%s13022_s4 + $0x140] ss:$12 sps:$4 sm:$0xff]  }
 0x327   : > { %3886 = vmatprep.subr.bf16.mxu0 %v8905_v32  ;;  %4019 = vmatprep.subr.bf16.mxu1 %v13069_v58 }
 0x328   : > { %v2890_v7 = vpack.c.bf16 %v2860_v6, %v2858_v25  ;;  %2956 = vrot.lane.b32.xlu0 %v2889_v27, %s9250_s25  ;;  %v8931_v6 = vld [vmem:[%s13022_s4 + $0x120] ss:$12 sps:$4 sm:$0xff]  }
 0x32a   : > { %2958 = vrot.lane.b32.xlu1 %v2890_v7, %s9250_s25  ;;  %3887 = vmatpush1.bf16.msra.mxu0 %v8903_v52  ;;  %v10626_v53 = vpop.permute.xlu0 %2928 }
 0x32b   : > { %v2796_v12 = vpop.f32.mrf.mxu1  ;;  %4020 = vmatpush1.bf16.msra.mxu1 %v8906_v21  ;;  %3888 = vmatprep.subr.bf16.mxu0 %v8909_v24  ;;  %v8937_v21 = vld [vmem:[%s13022_s4 + $0x10c] ss:$12 sps:$4 sm:$0xff]  }
 0x32c   : > { %v2931_v3 = vpop.permute.xlu1 %2930  ;;  %4021 = vmatprep.subr.bf16.mxu1 %v13069_v58 }
 0x32d   : > { %v2974_v5 = vsel %vm2972_vm6, %v10626_v53, %v2931_v3  ;;  %v2643_v0 = vpop.f32.mrf.mxu0  ;;  %v2798_v11 = vpop.f32.mrf.mxu1 }
 0x32e   : > { %v10638_v30 = vsel %vm3026_vm7, %v2974_v5, 0  ;;  %3889 = vmatpush1.bf16.msra.mxu0 %v8907_v31  ;;  %v2797_v22 = vadd.f32 %v2796_v12, %v2643_v0  ;;  %v8934_v12 = vld [vmem:[%s13022_s4 + $0x128] ss:$12 sps:$4 sm:$0xff]  }
 0x32f   : > { %v2645_v10 = vpop.f32.mrf.mxu0  ;;  %v2800_v15 = vpop.f32.mrf.mxu1  ;;  %7596 = vmatprep.mubr.msk.bf16.mxu0 %vm3389_vm8, %v10638_v30  ;;  %7626 = vmatprep.mubr.msk.bf16.mxu1 %vm3389_vm8, %v10638_v30  ;;  %v8935_v0 = vld [vmem:[%s13022_s4 + $0x108] ss:$12 sps:$4 sm:$0xff]  }
 0x330   : > { %7598 = vmatmul.mubr.msk.bf16.gmra.mxu0 %vm10573_vm9, %v10626_v53  ;;  %7628 = vmatmul.mubr.msk.bf16.gmra.mxu1 %vm10573_vm9, %v10626_v53  ;;  %v2799_v57 = vadd.f32 %v2798_v11, %v2645_v10  ;;  %v2861_v62 = vmax.f32 %v2797_v22, 0.0  ;;  %v8941_v11 = vld [vmem:[%s13022_s4 + $0xf4] ss:$12 sps:$4 sm:$0xff]  }
 0x331   : > { %v2647_v61 = vpop.f32.mrf.mxu0  ;;  %4022 = vmatpush1.bf16.msra.mxu1 %v8910_v59  ;;  %3890 = vmatprep.subr.bf16.mxu0 %v8913_v35  ;;  %v2802_v41 = vpop.f32.mrf.mxu1  ;;  %v8938_v35 = vld [vmem:[%s13022_s4 + $0x110] ss:$12 sps:$4 sm:$0xff]  }
 0x332   : > { %v2801_v20 = vadd.f32 %v2800_v15, %v2647_v61  ;;  %3891 = vmatpush1.bf16.msra.mxu0 %v8911_v55  ;;  %4023 = vmatprep.subr.bf16.mxu1 %v13069_v58  ;;  %v2862_v37 = vmax.f32 %v2799_v57, 0.0  ;;  %v8939_v55 = vld [vmem:[%s13022_s4 + $0xf0] ss:$12 sps:$4 sm:$0xff]   ;;  %v8942_v57 = vld [vmem:[%s13022_s4 + $0xf8] ss:$12 sps:$4 sm:$0xff]  }
 0x333   : > { %v2649_v8 = vpop.f32.mrf.mxu0  ;;  %3892 = vmatprep.subr.bf16.mxu0 %v8917_v56 }
 0x334   : > { %v2863_v34 = vmax.f32 %v2801_v20, 0.0  ;;  %v2803_v2 = vadd.f32 %v2802_v41, %v2649_v8  ;;  %v8945_v20 = vld [vmem:[%s13022_s4 + $0xdc] ss:$12 sps:$4 sm:$0xff]   ;;  %v8943_v8 = vld [vmem:[%s13022_s4 + $0xd8] ss:$12 sps:$4 sm:$0xff]  }
 0x335   : > { %4024 = vmatpush1.bf16.msra.mxu1 %v8914_v42 }
 0x336   : > { %v2891_v16 = vpack.c.bf16 %v2863_v34, %v2861_v62  ;;  %v2864_v63 = vmax.f32 %v2803_v2, 0.0  ;;  %3893 = vmatpush1.bf16.msra.mxu0 %v8915_v33  ;;  %4025 = vmatprep.subr.bf16.mxu1 %v13069_v58  ;;  %v8949_v34 = vld [vmem:[%s13022_s4 + $0xc4] ss:$12 sps:$4 sm:$0xff]  }
 0x337   : > { %3894 = vmatprep.subr.bf16.mxu0 %v8921_v14 }
 0x338   : > { %v2892_v54 = vpack.c.bf16 %v2864_v63, %v2862_v37  ;;  %2960 = vrot.lane.b32.xlu0 %v2891_v16, %s9250_s25  ;;  %v8946_v16 = vld [vmem:[%s13022_s4 + $0xe0] ss:$12 sps:$4 sm:$0xff]  }
 0x339   : > { %4026 = vmatpush1.bf16.msra.mxu1 %v8918_v28 }
 0x33a   : > { %2962 = vrot.lane.b32.xlu1 %v2892_v54, %s9250_s25  ;;  %3895 = vmatpush1.bf16.msra.mxu0 %v8919_v45  ;;  %v10685_v4 = vpop.permute.xlu0 %2932 }
 0x33b   : > { %v2806_v51 = vpop.f32.mrf.mxu1  ;;  %4027 = vmatprep.subr.bf16.mxu1 %v13069_v58  ;;  %3896 = vmatprep.subr.bf16.mxu0 %v8925_v47  ;;  %v8947_v47 = vld [vmem:[%s13022_s4 + $0xc0] ss:$12 sps:$4 sm:$0xff]  }
 0x33c   : > { %v2935_v36 = vpop.permute.xlu1 %2934  ;;  %2922 = vrot.lane.b32.xlu0 %v13069_v58, %s9250_s25 }
 0x33d   : > { %v2975_v50 = vsel %vm2972_vm6, %v10685_v4, %v2935_v36  ;;  %v2653_v44 = vpop.f32.mrf.mxu0  ;;  %v2808_v38 = vpop.f32.mrf.mxu1  ;;  %4028 = vmatpush1.bf16.msra.mxu1 %v8922_v43  ;;  %v8953_v43 = vld [vmem:[%s13022_s4 + $0x34c] ss:$12 sps:$4 sm:$0xff]  }
 0x33e   : > { %v10698_v26 = vsel %vm3026_vm7, %v2975_v50, 0  ;;  %v2807_v60 = vadd.f32 %v2806_v51, %v2653_v44  ;;  %3897 = vmatpush1.bf16.msra.mxu0 %v8923_v39  ;;  %4029 = vmatprep.subr.bf16.mxu1 %v13069_v58  ;;  %v8950_v50 = vld [vmem:[%s13022_s4 + $0xc8] ss:$12 sps:$4 sm:$0xff]  }
 0x33f   : > { %7599 = vmatprep.mubr.msk.bf16.mxu0 %vm3389_vm8, %v10698_v26  ;;  %7629 = vmatprep.mubr.msk.bf16.mxu1 %vm3389_vm8, %v10698_v26  ;;  %v2655_v46 = vpop.f32.mrf.mxu0  ;;  %v2810_v9 = vpop.f32.mrf.mxu1 }
 0x340   : > { %v2809_v32 = vadd.f32 %v2808_v38, %v2655_v46  ;;  %7601 = vmatmul.mubr.msk.bf16.gmra.mxu0 %vm10573_vm9, %v10685_v4  ;;  %7631 = vmatmul.mubr.msk.bf16.gmra.mxu1 %vm10573_vm9, %v10685_v4  ;;  %v2865_v25 = vmax.f32 %v2807_v60, 0.0 }
 0x341   : > { %v2657_v1 = vpop.f32.mrf.mxu0  ;;  %v2812_v17 = vpop.f32.mrf.mxu1  ;;  %4030 = vmatpush1.bf16.msra.mxu1 %v8926_v23  ;;  %3902 = vmatprep.subr.bf16.mxu0 %v8929_v49 }
 0x342   : > { %v2811_v27 = vadd.f32 %v2810_v9, %v2657_v1  ;;  %3903 = vmatpush2.bf16.msra.mxu0 %v8927_v19  ;;  %4035 = vmatprep.subr.bf16.mxu1 %v13069_v58  ;;  %v2866_v24 = vmax.f32 %v2809_v32, 0.0 }
 0x343   : > { %v2659_v52 = vpop.f32.mrf.mxu0  ;;  %3904 = vmatprep.subr.bf16.mxu0 %v8933_v29 }
 0x344   : > { %v2867_v7 = vmax.f32 %v2811_v27, 0.0  ;;  %v2813_v31 = vadd.f32 %v2812_v17, %v2659_v52 }
 0x345   : > { %4036 = vmatpush2.bf16.msra.mxu1 %v8930_v48 }
 0x346   : > { %v2893_v3 = vpack.c.bf16 %v2867_v7, %v2865_v25  ;;  %v2868_v5 = vmax.f32 %v2813_v31, 0.0  ;;  %3905 = vmatpush2.bf16.msra.mxu0 %v8931_v6  ;;  %4037 = vmatprep.subr.bf16.mxu1 %v13069_v58 }
 0x347   : > { %3906 = vmatprep.subr.bf16.mxu0 %v8937_v21 }
 0x348   : > { %v2894_v59 = vpack.c.bf16 %v2868_v5, %v2866_v24  ;;  %2964 = vrot.lane.b32.xlu1 %v2893_v3, %s9250_s25 }
 0x349   : > { %4038 = vmatpush2.bf16.msra.mxu1 %v8934_v12 }
 0x34a   : > { %2966 = vrot.lane.b32.xlu0 %v2894_v59, %s9250_s25  ;;  %3907 = vmatpush2.bf16.msra.mxu0 %v8935_v0  ;;  %v10746_v15 = vpop.permute.xlu0 %2936 }
 0x34b   : > { %v2816_v10 = vpop.f32.mrf.mxu1  ;;  %4039 = vmatprep.subr.bf16.mxu1 %v13069_v58  ;;  %3908 = vmatprep.subr.bf16.mxu0 %v8941_v11 }
 0x34c   : > { %v2939_v56 = vpop.permute.xlu1 %2938 }
 0x34d   : > { %v2976_v22 = vsel %vm2972_vm6, %v10746_v15, %v2939_v56  ;;  %v2663_v61 = vpop.f32.mrf.mxu0  ;;  %v2818_v42 = vpop.f32.mrf.mxu1  ;;  %4040 = vmatpush2.bf16.msra.mxu1 %v8938_v35  ;;  %v8954_v56 = vld [vmem:[%s13022_s4 + $0x350] ss:$12 sps:$4 sm:$0xff]  }
 0x34e   : > { %v10757_v33 = vsel %vm3026_vm7, %v2976_v22, 0  ;;  %v2817_v41 = vadd.f32 %v2816_v10, %v2663_v61  ;;  %3909 = vmatpush2.bf16.msra.mxu0 %v8939_v55  ;;  %4041 = vmatprep.subr.bf16.mxu1 %v13069_v58  ;;  %v8951_v10 = vld [vmem:[%s13022_s4 + $0x348] ss:$12 sps:$4 sm:$0xff]   ;;  %v8955_v61 = vld [vmem:[%s13022_s4 + $0x330] ss:$12 sps:$4 sm:$0xff]  }
 0x34f   : > { %7602 = vmatprep.mubr.msk.bf16.mxu0 %vm3389_vm8, %v10757_v33  ;;  %7632 = vmatprep.mubr.msk.bf16.mxu1 %vm3389_vm8, %v10757_v33  ;;  %v2665_v14 = vpop.f32.mrf.mxu0  ;;  %v2820_v62 = vpop.f32.mrf.mxu1  ;;  %v8957_v22 = vld [vmem:[%s13022_s4 + $0x334] ss:$12 sps:$4 sm:$0xff]  }
 0x350   : > { %7604 = vmatmul.mubr.msk.bf16.gmra.mxu0 %vm10573_vm9, %v10746_v15  ;;  %7634 = vmatmul.mubr.msk.bf16.gmra.mxu1 %vm10573_vm9, %v10746_v15  ;;  %v2819_v2 = vadd.f32 %v2818_v42, %v2665_v14  ;;  %v2869_v63 = vmax.f32 %v2817_v41, 0.0  ;;  %v8958_v42 = vld [vmem:[%s13022_s4 + $0x338] ss:$12 sps:$4 sm:$0xff]   ;;  %v8966_v14 = vld [vmem:[%s13022_s4 + $0x308] ss:$12 sps:$4 sm:$0xff]  }
 0x351   : > { %v2667_v28 = vpop.f32.mrf.mxu0  ;;  %v2822_v37 = vpop.f32.mrf.mxu1  ;;  %4042 = vmatpush2.bf16.msra.mxu1 %v8942_v57  ;;  %3910 = vmatprep.subr.bf16.mxu0 %v8945_v20  ;;  %v8961_v57 = vld [vmem:[%s13022_s4 + $0x31c] ss:$12 sps:$4 sm:$0xff]   ;;  %v8959_v20 = vld [vmem:[%s13022_s4 + $0x318] ss:$12 sps:$4 sm:$0xff]  }
 0x352   : > { %v2821_v45 = vadd.f32 %v2820_v62, %v2667_v28  ;;  %3911 = vmatpush2.bf16.msra.mxu0 %v8943_v8  ;;  %4043 = vmatprep.subr.bf16.mxu1 %v13069_v58  ;;  %v2870_v39 = vmax.f32 %v2819_v2, 0.0  ;;  %v8965_v41 = vld [vmem:[%s13022_s4 + $0x304] ss:$12 sps:$4 sm:$0xff]   ;;  %v8963_v8 = vld [vmem:[%s13022_s4 + $0x300] ss:$12 sps:$4 sm:$0xff]  }
 0x353   : > { %v2669_v54 = vpop.f32.mrf.mxu0  ;;  %3912 = vmatprep.subr.bf16.mxu0 %v8949_v34  ;;  %v8967_v62 = vld [vmem:[%s13022_s4 + $0x2e8] ss:$12 sps:$4 sm:$0xff]   ;;  %v8970_v34 = vld [vmem:[%s13022_s4 + $0x2f0] ss:$12 sps:$4 sm:$0xff]  }
 0x354   : > { %v2871_v51 = vmax.f32 %v2821_v45, 0.0  ;;  %v2823_v36 = vadd.f32 %v2822_v37, %v2669_v54  ;;  %v8973_v2 = vld [vmem:[%s13022_s4 + $0x2d4] ss:$12 sps:$4 sm:$0xff]   ;;  %v8971_v28 = vld [vmem:[%s13022_s4 + $0x2d0] ss:$12 sps:$4 sm:$0xff]  }
 0x355   : > { %4044 = vmatpush2.bf16.msra.mxu1 %v8946_v16  ;;  %v8974_v37 = vld [vmem:[%s13022_s4 + $0x2d8] ss:$12 sps:$4 sm:$0xff]   ;;  %v8977_v16 = vld [vmem:[%s13022_s4 + $0x2bc] ss:$12 sps:$4 sm:$0xff]   ;;  %v8978_v45 = vld [vmem:[%s13022_s4 + $0x2c0] ss:$12 sps:$4 sm:$0xff]  }
 0x356   : > { %v2895_v44 = vpack.c.bf16 %v2871_v51, %v2869_v63  ;;  %v2872_v38 = vmax.f32 %v2823_v36, 0.0  ;;  %3913 = vmatpush2.bf16.msra.mxu0 %v8947_v47  ;;  %4045 = vmatprep.subr.bf16.mxu1 %v13069_v58  ;;  %v8975_v63 = vld [vmem:[%s13022_s4 + $0x2b8] ss:$12 sps:$4 sm:$0xff]   ;;  %v8979_v54 = vld [vmem:[%s13022_s4 + $0x2a0] ss:$12 sps:$4 sm:$0xff]  }
 0x357   : > { %4411 = vmatprep.subr.bf16.mxu0 %v8953_v43  ;;  %v8981_v47 = vld [vmem:[%s13022_s4 + $0x2a4] ss:$12 sps:$4 sm:$0xff]   ;;  %v8982_v43 = vld [vmem:[%s13022_s4 + $0x2a8] ss:$12 sps:$4 sm:$0xff]   ;;  %v8986_v36 = vld [vmem:[%s13022_s4 + $0x3e0] ss:$12 sps:$4 sm:$0xff]  }
 0x358   : > { %v2896_v23 = vpack.c.bf16 %v2872_v38, %v2870_v39  ;;  %2968 = vrot.lane.b32.xlu1 %v2895_v44, %s9250_s25  ;;  %v8985_v39 = vld [vmem:[%s13022_s4 + $0x3dc] ss:$12 sps:$4 sm:$0xff]   ;;  %v8983_v51 = vld [vmem:[%s13022_s4 + $0x3d8] ss:$12 sps:$4 sm:$0xff]   ;;  %v8987_v44 = vld [vmem:[%s13022_s4 + $0x3c0] ss:$12 sps:$4 sm:$0xff]  }
 0x359   : > { %4046 = vmatpush2.bf16.msra.mxu1 %v8950_v50  ;;  %v8989_v50 = vld [vmem:[%s13022_s4 + $0x3c4] ss:$12 sps:$4 sm:$0xff]   ;;  %v8990_v38 = vld [vmem:[%s13022_s4 + $0x3c8] ss:$12 sps:$4 sm:$0xff]  }
 0x35a   : > { %2970 = vrot.lane.b32.xlu0 %v2896_v23, %s9250_s25  ;;  %4544 = vmatprep.subr.bf16.mxu1 %v13069_v58  ;;  %v10793_v49 = vpop.permute.xlu0 %2940  ;;  %v8993_v23 = vld [vmem:[%s13022_s4 + $0x3ac] ss:$12 sps:$4 sm:$0xff]  }
 0x35c   : > { %v2943_v60 = vpop.permute.xlu1 %2942 }
 0x35d   : > { %v2977_v19 = vsel %vm2972_vm6, %v10793_v49, %v2943_v60  ;;  %v8991_v60 = vld [vmem:[%s13022_s4 + $0x3a8] ss:$12 sps:$4 sm:$0xff]  }
 0x35e   : > { %v10798_v46 = vsel %vm3026_vm7, %v2977_v19, 0  ;;  %v8994_v19 = vld [vmem:[%s13022_s4 + $0x3b0] ss:$12 sps:$4 sm:$0xff]  }
 0x35f   : > { %7605 = vmatprep.mubr.msk.bf16.mxu0 %vm3389_vm8, %v10798_v46  ;;  %7635 = vmatprep.mubr.msk.bf16.mxu1 %vm3389_vm8, %v10798_v46 }
 0x360   : > { %7607 = vmatmul.mubr.msk.bf16.gmra.mxu0 %vm10573_vm9, %v10793_v49  ;;  %7637 = vmatmul.mubr.msk.bf16.gmra.mxu1 %vm10573_vm9, %v10793_v49 }
 0x36a   : > { %v10810_v9 = vpop.permute.xlu0 %2944 }
 0x36c   : > { %v2947_v29 = vpop.permute.xlu1 %2946 }
 0x36d   : > { %v2978_v32 = vsel %vm2972_vm6, %v10810_v9, %v2947_v29  ;;  %v8997_v29 = vld [vmem:[%s13022_s4 + $0x394] ss:$12 sps:$4 sm:$0xff]  }
 0x36e   : > { %v10815_v1 = vsel %vm3026_vm7, %v2978_v32, 0 }
 0x36f   : > { %7608 = vmatprep.mubr.msk.bf16.mxu0 %vm3389_vm8, %v10815_v1  ;;  %7638 = vmatprep.mubr.msk.bf16.mxu1 %vm3389_vm8, %v10815_v1 }
 0x370   : > { %7610 = vmatmul.mubr.msk.bf16.gmra.mxu0 %vm10573_vm9, %v10810_v9  ;;  %7640 = vmatmul.mubr.msk.bf16.gmra.mxu1 %vm10573_vm9, %v10810_v9 }
 0x37a   : > { %v10827_v17 = vpop.permute.xlu0 %2948 }
 0x37c   : > { %v2951_v48 = vpop.permute.xlu1 %2950 }
 0x37d   : > { %v2979_v25 = vsel %vm2972_vm6, %v10827_v17, %v2951_v48  ;;  %v8995_v48 = vld [vmem:[%s13022_s4 + $0x390] ss:$12 sps:$4 sm:$0xff]  }
 0x37e   : > { %v10832_v27 = vsel %vm3026_vm7, %v2979_v25, 0  ;;  %v8998_v25 = vld [vmem:[%s13022_s4 + $0x398] ss:$12 sps:$4 sm:$0xff]  }
 0x37f   : > { %7611 = vmatprep.mubr.msk.bf16.mxu0 %vm3389_vm8, %v10832_v27  ;;  %7641 = vmatprep.mubr.msk.bf16.mxu1 %vm3389_vm8, %v10832_v27 }
 0x380   : > { %7613 = vmatmul.mubr.msk.bf16.gmra.mxu0 %vm10573_vm9, %v10827_v17  ;;  %7643 = vmatmul.mubr.msk.bf16.gmra.mxu1 %vm10573_vm9, %v10827_v17 }
 0x38a   : > { %v10844_v6 = vpop.permute.xlu0 %2952 }
 0x38c   : > { %v2955_v52 = vpop.permute.xlu1 %2954 }
 0x38d   : > { %v2980_v21 = vsel %vm2972_vm6, %v10844_v6, %v2955_v52 }
 0x38e   : > { %v10849_v24 = vsel %vm3026_vm7, %v2980_v21, 0  ;;  %v9001_v21 = vld [vmem:[%s13022_s4 + $0x37c] ss:$12 sps:$4 sm:$0xff]  }
 0x38f   : > { %7614 = vmatprep.mubr.msk.bf16.mxu0 %vm3389_vm8, %v10849_v24  ;;  %7644 = vmatprep.mubr.msk.bf16.mxu1 %vm3389_vm8, %v10849_v24 }
 0x390   : > { %7616 = vmatmul.mubr.msk.bf16.gmra.mxu0 %vm10573_vm9, %v10844_v6  ;;  %7646 = vmatmul.mubr.msk.bf16.gmra.mxu1 %vm10573_vm9, %v10844_v6 }
 0x39a   : > { %v10861_v7 = vpop.permute.xlu0 %2956 }
 0x39c   : > { %v2959_v31 = vpop.permute.xlu1 %2958 }
 0x39d   : > { %v2981_v12 = vsel %vm2972_vm6, %v10861_v7, %v2959_v31 }
 0x39e   : > { %v10866_v3 = vsel %vm3026_vm7, %v2981_v12, 0  ;;  %v8999_v12 = vld [vmem:[%s13022_s4 + $0x378] ss:$12 sps:$4 sm:$0xff]  }
 0x39f   : > { %7617 = vmatprep.mubr.msk.bf16.mxu0 %vm3389_vm8, %v10866_v3  ;;  %7647 = vmatprep.mubr.msk.bf16.mxu1 %vm3389_vm8, %v10866_v3 }
 0x3a0   : > { %7619 = vmatmul.mubr.msk.bf16.gmra.mxu0 %vm10573_vm9, %v10861_v7  ;;  %7649 = vmatmul.mubr.msk.bf16.gmra.mxu1 %vm10573_vm9, %v10861_v7 }
 0x3aa   : > { %v10878_v5 = vpop.permute.xlu0 %2960 }
 0x3ac   : > { %v2963_v0 = vpop.permute.xlu1 %2962 }
 0x3ad   : > { %v2982_v11 = vsel %vm2972_vm6, %v10878_v5, %v2963_v0  ;;  %v9002_v0 = vld [vmem:[%s13022_s4 + $0x380] ss:$12 sps:$4 sm:$0xff]  }
 0x3ae   : > { %v10883_v59 = vsel %vm3026_vm7, %v2982_v11, 0  ;;  %v10885_v35 = vpop.permute.xlu0 %2922 }
 0x3af   : > { %13088 = vst [vmem:[#allocation3_spill] sm:$0xff] %v10885_v35  ;;  %7620 = vmatprep.mubr.msk.bf16.mxu0 %vm3389_vm8, %v10883_v59  ;;  %7650 = vmatprep.mubr.msk.bf16.mxu1 %vm3389_vm8, %v10883_v59  ;;  %v10893_v55 = vsel %vm3026_vm7, %v10885_v35, 0 }
 0x3b0   : > { %13089 = vst [vmem:[#allocation4_spill] sm:$0xff] %v10893_v55  ;;  %7622 = vmatmul.mubr.msk.bf16.gmra.mxu0 %vm10573_vm9, %v10878_v5  ;;  %7652 = vmatmul.mubr.msk.bf16.gmra.mxu1 %vm10573_vm9, %v10878_v5 }
 0x3b1   : > { %7695 = vmatprep.mubr.msk.bf16.mxu0 %vm3389_vm8, %v10893_v55  ;;  %7725 = vmatprep.mubr.msk.bf16.mxu1 %vm3389_vm8, %v10893_v55  ;;  %v9118_v55 = vld [vmem:[%s13022_s4 + $0x608] ss:$12 sps:$4 sm:$0xff]  }
 0x3b8   : > { %7697 = vmatmul.mubr.msk.bf16.vlgmr.msra.gmra.mxu0 %vm10573_vm9, %v10885_v35  ;;  %7727 = vmatmul.mubr.msk.bf16.vlgmr.msra.gmra.mxu1 %vm10573_vm9, %v10885_v35  ;;  %v9113_v35 = vld [vmem:[%s13022_s4 + $0x61c] ss:$12 sps:$4 sm:$0xff]  }
 0x3b9   : > { %4412 = vmatpush1.bf16.msra.mxu0 %v8951_v10  ;;  %7698 = vmatprep.mubr.msk.bf16.mxu0 %vm3389_vm8, %v10586_v40  ;;  %v9005_v10 = vld [vmem:[%s13022_s4 + $0x364] ss:$12 sps:$4 sm:$0xff]  }
 0x3ba   : > { %7728 = vmatprep.mubr.msk.bf16.mxu1 %vm3389_vm8, %v10586_v40  ;;  %4545 = vmatpush1.bf16.msra.mxu1 %v8954_v56  ;;  %v8962_v40 = vld [vmem:[%s13022_s4 + $0x320] ss:$12 sps:$4 sm:$0xff]  }
 0x3bb   : > { %4413 = vmatprep.subr.bf16.mxu0 %v8957_v22  ;;  %4546 = vmatprep.subr.bf16.mxu1 %v13069_v58  ;;  %v9003_v56 = vld [vmem:[%s13022_s4 + $0x360] ss:$12 sps:$4 sm:$0xff]   ;;  %v9006_v22 = vld [vmem:[%s13022_s4 + $0x368] ss:$12 sps:$4 sm:$0xff]  }
 0x3bd   : > { %4414 = vmatpush1.bf16.msra.mxu0 %v8955_v61  ;;  %v9009_v61 = vld [vmem:[%s13022_s4 + $0x49c] ss:$12 sps:$4 sm:$0xff]  }
 0x3be   : > { %4547 = vmatpush1.bf16.msra.mxu1 %v8958_v42  ;;  %4415 = vmatprep.subr.bf16.mxu0 %v8961_v57 }
 0x3bf   : > { %4548 = vmatprep.subr.bf16.mxu1 %v13069_v58 }
 0x3c0   : > { %7700 = vmatmul.mubr.msk.bf16.gmra.mxu0 %vm10573_vm9, %v10570_v13  ;;  %7730 = vmatmul.mubr.msk.bf16.gmra.mxu1 %vm10573_vm9, %v10570_v13  ;;  %v8969_v13 = vld [vmem:[%s13022_s4 + $0x2ec] ss:$12 sps:$4 sm:$0xff]  }
 0x3c1   : > { %7701 = vmatprep.mubr.msk.bf16.mxu0 %vm3389_vm8, %v10638_v30  ;;  %7731 = vmatprep.mubr.msk.bf16.mxu1 %vm3389_vm8, %v10638_v30 }
 0x3c2   : > { %4416 = vmatpush1.bf16.msra.mxu0 %v8959_v20  ;;  %4549 = vmatpush1.bf16.msra.mxu1 %v8962_v40 }
 0x3c3   : > { %4417 = vmatprep.subr.bf16.mxu0 %v8965_v41  ;;  %4550 = vmatprep.subr.bf16.mxu1 %v13069_v58 }
 0x3c6   : > { %4418 = vmatpush1.bf16.msra.mxu0 %v8963_v8  ;;  %4551 = vmatpush1.bf16.msra.mxu1 %v8966_v14 }
 0x3c7   : > { %4419 = vmatprep.subr.bf16.mxu0 %v8969_v13  ;;  %4552 = vmatprep.subr.bf16.mxu1 %v13069_v58 }
 0x3c8   : > { %7703 = vmatmul.mubr.msk.bf16.gmra.mxu0 %vm10573_vm9, %v10626_v53  ;;  %7733 = vmatmul.mubr.msk.bf16.gmra.mxu1 %vm10573_vm9, %v10626_v53 }
 0x3c9   : > { %7704 = vmatprep.mubr.msk.bf16.mxu0 %vm3389_vm8, %v10698_v26  ;;  %7734 = vmatprep.mubr.msk.bf16.mxu1 %vm3389_vm8, %v10698_v26 }
 0x3ca   : > { %4420 = vmatpush1.bf16.msra.mxu0 %v8967_v62  ;;  %4553 = vmatpush1.bf16.msra.mxu1 %v8970_v34 }
 0x3cb   : > { %4421 = vmatprep.subr.bf16.mxu0 %v8973_v2  ;;  %4554 = vmatprep.subr.bf16.mxu1 %v13069_v58 }
 0x3ce   : > { %4422 = vmatpush1.bf16.msra.mxu0 %v8971_v28  ;;  %4555 = vmatpush1.bf16.msra.mxu1 %v8974_v37 }
 0x3cf   : > { %4423 = vmatprep.subr.bf16.mxu0 %v8977_v16  ;;  %4556 = vmatprep.subr.bf16.mxu1 %v13069_v58  ;;  %v9007_v16 = vld [vmem:[%s13022_s4 + $0x498] ss:$12 sps:$4 sm:$0xff]  }
 0x3d0   : > { %7706 = vmatmul.mubr.msk.bf16.gmra.mxu0 %vm10573_vm9, %v10685_v4  ;;  %7736 = vmatmul.mubr.msk.bf16.gmra.mxu1 %vm10573_vm9, %v10685_v4 }
 0x3d1   : > { %7707 = vmatprep.mubr.msk.bf16.mxu0 %vm3389_vm8, %v10757_v33  ;;  %7737 = vmatprep.mubr.msk.bf16.mxu1 %vm3389_vm8, %v10757_v33 }
 0x3d2   : > { %4424 = vmatpush1.bf16.msra.mxu0 %v8975_v63  ;;  %4557 = vmatpush1.bf16.msra.mxu1 %v8978_v45  ;;  %v9010_v45 = vld [vmem:[%s13022_s4 + $0x4a0] ss:$12 sps:$4 sm:$0xff]  }
 0x3d3   : > { %4425 = vmatprep.subr.bf16.mxu0 %v8981_v47  ;;  %4558 = vmatprep.subr.bf16.mxu1 %v13069_v58  ;;  %v9013_v47 = vld [vmem:[%s13022_s4 + $0x484] ss:$12 sps:$4 sm:$0xff]  }
 0x3d6   : > { %4426 = vmatpush1.bf16.msra.mxu0 %v8979_v54  ;;  %4559 = vmatpush1.bf16.msra.mxu1 %v8982_v43  ;;  %v9014_v43 = vld [vmem:[%s13022_s4 + $0x488] ss:$12 sps:$4 sm:$0xff]  }
 0x3d7   : > { %4431 = vmatprep.subr.bf16.mxu0 %v8985_v39  ;;  %4564 = vmatprep.subr.bf16.mxu1 %v13069_v58 }
 0x3d8   : > { %7709 = vmatmul.mubr.msk.bf16.gmra.mxu0 %vm10573_vm9, %v10746_v15  ;;  %7739 = vmatmul.mubr.msk.bf16.gmra.mxu1 %vm10573_vm9, %v10746_v15 }
 0x3d9   : > { %7710 = vmatprep.mubr.msk.bf16.mxu0 %vm3389_vm8, %v10798_v46  ;;  %7740 = vmatprep.mubr.msk.bf16.mxu1 %vm3389_vm8, %v10798_v46 }
 0x3da   : > { %4432 = vmatpush2.bf16.msra.mxu0 %v8983_v51  ;;  %4565 = vmatpush2.bf16.msra.mxu1 %v8986_v36  ;;  %v9015_v36 = vld [vmem:[%s13022_s4 + $0x468] ss:$12 sps:$4 sm:$0xff]  }
 0x3db   : > { %4433 = vmatprep.subr.bf16.mxu0 %v8989_v50  ;;  %4566 = vmatprep.subr.bf16.mxu1 %v13069_v58  ;;  %v9018_v50 = vld [vmem:[%s13022_s4 + $0x470] ss:$12 sps:$4 sm:$0xff]  }
 0x3de   : > { %4434 = vmatpush2.bf16.msra.mxu0 %v8987_v44  ;;  %4567 = vmatpush2.bf16.msra.mxu1 %v8990_v38  ;;  %v9021_v44 = vld [vmem:[%s13022_s4 + $0x454] ss:$12 sps:$4 sm:$0xff]  }
 0x3df   : > { %4435 = vmatprep.subr.bf16.mxu0 %v8993_v23  ;;  %4568 = vmatprep.subr.bf16.mxu1 %v13069_v58 }
 0x3e0   : > { %7712 = vmatmul.mubr.msk.bf16.gmra.mxu0 %vm10573_vm9, %v10793_v49  ;;  %7742 = vmatmul.mubr.msk.bf16.gmra.mxu1 %vm10573_vm9, %v10793_v49 }
 0x3e1   : > { %v11070_v32 = vpop.f32.mrf.mxu1  ;;  %7713 = vmatprep.mubr.msk.bf16.mxu0 %vm3389_vm8, %v10815_v1  ;;  %7743 = vmatprep.mubr.msk.bf16.mxu1 %vm3389_vm8, %v10815_v1  ;;  %v11131_v57 = vpop.f32.mrf.mxu0 }
 0x3e2   : > { %4436 = vmatpush2.bf16.msra.mxu0 %v8991_v60  ;;  %4569 = vmatpush2.bf16.msra.mxu1 %v8994_v19  ;;  %v9019_v19 = vld [vmem:[%s13022_s4 + $0x450] ss:$12 sps:$4 sm:$0xff]  }
 0x3e3   : > { %v3579_v52 = vpop.f32.mrf.mxu1  ;;  %4437 = vmatprep.subr.bf16.mxu0 %v8997_v29  ;;  %4570 = vmatprep.subr.bf16.mxu1 %v13069_v58  ;;  %v11135_v41 = vpop.f32.mrf.mxu0  ;;  %v9022_v29 = vld [vmem:[%s13022_s4 + $0x458] ss:$12 sps:$4 sm:$0xff]  }
 0x3e5   : > { %v11086_v31 = vpop.f32.mrf.mxu1  ;;  %v11147_v14 = vpop.f32.mrf.mxu0 }
 0x3e6   : > { %4438 = vmatpush2.bf16.msra.mxu0 %v8995_v48  ;;  %4571 = vmatpush2.bf16.msra.mxu1 %v8998_v25  ;;  %v9025_v48 = vld [vmem:[%s13022_s4 + $0x43c] ss:$12 sps:$4 sm:$0xff]  }
 0x3e7   : > { %v3582_v11 = vpop.f32.mrf.mxu1  ;;  %4439 = vmatprep.subr.bf16.mxu0 %v9001_v21  ;;  %4572 = vmatprep.subr.bf16.mxu1 %v13069_v58  ;;  %v11149_v13 = vpop.f32.mrf.mxu0 }
 0x3e8   : > { %7715 = vmatmul.mubr.msk.bf16.gmra.mxu0 %vm10573_vm9, %v10810_v9  ;;  %7745 = vmatmul.mubr.msk.bf16.gmra.mxu1 %vm10573_vm9, %v10810_v9  ;;  %v9029_v11 = vld [vmem:[%s13022_s4 + $0x424] ss:$12 sps:$4 sm:$0xff]  }
 0x3e9   : > { %7716 = vmatprep.mubr.msk.bf16.mxu0 %vm3389_vm8, %v10832_v27  ;;  %7746 = vmatprep.mubr.msk.bf16.mxu1 %vm3389_vm8, %v10832_v27 }
 0x3ea   : > { %4440 = vmatpush2.bf16.msra.mxu0 %v8999_v12  ;;  %4573 = vmatpush2.bf16.msra.mxu1 %v9002_v0  ;;  %v9023_v12 = vld [vmem:[%s13022_s4 + $0x438] ss:$12 sps:$4 sm:$0xff]   ;;  %v9026_v0 = vld [vmem:[%s13022_s4 + $0x440] ss:$12 sps:$4 sm:$0xff]  }
 0x3eb   : > { %4441 = vmatprep.subr.bf16.mxu0 %v9005_v10  ;;  %4574 = vmatprep.subr.bf16.mxu1 %v13069_v58 }
 0x3ee   : > { %4442 = vmatpush2.bf16.msra.mxu0 %v9003_v56  ;;  %4575 = vmatpush2.bf16.msra.mxu1 %v9006_v22  ;;  %v9027_v56 = vld [vmem:[%s13022_s4 + $0x420] ss:$12 sps:$4 sm:$0xff]   ;;  %v9030_v22 = vld [vmem:[%s13022_s4 + $0x428] ss:$12 sps:$4 sm:$0xff]  }
 0x3ef   : > { %5000 = vmatprep.subr.bf16.mxu0 %v9009_v61  ;;  %5133 = vmatprep.subr.bf16.mxu1 %v13069_v58  ;;  %v9033_v61 = vld [vmem:[%s13022_s4 + $0x40c] ss:$12 sps:$4 sm:$0xff]  }
 0x3f0   : > { %v11119_v42 = vpop.f32.mrf.mxu1  ;;  %7718 = vmatmul.mubr.msk.bf16.gmra.mxu0 %vm10573_vm9, %v10827_v17  ;;  %7748 = vmatmul.mubr.msk.bf16.gmra.mxu1 %vm10573_vm9, %v10827_v17  ;;  %v11151_v62 = vpop.f32.mrf.mxu0 }
 0x3f1   : > { %7719 = vmatprep.mubr.msk.bf16.mxu0 %vm3389_vm8, %v10849_v24  ;;  %7749 = vmatprep.mubr.msk.bf16.mxu1 %vm3389_vm8, %v10849_v24 }
 0x3f2   : > { %v3587_v20 = vpop.f32.mrf.mxu1  ;;  %v11165_v28 = vpop.f32.mrf.mxu0 }
 0x3f4   : > { %v11133_v40 = vpop.f32.mrf.mxu1  ;;  %v11178_v54 = vpop.f32.mrf.mxu0 }
 0x3f6   : > { %v3590_v8 = vpop.f32.mrf.mxu1  ;;  %v11200_v39 = vpop.f32.mrf.mxu0 }
 0x3f7   : > { %v9031_v8 = vld [vmem:[%s13022_s4 + $0x408] ss:$12 sps:$4 sm:$0xff]  }
 0x3f8   : > { %7721 = vmatmul.mubr.msk.bf16.gmra.mxu0 %vm10573_vm9, %v10844_v6  ;;  %7751 = vmatmul.mubr.msk.bf16.gmra.mxu1 %vm10573_vm9, %v10844_v6 }
 0x3f9   : > { %7722 = vmatprep.mubr.msk.bf16.mxu0 %vm3389_vm8, %v10866_v3  ;;  %7752 = vmatprep.mubr.msk.bf16.mxu1 %vm3389_vm8, %v10866_v3 }
 0x400   : > { %v11153_v34 = vpop.f32.mrf.mxu1  ;;  %7724 = vmatmul.mubr.msk.bf16.gmra.mxu0 %vm10573_vm9, %v10861_v7  ;;  %7754 = vmatmul.mubr.msk.bf16.gmra.mxu1 %vm10573_vm9, %v10861_v7  ;;  %v11202_v51 = vpop.f32.mrf.mxu0 }
 0x401   : > { %7853 = vmatprep.mubr.msk.bf16.mxu0 %vm3389_vm8, %v10638_v30  ;;  %7883 = vmatprep.mubr.msk.bf16.mxu1 %vm3389_vm8, %v10638_v30  ;;  %v9011_v30 = vld [vmem:[%s13022_s4 + $0x480] ss:$12 sps:$4 sm:$0xff]  }
 0x402   : > { %v3595_v2 = vpop.f32.mrf.mxu1  ;;  %v11226_v23 = vpop.f32.mrf.mxu0 }
 0x403   : > { %v9034_v2 = vld [vmem:[%s13022_s4 + $0x410] ss:$12 sps:$4 sm:$0xff]  }
 0x404   : > { %v11167_v37 = vpop.f32.mrf.mxu1  ;;  %v11240_v52 = vpop.f32.mrf.mxu0 }
 0x406   : > { %v3598_v63 = vpop.f32.mrf.mxu1  ;;  %v11262_v10 = vpop.f32.mrf.mxu0 }
 0x407   : > { %13092 = vst [vmem:[#allocation7_spill] sm:$0xff] %v11262_v10 }
 0x408   : > { %7855 = vmatmul.mubr.msk.bf16.vlgmr.msra.gmra.mxu0 %vm10573_vm9, %v10626_v53  ;;  %7885 = vmatmul.mubr.msk.bf16.vlgmr.msra.gmra.mxu1 %vm10573_vm9, %v10626_v53  ;;  %v9017_v53 = vld [vmem:[%s13022_s4 + $0x46c] ss:$12 sps:$4 sm:$0xff]  }
 0x409   : > { %5001 = vmatpush1.bf16.msra.mxu0 %v9007_v16  ;;  %7856 = vmatprep.mubr.msk.bf16.mxu0 %vm3389_vm8, %v10698_v26  ;;  %v9037_v16 = vld [vmem:[%s13022_s4 + $0x3f4] ss:$12 sps:$4 sm:$0xff]  }
 0x40a   : > { %7886 = vmatprep.mubr.msk.bf16.mxu1 %vm3389_vm8, %v10698_v26  ;;  %5134 = vmatpush1.bf16.msra.mxu1 %v9010_v45 }
 0x40b   : > { %5002 = vmatprep.subr.bf16.mxu0 %v9013_v47  ;;  %5135 = vmatprep.subr.bf16.mxu1 %v13069_v58 }
 0x40d   : > { %5003 = vmatpush1.bf16.msra.mxu0 %v9011_v30  ;;  %v9035_v30 = vld [vmem:[%s13022_s4 + $0x3f0] ss:$12 sps:$4 sm:$0xff]  }
 0x40e   : > { %5136 = vmatpush1.bf16.msra.mxu1 %v9014_v43  ;;  %5004 = vmatprep.subr.bf16.mxu0 %v9017_v53  ;;  %v9038_v43 = vld [vmem:[%s13022_s4 + $0x3f8] ss:$12 sps:$4 sm:$0xff]  }
 0x40f   : > { %5137 = vmatprep.subr.bf16.mxu1 %v13069_v58  ;;  %v9041_v53 = vld [vmem:[%s13022_s4 + $0x52c] ss:$12 sps:$4 sm:$0xff]  }
 0x410   : > { %v11214_v38 = vpop.f32.mrf.mxu1  ;;  %7858 = vmatmul.mubr.msk.bf16.gmra.mxu0 %vm10573_vm9, %v10685_v4  ;;  %7888 = vmatmul.mubr.msk.bf16.gmra.mxu1 %vm10573_vm9, %v10685_v4  ;;  %v11274_v20 = vpop.f32.mrf.mxu0 }
 0x411   : > { %13090 = vst [vmem:[#allocation5_spill] sm:$0xff] %v11214_v38  ;;  %7859 = vmatprep.mubr.msk.bf16.mxu0 %vm3389_vm8, %v10757_v33  ;;  %7889 = vmatprep.mubr.msk.bf16.mxu1 %vm3389_vm8, %v10757_v33 }
 0x412   : > { %v3603_v60 = vpop.f32.mrf.mxu1  ;;  %5005 = vmatpush1.bf16.msra.mxu0 %v9015_v36  ;;  %5138 = vmatpush1.bf16.msra.mxu1 %v9018_v50  ;;  %v11286_v63 = vpop.f32.mrf.mxu0 }
 0x413   : > { %5006 = vmatprep.subr.bf16.mxu0 %v9021_v44  ;;  %5139 = vmatprep.subr.bf16.mxu1 %v13069_v58  ;;  %13093 = vst [vmem:[#allocation8_spill] sm:$0xff] %v11286_v63  ;;  %v9039_v60 = vld [vmem:[%s13022_s4 + $0x528] ss:$12 sps:$4 sm:$0xff]  }
 0x414   : > { %v11238_v25 = vpop.f32.mrf.mxu1  ;;  %v11310_v36 = vpop.f32.mrf.mxu0 }
 0x415   : > { %13091 = vst [vmem:[#allocation9_spill] sm:$0xff] %v11238_v25  ;;  %13095 = vst [vmem:[#allocation10_spill] sm:$0xff] %v11310_v36 }
 0x416   : > { %v3606_v21 = vpop.f32.mrf.mxu1  ;;  %5007 = vmatpush1.bf16.msra.mxu0 %v9019_v19  ;;  %5140 = vmatpush1.bf16.msra.mxu1 %v9022_v29  ;;  %v9042_v19 = vld [vmem:[%s13022_s4 + $0x530] ss:$12 sps:$4 sm:$0xff]   ;;  %v9045_v29 = vld [vmem:[%s13022_s4 + $0x514] ss:$12 sps:$4 sm:$0xff]  }
 0x417   : > { %5008 = vmatprep.subr.bf16.mxu0 %v9025_v48  ;;  %5141 = vmatprep.subr.bf16.mxu1 %v13069_v58  ;;  %v11324_v48 = vpop.f32.mrf.mxu0 }
 0x418   : > { %7861 = vmatmul.mubr.msk.bf16.gmra.mxu0 %vm10573_vm9, %v10746_v15  ;;  %7891 = vmatmul.mubr.msk.bf16.gmra.mxu1 %vm10573_vm9, %v10746_v15  ;;  %13097 = vst [vmem:[#allocation15_spill] sm:$0xff] %v11324_v48 }
 0x419   : > { %7862 = vmatprep.mubr.msk.bf16.mxu0 %vm3389_vm8, %v10798_v46  ;;  %7892 = vmatprep.mubr.msk.bf16.mxu1 %vm3389_vm8, %v10798_v46 }
 0x41a   : > { %5009 = vmatpush1.bf16.msra.mxu0 %v9023_v12  ;;  %5142 = vmatpush1.bf16.msra.mxu1 %v9026_v0  ;;  %v9043_v12 = vld [vmem:[%s13022_s4 + $0x510] ss:$12 sps:$4 sm:$0xff]   ;;  %v9046_v0 = vld [vmem:[%s13022_s4 + $0x518] ss:$12 sps:$4 sm:$0xff]  }
 0x41b   : > { %5010 = vmatprep.subr.bf16.mxu0 %v9029_v11  ;;  %5143 = vmatprep.subr.bf16.mxu1 %v13069_v58  ;;  %v9049_v11 = vld [vmem:[%s13022_s4 + $0x4fc] ss:$12 sps:$4 sm:$0xff]  }
 0x41e   : > { %5011 = vmatpush1.bf16.msra.mxu0 %v9027_v56  ;;  %5144 = vmatpush1.bf16.msra.mxu1 %v9030_v22  ;;  %v9047_v22 = vld [vmem:[%s13022_s4 + $0x4f8] ss:$12 sps:$4 sm:$0xff]  }
 0x41f   : > { %5012 = vmatprep.subr.bf16.mxu0 %v9033_v61  ;;  %5145 = vmatprep.subr.bf16.mxu1 %v13069_v58  ;;  %v9050_v61 = vld [vmem:[%s13022_s4 + $0x500] ss:$12 sps:$4 sm:$0xff]  }
 0x420   : > { %v11288_v45 = vpop.f32.mrf.mxu1  ;;  %7864 = vmatmul.mubr.msk.bf16.gmra.mxu0 %vm10573_vm9, %v10793_v49  ;;  %7894 = vmatmul.mubr.msk.bf16.gmra.mxu1 %vm10573_vm9, %v10793_v49  ;;  %v11336_v21 = vpop.f32.mrf.mxu0 }
 0x421   : > { %13094 = vst [vmem:[#allocation6_spill] sm:$0xff] %v11288_v45  ;;  %7865 = vmatprep.mubr.msk.bf16.mxu0 %vm3389_vm8, %v10815_v1  ;;  %7895 = vmatprep.mubr.msk.bf16.mxu1 %vm3389_vm8, %v10815_v1  ;;  %13098 = vst [vmem:[#allocation14_spill] sm:$0xff] %v11336_v21 }
 0x422   : > { %v3611_v47 = vpop.f32.mrf.mxu1  ;;  %5013 = vmatpush1.bf16.msra.mxu0 %v9031_v8  ;;  %5146 = vmatpush1.bf16.msra.mxu1 %v9034_v2  ;;  %v11348_v56 = vpop.f32.mrf.mxu0  ;;  %v9053_v8 = vld [vmem:[%s13022_s4 + $0x4e4] ss:$12 sps:$4 sm:$0xff]  }
 0x423   : > { %5014 = vmatprep.subr.bf16.mxu0 %v9037_v16  ;;  %5147 = vmatprep.subr.bf16.mxu1 %v13069_v58  ;;  %13099 = vst [vmem:[#allocation13_spill] sm:$0xff] %v11348_v56 }
 0x424   : > { %v11312_v50 = vpop.f32.mrf.mxu1  ;;  %v11372_v16 = vpop.f32.mrf.mxu0 }
 0x425   : > { %13096 = vst [vmem:[#allocation11_spill] sm:$0xff] %v11312_v50  ;;  %13101 = vst [vmem:[#allocation16_spill] sm:$0xff] %v11372_v16  ;;  %v9117_v50 = vld [vmem:[%s13022_s4 + $0x604] ss:$12 sps:$4 sm:$0xff]  }
 0x426   : > { %v3614_v44 = vpop.f32.mrf.mxu1  ;;  %5015 = vmatpush1.bf16.msra.mxu0 %v9035_v30  ;;  %5148 = vmatpush1.bf16.msra.mxu1 %v9038_v43  ;;  %v9051_v30 = vld [vmem:[%s13022_s4 + $0x4e0] ss:$12 sps:$4 sm:$0xff]   ;;  %v9054_v43 = vld [vmem:[%s13022_s4 + $0x4e8] ss:$12 sps:$4 sm:$0xff]  }
 0x427   : > { %5020 = vmatprep.subr.bf16.mxu0 %v9041_v53  ;;  %5153 = vmatprep.subr.bf16.mxu1 %v13069_v58  ;;  %v9057_v53 = vld [vmem:[%s13022_s4 + $0x4cc] ss:$12 sps:$4 sm:$0xff]  }
 0x428   : > { %7867 = vmatmul.mubr.msk.bf16.gmra.mxu0 %vm10573_vm9, %v10810_v9  ;;  %7897 = vmatmul.mubr.msk.bf16.gmra.mxu1 %vm10573_vm9, %v10810_v9 }
 0x429   : > { %7868 = vmatprep.mubr.msk.bf16.mxu0 %vm3389_vm8, %v10832_v27  ;;  %7898 = vmatprep.mubr.msk.bf16.mxu1 %vm3389_vm8, %v10832_v27 }
 0x42a   : > { %5021 = vmatpush2.bf16.msra.mxu0 %v9039_v60  ;;  %5154 = vmatpush2.bf16.msra.mxu1 %v9042_v19  ;;  %v11386_v60 = vpop.f32.mrf.mxu0 }
 0x42b   : > { %5022 = vmatprep.subr.bf16.mxu0 %v9045_v29  ;;  %5155 = vmatprep.subr.bf16.mxu1 %v13069_v58  ;;  %13103 = vst [vmem:[#allocation18_spill] sm:$0xff] %v11386_v60  ;;  %v9055_v29 = vld [vmem:[%s13022_s4 + $0x4c8] ss:$12 sps:$4 sm:$0xff]  }
 0x42e   : > { %5023 = vmatpush2.bf16.msra.mxu0 %v9043_v12  ;;  %5156 = vmatpush2.bf16.msra.mxu1 %v9046_v0  ;;  %v9058_v12 = vld [vmem:[%s13022_s4 + $0x4d0] ss:$12 sps:$4 sm:$0xff]   ;;  %v9061_v0 = vld [vmem:[%s13022_s4 + $0x4b4] ss:$12 sps:$4 sm:$0xff]  }
 0x42f   : > { %5024 = vmatprep.subr.bf16.mxu0 %v9049_v11  ;;  %5157 = vmatprep.subr.bf16.mxu1 %v13069_v58 }
 0x430   : > { %v11360_v2 = vpop.f32.mrf.mxu1  ;;  %7870 = vmatmul.mubr.msk.bf16.gmra.mxu0 %vm10573_vm9, %v10827_v17  ;;  %7900 = vmatmul.mubr.msk.bf16.gmra.mxu1 %vm10573_vm9, %v10827_v17  ;;  %v11398_v11 = vpop.f32.mrf.mxu0 }
 0x431   : > { %13100 = vst [vmem:[#allocation12_spill] sm:$0xff] %v11360_v2  ;;  %7871 = vmatprep.mubr.msk.bf16.mxu0 %vm3389_vm8, %v10849_v24  ;;  %7901 = vmatprep.mubr.msk.bf16.mxu1 %vm3389_vm8, %v10849_v24  ;;  %13104 = vst [vmem:[#allocation19_spill] sm:$0xff] %v11398_v11  ;;  %v9111_v11 = vld [vmem:[%s13022_s4 + $0x618] ss:$12 sps:$4 sm:$0xff]  }
 0x432   : > { %v3619_v47 = vpop.f32.mrf.mxu1  ;;  %5025 = vmatpush2.bf16.msra.mxu0 %v9047_v22  ;;  %5158 = vmatpush2.bf16.msra.mxu1 %v9050_v61  ;;  %v9059_v22 = vld [vmem:[%s13022_s4 + $0x4b0] ss:$12 sps:$4 sm:$0xff]   ;;  %v9062_v61 = vld [vmem:[%s13022_s4 + $0x4b8] ss:$12 sps:$4 sm:$0xff]  }
 0x433   : > { %5026 = vmatprep.subr.bf16.mxu0 %v9053_v8  ;;  %5159 = vmatprep.subr.bf16.mxu1 %v13069_v58  ;;  %v9065_v8 = vld [vmem:[%s13022_s4 + $0x5ec] ss:$12 sps:$4 sm:$0xff]   ;;  %v11420_v47 = vpop.f32.mrf.mxu0 }
 0x434   : > { %v11384_v44 = vpop.f32.mrf.mxu1  ;;  %13105 = vst [vmem:[#allocation20_spill] sm:$0xff] %v11420_v47  ;;  %v9110_v47 = vld [vmem:[%s13022_s4 + $0x638] ss:$12 sps:$4 sm:$0xff]  }
 0x435   : > { %13102 = vst [vmem:[#allocation17_spill] sm:$0xff] %v11384_v44  ;;  %v9109_v44 = vld [vmem:[%s13022_s4 + $0x634] ss:$12 sps:$4 sm:$0xff]  }
 0x436   : > { %v3622_v19 = vpop.f32.mrf.mxu1  ;;  %5027 = vmatpush2.bf16.msra.mxu0 %v9051_v30  ;;  %5160 = vmatpush2.bf16.msra.mxu1 %v9054_v43  ;;  %v11423_v30 = vpop.f32.mrf.mxu0 }
 0x437   : > { %5028 = vmatprep.subr.bf16.mxu0 %v9057_v53  ;;  %5161 = vmatprep.subr.bf16.mxu1 %v13069_v58  ;;  %13106 = vst [vmem:[#allocation21_spill] sm:$0xff] %v11423_v30  ;;  %v11433_v53 = vpop.permute.xlu1 %2964  ;;  %v2967_v19 = vpop.permute.xlu0 %2966 }
 0x438   : > { %7873 = vmatmul.mubr.msk.bf16.gmra.mxu0 %vm10573_vm9, %v10844_v6  ;;  %7903 = vmatmul.mubr.msk.bf16.gmra.mxu1 %vm10573_vm9, %v10844_v6 }
 0x439   : > { %7874 = vmatprep.mubr.msk.bf16.mxu0 %vm3389_vm8, %v10866_v3  ;;  %7904 = vmatprep.mubr.msk.bf16.mxu1 %vm3389_vm8, %v10866_v3 }
 0x43a   : > { %5029 = vmatpush2.bf16.msra.mxu0 %v9055_v29  ;;  %5162 = vmatpush2.bf16.msra.mxu1 %v9058_v12  ;;  %v11439_v12 = vpop.f32.mrf.mxu0 }
 0x43b   : > { %5030 = vmatprep.subr.bf16.mxu0 %v9061_v0  ;;  %5163 = vmatprep.subr.bf16.mxu1 %v13069_v58  ;;  %13108 = vst [vmem:[#allocation23_spill] sm:$0xff] %v11439_v12  ;;  %v9103_v12 = vld [vmem:[%s13022_s4 + $0x648] ss:$12 sps:$4 sm:$0xff]  }
 0x43e   : > { %5031 = vmatpush2.bf16.msra.mxu0 %v9059_v22  ;;  %5164 = vmatpush2.bf16.msra.mxu1 %v9062_v61  ;;  %v2983_v22 = vsel %vm2972_vm6, %v11433_v53, %v2967_v19 }
 0x43f   : > { %5587 = vmatprep.subr.bf16.mxu0 %v9065_v8  ;;  %5720 = vmatprep.subr.bf16.mxu1 %v13069_v58  ;;  %v11448_v60 = vsel %vm3026_vm7, %v2983_v22, 0 }
 0x440   : > { %v11425_v43 = vpop.f32.mrf.mxu1  ;;  %7876 = vmatmul.mubr.msk.bf16.gmra.mxu0 %vm10573_vm9, %v10861_v7  ;;  %7906 = vmatmul.mubr.msk.bf16.gmra.mxu1 %vm10573_vm9, %v10861_v7  ;;  %v11445_v61 = vpop.f32.mrf.mxu0 }
 0x441   : > { %13107 = vst [vmem:[#allocation22_spill] sm:$0xff] %v11425_v43  ;;  %7877 = vmatprep.mubr.msk.bf16.mxu0 %vm3389_vm8, %v10883_v59  ;;  %7907 = vmatprep.mubr.msk.bf16.mxu1 %vm3389_vm8, %v10883_v59  ;;  %13110 = vst [vmem:[#allocation25_spill] sm:$0xff] %v11445_v61 }
 0x442   : > { %v3627_v29 = vpop.f32.mrf.mxu1  ;;  %v11460_v19 = vpop.f32.mrf.mxu0 }
 0x443   : > { %13111 = vst [vmem:[#allocation26_spill] sm:$0xff] %v11460_v19  ;;  %v9066_v19 = vld [vmem:[%s13022_s4 + $0x5f0] ss:$12 sps:$4 sm:$0xff]  }
 0x444   : > { %v11441_v0 = vpop.f32.mrf.mxu1  ;;  %v11462_v29 = vpop.f32.mrf.mxu0 }
 0x445   : > { %13109 = vst [vmem:[#allocation24_spill] sm:$0xff] %v11441_v0  ;;  %13112 = vst [vmem:[#allocation27_spill] sm:$0xff] %v11462_v29  ;;  %v9063_v0 = vld [vmem:[%s13022_s4 + $0x5e8] ss:$12 sps:$4 sm:$0xff]  }
 0x446   : > { %v3630_v8 = vpop.f32.mrf.mxu1 }
 0x447   : > { %v11476_v8 = vpop.f32.mrf.mxu0 }
 0x448   : > { %7879 = vmatmul.mubr.msk.bf16.gmra.mxu0 %vm10573_vm9, %v10878_v5  ;;  %7909 = vmatmul.mubr.msk.bf16.gmra.mxu1 %vm10573_vm9, %v10878_v5  ;;  %13114 = vst [vmem:[#allocation29_spill] sm:$0xff] %v11476_v8  ;;  %v9105_v8 = vld [vmem:[%s13022_s4 + $0x64c] ss:$12 sps:$4 sm:$0xff]  }
 0x449   : > { %7880 = vmatprep.mubr.msk.bf16.mxu0 %vm3389_vm8, %v11448_v60  ;;  %7910 = vmatprep.mubr.msk.bf16.mxu1 %vm3389_vm8, %v11448_v60 }
 0x450   : > { %v11464_v22 = vpop.f32.mrf.mxu1  ;;  %7882 = vmatmul.mubr.msk.bf16.gmra.mxu0 %vm10573_vm9, %v11433_v53  ;;  %7912 = vmatmul.mubr.msk.bf16.gmra.mxu1 %vm10573_vm9, %v11433_v53  ;;  %v11478_v10 = vpop.f32.mrf.mxu0 }
 0x451   : > { %13113 = vst [vmem:[#allocation28_spill] sm:$0xff] %v11464_v22  ;;  %8011 = vmatprep.mubr.msk.bf16.mxu0 %vm3389_vm8, %v10698_v26  ;;  %8041 = vmatprep.mubr.msk.bf16.mxu1 %vm3389_vm8, %v10698_v26  ;;  %13115 = vst [vmem:[#allocation30_spill] sm:$0xff] %v11478_v10  ;;  %v9069_v26 = vld [vmem:[%s13022_s4 + $0x5d4] ss:$12 sps:$4 sm:$0xff]  }
 0x452   : > { %v3635_v48 = vpop.f32.mrf.mxu1  ;;  %v11491_v43 = vpop.f32.mrf.mxu0 }
 0x453   : > { %13117 = vst [vmem:[#allocation32_spill] sm:$0xff] %v11491_v43  ;;  %v9067_v48 = vld [vmem:[%s13022_s4 + $0x5d0] ss:$12 sps:$4 sm:$0xff]  }
 0x454   : > { %v11480_v22 = vpop.f32.mrf.mxu1 }
 0x455   : > { %13116 = vst [vmem:[#allocation31_spill] sm:$0xff] %v11480_v22  ;;  %v9071_v22 = vld [vmem:[%s13022_s4 + $0x5b8] ss:$12 sps:$4 sm:$0xff]  }
 0x456   : > { %v3638_v29 = vpop.f32.mrf.mxu1 }
 0x457   : > { %v9070_v29 = vld [vmem:[%s13022_s4 + $0x5d8] ss:$12 sps:$4 sm:$0xff]  }
 0x458   : > { %8013 = vmatmul.mubr.msk.bf16.vlgmr.msra.gmra.mxu0 %vm10573_vm9, %v10685_v4  ;;  %8043 = vmatmul.mubr.msk.bf16.vlgmr.msra.gmra.mxu1 %vm10573_vm9, %v10685_v4  ;;  %v9073_v4 = vld [vmem:[%s13022_s4 + $0x5bc] ss:$12 sps:$4 sm:$0xff]  }
 0x459   : > { %5588 = vmatpush1.bf16.msra.mxu0 %v9063_v0  ;;  %8014 = vmatprep.mubr.msk.bf16.mxu0 %vm3389_vm8, %v10757_v33  ;;  %v11513_v0 = vpop.f32.mrf.mxu0 }
 0x45a   : > { %8044 = vmatprep.mubr.msk.bf16.mxu1 %vm3389_vm8, %v10757_v33  ;;  %5721 = vmatpush1.bf16.msra.mxu1 %v9066_v19  ;;  %13118 = vst [vmem:[#allocation33_spill] sm:$0xff] %v11513_v0  ;;  %v9074_v19 = vld [vmem:[%s13022_s4 + $0x5c0] ss:$12 sps:$4 sm:$0xff]  }
 0x45b   : > { %5589 = vmatprep.subr.bf16.mxu0 %v9069_v26  ;;  %5722 = vmatprep.subr.bf16.mxu1 %v13069_v58  ;;  %v9077_v26 = vld [vmem:[%s13022_s4 + $0x5a4] ss:$12 sps:$4 sm:$0xff]   ;;  %v11525_v43 = vpop.f32.mrf.mxu0 }
 0x45c   : > { %13119 = vst [vmem:[#allocation34_spill] sm:$0xff] %v11525_v43  ;;  %v9081_v43 = vld [vmem:[%s13022_s4 + $0x58c] ss:$12 sps:$4 sm:$0xff]  }
 0x45d   : > { %5590 = vmatpush1.bf16.msra.mxu0 %v9067_v48 }
 0x45e   : > { %5723 = vmatpush1.bf16.msra.mxu1 %v9070_v29  ;;  %5591 = vmatprep.subr.bf16.mxu0 %v9073_v4  ;;  %v9075_v4 = vld [vmem:[%s13022_s4 + $0x5a0] ss:$12 sps:$4 sm:$0xff]  }
 0x45f   : > { %5724 = vmatprep.subr.bf16.mxu1 %v13069_v58 }
 0x460   : > { %v11527_v0 = vpop.f32.mrf.mxu1  ;;  %8016 = vmatmul.mubr.msk.bf16.gmra.mxu0 %vm10573_vm9, %v10746_v15  ;;  %8046 = vmatmul.mubr.msk.bf16.gmra.mxu1 %vm10573_vm9, %v10746_v15  ;;  %v11539_v48 = vpop.f32.mrf.mxu0 }
 0x461   : > { %13120 = vst [vmem:[#allocation35_spill] sm:$0xff] %v11527_v0  ;;  %8017 = vmatprep.mubr.msk.bf16.mxu0 %vm3389_vm8, %v10798_v46  ;;  %8047 = vmatprep.mubr.msk.bf16.mxu1 %vm3389_vm8, %v10798_v46  ;;  %13121 = vst [vmem:[#allocation36_spill] sm:$0xff] %v11539_v48  ;;  %v9078_v0 = vld [vmem:[%s13022_s4 + $0x5a8] ss:$12 sps:$4 sm:$0xff]  }
 0x462   : > { %v3643_v29 = vpop.f32.mrf.mxu1  ;;  %5592 = vmatpush1.bf16.msra.mxu0 %v9071_v22  ;;  %5725 = vmatpush1.bf16.msra.mxu1 %v9074_v19  ;;  %v9079_v19 = vld [vmem:[%s13022_s4 + $0x588] ss:$12 sps:$4 sm:$0xff]  }
 0x463   : > { %5593 = vmatprep.subr.bf16.mxu0 %v9077_v26  ;;  %5726 = vmatprep.subr.bf16.mxu1 %v13069_v58  ;;  %v11553_v29 = vpop.f32.mrf.mxu0  ;;  %v9082_v26 = vld [vmem:[%s13022_s4 + $0x590] ss:$12 sps:$4 sm:$0xff]  }
 0x464   : > { %v11551_v10 = vpop.f32.mrf.mxu1  ;;  %13123 = vst [vmem:[#allocation38_spill] sm:$0xff] %v11553_v29 }
 0x465   : > { %13122 = vst [vmem:[#allocation37_spill] sm:$0xff] %v11551_v10  ;;  %v9085_v10 = vld [vmem:[%s13022_s4 + $0x574] ss:$12 sps:$4 sm:$0xff]  }
 0x466   : > { %v3646_v22 = vpop.f32.mrf.mxu1  ;;  %5594 = vmatpush1.bf16.msra.mxu0 %v9075_v4  ;;  %5727 = vmatpush1.bf16.msra.mxu1 %v9078_v0  ;;  %v9083_v0 = vld [vmem:[%s13022_s4 + $0x570] ss:$12 sps:$4 sm:$0xff]   ;;  %v9086_v4 = vld [vmem:[%s13022_s4 + $0x578] ss:$12 sps:$4 sm:$0xff]  }
 0x467   : > { %5595 = vmatprep.subr.bf16.mxu0 %v9081_v43  ;;  %5728 = vmatprep.subr.bf16.mxu1 %v13069_v58  ;;  %v11575_v43 = vpop.f32.mrf.mxu0  ;;  %v9089_v22 = vld [vmem:[%s13022_s4 + $0x55c] ss:$12 sps:$4 sm:$0xff]  }
 0x468   : > { %8019 = vmatmul.mubr.msk.bf16.gmra.mxu0 %vm10573_vm9, %v10793_v49  ;;  %8049 = vmatmul.mubr.msk.bf16.gmra.mxu1 %vm10573_vm9, %v10793_v49  ;;  %13124 = vst [vmem:[#allocation39_spill] sm:$0xff] %v11575_v43 }
 0x469   : > { %8020 = vmatprep.mubr.msk.bf16.mxu0 %vm3389_vm8, %v10815_v1  ;;  %8050 = vmatprep.mubr.msk.bf16.mxu1 %vm3389_vm8, %v10815_v1  ;;  %v11587_v29 = vpop.f32.mrf.mxu0 }
 0x46a   : > { %5596 = vmatpush1.bf16.msra.mxu0 %v9079_v19  ;;  %5729 = vmatpush1.bf16.msra.mxu1 %v9082_v26  ;;  %13125 = vst [vmem:[#allocation40_spill] sm:$0xff] %v11587_v29  ;;  %v9087_v19 = vld [vmem:[%s13022_s4 + $0x558] ss:$12 sps:$4 sm:$0xff]   ;;  %v9090_v26 = vld [vmem:[%s13022_s4 + $0x560] ss:$12 sps:$4 sm:$0xff]  }
 0x46b   : > { %5597 = vmatprep.subr.bf16.mxu0 %v9085_v10  ;;  %5730 = vmatprep.subr.bf16.mxu1 %v13069_v58  ;;  %v9093_v10 = vld [vmem:[%s13022_s4 + $0x544] ss:$12 sps:$4 sm:$0xff]  }
 0x46e   : > { %5598 = vmatpush1.bf16.msra.mxu0 %v9083_v0  ;;  %5731 = vmatpush1.bf16.msra.mxu1 %v9086_v4 }
 0x46f   : > { %5599 = vmatprep.subr.bf16.mxu0 %v9089_v22  ;;  %5732 = vmatprep.subr.bf16.mxu1 %v13069_v58  ;;  %v9091_v22 = vld [vmem:[%s13022_s4 + $0x540] ss:$12 sps:$4 sm:$0xff]  }
 0x470   : > { %v11599_v43 = vpop.f32.mrf.mxu0  ;;  %v11601_v29 = vpop.f32.mrf.mxu1  ;;  %8022 = vmatmul.mubr.msk.bf16.gmra.mxu0 %vm10573_vm9, %v10810_v9  ;;  %8052 = vmatmul.mubr.msk.bf16.gmra.mxu1 %vm10573_vm9, %v10810_v9 }
 0x471   : > { %13126 = vst [vmem:[#allocation41_spill] sm:$0xff] %v11599_v43  ;;  %13127 = vst [vmem:[#allocation42_spill] sm:$0xff] %v11601_v29  ;;  %8023 = vmatprep.mubr.msk.bf16.mxu0 %vm3389_vm8, %v10832_v27  ;;  %8053 = vmatprep.mubr.msk.bf16.mxu1 %vm3389_vm8, %v10832_v27  ;;  %v9094_v29 = vld [vmem:[%s13022_s4 + $0x548] ss:$12 sps:$4 sm:$0xff]  }
 0x472   : > { %v11613_v0 = vpop.f32.mrf.mxu0  ;;  %v3651_v4 = vpop.f32.mrf.mxu1  ;;  %5600 = vmatpush1.bf16.msra.mxu0 %v9087_v19  ;;  %5733 = vmatpush1.bf16.msra.mxu1 %v9090_v26  ;;  %v9097_v43 = vld [vmem:[%s13022_s4 + $0x67c] ss:$12 sps:$4 sm:$0xff]  }
 0x473   : > { %13128 = vst [vmem:[#allocation43_spill] sm:$0xff] %v11613_v0  ;;  %5601 = vmatprep.subr.bf16.mxu0 %v9093_v10  ;;  %5734 = vmatprep.subr.bf16.mxu1 %v13069_v58  ;;  %v9095_v0 = vld [vmem:[%s13022_s4 + $0x678] ss:$12 sps:$4 sm:$0xff]   ;;  %v9098_v10 = vld [vmem:[%s13022_s4 + $0x680] ss:$12 sps:$4 sm:$0xff]  }
 0x474   : > { %v11625_v48 = vpop.f32.mrf.mxu0  ;;  %v11627_v4 = vpop.f32.mrf.mxu1 }
 0x475   : > { %13129 = vst [vmem:[#allocation44_spill] sm:$0xff] %v11625_v48  ;;  %13130 = vst [vmem:[#allocation45_spill] sm:$0xff] %v11627_v4  ;;  %v9101_v4 = vld [vmem:[%s13022_s4 + $0x664] ss:$12 sps:$4 sm:$0xff]  }
 0x476   : > { %v11629_v19 = vpop.f32.mrf.mxu0  ;;  %v3654_v26 = vpop.f32.mrf.mxu1  ;;  %5602 = vmatpush1.bf16.msra.mxu0 %v9091_v22  ;;  %5735 = vmatpush1.bf16.msra.mxu1 %v9094_v29  ;;  %v9099_v22 = vld [vmem:[%s13022_s4 + $0x660] ss:$12 sps:$4 sm:$0xff]  }
 0x477   : > { %13131 = vst [vmem:[#allocation46_spill] sm:$0xff] %v11629_v19  ;;  %5607 = vmatprep.subr.bf16.mxu0 %v9097_v43  ;;  %5740 = vmatprep.subr.bf16.mxu1 %v13069_v58  ;;  %v9102_v19 = vld [vmem:[%s13022_s4 + $0x668] ss:$12 sps:$4 sm:$0xff]  }
 0x478   : > { %v11641_v48 = vpop.f32.mrf.mxu0  ;;  %v11643_v26 = vpop.f32.mrf.mxu1  ;;  %8025 = vmatmul.mubr.msk.bf16.gmra.mxu0 %vm10573_vm9, %v10827_v17  ;;  %8055 = vmatmul.mubr.msk.bf16.gmra.mxu1 %vm10573_vm9, %v10827_v17 }
 0x479   : > { %8026 = vmatprep.mubr.msk.bf16.mxu0 %vm3389_vm8, %v10849_v24  ;;  %8056 = vmatprep.mubr.msk.bf16.mxu1 %vm3389_vm8, %v10849_v24 }
 0x47a   : > { %v11655_v29 = vpop.f32.mrf.mxu0  ;;  %v4051_v43 = vpop.f32.mrf.mxu1  ;;  %5608 = vmatpush2.bf16.msra.mxu0 %v9095_v0  ;;  %5741 = vmatpush2.bf16.msra.mxu1 %v9098_v10 }
 0x47b   : > { %5609 = vmatprep.subr.bf16.mxu0 %v9101_v4  ;;  %5742 = vmatprep.subr.bf16.mxu1 %v13069_v58  ;;  %v9106_v4 = vld [vmem:[%s13022_s4 + $0x650] ss:$12 sps:$4 sm:$0xff]  }
 0x47c   : > { %v11667_v61 = vpop.f32.mrf.mxu0  ;;  %v11669_v43 = vpop.f32.mrf.mxu1 }
 0x47e   : > { %v11671_v0 = vpop.f32.mrf.mxu0  ;;  %v4054_v10 = vpop.f32.mrf.mxu1  ;;  %5610 = vmatpush2.bf16.msra.mxu0 %v9099_v22  ;;  %5743 = vmatpush2.bf16.msra.mxu1 %v9102_v19  ;;  %v9107_v22 = vld [vmem:[%s13022_s4 + $0x630] ss:$12 sps:$4 sm:$0xff]  }
 0x47f   : > { %5611 = vmatprep.subr.bf16.mxu0 %v9105_v8  ;;  %5744 = vmatprep.subr.bf16.mxu1 %v13069_v58 }
 0x480   : > { %v11683_v30 = vpop.f32.mrf.mxu0  ;;  %v11685_v10 = vpop.f32.mrf.mxu1  ;;  %8028 = vmatmul.mubr.msk.bf16.gmra.mxu0 %vm10573_vm9, %v10844_v6  ;;  %8058 = vmatmul.mubr.msk.bf16.gmra.mxu1 %vm10573_vm9, %v10844_v6 }
 0x481   : > { %8029 = vmatprep.mubr.msk.bf16.mxu0 %vm3389_vm8, %v10866_v3  ;;  %8059 = vmatprep.mubr.msk.bf16.mxu1 %vm3389_vm8, %v10866_v3 }
 0x482   : > { %v11697_v8 = vpop.f32.mrf.mxu0  ;;  %v4059_v19 = vpop.f32.mrf.mxu1  ;;  %5612 = vmatpush2.bf16.msra.mxu0 %v9103_v12  ;;  %5745 = vmatpush2.bf16.msra.mxu1 %v9106_v4 }
 0x483   : > { %5613 = vmatprep.subr.bf16.mxu0 %v9109_v44  ;;  %5746 = vmatprep.subr.bf16.mxu1 %v13069_v58  ;;  %v9114_v44 = vld [vmem:[%s13022_s4 + $0x620] ss:$12 sps:$4 sm:$0xff]  }
 0x484   : > { %v11709_v2 = vpop.f32.mrf.mxu0  ;;  %v11711_v19 = vpop.f32.mrf.mxu1 }
 0x486   : > { %v11713_v12 = vpop.f32.mrf.mxu0  ;;  %v4062_v4 = vpop.f32.mrf.mxu1  ;;  %5614 = vmatpush2.bf16.msra.mxu0 %v9107_v22  ;;  %5747 = vmatpush2.bf16.msra.mxu1 %v9110_v47  ;;  %v9115_v22 = vld [vmem:[%s13022_s4 + $0x600] ss:$12 sps:$4 sm:$0xff]  }
 0x487   : > { %5615 = vmatprep.subr.bf16.mxu0 %v9113_v35  ;;  %5748 = vmatprep.subr.bf16.mxu1 %v13069_v58 }
 0x488   : > { %v11725_v16 = vpop.f32.mrf.mxu0  ;;  %v11727_v4 = vpop.f32.mrf.mxu1  ;;  %8031 = vmatmul.mubr.msk.bf16.gmra.mxu0 %vm10573_vm9, %v10861_v7  ;;  %8061 = vmatmul.mubr.msk.bf16.gmra.mxu1 %vm10573_vm9, %v10861_v7 }
 0x489   : > { %8032 = vmatprep.mubr.msk.bf16.mxu0 %vm3389_vm8, %v10883_v59  ;;  %8062 = vmatprep.mubr.msk.bf16.mxu1 %vm3389_vm8, %v10883_v59 }
 0x48a   : > { %v11739_v35 = vpop.f32.mrf.mxu0  ;;  %v4067_v47 = vpop.f32.mrf.mxu1  ;;  %5616 = vmatpush2.bf16.msra.mxu0 %v9111_v11  ;;  %5749 = vmatpush2.bf16.msra.mxu1 %v9114_v44 }
 0x48b   : > { %5617 = vmatprep.subr.bf16.mxu0 %v9117_v50  ;;  %5750 = vmatprep.subr.bf16.mxu1 %v13069_v58  ;;  %v11764_v50 = vpop.permute.xlu1 %2968  ;;  %v2971_v58 = vpop.permute.xlu0 %2970 }
 0x48c   : > { %v11748_v56 = vpop.f32.mrf.mxu0  ;;  %v11750_v45 = vpop.f32.mrf.mxu1  ;;  %v2984_v25 = vsel %vm2972_vm6, %v11764_v50, %v2971_v58 }
 0x48e   : > { %v11752_v21 = vpop.f32.mrf.mxu0  ;;  %v4070_v47 = vpop.f32.mrf.mxu1  ;;  %5618 = vmatpush2.bf16.msra.mxu0 %v9115_v22  ;;  %5751 = vmatpush2.bf16.msra.mxu1 %v9118_v55 }
 0x48f   : > { %13132 = vst [vmem:[#allocation47_spill] sm:$0xff] %v11752_v21 }
 0x490   : > { %v11754_v11 = vpop.f32.mrf.mxu0  ;;  %v11756_v44 = vpop.f32.mrf.mxu1  ;;  %8034 = vmatmul.mubr.msk.bf16.gmra.mxu0 %vm10573_vm9, %v10878_v5  ;;  %8064 = vmatmul.mubr.msk.bf16.gmra.mxu1 %vm10573_vm9, %v10878_v5 }
 0x491   : > { %13133 = vst [vmem:[#allocation48_spill] sm:$0xff] %v11754_v11  ;;  %13134 = vst [vmem:[#allocation49_spill] sm:$0xff] %v11756_v44  ;;  %8035 = vmatprep.mubr.msk.bf16.mxu0 %vm3389_vm8, %v11448_v60  ;;  %8065 = vmatprep.mubr.msk.bf16.mxu1 %vm3389_vm8, %v11448_v60  ;;  %v11781_v44 = vsel %vm3026_vm7, %v2984_v25, 0 }
 0x492   : > { %v11770_v55 = vpop.f32.mrf.mxu0  ;;  %v4075_v22 = vpop.f32.mrf.mxu1 }
 0x494   : > { %v11772_v47 = vpop.f32.mrf.mxu0  ;;  %v11774_v21 = vpop.f32.mrf.mxu1 }
 0x495   : > { %13135 = vst [vmem:[#allocation50_spill] sm:$0xff] %v11774_v21 }
 0x496   : > { %v11778_v36 = vpop.f32.mrf.mxu0  ;;  %v4078_v63 = vpop.f32.mrf.mxu1 }
 0x497   : > { %13136 = vst [vmem:[#allocation51_spill] sm:$0xff] %v11778_v36 }
 0x498   : > { %v11783_v38 = vpop.f32.mrf.mxu0  ;;  %v11785_v11 = vpop.f32.mrf.mxu1  ;;  %8037 = vmatmul.mubr.msk.bf16.gmra.mxu0 %vm10573_vm9, %v11433_v53  ;;  %8067 = vmatmul.mubr.msk.bf16.gmra.mxu1 %vm10573_vm9, %v11433_v53 }
 0x499   : > { %13137 = vst [vmem:[#allocation52_spill] sm:$0xff] %v11783_v38  ;;  %13138 = vst [vmem:[#allocation53_spill] sm:$0xff] %v11785_v11  ;;  %8038 = vmatprep.mubr.msk.bf16.mxu0 %vm3389_vm8, %v11781_v44  ;;  %8068 = vmatprep.mubr.msk.bf16.mxu1 %vm3389_vm8, %v11781_v44 }
 0x49a   : > { %v11797_v58 = vpop.f32.mrf.mxu0  ;;  %v4083_v25 = vpop.f32.mrf.mxu1 }
 0x49b   : > { %13139 = vst [vmem:[#allocation54_spill] sm:$0xff] %v11797_v58 }
 0x49c   : > { %v11799_v63 = vpop.f32.mrf.mxu0  ;;  %v11801_v22 = vpop.f32.mrf.mxu1 }
 0x49d   : > { %13140 = vst [vmem:[#allocation55_spill] sm:$0xff] %v11799_v63  ;;  %13141 = vst [vmem:[#allocation56_spill] sm:$0xff] %v11801_v22 }
 0x49e   : > { %v11803_v36 = vpop.f32.mrf.mxu0  ;;  %v4086_v11 = vpop.f32.mrf.mxu1 }
 0x49f   : > { %13142 = vst [vmem:[#allocation57_spill] sm:$0xff] %v11803_v36 }
 0x4a0   : > { %v11805_v38 = vpop.f32.mrf.mxu0  ;;  %v11807_v21 = vpop.f32.mrf.mxu1  ;;  %8040 = vmatmul.mubr.msk.bf16.gmra.mxu0 %vm10573_vm9, %v11764_v50  ;;  %8070 = vmatmul.mubr.msk.bf16.gmra.mxu1 %vm10573_vm9, %v11764_v50 }
 0x4a1   : > { %13143 = vst [vmem:[#allocation58_spill] sm:$0xff] %v11805_v38  ;;  %13144 = vst [vmem:[#allocation59_spill] sm:$0xff] %v11807_v21  ;;  %8169 = vmatprep.mubr.msk.bf16.mxu0 %vm3389_vm8, %v10757_v33  ;;  %8199 = vmatprep.mubr.msk.bf16.mxu1 %vm3389_vm8, %v10757_v33 }
 0x4a2   : > { %v11819_v25 = vpop.f32.mrf.mxu0  ;;  %v4091_v11 = vpop.f32.mrf.mxu1 }
 0x4a4   : > { %v11821_v36 = vpop.f32.mrf.mxu0  ;;  %v11823_v21 = vpop.f32.mrf.mxu1 }
 0x4a5   : > { %13145 = vst [vmem:[#allocation60_spill] sm:$0xff] %v11821_v36  ;;  %13146 = vst [vmem:[#allocation61_spill] sm:$0xff] %v11823_v21 }
 0x4a6   : > { %v11825_v38 = vpop.f32.mrf.mxu0  ;;  %v4094_v22 = vpop.f32.mrf.mxu1 }
 0x4a7   : > { %13147 = vst [vmem:[#allocation62_spill] sm:$0xff] %v11825_v38 }
 0x4a8   : > { %v11827_v63 = vpop.f32.mrf.mxu0  ;;  %v11829_v58 = vpop.f32.mrf.mxu1  ;;  %8171 = vmatmul.mubr.msk.bf16.vlgmr.msra.gmra.mxu0 %vm10573_vm9, %v10746_v15  ;;  %8201 = vmatmul.mubr.msk.bf16.vlgmr.msra.gmra.mxu1 %vm10573_vm9, %v10746_v15 }
 0x4a9   : > { %13148 = vst [vmem:[#allocation63_spill] sm:$0xff] %v11827_v63  ;;  %13149 = vst [vmem:[#allocation64_spill] sm:$0xff] %v11829_v58  ;;  %8172 = vmatprep.mubr.msk.bf16.mxu0 %vm3389_vm8, %v10798_v46  ;;  %8202 = vmatprep.mubr.msk.bf16.mxu1 %vm3389_vm8, %v10798_v46 }
 0x4aa   : > { %v11841_v33 = vpop.f32.mrf.mxu0  ;;  %v4099_v22 = vpop.f32.mrf.mxu1 }
 0x4ac   : > { %v11843_v11 = vpop.f32.mrf.mxu0  ;;  %v11845_v58 = vpop.f32.mrf.mxu1 }
 0x4ad   : > { %13150 = vst [vmem:[#allocation65_spill] sm:$0xff] %v11845_v58 }
 0x4ae   : > { %v11847_v63 = vpop.f32.mrf.mxu0  ;;  %v4102_v38 = vpop.f32.mrf.mxu1 }
 0x4af   : > { %13151 = vst [vmem:[#allocation66_spill] sm:$0xff] %v11847_v63 }
 0x4b0   : > { %v11849_v21 = vpop.f32.mrf.mxu0  ;;  %v11851_v36 = vpop.f32.mrf.mxu1  ;;  %8174 = vmatmul.mubr.msk.bf16.gmra.mxu0 %vm10573_vm9, %v10793_v49  ;;  %8204 = vmatmul.mubr.msk.bf16.gmra.mxu1 %vm10573_vm9, %v10793_v49 }
 0x4b1   : > { %13152 = vst [vmem:[#allocation67_spill] sm:$0xff] %v11849_v21  ;;  %13153 = vst [vmem:[#allocation68_spill] sm:$0xff] %v11851_v36  ;;  %8175 = vmatprep.mubr.msk.bf16.mxu0 %vm3389_vm8, %v10815_v1  ;;  %8205 = vmatprep.mubr.msk.bf16.mxu1 %vm3389_vm8, %v10815_v1 }
 0x4b2   : > { %v11863_v15 = vpop.f32.mrf.mxu0  ;;  %v4107_v46 = vpop.f32.mrf.mxu1 }
 0x4b4   : > { %v11865_v38 = vpop.f32.mrf.mxu0  ;;  %v11867_v22 = vpop.f32.mrf.mxu1 }
 0x4b5   : > { %13154 = vst [vmem:[#allocation69_spill] sm:$0xff] %v11867_v22 }
 0x4b6   : > { %v11869_v36 = vpop.f32.mrf.mxu0  ;;  %v4110_v21 = vpop.f32.mrf.mxu1 }
 0x4b7   : > { %13155 = vst [vmem:[#allocation70_spill] sm:$0xff] %v11869_v36 }
 0x4b8   : > { %v11871_v63 = vpop.f32.mrf.mxu0  ;;  %v11873_v58 = vpop.f32.mrf.mxu1  ;;  %8177 = vmatmul.mubr.msk.bf16.gmra.mxu0 %vm10573_vm9, %v10810_v9  ;;  %8207 = vmatmul.mubr.msk.bf16.gmra.mxu1 %vm10573_vm9, %v10810_v9 }
 0x4b9   : > { %13156 = vst [vmem:[#allocation71_spill] sm:$0xff] %v11871_v63  ;;  %13157 = vst [vmem:[#allocation72_spill] sm:$0xff] %v11873_v58  ;;  %8178 = vmatprep.mubr.msk.bf16.mxu0 %vm3389_vm8, %v10832_v27  ;;  %8208 = vmatprep.mubr.msk.bf16.mxu1 %vm3389_vm8, %v10832_v27 }
 0x4ba   : > { %v11885_v49 = vpop.f32.mrf.mxu0  ;;  %v4115_v1 = vpop.f32.mrf.mxu1 }
 0x4bc   : > { %v11887_v21 = vpop.f32.mrf.mxu0  ;;  %v11889_v46 = vpop.f32.mrf.mxu1 }
 0x4bd   : > { %13158 = vst [vmem:[#allocation73_spill] sm:$0xff] %v11887_v21  ;;  %13159 = vst [vmem:[#allocation74_spill] sm:$0xff] %v11889_v46 }
 0x4be   : > { %v11891_v58 = vpop.f32.mrf.mxu0  ;;  %v4118_v63 = vpop.f32.mrf.mxu1 }
 0x4bf   : > { %13160 = vst [vmem:[#allocation75_spill] sm:$0xff] %v11891_v58  ;;  %v3917_v58 = vadd.f32 %v11641_v48, %v11131_v57  ;;  %v3921_v48 = vadd.f32 %v11667_v61, %v11147_v14  ;;  %v4058_v14 = vadd.f32 %v11685_v10, %v11119_v42  ;;  %v3931_v10 = vadd.f32 %v11709_v2, %v11178_v54 }
 0x4c0   : > { %v11893_v36 = vpop.f32.mrf.mxu0  ;;  %v11895_v22 = vpop.f32.mrf.mxu1  ;;  %8180 = vmatmul.mubr.msk.bf16.gmra.mxu0 %vm10573_vm9, %v10827_v17  ;;  %8210 = vmatmul.mubr.msk.bf16.gmra.mxu1 %vm10573_vm9, %v10827_v17  ;;  %v4050_v17 = vadd.f32 %v11643_v26, %v11070_v32  ;;  %v4066_v54 = vadd.f32 %v11727_v4, %v11153_v34  ;;  %v3941_v4 = vadd.f32 %v11748_v56, %v11240_v52 }
 0x4c1   : > { %13161 = vst [vmem:[#allocation76_spill] sm:$0xff] %v11893_v36  ;;  %13162 = vst [vmem:[#allocation77_spill] sm:$0xff] %v11895_v22  ;;  %8181 = vmatprep.mubr.msk.bf16.mxu0 %vm3389_vm8, %v10849_v24  ;;  %8211 = vmatprep.mubr.msk.bf16.mxu1 %vm3389_vm8, %v10849_v24  ;;  %v3919_v24 = vadd.f32 %v11655_v29, %v11135_v41 }
 0x4c2   : > { %v11907_v9 = vpop.f32.mrf.mxu0  ;;  %v4123_v27 = vpop.f32.mrf.mxu1 }
 0x4c4   : > { %v11909_v63 = vpop.f32.mrf.mxu0  ;;  %v11911_v1 = vpop.f32.mrf.mxu1 }
 0x4c6   : > { %v11913_v22 = vpop.f32.mrf.mxu0  ;;  %v4126_v36 = vpop.f32.mrf.mxu1 }
 0x4c8   : > { %v4445_v46 = vpop.f32.mrf.mxu0  ;;  %v4578_v21 = vpop.f32.mrf.mxu1  ;;  %8183 = vmatmul.mubr.msk.bf16.gmra.mxu0 %vm10573_vm9, %v10844_v6  ;;  %8213 = vmatmul.mubr.msk.bf16.gmra.mxu1 %vm10573_vm9, %v10844_v6  ;;  %v4053_v6 = vadd.f32 %v11669_v43, %v11086_v31 }
 0x4c9   : > { %v11927_v36 = vadd.f32 %v4445_v46, %v3917_v58  ;;  %v11929_v27 = vadd.f32 %v4578_v21, %v4050_v17  ;;  %8184 = vmatprep.mubr.msk.bf16.mxu0 %vm3389_vm8, %v10866_v3  ;;  %8214 = vmatprep.mubr.msk.bf16.mxu1 %vm3389_vm8, %v10866_v3  ;;  %v3923_v58 = vadd.f32 %v11671_v0, %v11149_v13 }
 0x4ca   : > { %v4447_v32 = vpop.f32.mrf.mxu0  ;;  %v4580_v57 = vpop.f32.mrf.mxu1  ;;  %v3929_v13 = vadd.f32 %v11697_v8, %v11165_v28 }
 0x4cb   : > { %v11939_v26 = vadd.f32 %v4447_v32, %v3919_v24  ;;  %v3927_v57 = vadd.f32 %v11683_v30, %v11151_v62  ;;  %v3933_v32 = vadd.f32 %v11713_v12, %v11200_v39  ;;  %v3939_v39 = vadd.f32 %v11739_v35, %v11226_v23 }
 0x4cc   : > { %v4449_v41 = vpop.f32.mrf.mxu0  ;;  %v4581_v29 = vpop.f32.mrf.mxu1 }
 0x4cd   : > { %v11943_v21 = vadd.f32 %v4449_v41, %v3921_v48  ;;  %v11945_v46 = vadd.f32 %v4581_v29, %v4053_v6  ;;  %v3937_v29 = vadd.f32 %v11725_v16, %v11202_v51 }
 0x4ce   : > { %v4451_v3 = vpop.f32.mrf.mxu0  ;;  %v4583_v17 = vpop.f32.mrf.mxu1 }
 0x4cf   : > { %v11951_v31 = vadd.f32 %v4451_v3, %v3923_v58 }
 0x4d0   : > { %v4455_v61 = vpop.f32.mrf.mxu0  ;;  %v4586_v43 = vpop.f32.mrf.mxu1  ;;  %8186 = vmatmul.mubr.msk.bf16.gmra.mxu0 %vm10573_vm9, %v10861_v7  ;;  %8216 = vmatmul.mubr.msk.bf16.gmra.mxu1 %vm10573_vm9, %v10861_v7  ;;  %v4061_v7 = vadd.f32 %v11711_v19, %v11133_v40 }
 0x4d1   : > { %v11961_v0 = vadd.f32 %v4455_v61, %v3927_v57  ;;  %v11963_v62 = vadd.f32 %v4586_v43, %v4058_v14  ;;  %8187 = vmatprep.mubr.msk.bf16.mxu0 %vm3389_vm8, %v10883_v59  ;;  %8217 = vmatprep.mubr.msk.bf16.mxu1 %vm3389_vm8, %v10883_v59  ;;  %v13164_v43 = vld [vmem:[#allocation5_spill] sm:$0xff] }
 0x4d2   : > { %v4457_v42 = vpop.f32.mrf.mxu0  ;;  %v4588_v30 = vpop.f32.mrf.mxu1 }
 0x4d3   : > { %v11973_v24 = vadd.f32 %v4457_v42, %v3929_v13  ;;  %v13165_v13 = vld [vmem:[#allocation49_spill] sm:$0xff] }
 0x4d4   : > { %v4459_v28 = vpop.f32.mrf.mxu0  ;;  %v4589_v8 = vpop.f32.mrf.mxu1  ;;  %v4074_v52 = vadd.f32 %v13165_v13, %v13164_v43 }
 0x4d5   : > { %v11977_v48 = vadd.f32 %v4459_v28, %v3931_v10  ;;  %v11979_v6 = vadd.f32 %v4589_v8, %v4061_v7  ;;  %v13167_v28 = vld [vmem:[#allocation10_spill] sm:$0xff] }
 0x4d6   : > { %v4461_v59 = vpop.f32.mrf.mxu0  ;;  %v4591_v41 = vpop.f32.mrf.mxu1  ;;  %v3951_v8 = vadd.f32 %v11772_v47, %v13167_v28 }
 0x4d7   : > { %v11985_v40 = vadd.f32 %v4461_v59, %v3933_v32  ;;  %v13168_v32 = vld [vmem:[#allocation9_spill] sm:$0xff] }
 0x4d8   : > { %v4465_v2 = vpop.f32.mrf.mxu0  ;;  %v4594_v19 = vpop.f32.mrf.mxu1  ;;  %8189 = vmatmul.mubr.msk.bf16.gmra.mxu0 %vm10573_vm9, %v10878_v5  ;;  %8219 = vmatmul.mubr.msk.bf16.gmra.mxu1 %vm10573_vm9, %v10878_v5  ;;  %v4069_v5 = vadd.f32 %v11750_v45, %v11167_v37  ;;  %v13166_v37 = vld [vmem:[#allocation8_spill] sm:$0xff] }
 0x4d9   : > { %v11995_v12 = vadd.f32 %v4465_v2, %v3937_v29  ;;  %v11997_v51 = vadd.f32 %v4594_v19, %v4066_v54  ;;  %8190 = vmatprep.mubr.msk.bf16.mxu0 %vm3389_vm8, %v11448_v60  ;;  %8220 = vmatprep.mubr.msk.bf16.mxu1 %vm3389_vm8, %v11448_v60  ;;  %v13163_v60 = vld [vmem:[#allocation48_spill] sm:$0xff]  ;;  %v3949_v45 = vadd.f32 %v11770_v55, %v13166_v37 }
 0x4da   : > { %v4467_v34 = vpop.f32.mrf.mxu0  ;;  %v4596_v16 = vpop.f32.mrf.mxu1  ;;  %v3947_v61 = vadd.f32 %v13163_v60, %v11274_v20  ;;  %v13175_v60 = vld [vmem:[#allocation54_spill] sm:$0xff]  ;;  %v13177_v37 = vld [vmem:[#allocation16_spill] sm:$0xff] }
 0x4db   : > { %v12007_v58 = vadd.f32 %v4467_v34, %v3939_v39  ;;  %v13171_v34 = vld [vmem:[#allocation52_spill] sm:$0xff] }
 0x4dc   : > { %v4469_v23 = vpop.f32.mrf.mxu0  ;;  %v4597_v35 = vpop.f32.mrf.mxu1 }
 0x4dd   : > { %v12009_v3 = vadd.f32 %v4469_v23, %v3941_v4  ;;  %v12011_v17 = vadd.f32 %v4597_v35, %v4069_v5  ;;  %v13172_v4 = vld [vmem:[#allocation6_spill] sm:$0xff]  ;;  %v13173_v5 = vld [vmem:[#allocation53_spill] sm:$0xff] }
 0x4de   : > { %v12013_v57 = vpop.f32.mrf.mxu0  ;;  %v4599_v14 = vpop.f32.mrf.mxu1  ;;  %v4082_v47 = vadd.f32 %v13173_v5, %v13172_v4  ;;  %v13183_v4 = vld [vmem:[#allocation12_spill] sm:$0xff]  ;;  %v13184_v5 = vld [vmem:[#allocation59_spill] sm:$0xff] }
 0x4df   : > { %v13174_v14 = vld [vmem:[#allocation13_spill] sm:$0xff] }
 0x4e0   : > { %v4475_v56 = vpop.f32.mrf.mxu0  ;;  %v4602_v42 = vpop.f32.mrf.mxu1  ;;  %8192 = vmatmul.mubr.msk.bf16.gmra.mxu0 %vm10573_vm9, %v11433_v53  ;;  %8222 = vmatmul.mubr.msk.bf16.gmra.mxu1 %vm10573_vm9, %v11433_v53  ;;  %v13169_v53 = vld [vmem:[#allocation50_spill] sm:$0xff] }
 0x4e1   : > { %v12027_v30 = vadd.f32 %v4475_v56, %v3947_v61  ;;  %v12029_v10 = vadd.f32 %v4602_v42, %v4074_v52  ;;  %8193 = vmatprep.mubr.msk.bf16.mxu0 %vm3389_vm8, %v11781_v44  ;;  %8223 = vmatprep.mubr.msk.bf16.mxu1 %vm3389_vm8, %v11781_v44  ;;  %v4077_v59 = vadd.f32 %v13169_v53, %v13168_v32  ;;  %v13170_v44 = vld [vmem:[#allocation14_spill] sm:$0xff]  ;;  %v13176_v52 = vld [vmem:[#allocation4_spill] sm:$0xff] }
 0x4e2   : > { %v4477_v20 = vpop.f32.mrf.mxu0  ;;  %v4604_v7 = vpop.f32.mrf.mxu1  ;;  %v3957_v16 = vadd.f32 %v13171_v34, %v13170_v44  ;;  %v3959_v61 = vadd.f32 %v13175_v60, %v13174_v14  ;;  %v13181_v44 = vld [vmem:[#allocation19_spill] sm:$0xff]  ;;  %v13182_v34 = vld [vmem:[#allocation58_spill] sm:$0xff]  ;;  %v13186_v60 = vld [vmem:[#allocation20_spill] sm:$0xff] }
 0x4e3   : > { %v12039_v41 = vadd.f32 %v4477_v20, %v3949_v45  ;;  %v13178_v45 = vld [vmem:[#allocation55_spill] sm:$0xff] }
 0x4e4   : > { %v4479_v55 = vpop.f32.mrf.mxu0  ;;  %v4605_v29 = vpop.f32.mrf.mxu1  ;;  %v3961_v20 = vadd.f32 %v13178_v45, %v13177_v37  ;;  %v13179_v7 = vld [vmem:[#allocation11_spill] sm:$0xff]  ;;  %v13187_v45 = vld [vmem:[#allocation21_spill] sm:$0xff] }
 0x4e5   : > { %v12041_v54 = vadd.f32 %v4479_v55, %v3951_v8  ;;  %v12043_v2 = vadd.f32 %v4605_v29, %v4077_v59  ;;  %v13185_v14 = vld [vmem:[#allocation3_spill] sm:$0xff] }
 0x4e6   : > { %v12045_v19 = vpop.f32.mrf.mxu0  ;;  %v4607_v39 = vpop.f32.mrf.mxu1 }
 0x4e8   : > { %v4485_v23 = vpop.f32.mrf.mxu0  ;;  %v4610_v35 = vpop.f32.mrf.mxu1  ;;  %8195 = vmatmul.mubr.msk.bf16.gmra.mxu0 %vm10573_vm9, %v11764_v50  ;;  %8225 = vmatmul.mubr.msk.bf16.gmra.mxu1 %vm10573_vm9, %v11764_v50  ;;  %v13180_v50 = vld [vmem:[#allocation56_spill] sm:$0xff] }
 0x4e9   : > { %v12059_v43 = vadd.f32 %v4485_v23, %v3957_v16  ;;  %v12061_v13 = vadd.f32 %v4610_v35, %v4082_v47  ;;  %8196 = vmatprep.mubr.msk.bf16.mxu0 %vm3389_vm8, %v13176_v52  ;;  %8226 = vmatprep.mubr.msk.bf16.mxu1 %vm3389_vm8, %v13176_v52  ;;  %v4085_v28 = vadd.f32 %v13180_v50, %v13179_v7  ;;  %v13189_v50 = vld [vmem:[#allocation17_spill] sm:$0xff] }
 0x4ea   : > { %v4487_v56 = vpop.f32.mrf.mxu0  ;;  %v4612_v42 = vpop.f32.mrf.mxu1  ;;  %v3967_v16 = vadd.f32 %v13182_v34, %v13181_v44  ;;  %v4090_v47 = vadd.f32 %v13184_v5, %v13183_v4  ;;  %v13191_v44 = vld [vmem:[#allocation23_spill] sm:$0xff]  ;;  %v13192_v34 = vld [vmem:[#allocation62_spill] sm:$0xff] }
 0x4eb   : > { %v12071_v8 = vadd.f32 %v4487_v56, %v3959_v61  ;;  %v3969_v61 = vadd.f32 %v11819_v25, %v13186_v60  ;;  %v3973_v4 = vadd.f32 %v13192_v34, %v13191_v44  ;;  %v13196_v60 = vld [vmem:[#allocation22_spill] sm:$0xff] }
 0x4ec   : > { %v4489_v32 = vpop.f32.mrf.mxu0  ;;  %v4613_v53 = vpop.f32.mrf.mxu1 }
 0x4ed   : > { %v12073_v59 = vadd.f32 %v4489_v32, %v3961_v20  ;;  %v12075_v55 = vadd.f32 %v4613_v53, %v4085_v28  ;;  %v13188_v20 = vld [vmem:[#allocation60_spill] sm:$0xff]  ;;  %v13190_v28 = vld [vmem:[#allocation61_spill] sm:$0xff] }
 0x4ee   : > { %v12077_v29 = vpop.f32.mrf.mxu0  ;;  %v4615_v39 = vpop.f32.mrf.mxu1  ;;  %v3971_v7 = vadd.f32 %v13188_v20, %v13187_v45  ;;  %v4093_v32 = vadd.f32 %v13190_v28, %v13189_v50  ;;  %v13199_v50 = vld [vmem:[#allocation26_spill] sm:$0xff] }
 0x4ef   : > { %v3979_v28 = vadd.f32 %v11841_v33, %v13199_v50  ;;  %v13209_v50 = vld [vmem:[#allocation67_spill] sm:$0xff] }
 0x4f0   : > { %v4495_v23 = vpop.f32.mrf.mxu0  ;;  %v4618_v35 = vpop.f32.mrf.mxu1  ;;  %8198 = vmatmul.mubr.msk.bf16.gmra.mxu0 %vm10573_vm9, %v13185_v14  ;;  %8228 = vmatmul.mubr.msk.bf16.gmra.mxu1 %vm10573_vm9, %v13185_v14 }
 0x4f1   : > { %v12091_v52 = vadd.f32 %v4495_v23, %v3967_v16  ;;  %v12093_v56 = vadd.f32 %v4618_v35, %v4090_v47  ;;  %v13194_v23 = vld [vmem:[#allocation25_spill] sm:$0xff]  ;;  %v13195_v35 = vld [vmem:[#allocation63_spill] sm:$0xff] }
 0x4f2   : > { %v4497_v42 = vpop.f32.mrf.mxu0  ;;  %v4620_v37 = vpop.f32.mrf.mxu1  ;;  %v3977_v14 = vadd.f32 %v13195_v35, %v13194_v23  ;;  %v13203_v23 = vld [vmem:[#allocation65_spill] sm:$0xff] }
 0x4f3   : > { %v12099_v53 = vadd.f32 %v4497_v42, %v3969_v61  ;;  %v13197_v37 = vld [vmem:[#allocation64_spill] sm:$0xff] }
 0x4f4   : > { %v4499_v39 = vpop.f32.mrf.mxu0  ;;  %v4621_v18 = vpop.f32.mrf.mxu1  ;;  %v4098_v45 = vadd.f32 %v13197_v37, %v13196_v60  ;;  %v13205_v37 = vld [vmem:[#allocation29_spill] sm:$0xff] }
 0x4f5   : > { %v12103_v25 = vadd.f32 %v4499_v39, %v3971_v7  ;;  %v12105_v16 = vadd.f32 %v4621_v18, %v4093_v32  ;;  %v13201_v18 = vld [vmem:[#allocation27_spill] sm:$0xff] }
 0x4f6   : > { %v4501_v5 = vpop.f32.mrf.mxu0  ;;  %v4623_v47 = vpop.f32.mrf.mxu1  ;;  %v3981_v34 = vadd.f32 %v11843_v11, %v13201_v18  ;;  %v13210_v11 = vld [vmem:[#allocation28_spill] sm:$0xff] }
 0x4f7   : > { %13193 = vst [vmem:[#allocation48_spill] sm:$0xff] %v12105_v16  ;;  %v12111_v20 = vadd.f32 %v4501_v5, %v3973_v4  ;;  %v13202_v47 = vld [vmem:[#allocation24_spill] sm:$0xff] }
 0x4f8   : > { %v4505_v61 = vpop.f32.mrf.mxu0  ;;  %v4626_v42 = vpop.f32.mrf.mxu1  ;;  %v4101_v35 = vadd.f32 %v13203_v23, %v13202_v47  ;;  %v13211_v18 = vld [vmem:[#allocation68_spill] sm:$0xff] }
 0x4f9   : > { %13198 = vst [vmem:[#allocation5_spill] sm:$0xff] %v12111_v20  ;;  %v12115_v44 = vadd.f32 %v4505_v61, %v3977_v14  ;;  %v12117_v7 = vadd.f32 %v4626_v42, %v4098_v45  ;;  %v13206_v20 = vld [vmem:[#allocation66_spill] sm:$0xff]  ;;  %v13213_v23 = vld [vmem:[#allocation32_spill] sm:$0xff] }
 0x4fa   : > { %v4507_v32 = vpop.f32.mrf.mxu0  ;;  %v4628_v39 = vpop.f32.mrf.mxu1  ;;  %v3983_v16 = vadd.f32 %v13206_v20, %v13205_v37  ;;  %v13208_v42 = vld [vmem:[#allocation30_spill] sm:$0xff] }
 0x4fb   : > { %13200 = vst [vmem:[#allocation49_spill] sm:$0xff] %v12117_v7  ;;  %v12123_v60 = vadd.f32 %v4507_v32, %v3979_v28  ;;  %v3987_v39 = vadd.f32 %v13209_v50, %v13208_v42  ;;  %v4106_v7 = vadd.f32 %v13211_v18, %v13210_v11  ;;  %v13217_v42 = vld [vmem:[#allocation69_spill] sm:$0xff]  ;;  %v13219_v18 = vld [vmem:[#allocation34_spill] sm:$0xff] }
 0x4fc   : > { %v4509_v4 = vpop.f32.mrf.mxu0  ;;  %v4629_v5 = vpop.f32.mrf.mxu1 }
 0x4fd   : > { %13204 = vst [vmem:[#allocation8_spill] sm:$0xff] %v12123_v60  ;;  %v12127_v33 = vadd.f32 %v4509_v4, %v3981_v34  ;;  %v12129_v14 = vadd.f32 %v4629_v5, %v4101_v35  ;;  %v3989_v60 = vadd.f32 %v11863_v15, %v13213_v23  ;;  %v13215_v5 = vld [vmem:[#allocation33_spill] sm:$0xff]  ;;  %v13224_v23 = vld [vmem:[#allocation71_spill] sm:$0xff] }
 0x4fe   : > { %v4511_v45 = vpop.f32.mrf.mxu0  ;;  %v4631_v61 = vpop.f32.mrf.mxu1  ;;  %v3991_v37 = vadd.f32 %v11865_v38, %v13215_v5  ;;  %v13225_v38 = vld [vmem:[#allocation35_spill] sm:$0xff]  ;;  %v13226_v5 = vld [vmem:[#allocation72_spill] sm:$0xff] }
 0x4ff   : > { %13207 = vst [vmem:[#allocation10_spill] sm:$0xff] %v12129_v14  ;;  %v12135_v47 = vadd.f32 %v4511_v45, %v3983_v16  ;;  %v13216_v61 = vld [vmem:[#allocation31_spill] sm:$0xff] }
 0x500   : > { %v4515_v28 = vpop.f32.mrf.mxu0  ;;  %v4634_v32 = vpop.f32.mrf.mxu1  ;;  %v4109_v50 = vadd.f32 %v13217_v42, %v13216_v61  ;;  %v13228_v42 = vld [vmem:[#allocation38_spill] sm:$0xff] }
 0x501   : > { %13212 = vst [vmem:[#allocation9_spill] sm:$0xff] %v12135_v47  ;;  %v12139_v20 = vadd.f32 %v4515_v28, %v3987_v39  ;;  %v12141_v34 = vadd.f32 %v4634_v32, %v4106_v7  ;;  %v13220_v47 = vld [vmem:[#allocation70_spill] sm:$0xff]  ;;  %v13223_v32 = vld [vmem:[#allocation36_spill] sm:$0xff] }
 0x502   : > { %v4517_v35 = vpop.f32.mrf.mxu0  ;;  %v4636_v4 = vpop.f32.mrf.mxu1  ;;  %v3993_v14 = vadd.f32 %v13220_v47, %v13219_v18  ;;  %v13231_v18 = vld [vmem:[#allocation73_spill] sm:$0xff] }
 0x503   : > { %13214 = vst [vmem:[#allocation50_spill] sm:$0xff] %v12141_v34  ;;  %v12147_v11 = vadd.f32 %v4517_v35, %v3989_v60  ;;  %v3997_v4 = vadd.f32 %v13224_v23, %v13223_v32  ;;  %v4114_v34 = vadd.f32 %v13226_v5, %v13225_v38  ;;  %v13232_v32 = vld [vmem:[#allocation37_spill] sm:$0xff]  ;;  %v13233_v23 = vld [vmem:[#allocation74_spill] sm:$0xff]  ;;  %v13235_v5 = vld [vmem:[#allocation40_spill] sm:$0xff] }
 0x504   : > { %v4519_v16 = vpop.f32.mrf.mxu0  ;;  %v4637_v45 = vpop.f32.mrf.mxu1 }
 0x505   : > { %13218 = vst [vmem:[#allocation14_spill] sm:$0xff] %v12147_v11  ;;  %v12151_v15 = vadd.f32 %v4519_v16, %v3991_v37  ;;  %v12153_v39 = vadd.f32 %v4637_v45, %v4109_v50  ;;  %v3999_v11 = vadd.f32 %v11885_v49, %v13228_v42  ;;  %v13230_v45 = vld [vmem:[#allocation39_spill] sm:$0xff]  ;;  %v13238_v42 = vld [vmem:[#allocation76_spill] sm:$0xff] }
 0x506   : > { %v4521_v7 = vpop.f32.mrf.mxu0  ;;  %v4639_v28 = vpop.f32.mrf.mxu1 }
 0x507   : > { %13221 = vst [vmem:[#allocation52_spill] sm:$0xff] %v12151_v15  ;;  %13222 = vst [vmem:[#allocation6_spill] sm:$0xff] %v12153_v39  ;;  %v12159_v61 = vadd.f32 %v4521_v7, %v3993_v14  ;;  %v4001_v28 = vadd.f32 %v13231_v18, %v13230_v45  ;;  %v4117_v39 = vadd.f32 %v13233_v23, %v13232_v32  ;;  %v13239_v45 = vld [vmem:[#allocation42_spill] sm:$0xff]  ;;  %v13240_v18 = vld [vmem:[#allocation77_spill] sm:$0xff] }
 0x508   : > { %v4525_v60 = vpop.f32.mrf.mxu0  ;;  %v4642_v35 = vpop.f32.mrf.mxu1  ;;  %v13241_v23 = vld [vmem:[#allocation43_spill] sm:$0xff] }
 0x509   : > { %13227 = vst [vmem:[#allocation53_spill] sm:$0xff] %v12159_v61  ;;  %v12163_v47 = vadd.f32 %v4525_v60, %v3997_v4  ;;  %v12165_v37 = vadd.f32 %v4642_v35, %v4114_v34  ;;  %v13236_v61 = vld [vmem:[#allocation75_spill] sm:$0xff]  ;;  %v13237_v35 = vld [vmem:[#allocation41_spill] sm:$0xff] }
 0x50a   : > { %v4527_v50 = vpop.f32.mrf.mxu0  ;;  %v4644_v16 = vpop.f32.mrf.mxu1  ;;  %v4003_v15 = vadd.f32 %v13236_v61, %v13235_v5 }
 0x50b   : > { %13229 = vst [vmem:[#allocation13_spill] sm:$0xff] %v12165_v37  ;;  %v12171_v38 = vadd.f32 %v4527_v50, %v3999_v11  ;;  %v4007_v16 = vadd.f32 %v13238_v42, %v13237_v35  ;;  %v4122_v37 = vadd.f32 %v13240_v18, %v13239_v45  ;;  %v13244_v45 = vld [vmem:[#allocation46_spill] sm:$0xff] }
 0x50c   : > { %v4529_v14 = vpop.f32.mrf.mxu0  ;;  %v4645_v7 = vpop.f32.mrf.mxu1  ;;  %v4013_v18 = vadd.f32 %v11913_v22, %v13244_v45 }
 0x50d   : > { %13234 = vst [vmem:[#allocation54_spill] sm:$0xff] %v12171_v38  ;;  %v12175_v49 = vadd.f32 %v4529_v14, %v4001_v28  ;;  %v12177_v4 = vadd.f32 %v4645_v7, %v4117_v39  ;;  %v4009_v38 = vadd.f32 %v11907_v9, %v13241_v23  ;;  %v13242_v7 = vld [vmem:[#allocation44_spill] sm:$0xff] }
 0x50e   : > { %v4531_v34 = vpop.f32.mrf.mxu0  ;;  %v4647_v60 = vpop.f32.mrf.mxu1  ;;  %v4011_v5 = vadd.f32 %v11909_v63, %v13242_v7 }
 0x50f   : > { %v12183_v32 = vadd.f32 %v4531_v34, %v4003_v15  ;;  %v13243_v60 = vld [vmem:[#allocation45_spill] sm:$0xff] }
 0x510   : > { %v4535_v11 = vpop.f32.mrf.mxu0  ;;  %v4650_v50 = vpop.f32.mrf.mxu1  ;;  %v4125_v35 = vadd.f32 %v11911_v1, %v13243_v60 }
 0x511   : > { %v12187_v61 = vadd.f32 %v4535_v11, %v4007_v16  ;;  %v12189_v28 = vadd.f32 %v4650_v50, %v4122_v37 }
 0x512   : > { %v4537_v39 = vpop.f32.mrf.mxu0  ;;  %v4652_v14 = vpop.f32.mrf.mxu1 }
 0x513   : > { %v12195_v42 = vadd.f32 %v4537_v39, %v4009_v38 }
 0x514   : > { %v4539_v15 = vpop.f32.mrf.mxu0  ;;  %v4653_v34 = vpop.f32.mrf.mxu1 }
 0x515   : > { %v12199_v9 = vadd.f32 %v4539_v15, %v4011_v5  ;;  %v12201_v16 = vadd.f32 %v4653_v34, %v4125_v35 }
 0x516   : > { %v4541_v37 = vpop.f32.mrf.mxu0  ;;  %v4655_v11 = vpop.f32.mrf.mxu1 }
 0x517   : > { %v12203_v50 = vadd.f32 %v4541_v37, %v4013_v18 }
 0x518   : > { %v5034_v23 = vpop.f32.mrf.mxu0  ;;  %v5167_v63 = vpop.f32.mrf.mxu1 }
 0x519   : > { %v12206_v14 = vadd.f32 %v5034_v23, %v11927_v36  ;;  %v12209_v1 = vadd.f32 %v5167_v63, %v11929_v27 }
 0x51a   : > { %v5036_v38 = vpop.f32.mrf.mxu0  ;;  %v5169_v39 = vpop.f32.mrf.mxu1 }
 0x51b   : > { %v12212_v22 = vadd.f32 %v5036_v38, %v11939_v26 }
 0x51c   : > { %v5038_v7 = vpop.f32.mrf.mxu0  ;;  %v5170_v5 = vpop.f32.mrf.mxu1 }
 0x51d   : > { %v12215_v60 = vadd.f32 %v5038_v7, %v11943_v21  ;;  %v12218_v35 = vadd.f32 %v5170_v5, %v11945_v46 }
 0x51e   : > { %v5040_v15 = vpop.f32.mrf.mxu0  ;;  %v5172_v34 = vpop.f32.mrf.mxu1 }
 0x51f   : > { %v12221_v36 = vadd.f32 %v5040_v15, %v11951_v31 }
 0x520   : > { %v5044_v27 = vpop.f32.mrf.mxu0  ;;  %v5175_v45 = vpop.f32.mrf.mxu1 }
 0x521   : > { %v12224_v18 = vadd.f32 %v5044_v27, %v11961_v0  ;;  %v12227_v26 = vadd.f32 %v5175_v45, %v11963_v62  ;;  %v13246_v27 = vld [vmem:[#allocation47_spill] sm:$0xff] }
 0x522   : > { %v5046_v37 = vpop.f32.mrf.mxu0  ;;  %v5177_v11 = vpop.f32.mrf.mxu1 }
 0x523   : > { %v12230_v21 = vadd.f32 %v5046_v37, %v11973_v24 }
 0x524   : > { %v5048_v46 = vpop.f32.mrf.mxu0  ;;  %v5178_v23 = vpop.f32.mrf.mxu1 }
 0x525   : > { %v12233_v63 = vadd.f32 %v5048_v46, %v11977_v48  ;;  %v12236_v31 = vadd.f32 %v5178_v23, %v11979_v6  ;;  %v13245_v48 = vld [vmem:[#allocation7_spill] sm:$0xff] }
 0x526   : > { %v5050_v38 = vpop.f32.mrf.mxu0  ;;  %v5180_v39 = vpop.f32.mrf.mxu1  ;;  %v3943_v45 = vadd.f32 %v13246_v27, %v13245_v48 }
 0x527   : > { %v12239_v0 = vadd.f32 %v5050_v38, %v11985_v40 }
 0x528   : > { %v5054_v62 = vpop.f32.mrf.mxu0  ;;  %v5183_v7 = vpop.f32.mrf.mxu1  ;;  %v4673_v40 = vadd.f32 %v12013_v57, %v3943_v45 }
 0x529   : > { %v12242_v5 = vadd.f32 %v5054_v62, %v11995_v12  ;;  %v12245_v24 = vadd.f32 %v5183_v7, %v11997_v51 }
 0x52a   : > { %v5056_v15 = vpop.f32.mrf.mxu0  ;;  %v5185_v34 = vpop.f32.mrf.mxu1 }
 0x52b   : > { %v12250_v6 = vadd.f32 %v5056_v15, %v12007_v58  ;;  %v13247_v34 = vld [vmem:[#allocation15_spill] sm:$0xff] }
 0x52c   : > { %v5058_v37 = vpop.f32.mrf.mxu0  ;;  %v5186_v11 = vpop.f32.mrf.mxu1 }
 0x52d   : > { %v12254_v46 = vadd.f32 %v5058_v37, %v12009_v3  ;;  %v12257_v12 = vadd.f32 %v5186_v11, %v12011_v17  ;;  %v13248_v3 = vld [vmem:[#allocation51_spill] sm:$0xff] }
 0x52e   : > { %v5060_v51 = vpop.f32.mrf.mxu0  ;;  %v5188_v23 = vpop.f32.mrf.mxu1  ;;  %v3953_v48 = vadd.f32 %v13248_v3, %v13247_v34 }
 0x52f   : > { %v12259_v38 = vadd.f32 %v5060_v51, %v4673_v40 }
 0x530   : > { %v5064_v39 = vpop.f32.mrf.mxu0  ;;  %v5191_v62 = vpop.f32.mrf.mxu1  ;;  %v4679_v37 = vadd.f32 %v12045_v19, %v3953_v48 }
 0x531   : > { %v12262_v7 = vadd.f32 %v5064_v39, %v12027_v30  ;;  %v12265_v58 = vadd.f32 %v5191_v62, %v12029_v10 }
 0x532   : > { %v5066_v15 = vpop.f32.mrf.mxu0  ;;  %v5193_v57 = vpop.f32.mrf.mxu1 }
 0x533   : > { %v12270_v17 = vadd.f32 %v5066_v15, %v12039_v41  ;;  %v13249_v57 = vld [vmem:[#allocation18_spill] sm:$0xff] }
 0x534   : > { %v5068_v27 = vpop.f32.mrf.mxu0  ;;  %v5194_v45 = vpop.f32.mrf.mxu1 }
 0x535   : > { %v12274_v11 = vadd.f32 %v5068_v27, %v12041_v54  ;;  %v12277_v30 = vadd.f32 %v5194_v45, %v12043_v2  ;;  %v13250_v54 = vld [vmem:[#allocation57_spill] sm:$0xff] }
 0x536   : > { %v5070_v10 = vpop.f32.mrf.mxu0  ;;  %v5196_v40 = vpop.f32.mrf.mxu1  ;;  %v3963_v34 = vadd.f32 %v13250_v54, %v13249_v57  ;;  %v13251_v54 = vld [vmem:[#allocation48_spill] sm:$0xff] }
 0x537   : > { %v12279_v51 = vadd.f32 %v5070_v10, %v4679_v37 }
 0x538   : > { %v5074_v23 = vpop.f32.mrf.mxu0  ;;  %v5199_v39 = vpop.f32.mrf.mxu1  ;;  %v4685_v27 = vadd.f32 %v12077_v29, %v3963_v34 }
 0x539   : > { %v12282_v62 = vadd.f32 %v5074_v23, %v12059_v43  ;;  %v12285_v41 = vadd.f32 %v5199_v39, %v12061_v13 }
 0x53a   : > { %v5076_v15 = vpop.f32.mrf.mxu0  ;;  %v5201_v19 = vpop.f32.mrf.mxu1 }
 0x53b   : > { %v12290_v2 = vadd.f32 %v5076_v15, %v12071_v8 }
 0x53c   : > { %v5078_v3 = vpop.f32.mrf.mxu0  ;;  %v5202_v48 = vpop.f32.mrf.mxu1 }
 0x53d   : > { %v12294_v45 = vadd.f32 %v5078_v3, %v12073_v59  ;;  %v12297_v43 = vadd.f32 %v5202_v48, %v12075_v55 }
 0x53e   : > { %v5080_v13 = vpop.f32.mrf.mxu0  ;;  %v5204_v37 = vpop.f32.mrf.mxu1 }
 0x53f   : > { %v12299_v10 = vadd.f32 %v5080_v13, %v4685_v27 }
 0x540   : > { %v5084_v40 = vpop.f32.mrf.mxu0  ;;  %v5207_v23 = vpop.f32.mrf.mxu1 }
 0x541   : > { %v12302_v39 = vadd.f32 %v5084_v40, %v12091_v52  ;;  %v12305_v8 = vadd.f32 %v5207_v23, %v12093_v56  ;;  %v13252_v52 = vld [vmem:[#allocation5_spill] sm:$0xff] }
 0x542   : > { %v5086_v15 = vpop.f32.mrf.mxu0  ;;  %v5209_v29 = vpop.f32.mrf.mxu1 }
 0x543   : > { %v12308_v59 = vadd.f32 %v5086_v15, %v12099_v53  ;;  %v13254_v53 = vld [vmem:[#allocation49_spill] sm:$0xff] }
 0x544   : > { %v5088_v19 = vpop.f32.mrf.mxu0  ;;  %v5210_v55 = vpop.f32.mrf.mxu1 }
 0x545   : > { %v12311_v57 = vadd.f32 %v5088_v19, %v12103_v25  ;;  %v12314_v34 = vadd.f32 %v5210_v55, %v13251_v54  ;;  %v13256_v25 = vld [vmem:[#allocation8_spill] sm:$0xff] }
 0x546   : > { %v5090_v3 = vpop.f32.mrf.mxu0  ;;  %v5212_v48 = vpop.f32.mrf.mxu1 }
 0x547   : > { %v12317_v27 = vadd.f32 %v5090_v3, %v13252_v52  ;;  %v13259_v3 = vld [vmem:[#allocation10_spill] sm:$0xff] }
 0x548   : > { %v5094_v56 = vpop.f32.mrf.mxu0  ;;  %v5215_v13 = vpop.f32.mrf.mxu1 }
 0x549   : > { %13253 = vst [vmem:[#allocation4_spill] sm:$0xff] %v12317_v27  ;;  %v12320_v37 = vadd.f32 %v5094_v56, %v12115_v44  ;;  %v12323_v40 = vadd.f32 %v5215_v13, %v13254_v53  ;;  %v13261_v44 = vld [vmem:[#allocation9_spill] sm:$0xff] }
 0x54a   : > { %v5096_v23 = vpop.f32.mrf.mxu0  ;;  %v5217_v15 = vpop.f32.mrf.mxu1 }
 0x54b   : > { %13255 = vst [vmem:[#allocation16_spill] sm:$0xff] %v12323_v40  ;;  %v12326_v29 = vadd.f32 %v5096_v23, %v13256_v25  ;;  %v13263_v23 = vld [vmem:[#allocation50_spill] sm:$0xff] }
 0x54c   : > { %v5098_v19 = vpop.f32.mrf.mxu0  ;;  %v5218_v55 = vpop.f32.mrf.mxu1 }
 0x54d   : > { %13257 = vst [vmem:[#allocation55_spill] sm:$0xff] %v12326_v29  ;;  %v12329_v54 = vadd.f32 %v5098_v19, %v12127_v33  ;;  %v12332_v48 = vadd.f32 %v5218_v55, %v13259_v3  ;;  %v13265_v33 = vld [vmem:[#allocation14_spill] sm:$0xff] }
 0x54e   : > { %v5100_v52 = vpop.f32.mrf.mxu0  ;;  %v5220_v27 = vpop.f32.mrf.mxu1 }
 0x54f   : > { %13258 = vst [vmem:[#allocation11_spill] sm:$0xff] %v12329_v54  ;;  %13260 = vst [vmem:[#allocation56_spill] sm:$0xff] %v12332_v48  ;;  %v12335_v56 = vadd.f32 %v5100_v52, %v13261_v44  ;;  %v13267_v48 = vld [vmem:[#allocation52_spill] sm:$0xff]  ;;  %v13268_v52 = vld [vmem:[#allocation6_spill] sm:$0xff] }
 0x550   : > { %v5104_v13 = vpop.f32.mrf.mxu0  ;;  %v5223_v53 = vpop.f32.mrf.mxu1 }
 0x551   : > { %13262 = vst [vmem:[#allocation19_spill] sm:$0xff] %v12335_v56  ;;  %v12338_v15 = vadd.f32 %v5104_v13, %v12139_v20  ;;  %v12341_v25 = vadd.f32 %v5223_v53, %v13263_v23  ;;  %v13269_v20 = vld [vmem:[#allocation53_spill] sm:$0xff] }
 0x552   : > { %v5106_v29 = vpop.f32.mrf.mxu0  ;;  %v5225_v40 = vpop.f32.mrf.mxu1 }
 0x553   : > { %13264 = vst [vmem:[#allocation58_spill] sm:$0xff] %v12341_v25  ;;  %v12344_v19 = vadd.f32 %v5106_v29, %v13265_v33  ;;  %v13271_v29 = vld [vmem:[#allocation13_spill] sm:$0xff] }
 0x554   : > { %v5108_v55 = vpop.f32.mrf.mxu0  ;;  %v5226_v3 = vpop.f32.mrf.mxu1 }
 0x555   : > { %13266 = vst [vmem:[#allocation12_spill] sm:$0xff] %v12344_v19  ;;  %v12347_v27 = vadd.f32 %v5108_v55, %v13267_v48  ;;  %v12350_v44 = vadd.f32 %v5226_v3, %v13268_v52  ;;  %v13272_v48 = vld [vmem:[#allocation54_spill] sm:$0xff] }
 0x556   : > { %v5110_v56 = vpop.f32.mrf.mxu0  ;;  %v5228_v54 = vpop.f32.mrf.mxu1 }
 0x557   : > { %v12353_v13 = vadd.f32 %v5110_v56, %v13269_v20 }
 0x558   : > { %v5114_v53 = vpop.f32.mrf.mxu0  ;;  %v5231_v23 = vpop.f32.mrf.mxu1 }
 0x559   : > { %13270 = vst [vmem:[#allocation59_spill] sm:$0xff] %v12353_v13  ;;  %v12356_v40 = vadd.f32 %v5114_v53, %v12163_v47  ;;  %v12359_v33 = vadd.f32 %v5231_v23, %v13271_v29 }
 0x55a   : > { %v5116_v19 = vpop.f32.mrf.mxu0  ;;  %v5233_v25 = vpop.f32.mrf.mxu1 }
 0x55b   : > { %v12362_v55 = vadd.f32 %v5116_v19, %v13272_v48 }
 0x55c   : > { %v5118_v3 = vpop.f32.mrf.mxu0  ;;  %v5234_v52 = vpop.f32.mrf.mxu1 }
 0x55d   : > { %v12365_v54 = vadd.f32 %v5118_v3, %v12175_v49  ;;  %v12368_v56 = vadd.f32 %v5234_v52, %v12177_v4 }
 0x55e   : > { %v5120_v20 = vpop.f32.mrf.mxu0  ;;  %v5236_v13 = vpop.f32.mrf.mxu1 }
 0x55f   : > { %v12371_v47 = vadd.f32 %v5120_v20, %v12183_v32 }
 0x560   : > { %v5124_v53 = vpop.f32.mrf.mxu0  ;;  %v5239_v23 = vpop.f32.mrf.mxu1 }
 0x561   : > { %13273 = vst [vmem:[#allocation3_spill] sm:$0xff] %v12371_v47  ;;  %v12374_v25 = vadd.f32 %v5124_v53, %v12187_v61  ;;  %v12377_v19 = vadd.f32 %v5239_v23, %v12189_v28 }
 0x562   : > { %v5126_v29 = vpop.f32.mrf.mxu0  ;;  %v5241_v48 = vpop.f32.mrf.mxu1 }
 0x563   : > { %v12380_v49 = vadd.f32 %v5126_v29, %v12195_v42 }
 0x564   : > { %v5128_v4 = vpop.f32.mrf.mxu0  ;;  %v5242_v3 = vpop.f32.mrf.mxu1 }
 0x565   : > { %13274 = vst [vmem:[#allocation20_spill] sm:$0xff] %v12380_v49  ;;  %v12383_v13 = vadd.f32 %v5128_v4, %v12199_v9  ;;  %v12386_v32 = vadd.f32 %v5242_v3, %v12201_v16  ;;  %v5893_v9 = vld [vmem:[%s13023_s5] sm:$0x7] }
 0x566   : > { %v5130_v52 = vpop.f32.mrf.mxu0  ;;  %v5244_v20 = vpop.f32.mrf.mxu1 }
 0x567   : > { %13275 = vst [vmem:[#allocation21_spill] sm:$0xff] %v12383_v13  ;;  %13276 = vst [vmem:[#allocation60_spill] sm:$0xff] %v12386_v32  ;;  %v12389_v61 = vadd.f32 %v5130_v52, %v12203_v50  ;;  %v13278_v50 = vld [vmem:[#allocation2_spill] sm:$0xff] }
 0x568   : > { %v5621_v28 = vpop.f32.mrf.mxu0  ;;  %v5754_v53 = vpop.f32.mrf.mxu1  ;;  %v13279_v52 = vsub.s32 0, %v13278_v50 }
 0x569   : > { %13277 = vst [vmem:[#allocation17_spill] sm:$0xff] %v12389_v61  ;;  %v5833_v23 = vadd.f32 %v5621_v28, %v12206_v14  ;;  %v5835_v42 = vadd.f32 %v5754_v53, %v12209_v1  ;;  %v13280_v1 = vsub.s32 2, %v13278_v50  ;;  %v13281_v53 = vsub.s32 1, %v13278_v50 }
 0x56a   : > { %v5623_v29 = vpop.f32.mrf.mxu0  ;;  %v5756_v48 = vpop.f32.mrf.mxu1  ;;  %v12400_v61 = vrot.slane %v5893_v9, %v13279_v52 }
 0x56b   : > { %v5834_v16 = vadd.f32 %v5623_v29, %v12212_v22  ;;  %v12404_v28 = vrot.slane %v5893_v9, %v13280_v1  ;;  %v12408_v48 = vrot.slane %v5893_v9, %v13281_v53 }
 0x56c   : > { %v5625_v4 = vpop.f32.mrf.mxu0  ;;  %v5757_v3 = vpop.f32.mrf.mxu1 }
 0x56d   : > { %v5836_v20 = vadd.f32 %v5625_v4, %v12215_v60  ;;  %v5910_v4 = vadd.f32 %v12400_v61, %v5833_v23  ;;  %v5911_v9 = vadd.f32 %v12408_v48, %v5834_v16  ;;  %v5838_v53 = vadd.f32 %v5757_v3, %v12218_v35 }
 0x56e   : > { %v5627_v32 = vpop.f32.mrf.mxu0  ;;  %v5759_v14 = vpop.f32.mrf.mxu1 }
 0x56f   : > { %v5912_v14 = vadd.f32 %v12404_v28, %v5835_v42  ;;  %v5913_v16 = vadd.f32 %v12400_v61, %v5836_v20 }
 0x570   : > { %v5631_v13 = vpop.f32.mrf.mxu0  ;;  %v5762_v22 = vpop.f32.mrf.mxu1 }
 0x571   : > { %v5839_v29 = vadd.f32 %v5631_v13, %v12224_v18  ;;  %v5841_v60 = vadd.f32 %v5762_v22, %v12227_v26  ;;  %v5837_v18 = vadd.f32 %v5627_v32, %v12221_v36 }
 0x572   : > { %v5633_v52 = vpop.f32.mrf.mxu0  ;;  %v5764_v47 = vpop.f32.mrf.mxu1 }
 0x573   : > { %v5916_v49 = vadd.f32 %v12400_v61, %v5839_v29  ;;  %v5918_v1 = vadd.f32 %v12404_v28, %v5841_v60  ;;  %v5840_v50 = vadd.f32 %v5633_v52, %v12230_v21 }
 0x574   : > { %v5635_v13 = vpop.f32.mrf.mxu0  ;;  %v5765_v26 = vpop.f32.mrf.mxu1 }
 0x575   : > { %v12420_v22 = vmax.f32 %v5910_v4, %v5916_v49  ;;  %v12422_v23 = vmax.f32 %v5912_v14, %v5918_v1  ;;  %v5917_v47 = vadd.f32 %v12408_v48, %v5840_v50  ;;  %v5842_v42 = vadd.f32 %v5635_v13, %v12233_v63 }
 0x576   : > { %v5844_v29 = vadd.f32 %v5765_v26, %v12236_v31  ;;  %v5637_v60 = vpop.f32.mrf.mxu0  ;;  %v5767_v21 = vpop.f32.mrf.mxu1  ;;  %v5915_v49 = vadd.f32 %v12404_v28, %v5838_v53  ;;  %v5914_v63 = vadd.f32 %v12408_v48, %v5837_v18 }
 0x577   : > { %v12428_v52 = vmax.f32 %v5911_v9, %v5917_v47  ;;  %v5919_v35 = vadd.f32 %v12400_v61, %v5842_v42  ;;  %v5843_v36 = vadd.f32 %v5637_v60, %v12239_v0 }
 0x578   : > { %v5921_v32 = vadd.f32 %v12404_v28, %v5844_v29  ;;  %v5641_v3 = vpop.f32.mrf.mxu0  ;;  %v5770_v4 = vpop.f32.mrf.mxu1 }
 0x579   : > { %v12435_v14 = vmax.f32 %v5913_v16, %v5919_v35  ;;  %v5920_v31 = vadd.f32 %v12408_v48, %v5843_v36  ;;  %v5845_v53 = vadd.f32 %v5641_v3, %v12242_v5  ;;  %v5847_v26 = vadd.f32 %v5770_v4, %v12245_v24 }
 0x57a   : > { %v12438_v1 = vmax.f32 %v5915_v49, %v5921_v32  ;;  %v5643_v20 = vpop.f32.mrf.mxu0  ;;  %v5772_v50 = vpop.f32.mrf.mxu1 }
 0x57b   : > { %v12440_v9 = vmax.f32 %v5914_v63, %v5920_v31  ;;  %v5846_v18 = vadd.f32 %v5643_v20, %v12250_v6  ;;  %v5922_v35 = vadd.f32 %v12400_v61, %v5845_v53  ;;  %v5924_v36 = vadd.f32 %v12404_v28, %v5847_v26 }
 0x57c   : > { %v5645_v13 = vpop.f32.mrf.mxu0  ;;  %v5773_v0 = vpop.f32.mrf.mxu1 }
 0x57d   : > { %v5848_v5 = vadd.f32 %v5645_v13, %v12254_v46  ;;  %v5923_v4 = vadd.f32 %v12408_v48, %v5846_v18 }
 0x57e   : > { %v5647_v47 = vpop.f32.mrf.mxu0  ;;  %v5775_v42 = vpop.f32.mrf.mxu1 }
 0x57f   : > { %v5925_v42 = vadd.f32 %v12400_v61, %v5848_v5 }
 0x580   : > { %v5651_v29 = vpop.f32.mrf.mxu0  ;;  %v5778_v60 = vpop.f32.mrf.mxu1 }
 0x581   : > { %v5851_v21 = vadd.f32 %v5651_v29, %v12262_v7  ;;  %v5853_v16 = vadd.f32 %v5778_v60, %v12265_v58  ;;  %v5850_v7 = vadd.f32 %v5773_v0, %v12257_v12  ;;  %v5849_v58 = vadd.f32 %v5647_v47, %v12259_v38 }
 0x582   : > { %v5653_v49 = vpop.f32.mrf.mxu0  ;;  %v5780_v32 = vpop.f32.mrf.mxu1 }
 0x583   : > { %v5928_v24 = vadd.f32 %v12400_v61, %v5851_v21  ;;  %v5930_v3 = vadd.f32 %v12404_v28, %v5853_v16  ;;  %v5852_v6 = vadd.f32 %v5653_v49, %v12270_v17  ;;  %v5927_v0 = vadd.f32 %v12404_v28, %v5850_v7 }
 0x584   : > { %v5655_v63 = vpop.f32.mrf.mxu0  ;;  %v5781_v31 = vpop.f32.mrf.mxu1 }
 0x585   : > { %v12456_v20 = vmax.f32 %v5922_v35, %v5928_v24  ;;  %v12458_v50 = vmax.f32 %v5924_v36, %v5930_v3  ;;  %v5929_v46 = vadd.f32 %v12408_v48, %v5852_v6  ;;  %v5854_v13 = vadd.f32 %v5655_v63, %v12274_v11 }
 0x586   : > { %v5856_v53 = vadd.f32 %v5781_v31, %v12277_v30  ;;  %v5657_v26 = vpop.f32.mrf.mxu0  ;;  %v5783_v17 = vpop.f32.mrf.mxu1  ;;  %v5926_v11 = vadd.f32 %v12408_v48, %v5849_v58 }
 0x587   : > { %v12464_v18 = vmax.f32 %v5923_v4, %v5929_v46  ;;  %v5931_v12 = vadd.f32 %v12400_v61, %v5854_v13  ;;  %v5855_v38 = vadd.f32 %v5657_v26, %v12279_v51 }
 0x588   : > { %v5933_v47 = vadd.f32 %v12404_v28, %v5856_v53  ;;  %v5661_v29 = vpop.f32.mrf.mxu0  ;;  %v5786_v60 = vpop.f32.mrf.mxu1 }
 0x589   : > { %v8631_v30 = vpack.i.bf16 %v12464_v18, %v12456_v20  ;;  %v12473_v21 = vmax.f32 %v5925_v42, %v5931_v12  ;;  %v5932_v16 = vadd.f32 %v12408_v48, %v5855_v38  ;;  %v5857_v6 = vadd.f32 %v5661_v29, %v12282_v62 }
 0x58a   : > { %v12476_v35 = vmax.f32 %v5927_v0, %v5933_v47  ;;  %v5663_v36 = vpop.f32.mrf.mxu0  ;;  %v5788_v49 = vpop.f32.mrf.mxu1  ;;  %v5859_v4 = vadd.f32 %v5786_v60, %v12285_v41  ;;  %v9119_v41 = vld [vmem:[%s13024_s6 + $0x78] sm:$0xff]  }
 0x58b   : > { %v8636_v51 = vpack.i.bf16 %v12473_v21, %v12458_v50  ;;  %v12480_v32 = vmax.f32 %v5926_v11, %v5932_v16  ;;  %8632 = vrot.lane.b32.xlu1 %v8631_v30, %s9251_s23  ;;  %v5858_v63 = vadd.f32 %v5663_v36, %v12290_v2  ;;  %v5934_v26 = vadd.f32 %v12400_v61, %v5857_v6 }
 0x58c   : > { %v5665_v5 = vpop.f32.mrf.mxu0  ;;  %v5789_v24 = vpop.f32.mrf.mxu1  ;;  %v5936_v17 = vadd.f32 %v12404_v28, %v5859_v4  ;;  %8323 = vmatprep.subr.bf16.mxu0 %v9119_v41  ;;  %v9124_v41 = vld [vmem:[%s13024_s6 + $0x28] sm:$0xff]  }
 0x58d   : > { %v8641_v3 = vpack.i.bf16 %v12476_v35, %v12480_v32  ;;  %8637 = vrot.lane.b32.xlu0 %v8636_v51, %s9251_s23  ;;  %v5860_v12 = vadd.f32 %v5665_v5, %v12294_v45  ;;  %v5935_v0 = vadd.f32 %v12408_v48, %v5858_v63  ;;  %v5862_v47 = vadd.f32 %v5789_v24, %v12297_v43  ;;  %v9121_v43 = vld [vmem:[%s13024_s6 + $0x70] sm:$0xff]  }
 0x58e   : > { %v5667_v7 = vpop.f32.mrf.mxu0  ;;  %v5791_v58 = vpop.f32.mrf.mxu1 }
 0x58f   : > { %8642 = vrot.lane.b32.xlu1 %v8641_v3, %s9251_s23  ;;  %v5861_v29 = vadd.f32 %v5667_v7, %v12299_v10  ;;  %v5937_v10 = vadd.f32 %v12400_v61, %v5860_v12  ;;  %v13282_v3 = vld [vmem:[#allocation4_spill] sm:$0xff] }
 0x590   : > { %v5671_v31 = vpop.f32.mrf.mxu0  ;;  %v5794_v46 = vpop.f32.mrf.mxu1 }
 0x591   : > { %v5863_v13 = vadd.f32 %v5671_v31, %v12302_v39  ;;  %v5865_v53 = vadd.f32 %v5794_v46, %v12305_v8  ;;  %v9120_v8 = vld [vmem:[%s13024_s6 + $0x38] sm:$0xff]   ;;  %v5938_v63 = vadd.f32 %v12408_v48, %v5861_v29 }
 0x592   : > { %v5673_v42 = vpop.f32.mrf.mxu0  ;;  %v5796_v62 = vpop.f32.mrf.mxu1  ;;  %8324 = vmatpush3.bf16.msra.mxu0 %v9120_v8  ;;  %v13283_v8 = vld [vmem:[#allocation16_spill] sm:$0xff] }
 0x593   : > { %v5940_v2 = vadd.f32 %v12400_v61, %v5863_v13  ;;  %v5942_v38 = vadd.f32 %v12404_v28, %v5865_v53  ;;  %v5864_v39 = vadd.f32 %v5673_v42, %v12308_v59  ;;  %8325 = vmatprep.subr.bf16.mxu0 %v9121_v43  ;;  %v9123_v42 = vld [vmem:[%s13024_s6 + $0x68] sm:$0xff]  }
 0x594   : > { %v5675_v60 = vpop.f32.mrf.mxu0  ;;  %v5797_v11 = vpop.f32.mrf.mxu1 }
 0x595   : > { %v12507_v45 = vmax.f32 %v5934_v26, %v5940_v2  ;;  %v12509_v30 = vmax.f32 %v5936_v17, %v5942_v38  ;;  %v5941_v16 = vadd.f32 %v12408_v48, %v5864_v39  ;;  %v5866_v59 = vadd.f32 %v5675_v60, %v12311_v57  ;;  %v9122_v57 = vld [vmem:[%s13024_s6 + $0x30] sm:$0xff]   ;;  %v9125_v60 = vld [vmem:[%s13024_s6 + $0x60] sm:$0xff]  }
 0x596   : > { %v5868_v36 = vadd.f32 %v5797_v11, %v12314_v34  ;;  %v5677_v49 = vpop.f32.mrf.mxu0  ;;  %v5799_v51 = vpop.f32.mrf.mxu1  ;;  %v5939_v34 = vadd.f32 %v12404_v28, %v5862_v47  ;;  %8326 = vmatpush3.bf16.msra.mxu0 %v9122_v57  ;;  %v9126_v11 = vld [vmem:[%s13024_s6 + $0x20] sm:$0xff]   ;;  %v9127_v57 = vld [vmem:[%s13024_s6 + $0x58] sm:$0xff]  }
 0x597   : > { %v12518_v5 = vmax.f32 %v5935_v0, %v5941_v16  ;;  %v5943_v24 = vadd.f32 %v12400_v61, %v5866_v59  ;;  %v5867_v6 = vadd.f32 %v5677_v49, %v13282_v3  ;;  %8327 = vmatprep.subr.bf16.mxu0 %v9123_v42  ;;  %v13284_v16 = vld [vmem:[#allocation55_spill] sm:$0xff]  ;;  %v13285_v51 = vld [vmem:[#allocation58_spill] sm:$0xff] }
 0x598   : > { %v5945_v4 = vadd.f32 %v12404_v28, %v5868_v36  ;;  %v5681_v7 = vpop.f32.mrf.mxu0  ;;  %v5802_v58 = vpop.f32.mrf.mxu1 }
 0x599   : > { %v8646_v31 = vpack.i.bf16 %v12509_v30, %v12518_v5  ;;  %v12530_v46 = vmax.f32 %v5937_v10, %v5943_v24  ;;  %v5944_v13 = vadd.f32 %v12408_v48, %v5867_v6  ;;  %v5869_v39 = vadd.f32 %v5681_v7, %v12320_v37 }
 0x59a   : > { %v12533_v53 = vmax.f32 %v5939_v34, %v5945_v4  ;;  %v5683_v26 = vpop.f32.mrf.mxu0  ;;  %v5804_v17 = vpop.f32.mrf.mxu1  ;;  %8328 = vmatpush3.bf16.msra.mxu0 %v9124_v41  ;;  %v5871_v0 = vadd.f32 %v5802_v58, %v13283_v8  ;;  %v13286_v34 = vld [vmem:[#allocation11_spill] sm:$0xff] }
 0x59b   : > { %v12538_v62 = vmax.f32 %v5938_v63, %v5944_v13  ;;  %8647 = vrot.lane.b32.xlu0 %v8646_v31, %s9251_s23  ;;  %v5870_v59 = vadd.f32 %v5683_v26, %v13284_v16  ;;  %8329 = vmatprep.subr.bf16.mxu0 %v9125_v60  ;;  %v5946_v10 = vadd.f32 %v12400_v61, %v5869_v39  ;;  %v13288_v13 = vld [vmem:[#allocation56_spill] sm:$0xff]  ;;  %v13289_v17 = vld [vmem:[#allocation19_spill] sm:$0xff]  ;;  %v9128_v39 = vld [vmem:[%s13024_s6 + $0x18] sm:$0xff]  }
 0x59c   : > { %v5685_v12 = vpop.f32.mrf.mxu0  ;;  %v5805_v2 = vpop.f32.mrf.mxu1  ;;  %v5948_v24 = vadd.f32 %v12404_v28, %v5871_v0 }
 0x59d   : > { %v8651_v38 = vpack.i.bf16 %v12533_v53, %v12538_v62  ;;  %v5872_v4 = vadd.f32 %v5685_v12, %v13286_v34  ;;  %v5947_v31 = vadd.f32 %v12408_v48, %v5870_v59  ;;  %v5874_v26 = vadd.f32 %v5805_v2, %v13288_v13 }
 0x59e   : > { %v5687_v47 = vpop.f32.mrf.mxu0  ;;  %v5807_v29 = vpop.f32.mrf.mxu1  ;;  %8330 = vmatpush3.bf16.msra.mxu0 %v9126_v11 }
 0x59f   : > { %8652 = vrot.lane.b32.xlu1 %v8651_v38, %s9251_s23  ;;  %v5873_v42 = vadd.f32 %v5687_v47, %v13289_v17  ;;  %8331 = vmatprep.subr.bf16.mxu0 %v9127_v57  ;;  %v5949_v47 = vadd.f32 %v12400_v61, %v5872_v4 }
 0x5a0   : > { %v5691_v36 = vpop.f32.mrf.mxu0  ;;  %v5810_v49 = vpop.f32.mrf.mxu1 }
 0x5a1   : > { %v5875_v37 = vadd.f32 %v5691_v36, %v12338_v15  ;;  %v5877_v43 = vadd.f32 %v5810_v49, %v13285_v51  ;;  %v13287_v15 = vld [vmem:[#allocation12_spill] sm:$0xff]  ;;  %v13290_v36 = vld [vmem:[#allocation59_spill] sm:$0xff]  ;;  %v5951_v51 = vadd.f32 %v12404_v28, %v5874_v26 }
 0x5a2   : > { %v5693_v3 = vpop.f32.mrf.mxu0  ;;  %v5812_v6 = vpop.f32.mrf.mxu1  ;;  %8332 = vmatpush3.bf16.msra.mxu0 %v9128_v39 }
 0x5a3   : > { %v5952_v7 = vadd.f32 %v12400_v61, %v5875_v37  ;;  %v5954_v58 = vadd.f32 %v12404_v28, %v5877_v43  ;;  %v5876_v63 = vadd.f32 %v5693_v3, %v13287_v15  ;;  %v9129_v37 = vld [vmem:[%s13024_s6 + $0x50] sm:$0xff]  }
 0x5a4   : > { %v5695_v41 = vpop.f32.mrf.mxu0  ;;  %v5813_v38 = vpop.f32.mrf.mxu1  ;;  %8333 = vmatprep.subr.bf16.mxu0 %v9129_v37 }
 0x5a5   : > { %v12573_v12 = vmax.f32 %v5946_v10, %v5952_v7  ;;  %v12575_v8 = vmax.f32 %v5948_v24, %v5954_v58  ;;  %v5953_v0 = vadd.f32 %v12408_v48, %v5876_v63  ;;  %v5878_v29 = vadd.f32 %v5695_v41, %v12347_v27  ;;  %v9130_v10 = vld [vmem:[%s13024_s6 + $0x10] sm:$0xff]  }
 0x5a6   : > { %v5880_v60 = vadd.f32 %v5813_v38, %v12350_v44  ;;  %v5697_v2 = vpop.f32.mrf.mxu0  ;;  %v5815_v11 = vpop.f32.mrf.mxu1  ;;  %v5950_v24 = vadd.f32 %v12408_v48, %v5873_v42  ;;  %8334 = vmatpush3.bf16.msra.mxu0 %v9130_v10  ;;  %v9132_v42 = vld [vmem:[%s13024_s6 + $0x8] sm:$0xff]   ;;  %v8686_v10 = vpack.i.bf16 %v12435_v14, %v12420_v22 }
 0x5a7   : > { %v12581_v16 = vmax.f32 %v5947_v31, %v5953_v0  ;;  %v5955_v59 = vadd.f32 %v12400_v61, %v5878_v29  ;;  %v5879_v49 = vadd.f32 %v5697_v2, %v13290_v36  ;;  %v9131_v31 = vld [vmem:[%s13024_s6 + $0x48] sm:$0xff]   ;;  %v8671_v0 = vpack.i.bf16 %v12530_v46, %v12507_v45  ;;  %v9133_v2 = vld [vmem:[%s13024_s6 + $0x40] sm:$0xff]  }
 0x5a8   : > { %v5957_v27 = vadd.f32 %v12404_v28, %v5880_v60  ;;  %v5701_v44 = vpop.f32.mrf.mxu0  ;;  %v5818_v43 = vpop.f32.mrf.mxu1  ;;  %8335 = vmatprep.subr.bf16.mxu0 %v9131_v31 }
 0x5a9   : > { %v8656_v3 = vpack.i.bf16 %v12581_v16, %v12573_v12  ;;  %v12596_v6 = vmax.f32 %v5949_v47, %v5955_v59  ;;  %v5956_v57 = vadd.f32 %v12408_v48, %v5879_v49  ;;  %v5883_v4 = vadd.f32 %v5818_v43, %v12359_v33  ;;  %v9134_v59 = vld [vmem:[%s13024_s6] sm:$0xff]  }
 0x5aa   : > { %v12599_v34 = vmax.f32 %v5951_v51, %v5957_v27  ;;  %v5703_v7 = vpop.f32.mrf.mxu0  ;;  %v5820_v58 = vpop.f32.mrf.mxu1  ;;  %v5881_v41 = vadd.f32 %v5701_v44, %v12356_v40  ;;  %8336 = vmatpush3.bf16.msra.mxu0 %v9132_v42  ;;  %v8676_v40 = vpack.i.bf16 %v12438_v1, %v12422_v23  ;;  %v13291_v44 = vld [vmem:[#allocation20_spill] sm:$0xff] }
 0x5ab   : > { %v8661_v15 = vpack.i.bf16 %v12596_v6, %v12575_v8  ;;  %v12604_v63 = vmax.f32 %v5950_v24, %v5956_v57  ;;  %8657 = vrot.lane.b32.xlu0 %v8656_v3, %s9251_s23  ;;  %v5882_v29 = vadd.f32 %v5703_v7, %v12362_v55  ;;  %v8681_v55 = vpack.i.bf16 %v12440_v9, %v12428_v52  ;;  %v13292_v3 = vld [vmem:[#allocation3_spill] sm:$0xff]  ;;  %v9135_v7 = vld [vmem:[%s13024_s6 + $0xf8] sm:$0xff]  }
 0x5ac   : > { %v5705_v13 = vpop.f32.mrf.mxu0  ;;  %v5821_v26 = vpop.f32.mrf.mxu1  ;;  %v5958_v36 = vadd.f32 %v12400_v61, %v5881_v41  ;;  %v5960_v49 = vadd.f32 %v12404_v28, %v5883_v4  ;;  %8337 = vmatprep.subr.bf16.mxu0 %v9133_v2  ;;  %v9136_v58 = vld [vmem:[%s13024_s6 + $0xb8] sm:$0xff]   ;;  %v13294_v41 = vld [vmem:[#allocation60_spill] sm:$0xff]  ;;  %8345 = vmatprep.subr.bf16.mxu1 %v9135_v7 }
 0x5ad   : > { %v8666_v17 = vpack.i.bf16 %v12599_v34, %v12604_v63  ;;  %v5886_v33 = vadd.f32 %v5821_v26, %v12368_v56  ;;  %8662 = vrot.lane.b32.xlu1 %v8661_v15, %s9251_s23  ;;  %v5884_v37 = vadd.f32 %v5705_v13, %v12365_v54  ;;  %v5959_v24 = vadd.f32 %v12408_v48, %v5882_v29  ;;  %v13293_v26 = vld [vmem:[#allocation21_spill] sm:$0xff] }
 0x5ae   : > { %v5707_v38 = vpop.f32.mrf.mxu0  ;;  %v5823_v39 = vpop.f32.mrf.mxu1  ;;  %8338 = vmatpush3.bf16.msra.mxu0 %v9134_v59  ;;  %8346 = vmatpush3.bf16.msra.mxu1 %v9136_v58  ;;  %v9151_v58 = vld [vmem:[%s13024_s6 + $0x1f8] sm:$0xff]  }
 0x5af   : > { %8667 = vrot.lane.b32.xlu0 %v8666_v17, %s9251_s23  ;;  %v5885_v57 = vadd.f32 %v5707_v38, %v13292_v3  ;;  %v5961_v42 = vadd.f32 %v12400_v61, %v5884_v37  ;;  %v9141_v37 = vld [vmem:[%s13024_s6 + $0xe0] sm:$0xff]  }
 0x5b0   : > { %v5711_v56 = vpop.f32.mrf.mxu0  ;;  %v5826_v60 = vpop.f32.mrf.mxu1  ;;  %v9150_v3 = vld [vmem:[%s13024_s6 + $0x80] sm:$0xff]  }
 0x5b1   : > { %v5887_v11 = vadd.f32 %v5711_v56, %v12374_v25  ;;  %v5889_v47 = vadd.f32 %v5826_v60, %v12377_v19  ;;  %8672 = vrot.lane.b32.xlu1 %v8671_v0, %s9251_s23  ;;  %v13295_v60 = vld [vmem:[#allocation17_spill] sm:$0xff] }
 0x5b2   : > { %v5713_v51 = vpop.f32.mrf.mxu0  ;;  %v5828_v27 = vpop.f32.mrf.mxu1 }
 0x5b3   : > { %v5964_v25 = vadd.f32 %v12400_v61, %v5887_v11  ;;  %v5966_v19 = vadd.f32 %v12404_v28, %v5889_v47  ;;  %v5888_v43 = vadd.f32 %v5713_v51, %v13291_v44  ;;  %8677 = vrot.lane.b32.xlu0 %v8676_v40, %s9251_s23  ;;  %v5963_v40 = vadd.f32 %v12404_v28, %v5886_v33  ;;  %v9142_v51 = vld [vmem:[%s13024_s6 + $0xa0] sm:$0xff]   ;;  %v9143_v27 = vld [vmem:[%s13024_s6 + $0xd8] sm:$0xff]   ;;  %v9146_v44 = vld [vmem:[%s13024_s6 + $0x90] sm:$0xff]  }
 0x5b4   : > { %v5715_v54 = vpop.f32.mrf.mxu0  ;;  %v5829_v4 = vpop.f32.mrf.mxu1  ;;  %v5962_v47 = vadd.f32 %v12408_v48, %v5885_v57 }
 0x5b5   : > { %v12652_v15 = vmax.f32 %v5958_v36, %v5964_v25  ;;  %v12654_v31 = vmax.f32 %v5960_v49, %v5966_v19  ;;  %v5965_v13 = vadd.f32 %v12408_v48, %v5888_v43  ;;  %v5890_v17 = vadd.f32 %v5715_v54, %v13293_v26  ;;  %8682 = vrot.lane.b32.xlu1 %v8681_v55, %s9251_s23  ;;  %v9138_v49 = vld [vmem:[%s13024_s6 + $0xb0] sm:$0xff]   ;;  %v9144_v25 = vld [vmem:[%s13024_s6 + $0x98] sm:$0xff]   ;;  %v9147_v43 = vld [vmem:[%s13024_s6 + $0xc8] sm:$0xff]  }
 0x5b6   : > { %v5892_v38 = vadd.f32 %v5829_v4, %v13294_v41  ;;  %v5717_v39 = vpop.f32.mrf.mxu0  ;;  %v5831_v0 = vpop.f32.mrf.mxu1  ;;  %v9145_v19 = vld [vmem:[%s13024_s6 + $0xd0] sm:$0xff]  }
 0x5b7   : > { %v12661_v29 = vmax.f32 %v5959_v24, %v5965_v13  ;;  %v5967_v56 = vadd.f32 %v12400_v61, %v5890_v17  ;;  %v5891_v2 = vadd.f32 %v5717_v39, %v13295_v60  ;;  %8687 = vrot.lane.b32.xlu0 %v8686_v10, %s9251_s23  ;;  %v9137_v61 = vld [vmem:[%s13024_s6 + $0xf0] sm:$0xff]   ;;  %v9148_v10 = vld [vmem:[%s13024_s6 + $0x88] sm:$0xff]   ;;  %v9149_v24 = vld [vmem:[%s13024_s6 + $0xc0] sm:$0xff]  }
 0x5b8   : > { %v5969_v11 = vadd.f32 %v12404_v28, %v5892_v38  ;;  %v9139_v28 = vld [vmem:[%s13024_s6 + $0xe8] sm:$0xff]   ;;  %8347 = vmatprep.subr.bf16.mxu1 %v9137_v61 }
 0x5b9   : > { %v12669_v59 = vmax.f32 %v5961_v42, %v5967_v56  ;;  %v5968_v55 = vadd.f32 %v12408_v48, %v5891_v2  ;;  %8348 = vmatpush3.bf16.msra.mxu1 %v9138_v49  ;;  %v9140_v48 = vld [vmem:[%s13024_s6 + $0xa8] sm:$0xff]   ;;  %v9153_v42 = vld [vmem:[%s13024_s6 + $0x178] sm:$0xff]  }
 0x5ba   : > { %v12672_v36 = vmax.f32 %v5963_v40, %v5969_v11  ;;  %8349 = vmatprep.subr.bf16.mxu1 %v9139_v28  ;;  %8367 = vmatprep.subr.bf16.mxu0 %v9153_v42 }
 0x5bb   : > { %v12683_v33 = vmax.f32 %v5962_v47, %v5968_v55 }
 0x5bd   : > { %8350 = vmatpush3.bf16.msra.mxu1 %v9140_v48 }
 0x5be   : > { %8351 = vmatprep.subr.bf16.mxu1 %v9141_v37 }
 0x5c1   : > { %8352 = vmatpush3.bf16.msra.mxu1 %v9142_v51 }
 0x5c2   : > { %8353 = vmatprep.subr.bf16.mxu1 %v9143_v27 }
 0x5c5   : > { %8354 = vmatpush3.bf16.msra.mxu1 %v9144_v25 }
 0x5c6   : > { %8355 = vmatprep.subr.bf16.mxu1 %v9145_v19 }
 0x5c9   : > { %8356 = vmatpush3.bf16.msra.mxu1 %v9146_v44 }
 0x5ca   : > { %8357 = vmatprep.subr.bf16.mxu1 %v9147_v43 }
 0x5cd   : > { %8358 = vmatpush3.bf16.msra.mxu1 %v9148_v10 }
 0x5ce   : > { %8359 = vmatprep.subr.bf16.mxu1 %v9149_v24 }
 0x5d1   : > { %8360 = vmatpush3.bf16.msra.mxu1 %v9150_v3 }
 0x5d2   : > { %8389 = vmatprep.subr.bf16.mxu1 %v9151_v58 }
 0x5fd   : > { %v8633_v57 = vpop.permute.xlu1 %8632 }
 0x5fe   : > { %v8635_v54 = vunpack.i.h.bf16 %v8633_v57  ;;  %v8634_v4 = vunpack.i.l.bf16 %v8633_v57 }
 0x5ff   : > { %v12718_v7 = vpop.permute.xlu0 %8637 }
 0x600   : > { %v6043_v13 = vsel %vm3389_vm8, %v8634_v4, %v8635_v54  ;;  %v8639_v26 = vunpack.i.l.bf16 %v12718_v7  ;;  %v8640_v41 = vunpack.i.h.bf16 %v12718_v7 }
 0x601   : > { %v8643_v17 = vpop.permute.xlu1 %8642  ;;  %v6053_v56 = vmax.f32 %v12456_v20, %v6043_v13 }
 0x602   : > { %v6044_v38 = vsel %vm3389_vm8, %v8635_v54, %v8639_v26  ;;  %v8645_v39 = vunpack.i.h.bf16 %v8643_v17  ;;  %v8644_v0 = vunpack.i.l.bf16 %v8643_v17 }
 0x603   : > { %v6054_v60 = vmax.f32 %v12464_v18, %v6044_v38  ;;  %v6059_v55 = vmax.f32 %v6053_v56, 0.0 }
 0x604   : > { %v6045_v2 = vsel %vm3389_vm8, %v8640_v41, %v8644_v0  ;;  %v6046_v40 = vsel %vm3389_vm8, %v8644_v0, %v8645_v39  ;;  %v6058_v41 = vmax.f32 %v12476_v35, %v8645_v39  ;;  %v6055_v35 = vmax.f32 %v12458_v50, %v8639_v26 }
 0x605   : > { %v6056_v11 = vmax.f32 %v12473_v21, %v6045_v2  ;;  %v6057_v47 = vmax.f32 %v12480_v32, %v6046_v40  ;;  %v6060_v61 = vmax.f32 %v6054_v60, 0.0 }
 0x607   : > { %v6062_v49 = vmax.f32 %v6056_v11, 0.0  ;;  %v6063_v28 = vmax.f32 %v6057_v47, 0.0 }
 0x609   : > { %v6065_v48 = vpack.c.bf16 %v6062_v49, %v6059_v55  ;;  %v6066_v37 = vpack.c.bf16 %v6063_v28, %v6060_v61 }
 0x60b   : > { %6218 = vrot.lane.b32.xlu1 %v6065_v48, %s9252_s19  ;;  %6220 = vrot.lane.b32.xlu0 %v6066_v37, %s9252_s19  ;;  %v6064_v37 = vmax.f32 %v6058_v41, 0.0 }
 0x60d   : > { %v8648_v20 = vpop.permute.xlu0 %8647 }
 0x60e   : > { %v8650_v18 = vunpack.i.h.bf16 %v8648_v20  ;;  %v8649_v51 = vunpack.i.l.bf16 %v8648_v20 }
 0x610   : > { %v6093_v27 = vsel %vm3389_vm8, %v8649_v51, %v8650_v18  ;;  %v6104_v21 = vmax.f32 %v12509_v30, %v8650_v18 }
 0x611   : > { %v8653_v25 = vpop.permute.xlu1 %8652  ;;  %v6103_v44 = vmax.f32 %v12518_v5, %v6093_v27 }
 0x612   : > { %v8655_v32 = vunpack.i.h.bf16 %v8653_v25  ;;  %v8654_v19 = vunpack.i.l.bf16 %v8653_v25  ;;  %v6110_v3 = vmax.f32 %v6104_v21, 0.0 }
 0x613   : > { %v6109_v54 = vmax.f32 %v6103_v44, 0.0 }
 0x614   : > { %v6107_v43 = vmax.f32 %v12533_v53, %v8655_v32  ;;  %v6095_v10 = vsel %vm3389_vm8, %v8654_v19, %v8655_v32 }
 0x615   : > { %v6106_v24 = vmax.f32 %v12538_v62, %v6095_v10 }
 0x616   : > { %v6113_v57 = vmax.f32 %v6107_v43, 0.0 }
 0x617   : > { %v6112_v4 = vmax.f32 %v6106_v24, 0.0 }
 0x618   : > { %v6116_v58 = vpack.c.bf16 %v6113_v57, %v6110_v3 }
 0x619   : > { %v6115_v13 = vpack.c.bf16 %v6112_v4, %v6109_v54 }
 0x61a   : > { %6235 = vrot.lane.b32.xlu0 %v6116_v58, %s9253_s30 }
 0x61b   : > { %6233 = vrot.lane.b32.xlu1 %v6115_v13, %s9253_s30 }
 0x61d   : > { %v8658_v30 = vpop.permute.xlu0 %8657 }
 0x61e   : > { %v8660_v17 = vunpack.i.h.bf16 %v8658_v30  ;;  %v8659_v5 = vunpack.i.l.bf16 %v8658_v30 }
 0x61f   : > { %v12748_v42 = vpop.permute.xlu1 %8662 }
 0x620   : > { %v6141_v53 = vsel %vm3389_vm8, %v8659_v5, %v8660_v17  ;;  %v8664_v62 = vunpack.i.l.bf16 %v12748_v42  ;;  %v8665_v0 = vunpack.i.h.bf16 %v12748_v42 }
 0x621   : > { %v8668_v38 = vpop.permute.xlu0 %8667  ;;  %v6151_v40 = vmax.f32 %v12573_v12, %v6141_v53  ;;  %v6061_v53 = vmax.f32 %v6055_v35, 0.0  ;;  %v8701_v35 = vpack.i.bf16 %v12672_v36, %v12654_v31 }
 0x622   : > { %v6142_v56 = vsel %vm3389_vm8, %v8660_v17, %v8664_v62  ;;  %v8670_v60 = vunpack.i.h.bf16 %v8668_v38  ;;  %v8669_v2 = vunpack.i.l.bf16 %v8668_v38 }
 0x623   : > { %v6152_v11 = vmax.f32 %v12581_v16, %v6142_v56  ;;  %v8673_v47 = vpop.permute.xlu1 %8672  ;;  %v6157_v16 = vmax.f32 %v6151_v40, 0.0  ;;  %v6067_v40 = vpack.c.bf16 %v6064_v37, %v6061_v53  ;;  %v9167_v37 = vld [vmem:[%s13024_s6 + $0x120] sm:$0xff]  }
 0x624   : > { %v6143_v55 = vsel %vm3389_vm8, %v8665_v0, %v8669_v2  ;;  %v6144_v61 = vsel %vm3389_vm8, %v8669_v2, %v8670_v60  ;;  %v8675_v28 = vunpack.i.h.bf16 %v8673_v47  ;;  %v8674_v20 = vunpack.i.l.bf16 %v8673_v47 }
 0x625   : > { %v6154_v39 = vmax.f32 %v12596_v6, %v6143_v55  ;;  %v6155_v49 = vmax.f32 %v12604_v63, %v6144_v61  ;;  %v8678_v48 = vpop.permute.xlu0 %8677  ;;  %v6158_v27 = vmax.f32 %v6152_v11, 0.0  ;;  %v6156_v11 = vmax.f32 %v12599_v34, %v8670_v60 }
 0x626   : > { %v8680_v12 = vunpack.i.h.bf16 %v8678_v48  ;;  %v8679_v18 = vunpack.i.l.bf16 %v8678_v48  ;;  %v6094_v21 = vsel %vm3389_vm8, %v8675_v28, %v8654_v19  ;;  %v6092_v50 = vsel %vm3389_vm8, %v8674_v20, %v8649_v51  ;;  %v9163_v28 = vld [vmem:[%s13024_s6 + $0x128] sm:$0xff]   ;;  %v9165_v48 = vld [vmem:[%s13024_s6 + $0x160] sm:$0xff]   ;;  %v9169_v20 = vld [vmem:[%s13024_s6 + $0x158] sm:$0xff]  }
 0x627   : > { %v6160_v25 = vmax.f32 %v6154_v39, 0.0  ;;  %v8683_v32 = vpop.permute.xlu1 %8682  ;;  %v6161_v44 = vmax.f32 %v6155_v49, 0.0  ;;  %v6105_v7 = vmax.f32 %v12530_v46, %v6094_v21  ;;  %v6102_v63 = vmax.f32 %v12507_v45, %v6092_v50  ;;  %v9161_v49 = vld [vmem:[%s13024_s6 + $0x168] sm:$0xff]   ;;  %v9181_v21 = vld [vmem:[%s13024_s6 + $0x140] sm:$0xff]  }
 0x628   : > { %v6009_v6 = vmax.f32 %v12438_v1, %v8680_v12  ;;  %v6006_v26 = vmax.f32 %v12422_v23, %v8679_v18  ;;  %v8685_v43 = vunpack.i.h.bf16 %v8683_v32  ;;  %v8684_v10 = vunpack.i.l.bf16 %v8683_v32  ;;  %v9182_v32 = vld [vmem:[%s13024_s6 + $0x100] sm:$0xff]  }
 0x629   : > { %v8688_v24 = vpop.permute.xlu0 %8687  ;;  %v6111_v3 = vmax.f32 %v6105_v7, 0.0  ;;  %v6108_v19 = vmax.f32 %v6102_v63, 0.0  ;;  %v6164_v45 = vpack.c.bf16 %v6161_v44, %v6158_v27  ;;  %v6163_v30 = vpack.c.bf16 %v6160_v25, %v6157_v16  ;;  %v9175_v16 = vld [vmem:[%s13024_s6 + $0x110] sm:$0xff]   ;;  %v9177_v27 = vld [vmem:[%s13024_s6 + $0x148] sm:$0xff]   ;;  %v9184_v44 = vld [vmem:[%s13024_s6 + $0x278] sm:$0xff]  }
 0x62a   : > { %v6015_v57 = vmax.f32 %v6009_v6, 0.0  ;;  %v8690_v54 = vunpack.i.h.bf16 %v8688_v24  ;;  %v8689_v4 = vunpack.i.l.bf16 %v8688_v24  ;;  %v6012_v58 = vmax.f32 %v6006_v26, 0.0  ;;  %v9179_v25 = vld [vmem:[%s13024_s6 + $0x108] sm:$0xff]   ;;  %v9152_v6 = vld [vmem:[%s13024_s6 + $0x1b8] sm:$0xff]  }
 0x62b   : > { %v5995_v13 = vsel %vm3389_vm8, %v8684_v10, %v8679_v18  ;;  %v5997_v46 = vsel %vm3389_vm8, %v8685_v43, %v8680_v12  ;;  %6246 = vrot.lane.b32.xlu0 %v6164_v45, %s9251_s23  ;;  %6244 = vrot.lane.b32.xlu1 %v6163_v30, %s9251_s23  ;;  %v6114_v47 = vpack.c.bf16 %v6111_v3, %v6108_v19  ;;  %v6162_v60 = vmax.f32 %v6156_v11, 0.0  ;;  %v9171_v12 = vld [vmem:[%s13024_s6 + $0x118] sm:$0xff]   ;;  %v9173_v18 = vld [vmem:[%s13024_s6 + $0x150] sm:$0xff]  }
 0x62c   : > { %v5996_v51 = vsel %vm3389_vm8, %v8690_v54, %v8685_v43  ;;  %v5994_v1 = vsel %vm3389_vm8, %v8689_v4, %v8684_v10  ;;  %v6005_v5 = vmax.f32 %v12428_v52, %v5995_v13  ;;  %v6008_v41 = vmax.f32 %v12440_v9, %v5997_v46  ;;  %v9155_v9 = vld [vmem:[%s13024_s6 + $0x138] sm:$0xff]   ;;  %v9154_v43 = vld [vmem:[%s13024_s6 + $0x1f0] sm:$0xff]   ;;  %v9158_v24 = vld [vmem:[%s13024_s6 + $0x1e8] sm:$0xff]  }
 0x62d   : > { %v6007_v23 = vmax.f32 %v12435_v14, %v5996_v51  ;;  %v6004_v17 = vmax.f32 %v12420_v22, %v5994_v1  ;;  %v6018_v38 = vpack.c.bf16 %v6015_v57, %v6012_v58  ;;  %v6153_v22 = vmax.f32 %v12575_v8, %v8664_v62  ;;  %v9157_v8 = vld [vmem:[%s13024_s6 + $0x170] sm:$0xff]   ;;  %v9160_v3 = vld [vmem:[%s13024_s6 + $0x1a8] sm:$0xff]   ;;  %v9162_v57 = vld [vmem:[%s13024_s6 + $0x1e0] sm:$0xff]  }
 0x62e   : > { %v6011_v2 = vmax.f32 %v6005_v5, 0.0  ;;  %v6014_v14 = vmax.f32 %v6008_v41, 0.0  ;;  %v8691_v61 = vpack.i.bf16 %v12661_v29, %v12652_v15  ;;  %v8696_v34 = vpack.i.bf16 %v12683_v33, %v12669_v59  ;;  %v9159_v62 = vld [vmem:[%s13024_s6 + $0x130] sm:$0xff]   ;;  %v9164_v54 = vld [vmem:[%s13024_s6 + $0x1a0] sm:$0xff]   ;;  %v9166_v4 = vld [vmem:[%s13024_s6 + $0x1d8] sm:$0xff]  }
 0x62f   : > { %v6013_v0 = vmax.f32 %v6007_v23, 0.0  ;;  %v6010_v56 = vmax.f32 %v6004_v17, 0.0  ;;  %6231 = vrot.lane.b32.xlu0 %v6114_v47, %s9253_s30  ;;  %6222 = vrot.lane.b32.xlu1 %v6067_v40, %s9252_s19  ;;  %v6159_v42 = vmax.f32 %v6153_v22, 0.0  ;;  %v9156_v10 = vld [vmem:[%s13024_s6 + $0x1b0] sm:$0xff]   ;;  %v9168_v19 = vld [vmem:[%s13024_s6 + $0x198] sm:$0xff]   ;;  %v13296_v17 = vmov 0   ;;  %s305_s19 = scalar_lea.vmem %s13026_s8, %s7332_s17 }
 0x630   : > { %v6017_v52 = vpack.c.bf16 %v6014_v14, %v6011_v2  ;;  %v9170_v58 = vld [vmem:[%s13024_s6 + $0x1d0] sm:$0xff]   ;;  %v9174_v46 = vld [vmem:[%s13024_s6 + $0x1c8] sm:$0xff]   ;;  %v9178_v1 = vld [vmem:[%s13024_s6 + $0x1c0] sm:$0xff]  }
 0x631   : > { %v6016_v55 = vpack.c.bf16 %v6013_v0, %v6010_v56  ;;  %v6165_v39 = vpack.c.bf16 %v6162_v60, %v6159_v42  ;;  %v9172_v13 = vld [vmem:[%s13024_s6 + $0x190] sm:$0xff]   ;;  %v9176_v51 = vld [vmem:[%s13024_s6 + $0x188] sm:$0xff]   ;;  %v9180_v45 = vld [vmem:[%s13024_s6 + $0x180] sm:$0xff]  }
 0x632   : > { %7031 = vmatprep.mubr.bf16.mxu0 %v6017_v52  ;;  %v9185_v11 = vld [vmem:[%s13024_s6 + $0x238] sm:$0xff]   ;;  %v9186_v47 = vld [vmem:[%s13024_s6 + $0x2b0] sm:$0xff]   ;;  %v9189_v60 = vld [vmem:[%s13024_s6 + $0x2a8] sm:$0xff]  }
 0x633   : > { %7032 = vmatmul.mubr.bf16.vlgmr.msra.gmra.mxu0 %v6016_v55  ;;  %8692 = vrot.lane.b32.xlu1 %v8691_v61, %s9251_s23  ;;  %v9187_v22 = vld [vmem:[%s13024_s6 + $0x270] sm:$0xff]  }
 0x634   : > { %8697 = vrot.lane.b32.xlu0 %v8696_v34, %s9251_s23  ;;  %8368 = vmatpush3.bf16.msra.mxu0 %v9155_v9  ;;  %v9188_v34 = vld [vmem:[%s13024_s6 + $0x230] sm:$0xff]  }
 0x635   : > { %8369 = vmatprep.subr.bf16.mxu0 %v9157_v8 }
 0x637   : > { %8702 = vrot.lane.b32.xlu1 %v8701_v35, %s9251_s23 }
 0x638   : > { %6248 = vrot.lane.b32.xlu0 %v6165_v39, %s9251_s23  ;;  %8370 = vmatpush3.bf16.msra.mxu0 %v9159_v62  ;;  %v9190_v39 = vld [vmem:[%s13024_s6 + $0x268] sm:$0xff]  }
 0x639   : > { %8371 = vmatprep.subr.bf16.mxu0 %v9161_v49 }
 0x63c   : > { %8372 = vmatpush3.bf16.msra.mxu0 %v9163_v28 }
 0x63d   : > { %8373 = vmatprep.subr.bf16.mxu0 %v9165_v48 }
 0x640   : > { %8374 = vmatpush3.bf16.msra.mxu0 %v9167_v37  ;;  %v9191_v37 = vld [vmem:[%s13024_s6 + $0x228] sm:$0xff]  }
 0x641   : > { %8375 = vmatprep.subr.bf16.mxu0 %v9169_v20  ;;  %v9192_v20 = vld [vmem:[%s13024_s6 + $0x2a0] sm:$0xff]  }
 0x644   : > { %8376 = vmatpush3.bf16.msra.mxu0 %v9171_v12 }
 0x645   : > { %8377 = vmatprep.subr.bf16.mxu0 %v9173_v18 }
 0x648   : > { %8378 = vmatpush3.bf16.msra.mxu0 %v9175_v16 }
 0x649   : > { %8379 = vmatprep.subr.bf16.mxu0 %v9177_v27 }
 0x64c   : > { %8380 = vmatpush3.bf16.msra.mxu0 %v9179_v25  ;;  %v9193_v25 = vld [vmem:[%s13024_s6 + $0x260] sm:$0xff]  }
 0x64d   : > { %8381 = vmatprep.subr.bf16.mxu0 %v9181_v21 }
 0x650   : > { %8382 = vmatpush3.bf16.msra.mxu0 %v9182_v32 }
 0x651   : > { %8411 = vmatprep.subr.bf16.mxu0 %v9184_v44 }
 0x67d   : > { %v6219_v7 = vpop.permute.xlu1 %6218  ;;  %v6221_v50 = vpop.permute.xlu0 %6220 }
 0x67e   : > { %v6258_v63 = vsel %vm6224_vm10, %v6018_v38, %v6219_v7  ;;  %v6225_v26 = vsel %vm6224_vm10, %v6219_v7, %v6221_v50  ;;  %v9183_v38 = vld [vmem:[%s13024_s6 + $0x2b8] sm:$0xff]  }
 0x67f   : > { %7072 = vmatprep.mubr.bf16.mxu1 %v6225_v26  ;;  %v9197_v26 = vld [vmem:[%s13024_s6 + $0x218] sm:$0xff]  }
 0x680   : > { %7073 = vmatmul.mubr.bf16.vlgmr.msra.gmra.mxu1 %v6258_v63 }
 0x681   : > { %8390 = vmatpush3.bf16.msra.mxu1 %v9152_v6 }
 0x682   : > { %8391 = vmatprep.subr.bf16.mxu1 %v9154_v43  ;;  %v9198_v43 = vld [vmem:[%s13024_s6 + $0x290] sm:$0xff]  }
 0x685   : > { %8392 = vmatpush3.bf16.msra.mxu1 %v9156_v10  ;;  %v9199_v10 = vld [vmem:[%s13024_s6 + $0x250] sm:$0xff]  }
 0x686   : > { %8393 = vmatprep.subr.bf16.mxu1 %v9158_v24  ;;  %v9200_v24 = vld [vmem:[%s13024_s6 + $0x210] sm:$0xff]  }
 0x689   : > { %8394 = vmatpush3.bf16.msra.mxu1 %v9160_v3  ;;  %v9201_v3 = vld [vmem:[%s13024_s6 + $0x288] sm:$0xff]  }
 0x68a   : > { %8395 = vmatprep.subr.bf16.mxu1 %v9162_v57  ;;  %v9202_v57 = vld [vmem:[%s13024_s6 + $0x248] sm:$0xff]  }
 0x68c   : > { %v6236_v30 = vpop.permute.xlu0 %6235 }
 0x68d   : > { %8396 = vmatpush3.bf16.msra.mxu1 %v9164_v54  ;;  %v6234_v23 = vpop.permute.xlu1 %6233  ;;  %v9203_v54 = vld [vmem:[%s13024_s6 + $0x208] sm:$0xff]  }
 0x68e   : > { %8397 = vmatprep.subr.bf16.mxu1 %v9166_v4  ;;  %v6239_v5 = vsel %vm6237_vm11, %v6234_v23, %v6236_v30  ;;  %v9204_v4 = vld [vmem:[%s13024_s6 + $0x280] sm:$0xff]  }
 0x691   : > { %8398 = vmatpush3.bf16.msra.mxu1 %v9168_v19  ;;  %v9205_v19 = vld [vmem:[%s13024_s6 + $0x240] sm:$0xff]  }
 0x692   : > { %8399 = vmatprep.subr.bf16.mxu1 %v9170_v58 }
 0x695   : > { %8400 = vmatpush3.bf16.msra.mxu1 %v9172_v13 }
 0x696   : > { %8401 = vmatprep.subr.bf16.mxu1 %v9174_v46  ;;  %v9206_v46 = vld [vmem:[%s13024_s6 + $0x200] sm:$0xff]  }
 0x699   : > { %8402 = vmatpush3.bf16.msra.mxu1 %v9176_v51  ;;  %v9207_v51 = vld [vmem:[%s13024_s6 + $0x2c8] sm:$0xff]  }
 0x69a   : > { %8403 = vmatprep.subr.bf16.mxu1 %v9178_v1 }
 0x69d   : > { %8404 = vmatpush3.bf16.msra.mxu1 %v9180_v45  ;;  %v12895_v53 = vpop.permute.xlu0 %6246  ;;  %v6245_v41 = vpop.permute.xlu1 %6244 }
 0x69e   : > { %7204 = vmatprep.subr.bf16.mxu1 %v13296_v17  ;;  %v6267_v0 = vsel %vm3389_vm8, %v6239_v5, %v6245_v41  ;;  %v6251_v56 = vsel %vm3389_vm8, %v6245_v41, %v12895_v53 }
 0x69f   : > { %7154 = vmatprep.mubr.bf16.mxu1 %v6251_v56 }
 0x6a0   : > { %7155 = vmatmul.mubr.bf16.vlgmr.msra.gmra.mxu1 %v6267_v0 }
 0x6a1   : > { %7205 = vmatpush1.bf16.msra.mxu1 %v9183_v38  ;;  %v6232_v2 = vpop.permute.xlu0 %6231  ;;  %v6223_v40 = vpop.permute.xlu1 %6222 }
 0x6a2   : > { %v6226_v14 = vsel %vm6224_vm10, %v6221_v50, %v6223_v40  ;;  %v6238_v55 = vsel %vm6237_vm11, %v6232_v2, %v6234_v23  ;;  %7206 = vmatprep.subr.bf16.mxu1 %v13296_v17  ;;  %v9195_v50 = vld [vmem:[%s13024_s6 + $0x298] sm:$0xff]   ;;  %v9208_v23 = vld [vmem:[%s13024_s6 + $0x2c0] sm:$0xff]  }
 0x6a3   : > { %v6263_v52 = vsel %vm6237_vm11, %v6226_v14, %v6232_v2  ;;  %7113 = vmatprep.mubr.bf16.mxu0 %v6238_v55 }
 0x6a4   : > { %7114 = vmatmul.mubr.bf16.vlgmr.msra.gmra.mxu0 %v6263_v52 }
 0x6a5   : > { %8412 = vmatpush3.bf16.msra.mxu0 %v9185_v11  ;;  %7207 = vmatpush1.bf16.msra.mxu1 %v9186_v47  ;;  %v12916_v9 = vpop.permute.xlu1 %8692 }
 0x6a6   : > { %v12918_v61 = vpop.permute.xlu0 %8697  ;;  %v8695_v8 = vunpack.i.h.bf16 %v12916_v9  ;;  %v8694_v42 = vunpack.i.l.bf16 %v12916_v9  ;;  %8413 = vmatprep.subr.bf16.mxu0 %v9187_v22  ;;  %7208 = vmatprep.subr.bf16.mxu1 %v13296_v17 }
 0x6a7   : > { %v8700_v62 = vunpack.i.h.bf16 %v12918_v61  ;;  %v8699_v35 = vunpack.i.l.bf16 %v12918_v61 }
 0x6a8   : > { %v6190_v49 = vsel %vm3389_vm8, %v8694_v42, %v8695_v8 }
 0x6a9   : > { %v6192_v28 = vsel %vm3389_vm8, %v8699_v35, %v8700_v62  ;;  %8414 = vmatpush3.bf16.msra.mxu0 %v9188_v34  ;;  %7209 = vmatpush1.bf16.msra.mxu1 %v9189_v60  ;;  %v8703_v48 = vpop.permute.xlu1 %8702  ;;  %v6200_v12 = vmax.f32 %v12652_v15, %v6190_v49 }
 0x6aa   : > { %v6203_v18 = vmax.f32 %v12669_v59, %v6192_v28  ;;  %v8705_v16 = vunpack.i.h.bf16 %v8703_v48  ;;  %v8704_v27 = vunpack.i.l.bf16 %v8703_v48  ;;  %8415 = vmatprep.subr.bf16.mxu0 %v9190_v39  ;;  %7210 = vmatprep.subr.bf16.mxu1 %v13296_v17  ;;  %v9194_v59 = vld [vmem:[%s13024_s6 + $0x220] sm:$0xff]   ;;  %v6249_v30 = vpop.permute.xlu0 %6248 }
 0x6ab   : > { %v6206_v21 = vmax.f32 %v6200_v12, 0.0  ;;  %v6252_v38 = vsel %vm3389_vm8, %v12895_v53, %v6249_v30 }
 0x6ac   : > { %v6209_v32 = vmax.f32 %v6203_v18, 0.0  ;;  %v6205_v44 = vmax.f32 %v12672_v36, %v8705_v16  ;;  %v6202_v7 = vmax.f32 %v12654_v31, %v8704_v27  ;;  %v9196_v31 = vld [vmem:[%s13024_s6 + $0x258] sm:$0xff]   ;;  %v6191_v58 = vsel %vm3389_vm8, %v8695_v8, %v8704_v27 }
 0x6ad   : > { %8416 = vmatpush3.bf16.msra.mxu0 %v9191_v37  ;;  %7211 = vmatpush1.bf16.msra.mxu1 %v9192_v20  ;;  %v6193_v13 = vsel %vm3389_vm8, %v8700_v62, %v8705_v16  ;;  %v6201_v1 = vmax.f32 %v12661_v29, %v6191_v58 }
 0x6ae   : > { %v6212_v15 = vpack.c.bf16 %v6209_v32, %v6206_v21  ;;  %v6211_v6 = vmax.f32 %v6205_v44, 0.0  ;;  %v6208_v63 = vmax.f32 %v6202_v7, 0.0  ;;  %8417 = vmatprep.subr.bf16.mxu0 %v9193_v25  ;;  %7212 = vmatprep.subr.bf16.mxu1 %v13296_v17  ;;  %v6204_v45 = vmax.f32 %v12683_v33, %v6193_v13 }
 0x6af   : > { %v6207_v5 = vmax.f32 %v6201_v1, 0.0 }
 0x6b0   : > { %7195 = vmatprep.mubr.bf16.mxu0 %v6212_v15  ;;  %v6214_v36 = vpack.c.bf16 %v6211_v6, %v6208_v63  ;;  %v6210_v41 = vmax.f32 %v6204_v45, 0.0 }
 0x6b1   : > { %8418 = vmatpush3.bf16.msra.mxu0 %v9194_v59  ;;  %7213 = vmatpush1.bf16.msra.mxu1 %v9195_v50 }
 0x6b2   : > { %8320 = vmatprep.mubr.msk.bf16.mxu1 %vm6224_vm10, %v6214_v36  ;;  %8419 = vmatprep.subr.bf16.mxu0 %v9196_v31  ;;  %v6213_v29 = vpack.c.bf16 %v6210_v41, %v6207_v5 }
 0x6b3   : > { %7214 = vmatprep.subr.bf16.mxu1 %v13296_v17 }
 0x6b5   : > { %8420 = vmatpush3.bf16.msra.mxu0 %v9197_v26  ;;  %7215 = vmatpush1.bf16.msra.mxu1 %v9198_v43 }
 0x6b6   : > { %8421 = vmatprep.subr.bf16.mxu0 %v9199_v10  ;;  %7216 = vmatprep.subr.bf16.mxu1 %v13296_v17 }
 0x6b9   : > { %8422 = vmatpush3.bf16.msra.mxu0 %v9200_v24  ;;  %7217 = vmatpush1.bf16.msra.mxu1 %v9201_v3 }
 0x6ba   : > { %8423 = vmatprep.subr.bf16.mxu0 %v9202_v57  ;;  %7218 = vmatprep.subr.bf16.mxu1 %v13296_v17 }
 0x6bd   : > { %8424 = vmatpush3.bf16.msra.mxu0 %v9203_v54  ;;  %7219 = vmatpush1.bf16.msra.mxu1 %v9204_v4 }
 0x6be   : > { %8425 = vmatprep.subr.bf16.mxu0 %v9205_v19  ;;  %7232 = vmatprep.subr.bf16.mxu1 %v13296_v17 }
 0x6c1   : > { %8426 = vmatpush3.bf16.msra.mxu0 %v9206_v46  ;;  %7233 = vmatpush2.bf16.msra.mxu1 %v9207_v51 }
 0x6c2   : > { %7234 = vmatprep.subr.bf16.mxu1 %v13296_v17  ;;  %v8229_v17 = vld [vmem:[%s13025_s7] ss:$0 sm:$0xff] }
 0x6c4   : > { %7196 = vmatmul.mubr.bf16.vlgmr.msra.gmra.mxu0 %v6252_v38 }
 0x6c5   : > { %7235 = vmatpush2.bf16.msra.mxu1 %v9208_v23 }
 0x6c8   : > { %7237 = vmatmul.mubr.bf16.vlgmr.msra.gmra.mxu1 %v6213_v29 }
 0x6f3   : > { %v8339_v33 = vpop.f32.mrf.mxu0 }
 0x6f5   : > { %v8340_v0 = vpop.f32.mrf.mxu0 }
 0x6f6   : > { %v8341_v9 = vadd.f32 %v8340_v0, %v8339_v33 }
 0x6f7   : > { %v8342_v2 = vpop.f32.mrf.mxu0 }
 0x6f8   : > { %v7034_v60 = vadd.f32 %v8341_v9, %v8229_v17 }
 0x6f9   : > { %v8343_v11 = vpop.f32.mrf.mxu0 }
 0x6fa   : > { %v8344_v8 = vadd.f32 %v8343_v11, %v8342_v2 }
 0x6fc   : > { %v7037_v28 = vadd.f32 %v8344_v8, %v8229_v17 }
 0x740   : > { %v8361_v56 = vpop.f32.mrf.mxu1 }
 0x742   : > { %v8362_v40 = vpop.f32.mrf.mxu1 }
 0x743   : > { %v8363_v61 = vadd.f32 %v8362_v40, %v8361_v56 }
 0x744   : > { %v8364_v47 = vpop.f32.mrf.mxu1 }
 0x745   : > { %v7075_v35 = vadd.f32 %v8363_v61, %v7034_v60 }
 0x746   : > { %v8365_v55 = vpop.f32.mrf.mxu1 }
 0x747   : > { %v8366_v39 = vadd.f32 %v8365_v55, %v8364_v47 }
 0x749   : > { %v7078_v12 = vadd.f32 %v8366_v39, %v7037_v28 }
 0x760   : > { %v8405_v52 = vpop.f32.mrf.mxu1 }
 0x762   : > { %v8406_v34 = vpop.f32.mrf.mxu1 }
 0x763   : > { %v8407_v18 = vadd.f32 %v8406_v34, %v8405_v52 }
 0x764   : > { %v8383_v14 = vpop.f32.mrf.mxu0  ;;  %v8408_v49 = vpop.f32.mrf.mxu1 }
 0x766   : > { %v8384_v22 = vpop.f32.mrf.mxu0  ;;  %v8409_v16 = vpop.f32.mrf.mxu1 }
 0x767   : > { %v8385_v42 = vadd.f32 %v8384_v22, %v8383_v14  ;;  %v8410_v15 = vadd.f32 %v8409_v16, %v8408_v49 }
 0x768   : > { %v8386_v53 = vpop.f32.mrf.mxu0 }
 0x769   : > { %v7116_v48 = vadd.f32 %v8385_v42, %v7075_v35 }
 0x76a   : > { %v8387_v62 = vpop.f32.mrf.mxu0 }
 0x76b   : > { %v8388_v37 = vadd.f32 %v8387_v62, %v8386_v53  ;;  %v7157_v32 = vadd.f32 %v8407_v18, %v7116_v48 }
 0x76d   : > { %v7119_v25 = vadd.f32 %v8388_v37, %v7078_v12 }
 0x76f   : > { %v7160_v36 = vadd.f32 %v8410_v15, %v7119_v25 }
 0x784   : > { %v8427_v20 = vpop.f32.mrf.mxu0 }
 0x786   : > { %v8428_v27 = vpop.f32.mrf.mxu0 }
 0x787   : > { %v8429_v21 = vadd.f32 %v8428_v27, %v8427_v20 }
 0x788   : > { %v8430_v44 = vpop.f32.mrf.mxu0  ;;  %v7238_v7 = vpop.f32.mrf.mxu1 }
 0x789   : > { %v7198_v59 = vadd.f32 %v8429_v21, %v7157_v32 }
 0x78a   : > { %v8431_v50 = vpop.f32.mrf.mxu0  ;;  %v7240_v6 = vpop.f32.mrf.mxu1 }
 0x78b   : > { %v7239_v63 = vadd.f32 %v7238_v7, %v7198_v59  ;;  %v8432_v31 = vadd.f32 %v8431_v50, %v8430_v44 }
 0x78c   : > { %v7241_v26 = vpop.f32.mrf.mxu1 }
 0x78d   : > { %v7201_v43 = vadd.f32 %v8432_v31, %v7160_v36  ;;  %7245 = vmax.xlane.f32.xlu1 %v7239_v63 }
 0x78e   : > { %v7243_v10 = vpop.f32.mrf.mxu1 }
 0x78f   : > { %v7242_v24 = vadd.f32 %v7241_v26, %v7201_v43 }
 0x791   : > { %7247 = vmax.xlane.f32.xlu0 %v7242_v24 }
 0x816   : > { %v7246_v3 = vpop.xlane.xlu1 %7245 }
 0x817   : > { %v7249_v57 = vsub.f32 %v7239_v63, %v7246_v3 }
 0x819   : > { %v7251_v54 = vmul.f32 1.442695, %v7249_v57 }
 0x81a   : > { %v7248_v4 = vpop.xlane.xlu0 %7247 }
 0x81b   : > { %9209 = vpow2.f32 %v7251_v54  ;;  %v7250_v19 = vsub.f32 %v7242_v24, %v7248_v4 }
 0x81d   : > { %v7253_v58 = vmul.f32 1.442695, %v7250_v19 }
 0x81f   : > { %9211 = vpow2.f32 %v7253_v58 }
 0x828   : > { %v9210_v13 = vpop.eup %9209 }
 0x829   : > { %7255 = vadd.xlane.f32.xlu0 %v9210_v13 }
 0x82c   : > { %v9212_v46 = vpop.eup %9211 }
 0x82d   : > { %7257 = vadd.xlane.f32.xlu1 %v9212_v46 }
 0x8b2   : > { %v7256_v51 = vpop.xlane.xlu0 %7255 }
 0x8b3   : > { %9213 = vlog2.f32 %v7256_v51 }
 0x8b6   : > { %v7258_v1 = vpop.xlane.xlu1 %7257 }
 0x8b7   : > { %9215 = vlog2.f32 %v7258_v1 }
 0x8c0   : > { %v9214_v45 = vpop.eup %9213 }
 0x8c1   : > { %v7260_v30 = vmul.f32 0.6931472, %v9214_v45 }
 0x8c3   : > { %v7263_v23 = vadd.f32 %v7260_v30, %v7246_v3 }
 0x8c4   : > { %v9216_v5 = vpop.eup %9215 }
 0x8c5   : > { %v7265_v41 = vsub.f32 %v7239_v63, %v7263_v23  ;;  %v7262_v38 = vmul.f32 0.6931472, %v9216_v5 }
 0x8c7   : > { %7267 = vst [vmem:[%s305_s19] sm:$0xff] %v7265_v41  ;;  %v7264_v29 = vadd.f32 %v7262_v38, %v7248_v4 }
 0x8c9   : > { %v7266_v33 = vsub.f32 %v7242_v24, %v7264_v29 }
 0x8cb   : > { %7268 = vst [vmem:[%s305_s19 + $0x8] sm:$0xff] %v7266_v33 }
 0x8cc PF: > { %s18_s27 = sadd.s32 1, %s9243_s27  }
 0x8cd   : > { %p15_p5 = scmp.ge.s32.totalorder %s18_s27, 4  }
 0x8cf   :  { %17 = sbr.rel (!%p15_p5) target bundleno = 1 (0x1), region = 86 }

</bundles_post_ra>
